<compile_context>
chip_gen: v5e
topology: v5e:2x2
jax: 0.10.0
libtpu: 0.0.40
codegen_flags: <defaults>
</compile_context>

<pallas_src>
from functools import partial

import jax
import jax.numpy as jnp
from jax import lax
from jax.experimental import pallas as pl
from jax.experimental.pallas import tpu as pltpu


# ----------------------------------------------------------------------------
# Small helpers
# ----------------------------------------------------------------------------

_BN_EPS = 1e-5
_LANE = 128


def _round_up(v, m):
    return ((v + m - 1) // m) * m


def _choose_tm(m_rows):
    """M-tile: sublane aligned, multiple of 256 when big, <=1024 rows,
    >=2 grid steps once m>256 (keeps both v7x TensorCores busy)."""
    if m_rows <= 256:
        return _round_up(m_rows, 8)
    return min(1024, _round_up(pl.cdiv(m_rows, 2), 256))


# ----------------------------------------------------------------------------
# Pallas kernels (bf16 MXU operands, f32 accumulation, f32 epilogue)
# ----------------------------------------------------------------------------

def _matmul_bn_relu_kernel(x_ref, w_ref, s_ref, b_ref, o_ref):
    # o = relu((x @ w) * scale + bias)   (BN folded into scale/bias), x is bf16.
    acc = jnp.dot(x_ref[...], w_ref[...], preferred_element_type=jnp.float32)
    o_ref[...] = jnp.maximum(acc * s_ref[...] + b_ref[...], 0.0).astype(o_ref.dtype)


def _scale0_shortcut_kernel(x_ref, w0_ref, s0_ref, b0_ref,
                            wsc_ref, ssc_ref, bsc_ref, y0_ref, ysc_ref):
    # scale0 and shortcut share a single (bf16) read of x: two matmuls, two outputs.
    xb = x_ref[...]
    a0 = jnp.dot(xb, w0_ref[...], preferred_element_type=jnp.float32)
    y0_ref[...] = jnp.maximum(a0 * s0_ref[...] + b0_ref[...], 0.0).astype(y0_ref.dtype)
    a1 = jnp.dot(xb, wsc_ref[...], preferred_element_type=jnp.float32)
    ysc_ref[...] = jnp.maximum(a1 * ssc_ref[...] + bsc_ref[...], 0.0).astype(ysc_ref.dtype)


def _process3x3_kernel(a_ref, b_ref, w_ref, s_ref, bias_ref, o_ref, xpad_ref):
    """out = relu(BN(conv3x3(a + b, pad=1))) for one image.

    a may be (1,1,1,C) (global branch) -> broadcast add; b is (1,H,W,C).
    xpad scratch (bf16) layout: xpad[r, x, dx*C:(dx+1)*C] = padded_sum[r, x+dx],
    so each of the 3 dy taps is a free leading-axis slice + one K=3C matmul.
    """
    _, h, w, c = b_ref.shape
    cout = o_ref.shape[3]
    dt = xpad_ref.dtype

    # Zero only the 1-pixel border (4 thin stores).  The interior is fully
    # rewritten below, so this is grid-step independent (safe with "parallel").
    xpad_ref[0:1] = jnp.zeros((1, w, 3 * c), dt)
    xpad_ref[h + 1:h + 2] = jnp.zeros((1, w, 3 * c), dt)
    xpad_ref[1:h + 1, 0:1, 0:c] = jnp.zeros((h, 1, c), dt)
    xpad_ref[1:h + 1, w - 1:w, 2 * c:3 * c] = jnp.zeros((h, 1, c), dt)

    # Residual add once, rounded to bf16 once (a broadcasts if (1,1,C)).
    xsum = (a_ref[0].astype(jnp.float32) + b_ref[0].astype(jnp.float32)).astype(dt)
    xpad_ref[1:h + 1, 1:w, 0:c] = xsum[:, 0:w - 1, :]          # dx = 0 tap
    xpad_ref[1:h + 1, :, c:2 * c] = xsum                        # dx = 1 tap
    xpad_ref[1:h + 1, 0:w - 1, 2 * c:3 * c] = xsum[:, 1:w, :]   # dx = 2 tap

    # Row-block loop keeps the f32 accumulator to ~128 rows (no vreg spills).
    th = max(1, min(h, max(1, 128 // w)))
    for rb in range(0, h, th):
        rh = min(th, h - rb)
        acc = jnp.zeros((rh * w, cout), jnp.float32)
        for dy in range(3):
            patch = xpad_ref[rb + dy:rb + dy + rh]              # (rh, w, 3C) view
            acc = acc + jnp.dot(patch.reshape(rh * w, 3 * c), w_ref[dy],
                                preferred_element_type=jnp.float32)
        y = jnp.maximum(acc * s_ref[...] + bias_ref[...], 0.0)
        o_ref[0, rb:rb + rh, :, :] = y.reshape(rh, w, cout).astype(o_ref.dtype)


def _compress_shortcut_kernel(y0_ref, y1_ref, y2_ref, y3_ref, y4_ref, ysc_ref,
                              w_ref, s_ref, b_ref, o_ref):
    # out = relu(BN(concat(y0..y4) @ W)) + shortcut, with no HBM concat.
    # Pairs of branches are packed in VMEM to K=2*ci (fills the 256-deep MXU
    # on v6e/v7x; on v5e K=128 pieces were already optimal but this is neutral).
    ci = y0_ref.shape[1]
    y01 = jnp.concatenate([y0_ref[...], y1_ref[...]], axis=-1)
    acc = jnp.dot(y01, w_ref[0:2 * ci], preferred_element_type=jnp.float32)
    y23 = jnp.concatenate([y2_ref[...], y3_ref[...]], axis=-1)
    acc = acc + jnp.dot(y23, w_ref[2 * ci:4 * ci], preferred_element_type=jnp.float32)
    acc = acc + jnp.dot(y4_ref[...], w_ref[4 * ci:5 * ci],
                        preferred_element_type=jnp.float32)
    y = jnp.maximum(acc * s_ref[...] + b_ref[...], 0.0)
    o_ref[...] = (y + ysc_ref[...].astype(jnp.float32)).astype(o_ref.dtype)


# ----------------------------------------------------------------------------
# Pallas wrappers
# ----------------------------------------------------------------------------

def fused_scale0_shortcut(x2d, p0, psc):
    m, k = x2d.shape
    c0 = p0["w"].shape[1]
    csc = psc["w"].shape[1]
    tm = _choose_tm(m)
    return pl.pallas_call(
        _scale0_shortcut_kernel,
        out_shape=(jax.ShapeDtypeStruct((m, c0), jnp.bfloat16),
                   jax.ShapeDtypeStruct((m, csc), jnp.bfloat16)),
        grid=(pl.cdiv(m, tm),),
        in_specs=[
            pl.BlockSpec((tm, k), lambda i: (i, 0)),
            pl.BlockSpec((k, c0), lambda i: (0, 0)),
            pl.BlockSpec((1, c0), lambda i: (0, 0)),
            pl.BlockSpec((1, c0), lambda i: (0, 0)),
            pl.BlockSpec((k, csc), lambda i: (0, 0)),
            pl.BlockSpec((1, csc), lambda i: (0, 0)),
            pl.BlockSpec((1, csc), lambda i: (0, 0)),
        ],
        out_specs=(pl.BlockSpec((tm, c0), lambda i: (i, 0)),
                   pl.BlockSpec((tm, csc), lambda i: (i, 0))),
        compiler_params=pltpu.CompilerParams(dimension_semantics=("parallel",)),
    )(x2d, p0["w"], p0["scale"], p0["bias"], psc["w"], psc["scale"], psc["bias"])


def conv1x1_bn_relu(x_nhwc, p):
    n, h, w, c = x_nhwc.shape
    cout = p["w"].shape[1]
    m = n * h * w
    x2d = x_nhwc.reshape(m, c).astype(jnp.bfloat16)   # bf16 before the pallas_call
    tm = _choose_tm(m)
    out = pl.pallas_call(
        _matmul_bn_relu_kernel,
        out_shape=jax.ShapeDtypeStruct((m, cout), jnp.bfloat16),
        grid=(pl.cdiv(m, tm),),
        in_specs=[
            pl.BlockSpec((tm, c), lambda i: (i, 0)),
            pl.BlockSpec((c, cout), lambda i: (0, 0)),
            pl.BlockSpec((1, cout), lambda i: (0, 0)),
            pl.BlockSpec((1, cout), lambda i: (0, 0)),
        ],
        out_specs=pl.BlockSpec((tm, cout), lambda i: (i, 0)),
        compiler_params=pltpu.CompilerParams(dimension_semantics=("parallel",)),
    )(x2d, p["w"], p["scale"], p["bias"])
    return out.reshape(n, h, w, cout)


def conv3x3_bn_relu_add(a_nhwc, b_nhwc, p):
    """relu(BN(conv3x3(a + b, pad=1))); a may be (N,1,1,C) for broadcast add."""
    # TODO(synk): for very large feature maps, tile the H axis on the grid with
    #             a 1-row halo for pipelining; at DAPPM's 1/64-scale maps the
    #             per-image block already fits comfortably in VMEM.
    n, h, w, c = b_nhwc.shape
    ah, aw = a_nhwc.shape[1], a_nhwc.shape[2]
    cout = p["w"].shape[2]
    return pl.pallas_call(
        _process3x3_kernel,
        out_shape=jax.ShapeDtypeStruct((n, h, w, cout), jnp.bfloat16),
        grid=(n,),
        in_specs=[
            pl.BlockSpec((1, ah, aw, c), lambda b: (b, 0, 0, 0)),
            pl.BlockSpec((1, h, w, c), lambda b: (b, 0, 0, 0)),
            pl.BlockSpec((3, 3 * c, cout), lambda b: (0, 0, 0)),
            pl.BlockSpec((1, cout), lambda b: (0, 0)),
            pl.BlockSpec((1, cout), lambda b: (0, 0)),
        ],
        out_specs=pl.BlockSpec((1, h, w, cout), lambda b: (b, 0, 0, 0)),
        scratch_shapes=[pltpu.VMEM((h + 2, w, 3 * c), jnp.bfloat16)],
        compiler_params=pltpu.CompilerParams(
            dimension_semantics=("parallel",),
            vmem_limit_bytes=64 * 1024 * 1024),
        cost_estimate=pl.CostEstimate(
            flops=2 * n * h * w * 9 * c * cout,
            transcendentals=0,
            bytes_accessed=2 * (n * (ah * aw + h * w) * c
                                + n * h * w * cout + 9 * c * cout)),
    )(a_nhwc, b_nhwc, p["w"], p["scale"], p["bias"])


def fused_compression_shortcut(ys, ysc2d, p):
    m, ci = ys[0].shape
    cout = p["w"].shape[1]
    tm = _choose_tm(m)
    y_spec = pl.BlockSpec((tm, ci), lambda i: (i, 0))
    return pl.pallas_call(
        _compress_shortcut_kernel,
        out_shape=jax.ShapeDtypeStruct((m, cout), jnp.bfloat16),
        grid=(pl.cdiv(m, tm),),
        in_specs=[y_spec, y_spec, y_spec, y_spec, y_spec,
                  pl.BlockSpec((tm, cout), lambda i: (i, 0)),
                  pl.BlockSpec((5 * ci, cout), lambda i: (0, 0)),
                  pl.BlockSpec((1, cout), lambda i: (0, 0)),
                  pl.BlockSpec((1, cout), lambda i: (0, 0))],
        out_specs=pl.BlockSpec((tm, cout), lambda i: (i, 0)),
        compiler_params=pltpu.CompilerParams(dimension_semantics=("parallel",)),
        cost_estimate=pl.CostEstimate(
            flops=2 * m * 5 * ci * cout,
            transcendentals=0,
            bytes_accessed=2 * (m * (5 * ci + 2 * cout) + 5 * ci * cout)),
    )(*ys, ysc2d, p["w"], p["scale"], p["bias"])


# ----------------------------------------------------------------------------
# XLA glue (pooling / bilinear resize) — matches the PyTorch module semantics
# TODO(synk): avg-pool and bilinear upsample stay as XLA ops (windowed
#             reductions / data-dependent gathers); a PrefetchScalarGridSpec
#             index-table fusion into the process kernel is a future step.
# ----------------------------------------------------------------------------

def avg_pool_nhwc(x, k, s, p):
    """AvgPool2d(kernel=k, stride=s, padding=p, count_include_pad=False)."""
    pad = [(0, 0), (p, p), (p, p), (0, 0)]
    summed = lax.reduce_window(x, 0.0, lax.add, (1, k, k, 1), (1, s, s, 1), pad)
    ones = jnp.ones((1, x.shape[1], x.shape[2], 1), x.dtype)
    count = lax.reduce_window(ones, 0.0, lax.add, (1, k, k, 1), (1, s, s, 1), pad)
    return summed / count


def bilinear_resize_nhwc(x, out_h, out_w):
    """F.interpolate(mode='bilinear', align_corners=False) on NHWC bf16 data.
    Gathers stay bf16 (full-res traffic halved); lerp math is f32."""
    n, h, w, c = x.shape

    def coords(out_size, in_size):
        scale = in_size / out_size
        s = (jnp.arange(out_size, dtype=jnp.float32) + 0.5) * scale - 0.5
        s = jnp.maximum(s, 0.0)
        i0 = jnp.minimum(jnp.floor(s).astype(jnp.int32), in_size - 1)
        i1 = jnp.minimum(i0 + 1, in_size - 1)
        frac = s - i0.astype(jnp.float32)
        return i0, i1, frac

    r0, r1, fy = coords(out_h, h)
    c0, c1, fx = coords(out_w, w)
    top = x[:, r0, :, :].astype(jnp.float32)        # small (W is still pooled)
    bot = x[:, r1, :, :].astype(jnp.float32)
    rows = top * (1.0 - fy)[None, :, None, None] + bot * fy[None, :, None, None]
    rows = rows.astype(jnp.bfloat16)
    left = rows[:, :, c0, :].astype(jnp.float32)
    right = rows[:, :, c1, :].astype(jnp.float32)
    out = left * (1.0 - fx)[None, None, :, None] + right * fx[None, None, :, None]
    return out.astype(jnp.bfloat16)


# ----------------------------------------------------------------------------
# Parameters: deterministic synthetic init, BN folded OUTSIDE jit (eval mode),
# channels zero-padded to multiples of 128 (lane-dense blocks everywhere).
# ----------------------------------------------------------------------------

def _init_conv_bn(key, cin, cout, ksize):
    k1, k2, k3, k4, k5 = jax.random.split(key, 5)
    w = jax.random.normal(k1, (cout, cin, ksize, ksize), jnp.float32) * 0.1
    gamma = 1.0 + 0.1 * jax.random.normal(k2, (cout,), jnp.float32)
    beta = 0.05 * jax.random.normal(k3, (cout,), jnp.float32)
    mean = 0.05 * jax.random.normal(k4, (cout,), jnp.float32)
    var = jnp.abs(0.1 * jax.random.normal(k5, (cout,), jnp.float32)) + 1.0
    return w, gamma, beta, mean, var


def init_dappm_params(key, in_channels, inter_channels, out_channels):
    cin_p = _round_up(in_channels, _LANE)
    ci_p = _round_up(inter_channels, _LANE)
    co_p = _round_up(out_channels, _LANE)

    names = ["scale0", "scale1", "scale2", "scale3", "scale4",
             "process1", "process2", "process3", "process4",
             "compression", "shortcut"]
    keys = jax.random.split(key, len(names))
    params = {}
    for name, k in zip(names, keys):
        if name.startswith("scale"):
            cin, cout, ks, cout_pp = in_channels, inter_channels, 1, ci_p
        elif name.startswith("process"):
            cin, cout, ks, cout_pp = inter_channels, inter_channels, 3, ci_p
        elif name == "compression":
            cin, cout, ks, cout_pp = inter_channels * 5, out_channels, 1, co_p
        else:  # shortcut
            cin, cout, ks, cout_pp = in_channels, out_channels, 1, co_p

        w, gamma, beta, mean, var = _init_conv_bn(k, cin, cout, ks)
        scale = (gamma / jnp.sqrt(var + _BN_EPS)).reshape(1, -1)
        bias = (beta.reshape(1, -1) - mean.reshape(1, -1) * scale)
        # pad: scale with 1.0, bias with 0.0 -> padded channels stay exactly 0
        scale = jnp.pad(scale, ((0, 0), (0, cout_pp - cout)), constant_values=1.0)
        bias = jnp.pad(bias, ((0, 0), (0, cout_pp - cout)))

        if ks == 3:
            wm = w.transpose(2, 3, 1, 0)                         # (3,3,cin,cout)
            wm = jnp.pad(wm, ((0, 0), (0, 0),
                              (0, ci_p - cin), (0, ci_p - cout)))
            wm = wm.reshape(3, 3 * ci_p, ci_p)                   # [dy, dx*Ci+c, co]
        elif name == "compression":
            wm = w.reshape(cout, 5, inter_channels).transpose(1, 2, 0)  # (5,ci,co)
            wm = jnp.pad(wm, ((0, 0), (0, ci_p - inter_channels),
                              (0, co_p - out_channels)))
            wm = wm.reshape(5 * ci_p, co_p)
        else:
            wm = w.reshape(cout, cin).T                          # (cin, cout)
            wm = jnp.pad(wm, ((0, cin_p - cin), (0, cout_pp - cout)))

        dtype = jnp.float32 if name == "scale4" else jnp.bfloat16
        params[name] = {"w": wm.astype(dtype), "scale": scale, "bias": bias}
    return params


# ----------------------------------------------------------------------------
# DAPPM forward
# ----------------------------------------------------------------------------

# TODO(synk): at real DAPPM resolution all five branch outputs fit in VMEM;
#             fusing scale0/shortcut + the four process convs + compression
#             into ONE pallas_call (y_i kept as VMEM scratch) would remove the
#             remaining inter-kernel HBM round trips.

@partial(jax.jit, static_argnums=(2,))
def dappm_forward(x_nchw, params, out_channels):
    # TODO(synk): NCHW<->NHWC boundary transposes stay as XLA ops to match the
    #             PyTorch interface layout.
    x = jnp.transpose(x_nchw, (0, 2, 3, 1)).astype(jnp.float32)      # NHWC f32
    n, h, w, c = x.shape
    cin_p = params["scale0"]["w"].shape[0]
    ci_p = params["scale0"]["w"].shape[1]
    co_p = params["shortcut"]["w"].shape[1]
    if c < cin_p:                                                    # lane-pad input
        x = jnp.pad(x, ((0, 0), (0, 0), (0, 0), (0, cin_p - c)))
    m = n * h * w

    # scale0 + shortcut: one shared bf16 read of x, two fused matmul/BN/ReLU outs
    x2d = x.reshape(m, cin_p).astype(jnp.bfloat16)
    y0_2d, ysc_2d = fused_scale0_shortcut(x2d, params["scale0"], params["shortcut"])
    y0 = y0_2d.reshape(n, h, w, ci_p)

    # pooled branches: avg-pool -> 1x1 conv/bn/relu (Pallas) -> bilinear upsample
    def scale_branch(pk, ps, pp, name):
        xp = avg_pool_nhwc(x, pk, ps, pp)
        yb = conv1x1_bn_relu(xp, params[name])                       # bf16
        return bilinear_resize_nhwc(yb, h, w)                        # bf16

    s1 = scale_branch(5, 2, 2, "scale1")
    y1 = conv3x3_bn_relu_add(s1, y0, params["process1"])             # add fused in-kernel
    s2 = scale_branch(9, 4, 4, "scale2")
    y2 = conv3x3_bn_relu_add(s2, y1, params["process2"])
    s3 = scale_branch(17, 8, 8, "scale3")
    y3 = conv3x3_bn_relu_add(s3, y2, params["process3"])

    # scale4: global average pool -> tiny 1x1 conv in plain jnp; "bilinear
    # upsample" of a 1x1 map is a broadcast handled inside the process kernel.
    p4 = params["scale4"]
    xg = jnp.mean(x, axis=(1, 2))                                    # (N, Cin_p) f32
    s4 = jnp.maximum(jnp.dot(xg, p4["w"]) * p4["scale"] + p4["bias"], 0.0)
    s4 = s4.reshape(n, 1, 1, ci_p).astype(jnp.bfloat16)
    y4 = conv3x3_bn_relu_add(s4, y3, params["process4"])

    # compression(y0..y4) + shortcut, no HBM concat, bf16 output
    ys = [y0_2d,
          y1.reshape(m, ci_p), y2.reshape(m, ci_p),
          y3.reshape(m, ci_p), y4.reshape(m, ci_p)]
    out2d = fused_compression_shortcut(ys, ysc_2d, params["compression"])
    out = out2d.reshape(n, h, w, co_p)[..., :out_channels]
    return jnp.transpose(out, (0, 3, 1, 2))                          # NCHW bf16


# ----------------------------------------------------------------------------

if __name__ == "__main__":
    IN_CH, INTER_CH, OUT_CH = 4, 8, 8
    N, H, W = 2, 16, 16

    key = jax.random.PRNGKey(0)
    k_x, k_p = jax.random.split(key)
    x = jax.random.normal(k_x, (N, IN_CH, H, W), jnp.float32)
    params = init_dappm_params(k_p, IN_CH, INTER_CH, OUT_CH)

    out = dappm_forward(x, params, OUT_CH)
    out = jax.block_until_ready(out)
    assert out.shape == (N, OUT_CH, H, W)
    assert bool(jnp.all(jnp.isfinite(out.astype(jnp.float32))))
    # NOTE: BatchNorm uses eval-mode (running-stat) semantics folded into
    # per-channel scale/bias; intermediates and the output are bf16.
    print("KERNEL_OK")
</pallas_src>

<mosaic_0001>
module attributes {stable_mosaic.version = 11 : i64} {
  func.func @_matmul_bn_relu_kernel(%arg0: i32, %arg1: memref<8x128xbf16, #tpu.memory_space<vmem>>, %arg2: memref<128x128xbf16, #tpu.memory_space<vmem>>, %arg3: memref<1x128xf32, #tpu.memory_space<vmem>>, %arg4: memref<1x128xf32, #tpu.memory_space<vmem>>, %arg5: memref<8x128xbf16, #tpu.memory_space<vmem>>) attributes {dimension_semantics = [#tpu.dimension_semantics<parallel>], iteration_bounds = array<i64: 1>, scalar_prefetch = 0 : i64, scratch_operands = 0 : i64, tpu.core_type = #tpu.core_type<tc>, window_params = [{transform_indices = @transform_0, window_bounds = array<i64: 8, 128>}, {pipeline_mode = #tpu.pipeline_mode<synchronous>, transform_indices = @transform_1, window_bounds = array<i64: 128, 128>}, {pipeline_mode = #tpu.pipeline_mode<synchronous>, transform_indices = @transform_2, window_bounds = array<i64: 1, 128>}, {pipeline_mode = #tpu.pipeline_mode<synchronous>, transform_indices = @transform_3, window_bounds = array<i64: 1, 128>}, {transform_indices = @transform_4, window_bounds = array<i64: 8, 128>}]} {
    %c0 = arith.constant 0 : index
    %c0_0 = arith.constant 0 : index
    %0 = vector.load %arg1[%c0, %c0_0] : memref<8x128xbf16, #tpu.memory_space<vmem>>, vector<8x128xbf16>
    %c0_1 = arith.constant 0 : index
    %c0_2 = arith.constant 0 : index
    %1 = vector.load %arg2[%c0_1, %c0_2] : memref<128x128xbf16, #tpu.memory_space<vmem>>, vector<128x128xbf16>
    %cst = arith.constant dense<0.000000e+00> : vector<8x128xf32>
    %2 = tpu.matmul %0, %1, %cst {dimension_numbers = #tpu.dot_dimension_numbers<[1], [0], [0], [1], [0, 0, 1, 1], [], []>} : vector<8x128xbf16>, vector<128x128xbf16>, vector<8x128xf32> -> vector<8x128xf32>
    %c0_3 = arith.constant 0 : index
    %c0_4 = arith.constant 0 : index
    %3 = vector.load %arg3[%c0_3, %c0_4] : memref<1x128xf32, #tpu.memory_space<vmem>>, vector<1x128xf32>
    %4 = vector.broadcast %3 : vector<1x128xf32> to vector<8x128xf32>
    %5 = arith.mulf %2, %4 : vector<8x128xf32>
    %c0_5 = arith.constant 0 : index
    %c0_6 = arith.constant 0 : index
    %6 = vector.load %arg4[%c0_5, %c0_6] : memref<1x128xf32, #tpu.memory_space<vmem>>, vector<1x128xf32>
    %7 = vector.broadcast %6 : vector<1x128xf32> to vector<8x128xf32>
    %8 = arith.addf %5, %7 : vector<8x128xf32>
    %cst_7 = arith.constant 0.000000e+00 : f32
    %9 = vector.broadcast %cst_7 : f32 to vector<8x128xf32>
    %10 = arith.maximumf %8, %9 : vector<8x128xf32>
    %11 = arith.truncf %10 : vector<8x128xf32> to vector<8x128xbf16>
    %c0_8 = arith.constant 0 : index
    %c0_9 = arith.constant 0 : index
    %12 = vector.load %arg5[%c0_8, %c0_9] : memref<8x128xbf16, #tpu.memory_space<vmem>>, vector<8x128xbf16>
    tpu.vector_store %arg5[%c0_8, %c0_9], %11 {strides = array<i32>} : memref<8x128xbf16, #tpu.memory_space<vmem>>, vector<8x128xbf16>,
    return
  }
  func.func @transform_0(%arg0: i32) -> (i32, i32) {
    %c0_i32 = arith.constant 0 : i32
    %c0_i32_0 = arith.constant 0 : i32
    return %arg0, %c0_i32 : i32, i32
  }
  func.func @transform_1(%arg0: i32) -> (i32, i32) {
    %c0_i32 = arith.constant 0 : i32
    %c0_i32_0 = arith.constant 0 : i32
    %c0_i32_1 = arith.constant 0 : i32
    return %c0_i32, %c0_i32_0 : i32, i32
  }
  func.func @transform_2(%arg0: i32) -> (i32, i32) {
    %c0_i32 = arith.constant 0 : i32
    %c0_i32_0 = arith.constant 0 : i32
    %c0_i32_1 = arith.constant 0 : i32
    return %c0_i32, %c0_i32_0 : i32, i32
  }
  func.func @transform_3(%arg0: i32) -> (i32, i32) {
    %c0_i32 = arith.constant 0 : i32
    %c0_i32_0 = arith.constant 0 : i32
    %c0_i32_1 = arith.constant 0 : i32
    return %c0_i32, %c0_i32_0 : i32, i32
  }
  func.func @transform_4(%arg0: i32) -> (i32, i32) {
    %c0_i32 = arith.constant 0 : i32
    %c0_i32_0 = arith.constant 0 : i32
    return %arg0, %c0_i32 : i32, i32
  }
}

module attributes {stable_mosaic.version = 11 : i64} {
  func.func @_matmul_bn_relu_kernel(%arg0: i32, %arg1: memref<32x128xbf16, #tpu.memory_space<vmem>>, %arg2: memref<128x128xbf16, #tpu.memory_space<vmem>>, %arg3: memref<1x128xf32, #tpu.memory_space<vmem>>, %arg4: memref<1x128xf32, #tpu.memory_space<vmem>>, %arg5: memref<32x128xbf16, #tpu.memory_space<vmem>>) attributes {dimension_semantics = [#tpu.dimension_semantics<parallel>], iteration_bounds = array<i64: 1>, scalar_prefetch = 0 : i64, scratch_operands = 0 : i64, tpu.core_type = #tpu.core_type<tc>, window_params = [{transform_indices = @transform_0, window_bounds = array<i64: 32, 128>}, {pipeline_mode = #tpu.pipeline_mode<synchronous>, transform_indices = @transform_1, window_bounds = array<i64: 128, 128>}, {pipeline_mode = #tpu.pipeline_mode<synchronous>, transform_indices = @transform_2, window_bounds = array<i64: 1, 128>}, {pipeline_mode = #tpu.pipeline_mode<synchronous>, transform_indices = @transform_3, window_bounds = array<i64: 1, 128>}, {transform_indices = @transform_4, window_bounds = array<i64: 32, 128>}]} {
    %c0 = arith.constant 0 : index
    %c0_0 = arith.constant 0 : index
    %0 = vector.load %arg1[%c0, %c0_0] : memref<32x128xbf16, #tpu.memory_space<vmem>>, vector<32x128xbf16>
    %c0_1 = arith.constant 0 : index
    %c0_2 = arith.constant 0 : index
    %1 = vector.load %arg2[%c0_1, %c0_2] : memref<128x128xbf16, #tpu.memory_space<vmem>>, vector<128x128xbf16>
    %cst = arith.constant dense<0.000000e+00> : vector<32x128xf32>
    %2 = tpu.matmul %0, %1, %cst {dimension_numbers = #tpu.dot_dimension_numbers<[1], [0], [0], [1], [0, 0, 1, 1], [], []>} : vector<32x128xbf16>, vector<128x128xbf16>, vector<32x128xf32> -> vector<32x128xf32>
    %c0_3 = arith.constant 0 : index
    %c0_4 = arith.constant 0 : index
    %3 = vector.load %arg3[%c0_3, %c0_4] : memref<1x128xf32, #tpu.memory_space<vmem>>, vector<1x128xf32>
    %4 = vector.broadcast %3 : vector<1x128xf32> to vector<32x128xf32>
    %5 = arith.mulf %2, %4 : vector<32x128xf32>
    %c0_5 = arith.constant 0 : index
    %c0_6 = arith.constant 0 : index
    %6 = vector.load %arg4[%c0_5, %c0_6] : memref<1x128xf32, #tpu.memory_space<vmem>>, vector<1x128xf32>
    %7 = vector.broadcast %6 : vector<1x128xf32> to vector<32x128xf32>
    %8 = arith.addf %5, %7 : vector<32x128xf32>
    %cst_7 = arith.constant 0.000000e+00 : f32
    %9 = vector.broadcast %cst_7 : f32 to vector<32x128xf32>
    %10 = arith.maximumf %8, %9 : vector<32x128xf32>
    %11 = arith.truncf %10 : vector<32x128xf32> to vector<32x128xbf16>
    %c0_8 = arith.constant 0 : index
    %c0_9 = arith.constant 0 : index
    %12 = vector.load %arg5[%c0_8, %c0_9] : memref<32x128xbf16, #tpu.memory_space<vmem>>, vector<32x128xbf16>
    tpu.vector_store %arg5[%c0_8, %c0_9], %11 {strides = array<i32>} : memref<32x128xbf16, #tpu.memory_space<vmem>>, vector<32x128xbf16>,
    return
  }
  func.func @transform_0(%arg0: i32) -> (i32, i32) {
    %c0_i32 = arith.constant 0 : i32
    %c0_i32_0 = arith.constant 0 : i32
    return %arg0, %c0_i32 : i32, i32
  }
  func.func @transform_1(%arg0: i32) -> (i32, i32) {
    %c0_i32 = arith.constant 0 : i32
    %c0_i32_0 = arith.constant 0 : i32
    %c0_i32_1 = arith.constant 0 : i32
    return %c0_i32, %c0_i32_0 : i32, i32
  }
  func.func @transform_2(%arg0: i32) -> (i32, i32) {
    %c0_i32 = arith.constant 0 : i32
    %c0_i32_0 = arith.constant 0 : i32
    %c0_i32_1 = arith.constant 0 : i32
    return %c0_i32, %c0_i32_0 : i32, i32
  }
  func.func @transform_3(%arg0: i32) -> (i32, i32) {
    %c0_i32 = arith.constant 0 : i32
    %c0_i32_0 = arith.constant 0 : i32
    %c0_i32_1 = arith.constant 0 : i32
    return %c0_i32, %c0_i32_0 : i32, i32
  }
  func.func @transform_4(%arg0: i32) -> (i32, i32) {
    %c0_i32 = arith.constant 0 : i32
    %c0_i32_0 = arith.constant 0 : i32
    return %arg0, %c0_i32 : i32, i32
  }
}

module attributes {stable_mosaic.version = 11 : i64} {
  func.func @_matmul_bn_relu_kernel(%arg0: i32, %arg1: memref<128x128xbf16, #tpu.memory_space<vmem>>, %arg2: memref<128x128xbf16, #tpu.memory_space<vmem>>, %arg3: memref<1x128xf32, #tpu.memory_space<vmem>>, %arg4: memref<1x128xf32, #tpu.memory_space<vmem>>, %arg5: memref<128x128xbf16, #tpu.memory_space<vmem>>) attributes {dimension_semantics = [#tpu.dimension_semantics<parallel>], iteration_bounds = array<i64: 1>, scalar_prefetch = 0 : i64, scratch_operands = 0 : i64, tpu.core_type = #tpu.core_type<tc>, window_params = [{transform_indices = @transform_0, window_bounds = array<i64: 128, 128>}, {pipeline_mode = #tpu.pipeline_mode<synchronous>, transform_indices = @transform_1, window_bounds = array<i64: 128, 128>}, {pipeline_mode = #tpu.pipeline_mode<synchronous>, transform_indices = @transform_2, window_bounds = array<i64: 1, 128>}, {pipeline_mode = #tpu.pipeline_mode<synchronous>, transform_indices = @transform_3, window_bounds = array<i64: 1, 128>}, {transform_indices = @transform_4, window_bounds = array<i64: 128, 128>}]} {
    %c0 = arith.constant 0 : index
    %c0_0 = arith.constant 0 : index
    %0 = vector.load %arg1[%c0, %c0_0] : memref<128x128xbf16, #tpu.memory_space<vmem>>, vector<128x128xbf16>
    %c0_1 = arith.constant 0 : index
    %c0_2 = arith.constant 0 : index
    %1 = vector.load %arg2[%c0_1, %c0_2] : memref<128x128xbf16, #tpu.memory_space<vmem>>, vector<128x128xbf16>
    %cst = arith.constant dense<0.000000e+00> : vector<128x128xf32>
    %2 = tpu.matmul %0, %1, %cst {dimension_numbers = #tpu.dot_dimension_numbers<[1], [0], [0], [1], [0, 0, 1, 1], [], []>} : vector<128x128xbf16>, vector<128x128xbf16>, vector<128x128xf32> -> vector<128x128xf32>
    %c0_3 = arith.constant 0 : index
    %c0_4 = arith.constant 0 : index
    %3 = vector.load %arg3[%c0_3, %c0_4] : memref<1x128xf32, #tpu.memory_space<vmem>>, vector<1x128xf32>
    %4 = vector.broadcast %3 : vector<1x128xf32> to vector<128x128xf32>
    %5 = arith.mulf %2, %4 : vector<128x128xf32>
    %c0_5 = arith.constant 0 : index
    %c0_6 = arith.constant 0 : index
    %6 = vector.load %arg4[%c0_5, %c0_6] : memref<1x128xf32, #tpu.memory_space<vmem>>, vector<1x128xf32>
    %7 = vector.broadcast %6 : vector<1x128xf32> to vector<128x128xf32>
    %8 = arith.addf %5, %7 : vector<128x128xf32>
    %cst_7 = arith.constant 0.000000e+00 : f32
    %9 = vector.broadcast %cst_7 : f32 to vector<128x128xf32>
    %10 = arith.maximumf %8, %9 : vector<128x128xf32>
    %11 = arith.truncf %10 : vector<128x128xf32> to vector<128x128xbf16>
    %c0_8 = arith.constant 0 : index
    %c0_9 = arith.constant 0 : index
    %12 = vector.load %arg5[%c0_8, %c0_9] : memref<128x128xbf16, #tpu.memory_space<vmem>>, vector<128x128xbf16>
    tpu.vector_store %arg5[%c0_8, %c0_9], %11 {strides = array<i32>} : memref<128x128xbf16, #tpu.memory_space<vmem>>, vector<128x128xbf16>,
    return
  }
  func.func @transform_0(%arg0: i32) -> (i32, i32) {
    %c0_i32 = arith.constant 0 : i32
    %c0_i32_0 = arith.constant 0 : i32
    return %arg0, %c0_i32 : i32, i32
  }
  func.func @transform_1(%arg0: i32) -> (i32, i32) {
    %c0_i32 = arith.constant 0 : i32
    %c0_i32_0 = arith.constant 0 : i32
    %c0_i32_1 = arith.constant 0 : i32
    return %c0_i32, %c0_i32_0 : i32, i32
  }
  func.func @transform_2(%arg0: i32) -> (i32, i32) {
    %c0_i32 = arith.constant 0 : i32
    %c0_i32_0 = arith.constant 0 : i32
    %c0_i32_1 = arith.constant 0 : i32
    return %c0_i32, %c0_i32_0 : i32, i32
  }
  func.func @transform_3(%arg0: i32) -> (i32, i32) {
    %c0_i32 = arith.constant 0 : i32
    %c0_i32_0 = arith.constant 0 : i32
    %c0_i32_1 = arith.constant 0 : i32
    return %c0_i32, %c0_i32_0 : i32, i32
  }
  func.func @transform_4(%arg0: i32) -> (i32, i32) {
    %c0_i32 = arith.constant 0 : i32
    %c0_i32_0 = arith.constant 0 : i32
    return %arg0, %c0_i32 : i32, i32
  }
}

module attributes {stable_mosaic.version = 11 : i64} {
  func.func @_process3x3_kernel(%arg0: i32, %arg1: memref<1x16x16x128xbf16, #tpu.memory_space<vmem>>, %arg2: memref<1x16x16x128xbf16, #tpu.memory_space<vmem>>, %arg3: memref<3x384x128xbf16, #tpu.memory_space<vmem>>, %arg4: memref<1x128xf32, #tpu.memory_space<vmem>>, %arg5: memref<1x128xf32, #tpu.memory_space<vmem>>, %arg6: memref<1x16x16x128xbf16, #tpu.memory_space<vmem>>, %arg7: memref<18x16x384xbf16, #tpu.memory_space<vmem>>) attributes {dimension_semantics = [#tpu.dimension_semantics<parallel>], iteration_bounds = array<i64: 2>, scalar_prefetch = 0 : i64, scratch_operands = 1 : i64, tpu.core_type = #tpu.core_type<tc>, window_params = [{transform_indices = @transform_0, window_bounds = array<i64: 1, 16, 16, 128>}, {transform_indices = @transform_1, window_bounds = array<i64: 1, 16, 16, 128>}, {pipeline_mode = #tpu.pipeline_mode<synchronous>, transform_indices = @transform_2, window_bounds = array<i64: 3, 384, 128>}, {pipeline_mode = #tpu.pipeline_mode<synchronous>, transform_indices = @transform_3, window_bounds = array<i64: 1, 128>}, {pipeline_mode = #tpu.pipeline_mode<synchronous>, transform_indices = @transform_4, window_bounds = array<i64: 1, 128>}, {transform_indices = @transform_5, window_bounds = array<i64: 1, 16, 16, 128>}]} {
    %cst = arith.constant 0.000000e+00 : bf16
    %0 = vector.broadcast %cst : bf16 to vector<1x16x384xbf16>
    %c0 = arith.constant 0 : index
    %c0_0 = arith.constant 0 : index
    %c0_1 = arith.constant 0 : index
    %1 = vector.load %arg7[%c0, %c0_0, %c0_1] : memref<18x16x384xbf16, #tpu.memory_space<vmem>>, vector<1x16x384xbf16>
    tpu.vector_store %arg7[%c0, %c0_0, %c0_1], %0 {strides = array<i32>} : memref<18x16x384xbf16, #tpu.memory_space<vmem>>, vector<1x16x384xbf16>,
    %cst_2 = arith.constant 0.000000e+00 : bf16
    %2 = vector.broadcast %cst_2 : bf16 to vector<1x16x384xbf16>
    %c17 = arith.constant 17 : index
    %c0_3 = arith.constant 0 : index
    %c0_4 = arith.constant 0 : index
    %3 = vector.load %arg7[%c17, %c0_3, %c0_4] : memref<18x16x384xbf16, #tpu.memory_space<vmem>>, vector<1x16x384xbf16>
    tpu.vector_store %arg7[%c17, %c0_3, %c0_4], %2 {strides = array<i32>} : memref<18x16x384xbf16, #tpu.memory_space<vmem>>, vector<1x16x384xbf16>,
    %cst_5 = arith.constant 0.000000e+00 : bf16
    %4 = vector.broadcast %cst_5 : bf16 to vector<16x1x128xbf16>
    %c1 = arith.constant 1 : index
    %c0_6 = arith.constant 0 : index
    %c0_7 = arith.constant 0 : index
    %5 = vector.load %arg7[%c1, %c0_6, %c0_7] : memref<18x16x384xbf16, #tpu.memory_space<vmem>>, vector<16x1x128xbf16>
    tpu.vector_store %arg7[%c1, %c0_6, %c0_7], %4 {strides = array<i32>} : memref<18x16x384xbf16, #tpu.memory_space<vmem>>, vector<16x1x128xbf16>,
    %cst_8 = arith.constant 0.000000e+00 : bf16
    %6 = vector.broadcast %cst_8 : bf16 to vector<16x1x128xbf16>
    %c1_9 = arith.constant 1 : index
    %c15 = arith.constant 15 : index
    %c256 = arith.constant 256 : index
    %7 = vector.load %arg7[%c1_9, %c15, %c256] : memref<18x16x384xbf16, #tpu.memory_space<vmem>>, vector<16x1x128xbf16>
    tpu.vector_store %arg7[%c1_9, %c15, %c256], %6 {strides = array<i32>} : memref<18x16x384xbf16, #tpu.memory_space<vmem>>, vector<16x1x128xbf16>,
    %c0_10 = arith.constant 0 : index
    %c0_11 = arith.constant 0 : index
    %c0_12 = arith.constant 0 : index
    %c0_13 = arith.constant 0 : index
    %8 = vector.load %arg1[%c0_10, %c0_11, %c0_12, %c0_13] : memref<1x16x16x128xbf16, #tpu.memory_space<vmem>>, vector<1x16x16x128xbf16>
    %9 = vector.shape_cast %8 : vector<1x16x16x128xbf16> to vector<16x16x128xbf16>
    %10 = arith.extf %9 : vector<16x16x128xbf16> to vector<16x16x128xf32>
    %c0_14 = arith.constant 0 : index
    %c0_15 = arith.constant 0 : index
    %c0_16 = arith.constant 0 : index
    %c0_17 = arith.constant 0 : index
    %11 = vector.load %arg2[%c0_14, %c0_15, %c0_16, %c0_17] : memref<1x16x16x128xbf16, #tpu.memory_space<vmem>>, vector<1x16x16x128xbf16>
    %12 = vector.shape_cast %11 : vector<1x16x16x128xbf16> to vector<16x16x128xbf16>
    %13 = arith.extf %12 : vector<16x16x128xbf16> to vector<16x16x128xf32>
    %14 = arith.addf %10, %13 : vector<16x16x128xf32>
    %15 = arith.truncf %14 : vector<16x16x128xf32> to vector<16x16x128xbf16>
    %16 = vector.extract_strided_slice %15 {offsets = [0, 0, 0], sizes = [16, 15, 128], strides = [1, 1, 1]} : vector<16x16x128xbf16> to vector<16x15x128xbf16>
    %c1_18 = arith.constant 1 : index
    %c1_19 = arith.constant 1 : index
    %c0_20 = arith.constant 0 : index
    %17 = vector.load %arg7[%c1_18, %c1_19, %c0_20] : memref<18x16x384xbf16, #tpu.memory_space<vmem>>, vector<16x15x128xbf16>
    tpu.vector_store %arg7[%c1_18, %c1_19, %c0_20], %16 {strides = array<i32>} : memref<18x16x384xbf16, #tpu.memory_space<vmem>>, vector<16x15x128xbf16>,
    %c1_21 = arith.constant 1 : index
    %c0_22 = arith.constant 0 : index
    %c128 = arith.constant 128 : index
    %18 = vector.load %arg7[%c1_21, %c0_22, %c128] : memref<18x16x384xbf16, #tpu.memory_space<vmem>>, vector<16x16x128xbf16>
    tpu.vector_store %arg7[%c1_21, %c0_22, %c128], %15 {strides = array<i32>} : memref<18x16x384xbf16, #tpu.memory_space<vmem>>, vector<16x16x128xbf16>,
    %19 = vector.extract_strided_slice %15 {offsets = [0, 1, 0], sizes = [16, 15, 128], strides = [1, 1, 1]} : vector<16x16x128xbf16> to vector<16x15x128xbf16>
    %c1_23 = arith.constant 1 : index
    %c0_24 = arith.constant 0 : index
    %c256_25 = arith.constant 256 : index
    %20 = vector.load %arg7[%c1_23, %c0_24, %c256_25] : memref<18x16x384xbf16, #tpu.memory_space<vmem>>, vector<16x15x128xbf16>
    tpu.vector_store %arg7[%c1_23, %c0_24, %c256_25], %19 {strides = array<i32>} : memref<18x16x384xbf16, #tpu.memory_space<vmem>>, vector<16x15x128xbf16>,
    %cst_26 = arith.constant 0.000000e+00 : f32
    %21 = vector.broadcast %cst_26 : f32 to vector<128x128xf32>
    %c0_27 = arith.constant 0 : index
    %c0_28 = arith.constant 0 : index
    %c0_29 = arith.constant 0 : index
    %22 = vector.load %arg7[%c0_27, %c0_28, %c0_29] : memref<18x16x384xbf16, #tpu.memory_space<vmem>>, vector<8x16x384xbf16>
    %23 = vector.shape_cast %22 : vector<8x16x384xbf16> to vector<128x384xbf16>
    %c0_30 = arith.constant 0 : index
    %c0_31 = arith.constant 0 : index
    %c0_32 = arith.constant 0 : index
    %24 = vector.load %arg3[%c0_30, %c0_31, %c0_32] : memref<3x384x128xbf16, #tpu.memory_space<vmem>>, vector<1x384x128xbf16>
    %25 = vector.shape_cast %24 : vector<1x384x128xbf16> to vector<384x128xbf16>
    %cst_33 = arith.constant dense<0.000000e+00> : vector<128x128xf32>
    %26 = tpu.matmul %23, %25, %cst_33 {dimension_numbers = #tpu.dot_dimension_numbers<[1], [0], [0], [1], [0, 0, 1, 1], [], []>} : vector<128x384xbf16>, vector<384x128xbf16>, vector<128x128xf32> -> vector<128x128xf32>
    %27 = arith.addf %21, %26 : vector<128x128xf32>
    %c1_34 = arith.constant 1 : index
    %c0_35 = arith.constant 0 : index
    %c0_36 = arith.constant 0 : index
    %28 = vector.load %arg7[%c1_34, %c0_35, %c0_36] : memref<18x16x384xbf16, #tpu.memory_space<vmem>>, vector<8x16x384xbf16>
    %29 = vector.shape_cast %28 : vector<8x16x384xbf16> to vector<128x384xbf16>
    %c1_37 = arith.constant 1 : index
    %c0_38 = arith.constant 0 : index
    %c0_39 = arith.constant 0 : index
    %30 = vector.load %arg3[%c1_37, %c0_38, %c0_39] : memref<3x384x128xbf16, #tpu.memory_space<vmem>>, vector<1x384x128xbf16>
    %31 = vector.shape_cast %30 : vector<1x384x128xbf16> to vector<384x128xbf16>
    %cst_40 = arith.constant dense<0.000000e+00> : vector<128x128xf32>
    %32 = tpu.matmul %29, %31, %cst_40 {dimension_numbers = #tpu.dot_dimension_numbers<[1], [0], [0], [1], [0, 0, 1, 1], [], []>} : vector<128x384xbf16>, vector<384x128xbf16>, vector<128x128xf32> -> vector<128x128xf32>
    %33 = arith.addf %27, %32 : vector<128x128xf32>
    %c2 = arith.constant 2 : index
    %c0_41 = arith.constant 0 : index
    %c0_42 = arith.constant 0 : index
    %34 = vector.load %arg7[%c2, %c0_41, %c0_42] : memref<18x16x384xbf16, #tpu.memory_space<vmem>>, vector<8x16x384xbf16>
    %35 = vector.shape_cast %34 : vector<8x16x384xbf16> to vector<128x384xbf16>
    %c2_43 = arith.constant 2 : index
    %c0_44 = arith.constant 0 : index
    %c0_45 = arith.constant 0 : index
    %36 = vector.load %arg3[%c2_43, %c0_44, %c0_45] : memref<3x384x128xbf16, #tpu.memory_space<vmem>>, vector<1x384x128xbf16>
    %37 = vector.shape_cast %36 : vector<1x384x128xbf16> to vector<384x128xbf16>
    %cst_46 = arith.constant dense<0.000000e+00> : vector<128x128xf32>
    %38 = tpu.matmul %35, %37, %cst_46 {dimension_numbers = #tpu.dot_dimension_numbers<[1], [0], [0], [1], [0, 0, 1, 1], [], []>} : vector<128x384xbf16>, vector<384x128xbf16>, vector<128x128xf32> -> vector<128x128xf32>
    %39 = arith.addf %33, %38 : vector<128x128xf32>
    %c0_47 = arith.constant 0 : index
    %c0_48 = arith.constant 0 : index
    %40 = vector.load %arg4[%c0_47, %c0_48] : memref<1x128xf32, #tpu.memory_space<vmem>>, vector<1x128xf32>
    %41 = vector.broadcast %40 : vector<1x128xf32> to vector<128x128xf32>
    %42 = arith.mulf %39, %41 : vector<128x128xf32>
    %c0_49 = arith.constant 0 : index
    %c0_50 = arith.constant 0 : index
    %43 = vector.load %arg5[%c0_49, %c0_50] : memref<1x128xf32, #tpu.memory_space<vmem>>, vector<1x128xf32>
    %44 = vector.broadcast %43 : vector<1x128xf32> to vector<128x128xf32>
    %45 = arith.addf %42, %44 : vector<128x128xf32>
    %cst_51 = arith.constant 0.000000e+00 : f32
    %46 = vector.broadcast %cst_51 : f32 to vector<128x128xf32>
    %47 = arith.maximumf %45, %46 : vector<128x128xf32>
    %48 = vector.shape_cast %47 : vector<128x128xf32> to vector<8x16x128xf32>
    %49 = arith.truncf %48 : vector<8x16x128xf32> to vector<8x16x128xbf16>
    %c0_52 = arith.constant 0 : index
    %c0_53 = arith.constant 0 : index
    %c0_54 = arith.constant 0 : index
    %c0_55 = arith.constant 0 : index
    %50 = vector.load %arg6[%c0_52, %c0_53, %c0_54, %c0_55] : memref<1x16x16x128xbf16, #tpu.memory_space<vmem>>, vector<1x8x16x128xbf16>
    %51 = vector.shape_cast %50 : vector<1x8x16x128xbf16> to vector<8x16x128xbf16>
    %52 = vector.shape_cast %49 : vector<8x16x128xbf16> to vector<1x8x16x128xbf16>
    tpu.vector_store %arg6[%c0_52, %c0_53, %c0_54, %c0_55], %52 {strides = array<i32>} : memref<1x16x16x128xbf16, #tpu.memory_space<vmem>>, vector<1x8x16x128xbf16>,
    %cst_56 = arith.constant 0.000000e+00 : f32
    %53 = vector.broadcast %cst_56 : f32 to vector<128x128xf32>
    %c8 = arith.constant 8 : index
    %c0_57 = arith.constant 0 : index
    %c0_58 = arith.constant 0 : index
    %54 = vector.load %arg7[%c8, %c0_57, %c0_58] : memref<18x16x384xbf16, #tpu.memory_space<vmem>>, vector<8x16x384xbf16>
    %55 = vector.shape_cast %54 : vector<8x16x384xbf16> to vector<128x384xbf16>
    %c0_59 = arith.constant 0 : index
    %c0_60 = arith.constant 0 : index
    %c0_61 = arith.constant 0 : index
    %56 = vector.load %arg3[%c0_59, %c0_60, %c0_61] : memref<3x384x128xbf16, #tpu.memory_space<vmem>>, vector<1x384x128xbf16>
    %57 = vector.shape_cast %56 : vector<1x384x128xbf16> to vector<384x128xbf16>
    %cst_62 = arith.constant dense<0.000000e+00> : vector<128x128xf32>
    %58 = tpu.matmul %55, %57, %cst_62 {dimension_numbers = #tpu.dot_dimension_numbers<[1], [0], [0], [1], [0, 0, 1, 1], [], []>} : vector<128x384xbf16>, vector<384x128xbf16>, vector<128x128xf32> -> vector<128x128xf32>
    %59 = arith.addf %53, %58 : vector<128x128xf32>
    %c9 = arith.constant 9 : index
    %c0_63 = arith.constant 0 : index
    %c0_64 = arith.constant 0 : index
    %60 = vector.load %arg7[%c9, %c0_63, %c0_64] : memref<18x16x384xbf16, #tpu.memory_space<vmem>>, vector<8x16x384xbf16>
    %61 = vector.shape_cast %60 : vector<8x16x384xbf16> to vector<128x384xbf16>
    %c1_65 = arith.constant 1 : index
    %c0_66 = arith.constant 0 : index
    %c0_67 = arith.constant 0 : index
    %62 = vector.load %arg3[%c1_65, %c0_66, %c0_67] : memref<3x384x128xbf16, #tpu.memory_space<vmem>>, vector<1x384x128xbf16>
    %63 = vector.shape_cast %62 : vector<1x384x128xbf16> to vector<384x128xbf16>
    %cst_68 = arith.constant dense<0.000000e+00> : vector<128x128xf32>
    %64 = tpu.matmul %61, %63, %cst_68 {dimension_numbers = #tpu.dot_dimension_numbers<[1], [0], [0], [1], [0, 0, 1, 1], [], []>} : vector<128x384xbf16>, vector<384x128xbf16>, vector<128x128xf32> -> vector<128x128xf32>
    %65 = arith.addf %59, %64 : vector<128x128xf32>
    %c10 = arith.constant 10 : index
    %c0_69 = arith.constant 0 : index
    %c0_70 = arith.constant 0 : index
    %66 = vector.load %arg7[%c10, %c0_69, %c0_70] : memref<18x16x384xbf16, #tpu.memory_space<vmem>>, vector<8x16x384xbf16>
    %67 = vector.shape_cast %66 : vector<8x16x384xbf16> to vector<128x384xbf16>
    %c2_71 = arith.constant 2 : index
    %c0_72 = arith.constant 0 : index
    %c0_73 = arith.constant 0 : index
    %68 = vector.load %arg3[%c2_71, %c0_72, %c0_73] : memref<3x384x128xbf16, #tpu.memory_space<vmem>>, vector<1x384x128xbf16>
    %69 = vector.shape_cast %68 : vector<1x384x128xbf16> to vector<384x128xbf16>
    %cst_74 = arith.constant dense<0.000000e+00> : vector<128x128xf32>
    %70 = tpu.matmul %67, %69, %cst_74 {dimension_numbers = #tpu.dot_dimension_numbers<[1], [0], [0], [1], [0, 0, 1, 1], [], []>} : vector<128x384xbf16>, vector<384x128xbf16>, vector<128x128xf32> -> vector<128x128xf32>
    %71 = arith.addf %65, %70 : vector<128x128xf32>
    %c0_75 = arith.constant 0 : index
    %c0_76 = arith.constant 0 : index
    %72 = vector.load %arg4[%c0_75, %c0_76] : memref<1x128xf32, #tpu.memory_space<vmem>>, vector<1x128xf32>
    %73 = vector.broadcast %72 : vector<1x128xf32> to vector<128x128xf32>
    %74 = arith.mulf %71, %73 : vector<128x128xf32>
    %c0_77 = arith.constant 0 : index
    %c0_78 = arith.constant 0 : index
    %75 = vector.load %arg5[%c0_77, %c0_78] : memref<1x128xf32, #tpu.memory_space<vmem>>, vector<1x128xf32>
    %76 = vector.broadcast %75 : vector<1x128xf32> to vector<128x128xf32>
    %77 = arith.addf %74, %76 : vector<128x128xf32>
    %cst_79 = arith.constant 0.000000e+00 : f32
    %78 = vector.broadcast %cst_79 : f32 to vector<128x128xf32>
    %79 = arith.maximumf %77, %78 : vector<128x128xf32>
    %80 = vector.shape_cast %79 : vector<128x128xf32> to vector<8x16x128xf32>
    %81 = arith.truncf %80 : vector<8x16x128xf32> to vector<8x16x128xbf16>
    %c0_80 = arith.constant 0 : index
    %c8_81 = arith.constant 8 : index
    %c0_82 = arith.constant 0 : index
    %c0_83 = arith.constant 0 : index
    %82 = vector.load %arg6[%c0_80, %c8_81, %c0_82, %c0_83] : memref<1x16x16x128xbf16, #tpu.memory_space<vmem>>, vector<1x8x16x128xbf16>
    %83 = vector.shape_cast %82 : vector<1x8x16x128xbf16> to vector<8x16x128xbf16>
    %84 = vector.shape_cast %81 : vector<8x16x128xbf16> to vector<1x8x16x128xbf16>
    tpu.vector_store %arg6[%c0_80, %c8_81, %c0_82, %c0_83], %84 {strides = array<i32>} : memref<1x16x16x128xbf16, #tpu.memory_space<vmem>>, vector<1x8x16x128xbf16>,
    return
  }
  func.func @transform_0(%arg0: i32) -> (i32, i32, i32, i32) {
    %c0_i32 = arith.constant 0 : i32
    %c0_i32_0 = arith.constant 0 : i32
    %c0_i32_1 = arith.constant 0 : i32
    %c0_i32_2 = arith.constant 0 : i32
    return %arg0, %c0_i32, %c0_i32_0, %c0_i32_1 : i32, i32, i32, i32
  }
  func.func @transform_1(%arg0: i32) -> (i32, i32, i32, i32) {
    %c0_i32 = arith.constant 0 : i32
    %c0_i32_0 = arith.constant 0 : i32
    %c0_i32_1 = arith.constant 0 : i32
    %c0_i32_2 = arith.constant 0 : i32
    return %arg0, %c0_i32, %c0_i32_0, %c0_i32_1 : i32, i32, i32, i32
  }
  func.func @transform_2(%arg0: i32) -> (i32, i32, i32) {
    %c0_i32 = arith.constant 0 : i32
    %c0_i32_0 = arith.constant 0 : i32
    %c0_i32_1 = arith.constant 0 : i32
    %c0_i32_2 = arith.constant 0 : i32
    return %c0_i32, %c0_i32_0, %c0_i32_1 : i32, i32, i32
  }
  func.func @transform_3(%arg0: i32) -> (i32, i32) {
    %c0_i32 = arith.constant 0 : i32
    %c0_i32_0 = arith.constant 0 : i32
    %c0_i32_1 = arith.constant 0 : i32
    return %c0_i32, %c0_i32_0 : i32, i32
  }
  func.func @transform_4(%arg0: i32) -> (i32, i32) {
    %c0_i32 = arith.constant 0 : i32
    %c0_i32_0 = arith.constant 0 : i32
    %c0_i32_1 = arith.constant 0 : i32
    return %c0_i32, %c0_i32_0 : i32, i32
  }
  func.func @transform_5(%arg0: i32) -> (i32, i32, i32, i32) {
    %c0_i32 = arith.constant 0 : i32
    %c0_i32_0 = arith.constant 0 : i32
    %c0_i32_1 = arith.constant 0 : i32
    %c0_i32_2 = arith.constant 0 : i32
    return %arg0, %c0_i32, %c0_i32_0, %c0_i32_1 : i32, i32, i32, i32
  }
}

module attributes {stable_mosaic.version = 11 : i64} {
  func.func @_scale0_shortcut_kernel(%arg0: i32, %arg1: memref<256x128xbf16, #tpu.memory_space<vmem>>, %arg2: memref<128x128xbf16, #tpu.memory_space<vmem>>, %arg3: memref<1x128xf32, #tpu.memory_space<vmem>>, %arg4: memref<1x128xf32, #tpu.memory_space<vmem>>, %arg5: memref<128x128xbf16, #tpu.memory_space<vmem>>, %arg6: memref<1x128xf32, #tpu.memory_space<vmem>>, %arg7: memref<1x128xf32, #tpu.memory_space<vmem>>, %arg8: memref<256x128xbf16, #tpu.memory_space<vmem>>, %arg9: memref<256x128xbf16, #tpu.memory_space<vmem>>) attributes {dimension_semantics = [#tpu.dimension_semantics<parallel>], iteration_bounds = array<i64: 2>, scalar_prefetch = 0 : i64, scratch_operands = 0 : i64, tpu.core_type = #tpu.core_type<tc>, window_params = [{transform_indices = @transform_0, window_bounds = array<i64: 256, 128>}, {pipeline_mode = #tpu.pipeline_mode<synchronous>, transform_indices = @transform_1, window_bounds = array<i64: 128, 128>}, {pipeline_mode = #tpu.pipeline_mode<synchronous>, transform_indices = @transform_2, window_bounds = array<i64: 1, 128>}, {pipeline_mode = #tpu.pipeline_mode<synchronous>, transform_indices = @transform_3, window_bounds = array<i64: 1, 128>}, {pipeline_mode = #tpu.pipeline_mode<synchronous>, transform_indices = @transform_4, window_bounds = array<i64: 128, 128>}, {pipeline_mode = #tpu.pipeline_mode<synchronous>, transform_indices = @transform_5, window_bounds = array<i64: 1, 128>}, {pipeline_mode = #tpu.pipeline_mode<synchronous>, transform_indices = @transform_6, window_bounds = array<i64: 1, 128>}, {transform_indices = @transform_7, window_bounds = array<i64: 256, 128>}, {transform_indices = @transform_8, window_bounds = array<i64: 256, 128>}]} {
    %c0 = arith.constant 0 : index
    %c0_0 = arith.constant 0 : index
    %0 = vector.load %arg1[%c0, %c0_0] : memref<256x128xbf16, #tpu.memory_space<vmem>>, vector<256x128xbf16>
    %c0_1 = arith.constant 0 : index
    %c0_2 = arith.constant 0 : index
    %1 = vector.load %arg2[%c0_1, %c0_2] : memref<128x128xbf16, #tpu.memory_space<vmem>>, vector<128x128xbf16>
    %cst = arith.constant dense<0.000000e+00> : vector<256x128xf32>
    %2 = tpu.matmul %0, %1, %cst {dimension_numbers = #tpu.dot_dimension_numbers<[1], [0], [0], [1], [0, 0, 1, 1], [], []>} : vector<256x128xbf16>, vector<128x128xbf16>, vector<256x128xf32> -> vector<256x128xf32>
    %c0_3 = arith.constant 0 : index
    %c0_4 = arith.constant 0 : index
    %3 = vector.load %arg3[%c0_3, %c0_4] : memref<1x128xf32, #tpu.memory_space<vmem>>, vector<1x128xf32>
    %4 = vector.broadcast %3 : vector<1x128xf32> to vector<256x128xf32>
    %5 = arith.mulf %2, %4 : vector<256x128xf32>
    %c0_5 = arith.constant 0 : index
    %c0_6 = arith.constant 0 : index
    %6 = vector.load %arg4[%c0_5, %c0_6] : memref<1x128xf32, #tpu.memory_space<vmem>>, vector<1x128xf32>
    %7 = vector.broadcast %6 : vector<1x128xf32> to vector<256x128xf32>
    %8 = arith.addf %5, %7 : vector<256x128xf32>
    %cst_7 = arith.constant 0.000000e+00 : f32
    %9 = vector.broadcast %cst_7 : f32 to vector<256x128xf32>
    %10 = arith.maximumf %8, %9 : vector<256x128xf32>
    %11 = arith.truncf %10 : vector<256x128xf32> to vector<256x128xbf16>
    %c0_8 = arith.constant 0 : index
    %c0_9 = arith.constant 0 : index
    %12 = vector.load %arg8[%c0_8, %c0_9] : memref<256x128xbf16, #tpu.memory_space<vmem>>, vector<256x128xbf16>
    tpu.vector_store %arg8[%c0_8, %c0_9], %11 {strides = array<i32>} : memref<256x128xbf16, #tpu.memory_space<vmem>>, vector<256x128xbf16>,
    %c0_10 = arith.constant 0 : index
    %c0_11 = arith.constant 0 : index
    %13 = vector.load %arg5[%c0_10, %c0_11] : memref<128x128xbf16, #tpu.memory_space<vmem>>, vector<128x128xbf16>
    %cst_12 = arith.constant dense<0.000000e+00> : vector<256x128xf32>
    %14 = tpu.matmul %0, %13, %cst_12 {dimension_numbers = #tpu.dot_dimension_numbers<[1], [0], [0], [1], [0, 0, 1, 1], [], []>} : vector<256x128xbf16>, vector<128x128xbf16>, vector<256x128xf32> -> vector<256x128xf32>
    %c0_13 = arith.constant 0 : index
    %c0_14 = arith.constant 0 : index
    %15 = vector.load %arg6[%c0_13, %c0_14] : memref<1x128xf32, #tpu.memory_space<vmem>>, vector<1x128xf32>
    %16 = vector.broadcast %15 : vector<1x128xf32> to vector<256x128xf32>
    %17 = arith.mulf %14, %16 : vector<256x128xf32>
    %c0_15 = arith.constant 0 : index
    %c0_16 = arith.constant 0 : index
    %18 = vector.load %arg7[%c0_15, %c0_16] : memref<1x128xf32, #tpu.memory_space<vmem>>, vector<1x128xf32>
    %19 = vector.broadcast %18 : vector<1x128xf32> to vector<256x128xf32>
    %20 = arith.addf %17, %19 : vector<256x128xf32>
    %cst_17 = arith.constant 0.000000e+00 : f32
    %21 = vector.broadcast %cst_17 : f32 to vector<256x128xf32>
    %22 = arith.maximumf %20, %21 : vector<256x128xf32>
    %23 = arith.truncf %22 : vector<256x128xf32> to vector<256x128xbf16>
    %c0_18 = arith.constant 0 : index
    %c0_19 = arith.constant 0 : index
    %24 = vector.load %arg9[%c0_18, %c0_19] : memref<256x128xbf16, #tpu.memory_space<vmem>>, vector<256x128xbf16>
    tpu.vector_store %arg9[%c0_18, %c0_19], %23 {strides = array<i32>} : memref<256x128xbf16, #tpu.memory_space<vmem>>, vector<256x128xbf16>,
    return
  }
  func.func @transform_0(%arg0: i32) -> (i32, i32) {
    %c0_i32 = arith.constant 0 : i32
    %c0_i32_0 = arith.constant 0 : i32
    return %arg0, %c0_i32 : i32, i32
  }
  func.func @transform_1(%arg0: i32) -> (i32, i32) {
    %c0_i32 = arith.constant 0 : i32
    %c0_i32_0 = arith.constant 0 : i32
    %c0_i32_1 = arith.constant 0 : i32
    return %c0_i32, %c0_i32_0 : i32, i32
  }
  func.func @transform_2(%arg0: i32) -> (i32, i32) {
    %c0_i32 = arith.constant 0 : i32
    %c0_i32_0 = arith.constant 0 : i32
    %c0_i32_1 = arith.constant 0 : i32
    return %c0_i32, %c0_i32_0 : i32, i32
  }
  func.func @transform_3(%arg0: i32) -> (i32, i32) {
    %c0_i32 = arith.constant 0 : i32
    %c0_i32_0 = arith.constant 0 : i32
    %c0_i32_1 = arith.constant 0 : i32
    return %c0_i32, %c0_i32_0 : i32, i32
  }
  func.func @transform_4(%arg0: i32) -> (i32, i32) {
    %c0_i32 = arith.constant 0 : i32
    %c0_i32_0 = arith.constant 0 : i32
    %c0_i32_1 = arith.constant 0 : i32
    return %c0_i32, %c0_i32_0 : i32, i32
  }
  func.func @transform_5(%arg0: i32) -> (i32, i32) {
    %c0_i32 = arith.constant 0 : i32
    %c0_i32_0 = arith.constant 0 : i32
    %c0_i32_1 = arith.constant 0 : i32
    return %c0_i32, %c0_i32_0 : i32, i32
  }
  func.func @transform_6(%arg0: i32) -> (i32, i32) {
    %c0_i32 = arith.constant 0 : i32
    %c0_i32_0 = arith.constant 0 : i32
    %c0_i32_1 = arith.constant 0 : i32
    return %c0_i32, %c0_i32_0 : i32, i32
  }
  func.func @transform_7(%arg0: i32) -> (i32, i32) {
    %c0_i32 = arith.constant 0 : i32
    %c0_i32_0 = arith.constant 0 : i32
    return %arg0, %c0_i32 : i32, i32
  }
  func.func @transform_8(%arg0: i32) -> (i32, i32) {
    %c0_i32 = arith.constant 0 : i32
    %c0_i32_0 = arith.constant 0 : i32
    return %arg0, %c0_i32 : i32, i32
  }
}

module attributes {stable_mosaic.version = 11 : i64} {
  func.func @_process3x3_kernel(%arg0: i32, %arg1: memref<1x1x1x128xbf16, #tpu.memory_space<vmem>>, %arg2: memref<1x16x16x128xbf16, #tpu.memory_space<vmem>>, %arg3: memref<3x384x128xbf16, #tpu.memory_space<vmem>>, %arg4: memref<1x128xf32, #tpu.memory_space<vmem>>, %arg5: memref<1x128xf32, #tpu.memory_space<vmem>>, %arg6: memref<1x16x16x128xbf16, #tpu.memory_space<vmem>>, %arg7: memref<18x16x384xbf16, #tpu.memory_space<vmem>>) attributes {dimension_semantics = [#tpu.dimension_semantics<parallel>], iteration_bounds = array<i64: 2>, scalar_prefetch = 0 : i64, scratch_operands = 1 : i64, tpu.core_type = #tpu.core_type<tc>, window_params = [{transform_indices = @transform_0, window_bounds = array<i64: 1, 1, 1, 128>}, {transform_indices = @transform_1, window_bounds = array<i64: 1, 16, 16, 128>}, {pipeline_mode = #tpu.pipeline_mode<synchronous>, transform_indices = @transform_2, window_bounds = array<i64: 3, 384, 128>}, {pipeline_mode = #tpu.pipeline_mode<synchronous>, transform_indices = @transform_3, window_bounds = array<i64: 1, 128>}, {pipeline_mode = #tpu.pipeline_mode<synchronous>, transform_indices = @transform_4, window_bounds = array<i64: 1, 128>}, {transform_indices = @transform_5, window_bounds = array<i64: 1, 16, 16, 128>}]} {
    %cst = arith.constant 0.000000e+00 : bf16
    %0 = vector.broadcast %cst : bf16 to vector<1x16x384xbf16>
    %c0 = arith.constant 0 : index
    %c0_0 = arith.constant 0 : index
    %c0_1 = arith.constant 0 : index
    %1 = vector.load %arg7[%c0, %c0_0, %c0_1] : memref<18x16x384xbf16, #tpu.memory_space<vmem>>, vector<1x16x384xbf16>
    tpu.vector_store %arg7[%c0, %c0_0, %c0_1], %0 {strides = array<i32>} : memref<18x16x384xbf16, #tpu.memory_space<vmem>>, vector<1x16x384xbf16>,
    %cst_2 = arith.constant 0.000000e+00 : bf16
    %2 = vector.broadcast %cst_2 : bf16 to vector<1x16x384xbf16>
    %c17 = arith.constant 17 : index
    %c0_3 = arith.constant 0 : index
    %c0_4 = arith.constant 0 : index
    %3 = vector.load %arg7[%c17, %c0_3, %c0_4] : memref<18x16x384xbf16, #tpu.memory_space<vmem>>, vector<1x16x384xbf16>
    tpu.vector_store %arg7[%c17, %c0_3, %c0_4], %2 {strides = array<i32>} : memref<18x16x384xbf16, #tpu.memory_space<vmem>>, vector<1x16x384xbf16>,
    %cst_5 = arith.constant 0.000000e+00 : bf16
    %4 = vector.broadcast %cst_5 : bf16 to vector<16x1x128xbf16>
    %c1 = arith.constant 1 : index
    %c0_6 = arith.constant 0 : index
    %c0_7 = arith.constant 0 : index
    %5 = vector.load %arg7[%c1, %c0_6, %c0_7] : memref<18x16x384xbf16, #tpu.memory_space<vmem>>, vector<16x1x128xbf16>
    tpu.vector_store %arg7[%c1, %c0_6, %c0_7], %4 {strides = array<i32>} : memref<18x16x384xbf16, #tpu.memory_space<vmem>>, vector<16x1x128xbf16>,
    %cst_8 = arith.constant 0.000000e+00 : bf16
    %6 = vector.broadcast %cst_8 : bf16 to vector<16x1x128xbf16>
    %c1_9 = arith.constant 1 : index
    %c15 = arith.constant 15 : index
    %c256 = arith.constant 256 : index
    %7 = vector.load %arg7[%c1_9, %c15, %c256] : memref<18x16x384xbf16, #tpu.memory_space<vmem>>, vector<16x1x128xbf16>
    tpu.vector_store %arg7[%c1_9, %c15, %c256], %6 {strides = array<i32>} : memref<18x16x384xbf16, #tpu.memory_space<vmem>>, vector<16x1x128xbf16>,
    %c0_10 = arith.constant 0 : index
    %c0_11 = arith.constant 0 : index
    %c0_12 = arith.constant 0 : index
    %c0_13 = arith.constant 0 : index
    %8 = vector.load %arg1[%c0_10, %c0_11, %c0_12, %c0_13] : memref<1x1x1x128xbf16, #tpu.memory_space<vmem>>, vector<1x1x1x128xbf16>
    %9 = vector.shape_cast %8 : vector<1x1x1x128xbf16> to vector<1x1x128xbf16>
    %10 = arith.extf %9 : vector<1x1x128xbf16> to vector<1x1x128xf32>
    %c0_14 = arith.constant 0 : index
    %c0_15 = arith.constant 0 : index
    %c0_16 = arith.constant 0 : index
    %c0_17 = arith.constant 0 : index
    %11 = vector.load %arg2[%c0_14, %c0_15, %c0_16, %c0_17] : memref<1x16x16x128xbf16, #tpu.memory_space<vmem>>, vector<1x16x16x128xbf16>
    %12 = vector.shape_cast %11 : vector<1x16x16x128xbf16> to vector<16x16x128xbf16>
    %13 = arith.extf %12 : vector<16x16x128xbf16> to vector<16x16x128xf32>
    %14 = vector.broadcast %10 : vector<1x1x128xf32> to vector<16x16x128xf32>
    %15 = arith.addf %14, %13 : vector<16x16x128xf32>
    %16 = arith.truncf %15 : vector<16x16x128xf32> to vector<16x16x128xbf16>
    %17 = vector.extract_strided_slice %16 {offsets = [0, 0, 0], sizes = [16, 15, 128], strides = [1, 1, 1]} : vector<16x16x128xbf16> to vector<16x15x128xbf16>
    %c1_18 = arith.constant 1 : index
    %c1_19 = arith.constant 1 : index
    %c0_20 = arith.constant 0 : index
    %18 = vector.load %arg7[%c1_18, %c1_19, %c0_20] : memref<18x16x384xbf16, #tpu.memory_space<vmem>>, vector<16x15x128xbf16>
    tpu.vector_store %arg7[%c1_18, %c1_19, %c0_20], %17 {strides = array<i32>} : memref<18x16x384xbf16, #tpu.memory_space<vmem>>, vector<16x15x128xbf16>,
    %c1_21 = arith.constant 1 : index
    %c0_22 = arith.constant 0 : index
    %c128 = arith.constant 128 : index
    %19 = vector.load %arg7[%c1_21, %c0_22, %c128] : memref<18x16x384xbf16, #tpu.memory_space<vmem>>, vector<16x16x128xbf16>
    tpu.vector_store %arg7[%c1_21, %c0_22, %c128], %16 {strides = array<i32>} : memref<18x16x384xbf16, #tpu.memory_space<vmem>>, vector<16x16x128xbf16>,
    %20 = vector.extract_strided_slice %16 {offsets = [0, 1, 0], sizes = [16, 15, 128], strides = [1, 1, 1]} : vector<16x16x128xbf16> to vector<16x15x128xbf16>
    %c1_23 = arith.constant 1 : index
    %c0_24 = arith.constant 0 : index
    %c256_25 = arith.constant 256 : index
    %21 = vector.load %arg7[%c1_23, %c0_24, %c256_25] : memref<18x16x384xbf16, #tpu.memory_space<vmem>>, vector<16x15x128xbf16>
    tpu.vector_store %arg7[%c1_23, %c0_24, %c256_25], %20 {strides = array<i32>} : memref<18x16x384xbf16, #tpu.memory_space<vmem>>, vector<16x15x128xbf16>,
    %cst_26 = arith.constant 0.000000e+00 : f32
    %22 = vector.broadcast %cst_26 : f32 to vector<128x128xf32>
    %c0_27 = arith.constant 0 : index
    %c0_28 = arith.constant 0 : index
    %c0_29 = arith.constant 0 : index
    %23 = vector.load %arg7[%c0_27, %c0_28, %c0_29] : memref<18x16x384xbf16, #tpu.memory_space<vmem>>, vector<8x16x384xbf16>
    %24 = vector.shape_cast %23 : vector<8x16x384xbf16> to vector<128x384xbf16>
    %c0_30 = arith.constant 0 : index
    %c0_31 = arith.constant 0 : index
    %c0_32 = arith.constant 0 : index
    %25 = vector.load %arg3[%c0_30, %c0_31, %c0_32] : memref<3x384x128xbf16, #tpu.memory_space<vmem>>, vector<1x384x128xbf16>
    %26 = vector.shape_cast %25 : vector<1x384x128xbf16> to vector<384x128xbf16>
    %cst_33 = arith.constant dense<0.000000e+00> : vector<128x128xf32>
    %27 = tpu.matmul %24, %26, %cst_33 {dimension_numbers = #tpu.dot_dimension_numbers<[1], [0], [0], [1], [0, 0, 1, 1], [], []>} : vector<128x384xbf16>, vector<384x128xbf16>, vector<128x128xf32> -> vector<128x128xf32>
    %28 = arith.addf %22, %27 : vector<128x128xf32>
    %c1_34 = arith.constant 1 : index
    %c0_35 = arith.constant 0 : index
    %c0_36 = arith.constant 0 : index
    %29 = vector.load %arg7[%c1_34, %c0_35, %c0_36] : memref<18x16x384xbf16, #tpu.memory_space<vmem>>, vector<8x16x384xbf16>
    %30 = vector.shape_cast %29 : vector<8x16x384xbf16> to vector<128x384xbf16>
    %c1_37 = arith.constant 1 : index
    %c0_38 = arith.constant 0 : index
    %c0_39 = arith.constant 0 : index
    %31 = vector.load %arg3[%c1_37, %c0_38, %c0_39] : memref<3x384x128xbf16, #tpu.memory_space<vmem>>, vector<1x384x128xbf16>
    %32 = vector.shape_cast %31 : vector<1x384x128xbf16> to vector<384x128xbf16>
    %cst_40 = arith.constant dense<0.000000e+00> : vector<128x128xf32>
    %33 = tpu.matmul %30, %32, %cst_40 {dimension_numbers = #tpu.dot_dimension_numbers<[1], [0], [0], [1], [0, 0, 1, 1], [], []>} : vector<128x384xbf16>, vector<384x128xbf16>, vector<128x128xf32> -> vector<128x128xf32>
    %34 = arith.addf %28, %33 : vector<128x128xf32>
    %c2 = arith.constant 2 : index
    %c0_41 = arith.constant 0 : index
    %c0_42 = arith.constant 0 : index
    %35 = vector.load %arg7[%c2, %c0_41, %c0_42] : memref<18x16x384xbf16, #tpu.memory_space<vmem>>, vector<8x16x384xbf16>
    %36 = vector.shape_cast %35 : vector<8x16x384xbf16> to vector<128x384xbf16>
    %c2_43 = arith.constant 2 : index
    %c0_44 = arith.constant 0 : index
    %c0_45 = arith.constant 0 : index
    %37 = vector.load %arg3[%c2_43, %c0_44, %c0_45] : memref<3x384x128xbf16, #tpu.memory_space<vmem>>, vector<1x384x128xbf16>
    %38 = vector.shape_cast %37 : vector<1x384x128xbf16> to vector<384x128xbf16>
    %cst_46 = arith.constant dense<0.000000e+00> : vector<128x128xf32>
    %39 = tpu.matmul %36, %38, %cst_46 {dimension_numbers = #tpu.dot_dimension_numbers<[1], [0], [0], [1], [0, 0, 1, 1], [], []>} : vector<128x384xbf16>, vector<384x128xbf16>, vector<128x128xf32> -> vector<128x128xf32>
    %40 = arith.addf %34, %39 : vector<128x128xf32>
    %c0_47 = arith.constant 0 : index
    %c0_48 = arith.constant 0 : index
    %41 = vector.load %arg4[%c0_47, %c0_48] : memref<1x128xf32, #tpu.memory_space<vmem>>, vector<1x128xf32>
    %42 = vector.broadcast %41 : vector<1x128xf32> to vector<128x128xf32>
    %43 = arith.mulf %40, %42 : vector<128x128xf32>
    %c0_49 = arith.constant 0 : index
    %c0_50 = arith.constant 0 : index
    %44 = vector.load %arg5[%c0_49, %c0_50] : memref<1x128xf32, #tpu.memory_space<vmem>>, vector<1x128xf32>
    %45 = vector.broadcast %44 : vector<1x128xf32> to vector<128x128xf32>
    %46 = arith.addf %43, %45 : vector<128x128xf32>
    %cst_51 = arith.constant 0.000000e+00 : f32
    %47 = vector.broadcast %cst_51 : f32 to vector<128x128xf32>
    %48 = arith.maximumf %46, %47 : vector<128x128xf32>
    %49 = vector.shape_cast %48 : vector<128x128xf32> to vector<8x16x128xf32>
    %50 = arith.truncf %49 : vector<8x16x128xf32> to vector<8x16x128xbf16>
    %c0_52 = arith.constant 0 : index
    %c0_53 = arith.constant 0 : index
    %c0_54 = arith.constant 0 : index
    %c0_55 = arith.constant 0 : index
    %51 = vector.load %arg6[%c0_52, %c0_53, %c0_54, %c0_55] : memref<1x16x16x128xbf16, #tpu.memory_space<vmem>>, vector<1x8x16x128xbf16>
    %52 = vector.shape_cast %51 : vector<1x8x16x128xbf16> to vector<8x16x128xbf16>
    %53 = vector.shape_cast %50 : vector<8x16x128xbf16> to vector<1x8x16x128xbf16>
    tpu.vector_store %arg6[%c0_52, %c0_53, %c0_54, %c0_55], %53 {strides = array<i32>} : memref<1x16x16x128xbf16, #tpu.memory_space<vmem>>, vector<1x8x16x128xbf16>,
    %cst_56 = arith.constant 0.000000e+00 : f32
    %54 = vector.broadcast %cst_56 : f32 to vector<128x128xf32>
    %c8 = arith.constant 8 : index
    %c0_57 = arith.constant 0 : index
    %c0_58 = arith.constant 0 : index
    %55 = vector.load %arg7[%c8, %c0_57, %c0_58] : memref<18x16x384xbf16, #tpu.memory_space<vmem>>, vector<8x16x384xbf16>
    %56 = vector.shape_cast %55 : vector<8x16x384xbf16> to vector<128x384xbf16>
    %c0_59 = arith.constant 0 : index
    %c0_60 = arith.constant 0 : index
    %c0_61 = arith.constant 0 : index
    %57 = vector.load %arg3[%c0_59, %c0_60, %c0_61] : memref<3x384x128xbf16, #tpu.memory_space<vmem>>, vector<1x384x128xbf16>
    %58 = vector.shape_cast %57 : vector<1x384x128xbf16> to vector<384x128xbf16>
    %cst_62 = arith.constant dense<0.000000e+00> : vector<128x128xf32>
    %59 = tpu.matmul %56, %58, %cst_62 {dimension_numbers = #tpu.dot_dimension_numbers<[1], [0], [0], [1], [0, 0, 1, 1], [], []>} : vector<128x384xbf16>, vector<384x128xbf16>, vector<128x128xf32> -> vector<128x128xf32>
    %60 = arith.addf %54, %59 : vector<128x128xf32>
    %c9 = arith.constant 9 : index
    %c0_63 = arith.constant 0 : index
    %c0_64 = arith.constant 0 : index
    %61 = vector.load %arg7[%c9, %c0_63, %c0_64] : memref<18x16x384xbf16, #tpu.memory_space<vmem>>, vector<8x16x384xbf16>
    %62 = vector.shape_cast %61 : vector<8x16x384xbf16> to vector<128x384xbf16>
    %c1_65 = arith.constant 1 : index
    %c0_66 = arith.constant 0 : index
    %c0_67 = arith.constant 0 : index
    %63 = vector.load %arg3[%c1_65, %c0_66, %c0_67] : memref<3x384x128xbf16, #tpu.memory_space<vmem>>, vector<1x384x128xbf16>
    %64 = vector.shape_cast %63 : vector<1x384x128xbf16> to vector<384x128xbf16>
    %cst_68 = arith.constant dense<0.000000e+00> : vector<128x128xf32>
    %65 = tpu.matmul %62, %64, %cst_68 {dimension_numbers = #tpu.dot_dimension_numbers<[1], [0], [0], [1], [0, 0, 1, 1], [], []>} : vector<128x384xbf16>, vector<384x128xbf16>, vector<128x128xf32> -> vector<128x128xf32>
    %66 = arith.addf %60, %65 : vector<128x128xf32>
    %c10 = arith.constant 10 : index
    %c0_69 = arith.constant 0 : index
    %c0_70 = arith.constant 0 : index
    %67 = vector.load %arg7[%c10, %c0_69, %c0_70] : memref<18x16x384xbf16, #tpu.memory_space<vmem>>, vector<8x16x384xbf16>
    %68 = vector.shape_cast %67 : vector<8x16x384xbf16> to vector<128x384xbf16>
    %c2_71 = arith.constant 2 : index
    %c0_72 = arith.constant 0 : index
    %c0_73 = arith.constant 0 : index
    %69 = vector.load %arg3[%c2_71, %c0_72, %c0_73] : memref<3x384x128xbf16, #tpu.memory_space<vmem>>, vector<1x384x128xbf16>
    %70 = vector.shape_cast %69 : vector<1x384x128xbf16> to vector<384x128xbf16>
    %cst_74 = arith.constant dense<0.000000e+00> : vector<128x128xf32>
    %71 = tpu.matmul %68, %70, %cst_74 {dimension_numbers = #tpu.dot_dimension_numbers<[1], [0], [0], [1], [0, 0, 1, 1], [], []>} : vector<128x384xbf16>, vector<384x128xbf16>, vector<128x128xf32> -> vector<128x128xf32>
    %72 = arith.addf %66, %71 : vector<128x128xf32>
    %c0_75 = arith.constant 0 : index
    %c0_76 = arith.constant 0 : index
    %73 = vector.load %arg4[%c0_75, %c0_76] : memref<1x128xf32, #tpu.memory_space<vmem>>, vector<1x128xf32>
    %74 = vector.broadcast %73 : vector<1x128xf32> to vector<128x128xf32>
    %75 = arith.mulf %72, %74 : vector<128x128xf32>
    %c0_77 = arith.constant 0 : index
    %c0_78 = arith.constant 0 : index
    %76 = vector.load %arg5[%c0_77, %c0_78] : memref<1x128xf32, #tpu.memory_space<vmem>>, vector<1x128xf32>
    %77 = vector.broadcast %76 : vector<1x128xf32> to vector<128x128xf32>
    %78 = arith.addf %75, %77 : vector<128x128xf32>
    %cst_79 = arith.constant 0.000000e+00 : f32
    %79 = vector.broadcast %cst_79 : f32 to vector<128x128xf32>
    %80 = arith.maximumf %78, %79 : vector<128x128xf32>
    %81 = vector.shape_cast %80 : vector<128x128xf32> to vector<8x16x128xf32>
    %82 = arith.truncf %81 : vector<8x16x128xf32> to vector<8x16x128xbf16>
    %c0_80 = arith.constant 0 : index
    %c8_81 = arith.constant 8 : index
    %c0_82 = arith.constant 0 : index
    %c0_83 = arith.constant 0 : index
    %83 = vector.load %arg6[%c0_80, %c8_81, %c0_82, %c0_83] : memref<1x16x16x128xbf16, #tpu.memory_space<vmem>>, vector<1x8x16x128xbf16>
    %84 = vector.shape_cast %83 : vector<1x8x16x128xbf16> to vector<8x16x128xbf16>
    %85 = vector.shape_cast %82 : vector<8x16x128xbf16> to vector<1x8x16x128xbf16>
    tpu.vector_store %arg6[%c0_80, %c8_81, %c0_82, %c0_83], %85 {strides = array<i32>} : memref<1x16x16x128xbf16, #tpu.memory_space<vmem>>, vector<1x8x16x128xbf16>,
    return
  }
  func.func @transform_0(%arg0: i32) -> (i32, i32, i32, i32) {
    %c0_i32 = arith.constant 0 : i32
    %c0_i32_0 = arith.constant 0 : i32
    %c0_i32_1 = arith.constant 0 : i32
    %c0_i32_2 = arith.constant 0 : i32
    return %arg0, %c0_i32, %c0_i32_0, %c0_i32_1 : i32, i32, i32, i32
  }
  func.func @transform_1(%arg0: i32) -> (i32, i32, i32, i32) {
    %c0_i32 = arith.constant 0 : i32
    %c0_i32_0 = arith.constant 0 : i32
    %c0_i32_1 = arith.constant 0 : i32
    %c0_i32_2 = arith.constant 0 : i32
    return %arg0, %c0_i32, %c0_i32_0, %c0_i32_1 : i32, i32, i32, i32
  }
  func.func @transform_2(%arg0: i32) -> (i32, i32, i32) {
    %c0_i32 = arith.constant 0 : i32
    %c0_i32_0 = arith.constant 0 : i32
    %c0_i32_1 = arith.constant 0 : i32
    %c0_i32_2 = arith.constant 0 : i32
    return %c0_i32, %c0_i32_0, %c0_i32_1 : i32, i32, i32
  }
  func.func @transform_3(%arg0: i32) -> (i32, i32) {
    %c0_i32 = arith.constant 0 : i32
    %c0_i32_0 = arith.constant 0 : i32
    %c0_i32_1 = arith.constant 0 : i32
    return %c0_i32, %c0_i32_0 : i32, i32
  }
  func.func @transform_4(%arg0: i32) -> (i32, i32) {
    %c0_i32 = arith.constant 0 : i32
    %c0_i32_0 = arith.constant 0 : i32
    %c0_i32_1 = arith.constant 0 : i32
    return %c0_i32, %c0_i32_0 : i32, i32
  }
  func.func @transform_5(%arg0: i32) -> (i32, i32, i32, i32) {
    %c0_i32 = arith.constant 0 : i32
    %c0_i32_0 = arith.constant 0 : i32
    %c0_i32_1 = arith.constant 0 : i32
    %c0_i32_2 = arith.constant 0 : i32
    return %arg0, %c0_i32, %c0_i32_0, %c0_i32_1 : i32, i32, i32, i32
  }
}

module attributes {stable_mosaic.version = 11 : i64} {
  func.func @_compress_shortcut_kernel(%arg0: i32, %arg1: memref<256x128xbf16, #tpu.memory_space<vmem>>, %arg2: memref<256x128xbf16, #tpu.memory_space<vmem>>, %arg3: memref<256x128xbf16, #tpu.memory_space<vmem>>, %arg4: memref<256x128xbf16, #tpu.memory_space<vmem>>, %arg5: memref<256x128xbf16, #tpu.memory_space<vmem>>, %arg6: memref<256x128xbf16, #tpu.memory_space<vmem>>, %arg7: memref<640x128xbf16, #tpu.memory_space<vmem>>, %arg8: memref<1x128xf32, #tpu.memory_space<vmem>>, %arg9: memref<1x128xf32, #tpu.memory_space<vmem>>, %arg10: memref<256x128xbf16, #tpu.memory_space<vmem>>) attributes {dimension_semantics = [#tpu.dimension_semantics<parallel>], iteration_bounds = array<i64: 2>, scalar_prefetch = 0 : i64, scratch_operands = 0 : i64, tpu.core_type = #tpu.core_type<tc>, window_params = [{transform_indices = @transform_0, window_bounds = array<i64: 256, 128>}, {transform_indices = @transform_1, window_bounds = array<i64: 256, 128>}, {transform_indices = @transform_2, window_bounds = array<i64: 256, 128>}, {transform_indices = @transform_3, window_bounds = array<i64: 256, 128>}, {transform_indices = @transform_4, window_bounds = array<i64: 256, 128>}, {transform_indices = @transform_5, window_bounds = array<i64: 256, 128>}, {pipeline_mode = #tpu.pipeline_mode<synchronous>, transform_indices = @transform_6, window_bounds = array<i64: 640, 128>}, {pipeline_mode = #tpu.pipeline_mode<synchronous>, transform_indices = @transform_7, window_bounds = array<i64: 1, 128>}, {pipeline_mode = #tpu.pipeline_mode<synchronous>, transform_indices = @transform_8, window_bounds = array<i64: 1, 128>}, {transform_indices = @transform_9, window_bounds = array<i64: 256, 128>}]} {
    %c0 = arith.constant 0 : index
    %c0_0 = arith.constant 0 : index
    %0 = vector.load %arg1[%c0, %c0_0] : memref<256x128xbf16, #tpu.memory_space<vmem>>, vector<256x128xbf16>
    %c0_1 = arith.constant 0 : index
    %c0_2 = arith.constant 0 : index
    %1 = vector.load %arg2[%c0_1, %c0_2] : memref<256x128xbf16, #tpu.memory_space<vmem>>, vector<256x128xbf16>
    %2 = tpu.concatenate %0, %1 in 1 : vector<256x128xbf16>, vector<256x128xbf16> -> vector<256x256xbf16>
    %c0_3 = arith.constant 0 : index
    %c0_4 = arith.constant 0 : index
    %3 = vector.load %arg7[%c0_3, %c0_4] : memref<640x128xbf16, #tpu.memory_space<vmem>>, vector<256x128xbf16>
    %cst = arith.constant dense<0.000000e+00> : vector<256x128xf32>
    %4 = tpu.matmul %2, %3, %cst {dimension_numbers = #tpu.dot_dimension_numbers<[1], [0], [0], [1], [0, 0, 1, 1], [], []>} : vector<256x256xbf16>, vector<256x128xbf16>, vector<256x128xf32> -> vector<256x128xf32>
    %c0_5 = arith.constant 0 : index
    %c0_6 = arith.constant 0 : index
    %5 = vector.load %arg3[%c0_5, %c0_6] : memref<256x128xbf16, #tpu.memory_space<vmem>>, vector<256x128xbf16>
    %c0_7 = arith.constant 0 : index
    %c0_8 = arith.constant 0 : index
    %6 = vector.load %arg4[%c0_7, %c0_8] : memref<256x128xbf16, #tpu.memory_space<vmem>>, vector<256x128xbf16>
    %7 = tpu.concatenate %5, %6 in 1 : vector<256x128xbf16>, vector<256x128xbf16> -> vector<256x256xbf16>
    %c256 = arith.constant 256 : index
    %c0_9 = arith.constant 0 : index
    %8 = vector.load %arg7[%c256, %c0_9] : memref<640x128xbf16, #tpu.memory_space<vmem>>, vector<256x128xbf16>
    %cst_10 = arith.constant dense<0.000000e+00> : vector<256x128xf32>
    %9 = tpu.matmul %7, %8, %cst_10 {dimension_numbers = #tpu.dot_dimension_numbers<[1], [0], [0], [1], [0, 0, 1, 1], [], []>} : vector<256x256xbf16>, vector<256x128xbf16>, vector<256x128xf32> -> vector<256x128xf32>
    %10 = arith.addf %4, %9 : vector<256x128xf32>
    %c0_11 = arith.constant 0 : index
    %c0_12 = arith.constant 0 : index
    %11 = vector.load %arg5[%c0_11, %c0_12] : memref<256x128xbf16, #tpu.memory_space<vmem>>, vector<256x128xbf16>
    %c512 = arith.constant 512 : index
    %c0_13 = arith.constant 0 : index
    %12 = vector.load %arg7[%c512, %c0_13] : memref<640x128xbf16, #tpu.memory_space<vmem>>, vector<128x128xbf16>
    %cst_14 = arith.constant dense<0.000000e+00> : vector<256x128xf32>
    %13 = tpu.matmul %11, %12, %cst_14 {dimension_numbers = #tpu.dot_dimension_numbers<[1], [0], [0], [1], [0, 0, 1, 1], [], []>} : vector<256x128xbf16>, vector<128x128xbf16>, vector<256x128xf32> -> vector<256x128xf32>
    %14 = arith.addf %10, %13 : vector<256x128xf32>
    %c0_15 = arith.constant 0 : index
    %c0_16 = arith.constant 0 : index
    %15 = vector.load %arg8[%c0_15, %c0_16] : memref<1x128xf32, #tpu.memory_space<vmem>>, vector<1x128xf32>
    %16 = vector.broadcast %15 : vector<1x128xf32> to vector<256x128xf32>
    %17 = arith.mulf %14, %16 : vector<256x128xf32>
    %c0_17 = arith.constant 0 : index
    %c0_18 = arith.constant 0 : index
    %18 = vector.load %arg9[%c0_17, %c0_18] : memref<1x128xf32, #tpu.memory_space<vmem>>, vector<1x128xf32>
    %19 = vector.broadcast %18 : vector<1x128xf32> to vector<256x128xf32>
    %20 = arith.addf %17, %19 : vector<256x128xf32>
    %cst_19 = arith.constant 0.000000e+00 : f32
    %21 = vector.broadcast %cst_19 : f32 to vector<256x128xf32>
    %22 = arith.maximumf %20, %21 : vector<256x128xf32>
    %c0_20 = arith.constant 0 : index
    %c0_21 = arith.constant 0 : index
    %23 = vector.load %arg6[%c0_20, %c0_21] : memref<256x128xbf16, #tpu.memory_space<vmem>>, vector<256x128xbf16>
    %24 = arith.extf %23 : vector<256x128xbf16> to vector<256x128xf32>
    %25 = arith.addf %22, %24 : vector<256x128xf32>
    %26 = arith.truncf %25 : vector<256x128xf32> to vector<256x128xbf16>
    %c0_22 = arith.constant 0 : index
    %c0_23 = arith.constant 0 : index
    %27 = vector.load %arg10[%c0_22, %c0_23] : memref<256x128xbf16, #tpu.memory_space<vmem>>, vector<256x128xbf16>
    tpu.vector_store %arg10[%c0_22, %c0_23], %26 {strides = array<i32>} : memref<256x128xbf16, #tpu.memory_space<vmem>>, vector<256x128xbf16>,
    return
  }
  func.func @transform_0(%arg0: i32) -> (i32, i32) {
    %c0_i32 = arith.constant 0 : i32
    %c0_i32_0 = arith.constant 0 : i32
    return %arg0, %c0_i32 : i32, i32
  }
  func.func @transform_1(%arg0: i32) -> (i32, i32) {
    %c0_i32 = arith.constant 0 : i32
    %c0_i32_0 = arith.constant 0 : i32
    return %arg0, %c0_i32 : i32, i32
  }
  func.func @transform_2(%arg0: i32) -> (i32, i32) {
    %c0_i32 = arith.constant 0 : i32
    %c0_i32_0 = arith.constant 0 : i32
    return %arg0, %c0_i32 : i32, i32
  }
  func.func @transform_3(%arg0: i32) -> (i32, i32) {
    %c0_i32 = arith.constant 0 : i32
    %c0_i32_0 = arith.constant 0 : i32
    return %arg0, %c0_i32 : i32, i32
  }
  func.func @transform_4(%arg0: i32) -> (i32, i32) {
    %c0_i32 = arith.constant 0 : i32
    %c0_i32_0 = arith.constant 0 : i32
    return %arg0, %c0_i32 : i32, i32
  }
  func.func @transform_5(%arg0: i32) -> (i32, i32) {
    %c0_i32 = arith.constant 0 : i32
    %c0_i32_0 = arith.constant 0 : i32
    return %arg0, %c0_i32 : i32, i32
  }
  func.func @transform_6(%arg0: i32) -> (i32, i32) {
    %c0_i32 = arith.constant 0 : i32
    %c0_i32_0 = arith.constant 0 : i32
    %c0_i32_1 = arith.constant 0 : i32
    return %c0_i32, %c0_i32_0 : i32, i32
  }
  func.func @transform_7(%arg0: i32) -> (i32, i32) {
    %c0_i32 = arith.constant 0 : i32
    %c0_i32_0 = arith.constant 0 : i32
    %c0_i32_1 = arith.constant 0 : i32
    return %c0_i32, %c0_i32_0 : i32, i32
  }
  func.func @transform_8(%arg0: i32) -> (i32, i32) {
    %c0_i32 = arith.constant 0 : i32
    %c0_i32_0 = arith.constant 0 : i32
    %c0_i32_1 = arith.constant 0 : i32
    return %c0_i32, %c0_i32_0 : i32, i32
  }
  func.func @transform_9(%arg0: i32) -> (i32, i32) {
    %c0_i32 = arith.constant 0 : i32
    %c0_i32_0 = arith.constant 0 : i32
    return %arg0, %c0_i32 : i32, i32
  }
}

</mosaic_0001>

<bundles_post_ra>
// kernel: dappm_forward.14
= control target key start
LH: loop header
LB: loop body
LE: loop exit
PB: predicated region body
PF: predicated region fallthrough
CT: control target
= control target key end

     0   :  { %s215_s1 = inlined_call_operand.vmem [shape: bf16[128,128], index: 1, kind: input, shape index: {}]   ;;  %s216_s2 = inlined_call_operand.vmem [shape: f32[1,128], index: 2, kind: input, shape index: {}]   ;;  %s217_s3 = inlined_call_operand.vmem [shape: f32[1,128], index: 3, kind: input, shape index: {}]   ;;  %s218_s0 = inlined_call_operand.vmem [shape: bf16[8,128], index: 0, kind: input, shape index: {}]   ;;  %s219_s4 = inlined_call_operand.vmem [shape: bf16[8,128], index: 4, kind: output, shape index: {}]  }
   0x1   :  { %v151_v0 = vld [vmem:[%s215_s1 + $0x38] sm:$0xff]  ;;  %v150_v1 = vld [vmem:[%s215_s1 + $0x30] sm:$0xff]  ;;  %v149_v2 = vld [vmem:[%s215_s1 + $0x28] sm:$0xff] }
   0x2   :  { %82 = vmatpush.bf16.msra.mxu0 %v151_v0  ;;  %v148_v3 = vld [vmem:[%s215_s1 + $0x20] sm:$0xff]  ;;  %v147_v4 = vld [vmem:[%s215_s1 + $0x18] sm:$0xff]  ;;  %v146_v5 = vld [vmem:[%s215_s1 + $0x10] sm:$0xff] }
   0x3   :  { %v145_v6 = vld [vmem:[%s215_s1 + $0x8] sm:$0xff]  ;;  %v144_v7 = vld [vmem:[%s215_s1] sm:$0xff] }
   0x4   :  { %v17_v8 = vld [vmem:[%s218_s0] sm:$0xf] }
   0x5   :  { %v152_v9 = vld [vmem:[%s216_s2] ss:$0 sm:$0xff] }
   0x6   :  { %83 = vmatpush.bf16.msra.mxu0 %v150_v1  ;;  %v153_v10 = vld [vmem:[%s217_s3] ss:$0 sm:$0xff] }
   0xa   :  { %84 = vmatpush.bf16.msra.mxu0 %v149_v2 }
   0xe   :  { %85 = vmatpush.bf16.msra.mxu0 %v148_v3 }
  0x12   :  { %86 = vmatpush.bf16.msra.mxu0 %v147_v4 }
  0x16   :  { %87 = vmatpush.bf16.msra.mxu0 %v146_v5 }
  0x1a   :  { %88 = vmatpush.bf16.msra.mxu0 %v145_v6 }
  0x1e   :  { %89 = vmatpush.bf16.msra.mxu0 %v144_v7 }
  0x21   :  { %90 = vmatmul.bf16.vlgmr.msra.gmra.mxu0 %v17_v8 }
  0x9e   :  { %v91_v11 = vpop.f32.mrf.mxu0 }
  0x9f   :  { %v99_v12 = vmul.f32 %v152_v9, %v91_v11 }
  0xa1   :  { %v104_v13 = vadd.f32 %v153_v10, %v99_v12 }
  0xa3   :  { %v105_v14 = vmax.f32 %v104_v13, 0.0 }
  0xa5   :  { %v106_v15 = vpack.c.bf16 %v105_v14, %v105_v14 }
  0xa6   :  { %v93_v16 = vpop.f32.mrf.mxu0 }
  0xa7   :  { %107 = vst [vmem:[%s219_s4] sm:$0xf] %v106_v15 }

// kernel: dappm_forward.12
= control target key start
LH: loop header
LB: loop body
LE: loop exit
PB: predicated region body
PF: predicated region fallthrough
CT: control target
= control target key end

     0   :  { %s286_s1 = inlined_call_operand.vmem [shape: bf16[128,128], index: 1, kind: input, shape index: {}]   ;;  %s287_s2 = inlined_call_operand.vmem [shape: f32[1,128], index: 2, kind: input, shape index: {}]   ;;  %s288_s3 = inlined_call_operand.vmem [shape: f32[1,128], index: 3, kind: input, shape index: {}]   ;;  %s289_s0 = inlined_call_operand.vmem [shape: bf16[32,128], index: 0, kind: input, shape index: {}]   ;;  %s290_s4 = inlined_call_operand.vmem [shape: bf16[32,128], index: 4, kind: output, shape index: {}]  }
   0x1   :  { %v197_v0 = vld [vmem:[%s286_s1 + $0x38] sm:$0xff]  ;;  %v196_v1 = vld [vmem:[%s286_s1 + $0x30] sm:$0xff]  ;;  %v195_v2 = vld [vmem:[%s286_s1 + $0x28] sm:$0xff] }
   0x2   :  { %97 = vmatpush.bf16.msra.mxu0 %v197_v0  ;;  %209 = vmatpush.bf16.msra.mxu1 %v197_v0  ;;  %v194_v3 = vld [vmem:[%s286_s1 + $0x20] sm:$0xff]  ;;  %v193_v4 = vld [vmem:[%s286_s1 + $0x18] sm:$0xff]  ;;  %v192_v5 = vld [vmem:[%s286_s1 + $0x10] sm:$0xff] }
   0x3   :  { %v191_v6 = vld [vmem:[%s286_s1 + $0x8] sm:$0xff]  ;;  %v190_v7 = vld [vmem:[%s286_s1] sm:$0xff] }
   0x4   :  { %v188_v8 = vld [vmem:[%s289_s0] sm:$0xff]  ;;  %v189_v9 = vld [vmem:[%s289_s0 + $0x8] sm:$0xff] }
   0x5   :  { %v217_v12 = vld [vmem:[%s287_s2] ss:$0 sm:$0xff] }
   0x6   :  { %98 = vmatpush.bf16.msra.mxu0 %v196_v1  ;;  %210 = vmatpush.bf16.msra.mxu1 %v196_v1  ;;  %v218_v14 = vld [vmem:[%s288_s3] ss:$0 sm:$0xff] }
   0xa   :  { %99 = vmatpush.bf16.msra.mxu0 %v195_v2  ;;  %211 = vmatpush.bf16.msra.mxu1 %v195_v2 }
   0xe   :  { %100 = vmatpush.bf16.msra.mxu0 %v194_v3  ;;  %212 = vmatpush.bf16.msra.mxu1 %v194_v3 }
  0x12   :  { %101 = vmatpush.bf16.msra.mxu0 %v193_v4  ;;  %213 = vmatpush.bf16.msra.mxu1 %v193_v4 }
  0x16   :  { %102 = vmatpush.bf16.msra.mxu0 %v192_v5  ;;  %214 = vmatpush.bf16.msra.mxu1 %v192_v5 }
  0x1a   :  { %103 = vmatpush.bf16.msra.mxu0 %v191_v6  ;;  %215 = vmatpush.bf16.msra.mxu1 %v191_v6 }
  0x1e   :  { %104 = vmatpush.bf16.msra.mxu0 %v190_v7  ;;  %216 = vmatpush.bf16.msra.mxu1 %v190_v7 }
  0x21   :  { %105 = vmatmul.bf16.vlgmr.msra.gmra.mxu0 %v188_v8  ;;  %110 = vmatmul.bf16.vlgmr.msra.gmra.mxu1 %v189_v9 }
  0x9e   :  { %v106_v10 = vpop.f32.mrf.mxu0  ;;  %v111_v11 = vpop.f32.mrf.mxu1 }
  0x9f   :  { %v120_v13 = vmul.f32 %v217_v12, %v106_v10  ;;  %v122_v15 = vmul.f32 %v217_v12, %v111_v11 }
  0xa1   :  { %v128_v18 = vadd.f32 %v218_v14, %v120_v13  ;;  %v130_v19 = vadd.f32 %v218_v14, %v122_v15 }
  0xa3   :  { %v132_v24 = vmax.f32 %v128_v18, 0.0  ;;  %v134_v25 = vmax.f32 %v130_v19, 0.0 }
  0xa6   :  { %v108_v16 = vpop.f32.mrf.mxu0  ;;  %v113_v17 = vpop.f32.mrf.mxu1 }
  0xa7   :  { %v121_v20 = vmul.f32 %v217_v12, %v108_v16  ;;  %v123_v21 = vmul.f32 %v217_v12, %v113_v17 }
  0xa9   :  { %v129_v22 = vadd.f32 %v218_v14, %v121_v20  ;;  %v131_v23 = vadd.f32 %v218_v14, %v123_v21 }
  0xab   :  { %v133_v26 = vmax.f32 %v129_v22, 0.0  ;;  %v135_v27 = vmax.f32 %v131_v23, 0.0 }
  0xad   :  { %v201_v28 = vpack.c.bf16 %v133_v26, %v132_v24  ;;  %v206_v29 = vpack.c.bf16 %v135_v27, %v134_v25 }
  0xaf   :  { %202 = vst [vmem:[%s290_s4] sm:$0xff] %v201_v28  }
  0xb0   :  { %208 = vst [vmem:[%s290_s4 + $0x8] sm:$0xff] %v206_v29  }

// kernel: dappm_forward.10
= control target key start
LH: loop header
LB: loop body
LE: loop exit
PB: predicated region body
PF: predicated region fallthrough
CT: control target
= control target key end

     0   :  { %s578_s1 = inlined_call_operand.vmem [shape: bf16[128,128], index: 1, kind: input, shape index: {}]   ;;  %s579_s2 = inlined_call_operand.vmem [shape: f32[1,128], index: 2, kind: input, shape index: {}]   ;;  %s580_s3 = inlined_call_operand.vmem [shape: f32[1,128], index: 3, kind: input, shape index: {}]   ;;  %s581_s0 = inlined_call_operand.vmem [shape: bf16[128,128], index: 0, kind: input, shape index: {}]   ;;  %s582_s4 = inlined_call_operand.vmem [shape: bf16[128,128], index: 4, kind: output, shape index: {}]  }
   0x1   :  { %v365_v0 = vld [vmem:[%s578_s1 + $0x38] sm:$0xff]  ;;  %v364_v1 = vld [vmem:[%s578_s1 + $0x30] sm:$0xff]  ;;  %v363_v2 = vld [vmem:[%s578_s1 + $0x28] sm:$0xff] }
   0x2   :  { %145 = vmatpush.bf16.msra.mxu0 %v365_v0  ;;  %413 = vmatpush.bf16.msra.mxu1 %v365_v0  ;;  %v362_v3 = vld [vmem:[%s578_s1 + $0x20] sm:$0xff]  ;;  %v361_v4 = vld [vmem:[%s578_s1 + $0x18] sm:$0xff]  ;;  %v360_v5 = vld [vmem:[%s578_s1 + $0x10] sm:$0xff] }
   0x3   :  { %414 = vmatpush.bf16.msra.mxu2 %v365_v0  ;;  %415 = vmatpush.bf16.msra.mxu3 %v365_v0  ;;  %v359_v6 = vld [vmem:[%s578_s1 + $0x8] sm:$0xff]  ;;  %v358_v7 = vld [vmem:[%s578_s1] sm:$0xff]  ;;  %v352_v9 = vld [vmem:[%s581_s0 + $0x10] sm:$0xff] }
   0x4   :  { %v350_v8 = vld [vmem:[%s581_s0] sm:$0xff]  ;;  %v356_v11 = vld [vmem:[%s581_s0 + $0x30] sm:$0xff]  ;;  %v351_v12 = vld [vmem:[%s581_s0 + $0x8] sm:$0xff] }
   0x5   :  { %v354_v10 = vld [vmem:[%s581_s0 + $0x20] sm:$0xff]  ;;  %v353_v13 = vld [vmem:[%s581_s0 + $0x18] sm:$0xff]  ;;  %v355_v14 = vld [vmem:[%s581_s0 + $0x28] sm:$0xff] }
   0x6   :  { %146 = vmatpush.bf16.msra.mxu0 %v364_v1  ;;  %416 = vmatpush.bf16.msra.mxu1 %v364_v1  ;;  %v357_v15 = vld [vmem:[%s581_s0 + $0x38] sm:$0xff]  ;;  %v515_v18 = vld [vmem:[%s579_s2] ss:$0 sm:$0xff] }
   0x7   :  { %417 = vmatpush.bf16.msra.mxu2 %v364_v1  ;;  %418 = vmatpush.bf16.msra.mxu3 %v364_v1  ;;  %v521_v20 = vld [vmem:[%s580_s3] ss:$0 sm:$0xff] }
   0xa   :  { %147 = vmatpush.bf16.msra.mxu0 %v363_v2  ;;  %419 = vmatpush.bf16.msra.mxu1 %v363_v2 }
   0xb   :  { %420 = vmatpush.bf16.msra.mxu2 %v363_v2  ;;  %421 = vmatpush.bf16.msra.mxu3 %v363_v2 }
   0xe   :  { %148 = vmatpush.bf16.msra.mxu0 %v362_v3  ;;  %422 = vmatpush.bf16.msra.mxu1 %v362_v3 }
   0xf   :  { %423 = vmatpush.bf16.msra.mxu2 %v362_v3  ;;  %424 = vmatpush.bf16.msra.mxu3 %v362_v3 }
  0x12   :  { %149 = vmatpush.bf16.msra.mxu0 %v361_v4  ;;  %425 = vmatpush.bf16.msra.mxu1 %v361_v4 }
  0x13   :  { %426 = vmatpush.bf16.msra.mxu2 %v361_v4  ;;  %427 = vmatpush.bf16.msra.mxu3 %v361_v4 }
  0x16   :  { %150 = vmatpush.bf16.msra.mxu0 %v360_v5  ;;  %428 = vmatpush.bf16.msra.mxu1 %v360_v5 }
  0x17   :  { %429 = vmatpush.bf16.msra.mxu2 %v360_v5  ;;  %430 = vmatpush.bf16.msra.mxu3 %v360_v5 }
  0x1a   :  { %151 = vmatpush.bf16.msra.mxu0 %v359_v6  ;;  %431 = vmatpush.bf16.msra.mxu1 %v359_v6 }
  0x1b   :  { %432 = vmatpush.bf16.msra.mxu2 %v359_v6  ;;  %433 = vmatpush.bf16.msra.mxu3 %v359_v6 }
  0x1e   :  { %152 = vmatpush.bf16.msra.mxu0 %v358_v7  ;;  %434 = vmatpush.bf16.msra.mxu1 %v358_v7 }
  0x1f   :  { %435 = vmatpush.bf16.msra.mxu2 %v358_v7  ;;  %436 = vmatpush.bf16.msra.mxu3 %v358_v7 }
  0x21   :  { %153 = vmatmul.bf16.vlgmr.msra.gmra.mxu0 %v350_v8  ;;  %163 = vmatmul.bf16.vlgmr.msra.gmra.mxu1 %v352_v9 }
  0x22   :  { %173 = vmatmul.bf16.vlgmr.msra.gmra.mxu2 %v354_v10  ;;  %183 = vmatmul.bf16.vlgmr.msra.gmra.mxu3 %v356_v11 }
  0x31   :  { %158 = vmatmul.bf16.gmra.mxu0 %v351_v12  ;;  %168 = vmatmul.bf16.gmra.mxu1 %v353_v13 }
  0x32   :  { %178 = vmatmul.bf16.gmra.mxu2 %v355_v14  ;;  %188 = vmatmul.bf16.gmra.mxu3 %v357_v15 }
  0x9e   :  { %v154_v16 = vpop.f32.mrf.mxu0  ;;  %v164_v17 = vpop.f32.mrf.mxu1 }
  0x9f   :  { %v198_v19 = vmul.f32 %v515_v18, %v154_v16  ;;  %v202_v21 = vmul.f32 %v515_v18, %v164_v17 }
  0xa1   :  { %v218_v26 = vadd.f32 %v521_v20, %v198_v19  ;;  %v222_v27 = vadd.f32 %v521_v20, %v202_v21 }
  0xa3   :  { %v234_v34 = vmax.f32 %v218_v26, 0.0  ;;  %v238_v35 = vmax.f32 %v222_v27, 0.0 }
  0xa5   :  { %v174_v22 = vpop.f32.mrf.mxu2  ;;  %v184_v23 = vpop.f32.mrf.mxu3 }
  0xa6   :  { %v156_v24 = vpop.f32.mrf.mxu0  ;;  %v166_v25 = vpop.f32.mrf.mxu1  ;;  %v206_v32 = vmul.f32 %v515_v18, %v174_v22  ;;  %v210_v33 = vmul.f32 %v515_v18, %v184_v23 }
  0xa7   :  { %v199_v28 = vmul.f32 %v515_v18, %v156_v24  ;;  %v203_v29 = vmul.f32 %v515_v18, %v166_v25 }
  0xa8   :  { %v226_v42 = vadd.f32 %v521_v20, %v206_v32  ;;  %v230_v43 = vadd.f32 %v521_v20, %v210_v33 }
  0xa9   :  { %v219_v30 = vadd.f32 %v521_v20, %v199_v28  ;;  %v223_v31 = vadd.f32 %v521_v20, %v203_v29 }
  0xaa   :  { %v242_v50 = vmax.f32 %v226_v42, 0.0  ;;  %v246_v51 = vmax.f32 %v230_v43, 0.0 }
  0xab   :  { %v235_v36 = vmax.f32 %v219_v30, 0.0  ;;  %v239_v37 = vmax.f32 %v223_v31, 0.0 }
  0xad   :  { %v369_v38 = vpack.c.bf16 %v235_v36, %v234_v34  ;;  %v379_v39 = vpack.c.bf16 %v239_v37, %v238_v35  ;;  %v176_v40 = vpop.f32.mrf.mxu2  ;;  %v186_v41 = vpop.f32.mrf.mxu3 }
  0xae   :  { %v207_v44 = vmul.f32 %v515_v18, %v176_v40  ;;  %v211_v45 = vmul.f32 %v515_v18, %v186_v41  ;;  %v159_v46 = vpop.f32.mrf.mxu0  ;;  %v169_v47 = vpop.f32.mrf.mxu1 }
  0xaf   :  { %370 = vst [vmem:[%s582_s4] sm:$0xff] %v369_v38   ;;  %v200_v54 = vmul.f32 %v515_v18, %v159_v46  ;;  %v204_v55 = vmul.f32 %v515_v18, %v169_v47 }
  0xb0   :  { %407 = vst [vmem:[%s582_s4 + $0x10] sm:$0xff] %v379_v39   ;;  %v227_v48 = vadd.f32 %v521_v20, %v207_v44  ;;  %v231_v49 = vadd.f32 %v521_v20, %v211_v45 }
  0xb1   :  { %v220_v62 = vadd.f32 %v521_v20, %v200_v54  ;;  %v224_v63 = vadd.f32 %v521_v20, %v204_v55 }
  0xb2   :  { %v243_v52 = vmax.f32 %v227_v48, 0.0  ;;  %v247_v53 = vmax.f32 %v231_v49, 0.0 }
  0xb3   :  { %v236_v6 = vmax.f32 %v220_v62, 0.0  ;;  %v240_v7 = vmax.f32 %v224_v63, 0.0 }
  0xb4   :  { %v389_v56 = vpack.c.bf16 %v243_v52, %v242_v50  ;;  %v399_v57 = vpack.c.bf16 %v247_v53, %v246_v51 }
  0xb5   :  { %v179_v58 = vpop.f32.mrf.mxu2  ;;  %v189_v59 = vpop.f32.mrf.mxu3 }
  0xb6   :  { %409 = vst [vmem:[%s582_s4 + $0x20] sm:$0xff] %v389_v56   ;;  %v161_v60 = vpop.f32.mrf.mxu0  ;;  %v171_v61 = vpop.f32.mrf.mxu1  ;;  %v208_v4 = vmul.f32 %v515_v18, %v179_v58  ;;  %v212_v5 = vmul.f32 %v515_v18, %v189_v59 }
  0xb7   :  { %411 = vst [vmem:[%s582_s4 + $0x30] sm:$0xff] %v399_v57   ;;  %v201_v0 = vmul.f32 %v515_v18, %v161_v60  ;;  %v205_v1 = vmul.f32 %v515_v18, %v171_v61 }
  0xb8   :  { %v228_v14 = vadd.f32 %v521_v20, %v208_v4  ;;  %v232_v15 = vadd.f32 %v521_v20, %v212_v5 }
  0xb9   :  { %v221_v2 = vadd.f32 %v521_v20, %v201_v0  ;;  %v225_v3 = vadd.f32 %v521_v20, %v205_v1 }
  0xba   :  { %v244_v22 = vmax.f32 %v228_v14, 0.0  ;;  %v248_v23 = vmax.f32 %v232_v15, 0.0 }
  0xbb   :  { %v237_v8 = vmax.f32 %v221_v2, 0.0  ;;  %v241_v9 = vmax.f32 %v225_v3, 0.0 }
  0xbd   :  { %v374_v10 = vpack.c.bf16 %v237_v8, %v236_v6  ;;  %v384_v11 = vpack.c.bf16 %v241_v9, %v240_v7  ;;  %v181_v12 = vpop.f32.mrf.mxu2  ;;  %v191_v13 = vpop.f32.mrf.mxu3 }
  0xbe   :  { %v209_v16 = vmul.f32 %v515_v18, %v181_v12  ;;  %v213_v17 = vmul.f32 %v515_v18, %v191_v13 }
  0xbf   :  { %406 = vst [vmem:[%s582_s4 + $0x8] sm:$0xff] %v374_v10  }
  0xc0   :  { %408 = vst [vmem:[%s582_s4 + $0x18] sm:$0xff] %v384_v11   ;;  %v229_v19 = vadd.f32 %v521_v20, %v209_v16  ;;  %v233_v21 = vadd.f32 %v521_v20, %v213_v17 }
  0xc2   :  { %v245_v24 = vmax.f32 %v229_v19, 0.0  ;;  %v249_v25 = vmax.f32 %v233_v21, 0.0 }
  0xc4   :  { %v394_v26 = vpack.c.bf16 %v245_v24, %v244_v22  ;;  %v404_v27 = vpack.c.bf16 %v249_v25, %v248_v23 }
  0xc6   :  { %410 = vst [vmem:[%s582_s4 + $0x28] sm:$0xff] %v394_v26  }
  0xc7   :  { %412 = vst [vmem:[%s582_s4 + $0x38] sm:$0xff] %v404_v27  }

// kernel: dappm_forward.9
= control target key start
LH: loop header
LB: loop body
LE: loop exit
PB: predicated region body
PF: predicated region fallthrough
CT: control target
= control target key end

     0   :  { %s1627_s27 = smov 0   ;;  %s1902_s0 = inlined_call_operand.vmem [shape: bf16[512,128], index: 0, kind: input, shape index: {}]   ;;  %s1903_s1 = inlined_call_operand.vmem [shape: bf16[128,128], index: 1, kind: input, shape index: {}]   ;;  %s1904_s2 = inlined_call_operand.vmem [shape: f32[1,128], index: 2, kind: input, shape index: {}]   ;;  %s1905_s3 = inlined_call_operand.vmem [shape: f32[1,128], index: 3, kind: input, shape index: {}]   ;;  %s1906_s4 = inlined_call_operand.vmem [shape: bf16[128,128], index: 4, kind: input, shape index: {}]   ;;  %s1907_s5 = inlined_call_operand.vmem [shape: f32[1,128], index: 5, kind: input, shape index: {}]   ;;  %s1908_s6 = inlined_call_operand.vmem [shape: f32[1,128], index: 6, kind: input, shape index: {}]   ;;  %s1909_s7 = inlined_call_operand.vmem [shape: bf16[512,128], index: 7, kind: output, shape index: {0}]   ;;  %s1910_s8 = inlined_call_operand.vmem [shape: bf16[512,128], index: 8, kind: output, shape index: {1}]  }
   0x1 LB: > { %s1183_s28 = sadd.s32 4294967295, %s1580_s27   ;;  %p1187_p0 = scmp.ge.s32.totalorder %s1580_s27, 1  ;;  %s1580_s27 = sphi %s1627_s27, %s19_s27  }
   0x2   : > { %p266_p1 = scmp.lt.s32.totalorder %s1580_s27, 3 }
   0x4   : > { %p267_p2 = pnand %p1187_p0, %p266_p1 }
   0x5   : > { %s1188_s23 = sshll.u32 (!%p267_p2), %s1183_s28, 5 }
   0x6   : > { %270 = sbr.rel (%p267_p2) target bundleno = 305 (0x131), region = 48  ;;  %p306_p3 = scmp.lt.s32.totalorder (!%p267_p2), %s1188_s23, 63 }
   0xb   : > { %v1347_v0 = vld [vmem:[%s1903_s1 + $0x38] sm:$0xff]  ;;  %v1346_v2 = vld [vmem:[%s1903_s1 + $0x30] sm:$0xff]  ;;  %v1345_v4 = vld [vmem:[%s1903_s1 + $0x28] sm:$0xff]  ;;  %s1912_s23 = smov (!%p306_p3, %s1188_s23), 63 }
   0xc   : > { %v1355_v1 = vld [vmem:[%s1906_s4 + $0x38] sm:$0xff]  ;;  %515 = vmatpush.bf16.msra.mxu0 %v1347_v0  ;;  %1546 = vmatpush.bf16.msra.mxu2 %v1347_v0  ;;  %v1354_v3 = vld [vmem:[%s1906_s4 + $0x30] sm:$0xff]  ;;  %v1353_v5 = vld [vmem:[%s1906_s4 + $0x28] sm:$0xff]  ;;  %s1677_s15 = sshll.u32 %s1912_s23, 2 }
   0xd   : > { %836 = vmatpush.bf16.msra.mxu1 %v1355_v1  ;;  %1554 = vmatpush.bf16.msra.mxu3 %v1355_v1  ;;  %v1344_v6 = vld [vmem:[%s1903_s1 + $0x20] sm:$0xff]  ;;  %v1343_v8 = vld [vmem:[%s1903_s1 + $0x18] sm:$0xff]  ;;  %v1342_v10 = vld [vmem:[%s1903_s1 + $0x10] sm:$0xff]  ;;  %s1686_s20 = scalar_lea.vmem %s1902_s0, %s1677_s15  ;;  %s1741_s12 = scalar_lea.vmem %s1909_s7, %s1677_s15 }
   0xe   : > { %v1352_v7 = vld [vmem:[%s1906_s4 + $0x20] sm:$0xff]  ;;  %v1351_v9 = vld [vmem:[%s1906_s4 + $0x18] sm:$0xff]  ;;  %v1350_v11 = vld [vmem:[%s1906_s4 + $0x10] sm:$0xff]  ;;  %s1748_s16 = scalar_lea.vmem %s1910_s8, %s1677_s15 }
   0xf   : > { %v1341_v12 = vld [vmem:[%s1903_s1 + $0x8] sm:$0xff]  ;;  %v1340_v14 = vld [vmem:[%s1903_s1] sm:$0xff]  ;;  %v1326_v20 = vld [vmem:[%s1686_s20 + $0x10] sm:$0xff] }
  0x10   : > { %516 = vmatpush.bf16.msra.mxu0 %v1346_v2  ;;  %1547 = vmatpush.bf16.msra.mxu2 %v1346_v2  ;;  %v1349_v13 = vld [vmem:[%s1906_s4 + $0x8] sm:$0xff]  ;;  %v1348_v15 = vld [vmem:[%s1906_s4] sm:$0xff]  ;;  %v1334_v21 = vld [vmem:[%s1686_s20 + $0x50] sm:$0xff] }
  0x11   : > { %837 = vmatpush.bf16.msra.mxu1 %v1354_v3  ;;  %1555 = vmatpush.bf16.msra.mxu3 %v1354_v3  ;;  %v1324_v16 = vld [vmem:[%s1686_s20] sm:$0xff]  ;;  %v1325_v18 = vld [vmem:[%s1686_s20 + $0x8] sm:$0xff]  ;;  %v1327_v22 = vld [vmem:[%s1686_s20 + $0x18] sm:$0xff] }
  0x12   : > { %v1332_v17 = vld [vmem:[%s1686_s20 + $0x40] sm:$0xff]  ;;  %v1333_v19 = vld [vmem:[%s1686_s20 + $0x48] sm:$0xff]  ;;  %v1335_v23 = vld [vmem:[%s1686_s20 + $0x58] sm:$0xff] }
  0x13   : > { %v1328_v24 = vld [vmem:[%s1686_s20 + $0x20] sm:$0xff]  ;;  %v1329_v26 = vld [vmem:[%s1686_s20 + $0x28] sm:$0xff]  ;;  %v1330_v28 = vld [vmem:[%s1686_s20 + $0x30] sm:$0xff] }
  0x14   : > { %517 = vmatpush.bf16.msra.mxu0 %v1345_v4  ;;  %1548 = vmatpush.bf16.msra.mxu2 %v1345_v4  ;;  %v1336_v25 = vld [vmem:[%s1686_s20 + $0x60] sm:$0xff]  ;;  %v1337_v27 = vld [vmem:[%s1686_s20 + $0x68] sm:$0xff]  ;;  %v1338_v29 = vld [vmem:[%s1686_s20 + $0x70] sm:$0xff] }
  0x15   : > { %838 = vmatpush.bf16.msra.mxu1 %v1353_v5  ;;  %1556 = vmatpush.bf16.msra.mxu3 %v1353_v5  ;;  %v1331_v30 = vld [vmem:[%s1686_s20 + $0x38] sm:$0xff]  ;;  %v1710_v33 = vld [vmem:[%s1904_s2] ss:$0 sm:$0xff] }
  0x16   : > { %v1339_v31 = vld [vmem:[%s1686_s20 + $0x78] sm:$0xff]  ;;  %v1715_v35 = vld [vmem:[%s1907_s5] ss:$0 sm:$0xff] }
  0x17   : > { %v1721_v37 = vld [vmem:[%s1905_s3] ss:$0 sm:$0xff] }
  0x18   : > { %518 = vmatpush.bf16.msra.mxu0 %v1344_v6  ;;  %1549 = vmatpush.bf16.msra.mxu2 %v1344_v6  ;;  %v1727_v39 = vld [vmem:[%s1908_s6] ss:$0 sm:$0xff] }
  0x19   : > { %839 = vmatpush.bf16.msra.mxu1 %v1352_v7  ;;  %1557 = vmatpush.bf16.msra.mxu3 %v1352_v7 }
  0x1c   : > { %519 = vmatpush.bf16.msra.mxu0 %v1343_v8  ;;  %1550 = vmatpush.bf16.msra.mxu2 %v1343_v8 }
  0x1d   : > { %840 = vmatpush.bf16.msra.mxu1 %v1351_v9  ;;  %1558 = vmatpush.bf16.msra.mxu3 %v1351_v9 }
  0x20   : > { %520 = vmatpush.bf16.msra.mxu0 %v1342_v10  ;;  %1551 = vmatpush.bf16.msra.mxu2 %v1342_v10 }
  0x21   : > { %841 = vmatpush.bf16.msra.mxu1 %v1350_v11  ;;  %1559 = vmatpush.bf16.msra.mxu3 %v1350_v11 }
  0x24   : > { %521 = vmatpush.bf16.msra.mxu0 %v1341_v12  ;;  %1552 = vmatpush.bf16.msra.mxu2 %v1341_v12 }
  0x25   : > { %842 = vmatpush.bf16.msra.mxu1 %v1349_v13  ;;  %1560 = vmatpush.bf16.msra.mxu3 %v1349_v13 }
  0x28   : > { %522 = vmatpush.bf16.msra.mxu0 %v1340_v14  ;;  %1553 = vmatpush.bf16.msra.mxu2 %v1340_v14 }
  0x29   : > { %843 = vmatpush.bf16.msra.mxu1 %v1348_v15  ;;  %1561 = vmatpush.bf16.msra.mxu3 %v1348_v15 }
  0x2b   : > { %523 = vmatmul.bf16.vlgmr.msra.gmra.mxu0 %v1324_v16  ;;  %563 = vmatmul.bf16.vlgmr.msra.gmra.mxu2 %v1332_v17 }
  0x2c   : > { %844 = vmatmul.bf16.vlgmr.msra.gmra.mxu1 %v1324_v16  ;;  %884 = vmatmul.bf16.vlgmr.msra.gmra.mxu3 %v1332_v17 }
  0x3b   : > { %528 = vmatmul.bf16.gmra.mxu0 %v1325_v18  ;;  %568 = vmatmul.bf16.gmra.mxu2 %v1333_v19 }
  0x3c   : > { %849 = vmatmul.bf16.gmra.mxu1 %v1325_v18  ;;  %889 = vmatmul.bf16.gmra.mxu3 %v1333_v19 }
  0x4b   : > { %533 = vmatmul.bf16.gmra.mxu0 %v1326_v20  ;;  %573 = vmatmul.bf16.gmra.mxu2 %v1334_v21 }
  0x4c   : > { %854 = vmatmul.bf16.gmra.mxu1 %v1326_v20  ;;  %894 = vmatmul.bf16.gmra.mxu3 %v1334_v21 }
  0x5b   : > { %538 = vmatmul.bf16.gmra.mxu0 %v1327_v22  ;;  %578 = vmatmul.bf16.gmra.mxu2 %v1335_v23 }
  0x5c   : > { %859 = vmatmul.bf16.gmra.mxu1 %v1327_v22  ;;  %899 = vmatmul.bf16.gmra.mxu3 %v1335_v23 }
  0x6b   : > { %543 = vmatmul.bf16.gmra.mxu0 %v1328_v24  ;;  %583 = vmatmul.bf16.gmra.mxu2 %v1336_v25 }
  0x6c   : > { %864 = vmatmul.bf16.gmra.mxu1 %v1328_v24  ;;  %904 = vmatmul.bf16.gmra.mxu3 %v1336_v25 }
  0x7b   : > { %548 = vmatmul.bf16.gmra.mxu0 %v1329_v26  ;;  %588 = vmatmul.bf16.gmra.mxu2 %v1337_v27 }
  0x7c   : > { %869 = vmatmul.bf16.gmra.mxu1 %v1329_v26  ;;  %909 = vmatmul.bf16.gmra.mxu3 %v1337_v27 }
  0x8b   : > { %553 = vmatmul.bf16.gmra.mxu0 %v1330_v28  ;;  %593 = vmatmul.bf16.gmra.mxu2 %v1338_v29 }
  0x8c   : > { %874 = vmatmul.bf16.gmra.mxu1 %v1330_v28  ;;  %914 = vmatmul.bf16.gmra.mxu3 %v1338_v29 }
  0x9b   : > { %558 = vmatmul.bf16.gmra.mxu0 %v1331_v30  ;;  %598 = vmatmul.bf16.gmra.mxu2 %v1339_v31 }
  0x9c   : > { %879 = vmatmul.bf16.gmra.mxu1 %v1331_v30  ;;  %919 = vmatmul.bf16.gmra.mxu3 %v1339_v31 }
  0xa8   : > { %v524_v32 = vpop.f32.mrf.mxu0 }
  0xa9   : > { %v845_v34 = vpop.f32.mrf.mxu1  ;;  %v608_v36 = vmul.f32 %v1710_v33, %v524_v32 }
  0xaa   : > { %v929_v38 = vmul.f32 %v1715_v35, %v845_v34 }
  0xab   : > { %v644_v43 = vadd.f32 %v1721_v37, %v608_v36 }
  0xac   : > { %v965_v46 = vadd.f32 %v1727_v39, %v929_v38 }
  0xad   : > { %v676_v52 = vmax.f32 %v644_v43, 0.0 }
  0xae   : > { %v564_v40 = vpop.f32.mrf.mxu2  ;;  %v997_v54 = vmax.f32 %v965_v46, 0.0 }
  0xaf   : > { %v885_v41 = vpop.f32.mrf.mxu3  ;;  %v624_v48 = vmul.f32 %v1710_v33, %v564_v40 }
  0xb0   : > { %v526_v42 = vpop.f32.mrf.mxu0  ;;  %v945_v50 = vmul.f32 %v1715_v35, %v885_v41 }
  0xb1   : > { %v609_v44 = vmul.f32 %v1710_v33, %v526_v42  ;;  %v847_v45 = vpop.f32.mrf.mxu1  ;;  %v660_v57 = vadd.f32 %v1721_v37, %v624_v48 }
  0xb2   : > { %v930_v47 = vmul.f32 %v1715_v35, %v847_v45  ;;  %v981_v61 = vadd.f32 %v1727_v39, %v945_v50 }
  0xb3   : > { %v645_v49 = vadd.f32 %v1721_v37, %v609_v44  ;;  %v692_v4 = vmax.f32 %v660_v57, 0.0 }
  0xb4   : > { %v966_v51 = vadd.f32 %v1727_v39, %v930_v47  ;;  %v1013_v6 = vmax.f32 %v981_v61, 0.0 }
  0xb5   : > { %v677_v53 = vmax.f32 %v645_v49, 0.0 }
  0xb6   : > { %v998_v55 = vmax.f32 %v966_v51, 0.0  ;;  %v566_v56 = vpop.f32.mrf.mxu2 }
  0xb7   : > { %v1359_v58 = vpack.c.bf16 %v677_v53, %v676_v52  ;;  %v625_v59 = vmul.f32 %v1710_v33, %v566_v56  ;;  %v887_v60 = vpop.f32.mrf.mxu3 }
  0xb8   : > { %v1439_v62 = vpack.c.bf16 %v998_v55, %v997_v54  ;;  %v946_v63 = vmul.f32 %v1715_v35, %v887_v60  ;;  %v529_v0 = vpop.f32.mrf.mxu0 }
  0xb9   : > { %1360 = vst [vmem:[%s1741_s12] sm:$0xff] %v1359_v58   ;;  %v661_v1 = vadd.f32 %v1721_v37, %v625_v59  ;;  %v850_v2 = vpop.f32.mrf.mxu1  ;;  %v610_v9 = vmul.f32 %v1710_v33, %v529_v0 }
  0xba   : > { %1440 = vst [vmem:[%s1748_s16] sm:$0xff] %v1439_v62   ;;  %v982_v3 = vadd.f32 %v1727_v39, %v946_v63  ;;  %v931_v11 = vmul.f32 %v1715_v35, %v850_v2 }
  0xbb   : > { %v693_v5 = vmax.f32 %v661_v1, 0.0  ;;  %v646_v15 = vadd.f32 %v1721_v37, %v610_v9 }
  0xbc   : > { %v1014_v7 = vmax.f32 %v982_v3, 0.0  ;;  %v967_v18 = vadd.f32 %v1727_v39, %v931_v11 }
  0xbd   : > { %v1399_v8 = vpack.c.bf16 %v693_v5, %v692_v4  ;;  %v678_v24 = vmax.f32 %v646_v15, 0.0 }
  0xbe   : > { %v1479_v10 = vpack.c.bf16 %v1014_v7, %v1013_v6  ;;  %v569_v12 = vpop.f32.mrf.mxu2  ;;  %v999_v26 = vmax.f32 %v967_v18, 0.0 }
  0xbf   : > { %1523 = vst [vmem:[%s1741_s12 + $0x40] sm:$0xff] %v1399_v8   ;;  %v890_v13 = vpop.f32.mrf.mxu3  ;;  %v626_v20 = vmul.f32 %v1710_v33, %v569_v12 }
  0xc0   : > { %1538 = vst [vmem:[%s1748_s16 + $0x40] sm:$0xff] %v1479_v10   ;;  %v531_v14 = vpop.f32.mrf.mxu0  ;;  %v947_v22 = vmul.f32 %v1715_v35, %v890_v13 }
  0xc1   : > { %v611_v16 = vmul.f32 %v1710_v33, %v531_v14  ;;  %v852_v17 = vpop.f32.mrf.mxu1  ;;  %v662_v29 = vadd.f32 %v1721_v37, %v626_v20 }
  0xc2   : > { %v932_v19 = vmul.f32 %v1715_v35, %v852_v17  ;;  %v983_v34 = vadd.f32 %v1727_v39, %v947_v22 }
  0xc3   : > { %v647_v21 = vadd.f32 %v1721_v37, %v611_v16  ;;  %v694_v44 = vmax.f32 %v662_v29, 0.0 }
  0xc4   : > { %v968_v23 = vadd.f32 %v1727_v39, %v932_v19  ;;  %v1015_v46 = vmax.f32 %v983_v34, 0.0 }
  0xc5   : > { %v679_v25 = vmax.f32 %v647_v21, 0.0 }
  0xc6   : > { %v1000_v27 = vmax.f32 %v968_v23, 0.0  ;;  %v571_v28 = vpop.f32.mrf.mxu2 }
  0xc7   : > { %v1364_v30 = vpack.c.bf16 %v679_v25, %v678_v24  ;;  %v627_v31 = vmul.f32 %v1710_v33, %v571_v28  ;;  %v892_v32 = vpop.f32.mrf.mxu3 }
  0xc8   : > { %v1444_v36 = vpack.c.bf16 %v1000_v27, %v999_v26  ;;  %v948_v38 = vmul.f32 %v1715_v35, %v892_v32  ;;  %v534_v40 = vpop.f32.mrf.mxu0 }
  0xc9   : > { %1516 = vst [vmem:[%s1741_s12 + $0x8] sm:$0xff] %v1364_v30   ;;  %v663_v41 = vadd.f32 %v1721_v37, %v627_v31  ;;  %v855_v42 = vpop.f32.mrf.mxu1  ;;  %v612_v49 = vmul.f32 %v1710_v33, %v534_v40 }
  0xca   : > { %1531 = vst [vmem:[%s1748_s16 + $0x8] sm:$0xff] %v1444_v36   ;;  %v984_v43 = vadd.f32 %v1727_v39, %v948_v38  ;;  %v933_v51 = vmul.f32 %v1715_v35, %v855_v42 }
  0xcb   : > { %v695_v45 = vmax.f32 %v663_v41, 0.0  ;;  %v648_v55 = vadd.f32 %v1721_v37, %v612_v49 }
  0xcc   : > { %v1016_v47 = vmax.f32 %v984_v43, 0.0  ;;  %v969_v58 = vadd.f32 %v1727_v39, %v933_v51 }
  0xcd   : > { %v1404_v48 = vpack.c.bf16 %v695_v45, %v694_v44  ;;  %v680_v0 = vmax.f32 %v648_v55, 0.0 }
  0xce   : > { %v1484_v50 = vpack.c.bf16 %v1016_v47, %v1015_v46  ;;  %v574_v52 = vpop.f32.mrf.mxu2  ;;  %v1001_v2 = vmax.f32 %v969_v58, 0.0 }
  0xcf   : > { %1524 = vst [vmem:[%s1741_s12 + $0x48] sm:$0xff] %v1404_v48   ;;  %v895_v53 = vpop.f32.mrf.mxu3  ;;  %v628_v60 = vmul.f32 %v1710_v33, %v574_v52 }
  0xd0   : > { %1539 = vst [vmem:[%s1748_s16 + $0x48] sm:$0xff] %v1484_v50   ;;  %v536_v54 = vpop.f32.mrf.mxu0  ;;  %v949_v62 = vmul.f32 %v1715_v35, %v895_v53 }
  0xd1   : > { %v613_v56 = vmul.f32 %v1710_v33, %v536_v54  ;;  %v857_v57 = vpop.f32.mrf.mxu1  ;;  %v664_v5 = vadd.f32 %v1721_v37, %v628_v60 }
  0xd2   : > { %v934_v59 = vmul.f32 %v1715_v35, %v857_v57  ;;  %v985_v9 = vadd.f32 %v1727_v39, %v949_v62 }
  0xd3   : > { %v649_v61 = vadd.f32 %v1721_v37, %v613_v56  ;;  %v696_v16 = vmax.f32 %v664_v5, 0.0 }
  0xd4   : > { %v970_v63 = vadd.f32 %v1727_v39, %v934_v59  ;;  %v1017_v18 = vmax.f32 %v985_v9, 0.0 }
  0xd5   : > { %v681_v1 = vmax.f32 %v649_v61, 0.0 }
  0xd6   : > { %v1002_v3 = vmax.f32 %v970_v63, 0.0  ;;  %v576_v4 = vpop.f32.mrf.mxu2 }
  0xd7   : > { %v1369_v6 = vpack.c.bf16 %v681_v1, %v680_v0  ;;  %v629_v7 = vmul.f32 %v1710_v33, %v576_v4  ;;  %v897_v8 = vpop.f32.mrf.mxu3 }
  0xd8   : > { %v1449_v10 = vpack.c.bf16 %v1002_v3, %v1001_v2  ;;  %v950_v11 = vmul.f32 %v1715_v35, %v897_v8  ;;  %v539_v12 = vpop.f32.mrf.mxu0 }
  0xd9   : > { %1517 = vst [vmem:[%s1741_s12 + $0x10] sm:$0xff] %v1369_v6   ;;  %v665_v13 = vadd.f32 %v1721_v37, %v629_v7  ;;  %v860_v14 = vpop.f32.mrf.mxu1  ;;  %v614_v21 = vmul.f32 %v1710_v33, %v539_v12 }
  0xda   : > { %1532 = vst [vmem:[%s1748_s16 + $0x10] sm:$0xff] %v1449_v10   ;;  %v986_v15 = vadd.f32 %v1727_v39, %v950_v11  ;;  %v935_v23 = vmul.f32 %v1715_v35, %v860_v14 }
  0xdb   : > { %v697_v17 = vmax.f32 %v665_v13, 0.0  ;;  %v650_v27 = vadd.f32 %v1721_v37, %v614_v21 }
  0xdc   : > { %v1018_v19 = vmax.f32 %v986_v15, 0.0  ;;  %v971_v30 = vadd.f32 %v1727_v39, %v935_v23 }
  0xdd   : > { %v1409_v20 = vpack.c.bf16 %v697_v17, %v696_v16  ;;  %v682_v40 = vmax.f32 %v650_v27, 0.0 }
  0xde   : > { %v1489_v22 = vpack.c.bf16 %v1018_v19, %v1017_v18  ;;  %v579_v24 = vpop.f32.mrf.mxu2  ;;  %v1003_v42 = vmax.f32 %v971_v30, 0.0 }
  0xdf   : > { %1525 = vst [vmem:[%s1741_s12 + $0x50] sm:$0xff] %v1409_v20   ;;  %v900_v25 = vpop.f32.mrf.mxu3  ;;  %v630_v32 = vmul.f32 %v1710_v33, %v579_v24 }
  0xe0   : > { %1540 = vst [vmem:[%s1748_s16 + $0x50] sm:$0xff] %v1489_v22   ;;  %v541_v26 = vpop.f32.mrf.mxu0  ;;  %v951_v36 = vmul.f32 %v1715_v35, %v900_v25 }
  0xe1   : > { %v615_v28 = vmul.f32 %v1710_v33, %v541_v26  ;;  %v862_v29 = vpop.f32.mrf.mxu1  ;;  %v666_v45 = vadd.f32 %v1721_v37, %v630_v32 }
  0xe2   : > { %v936_v31 = vmul.f32 %v1715_v35, %v862_v29  ;;  %v987_v49 = vadd.f32 %v1727_v39, %v951_v36 }
  0xe3   : > { %v651_v34 = vadd.f32 %v1721_v37, %v615_v28  ;;  %v698_v56 = vmax.f32 %v666_v45, 0.0 }
  0xe4   : > { %v972_v38 = vadd.f32 %v1727_v39, %v936_v31  ;;  %v1019_v58 = vmax.f32 %v987_v49, 0.0 }
  0xe5   : > { %v683_v41 = vmax.f32 %v651_v34, 0.0 }
  0xe6   : > { %v1004_v43 = vmax.f32 %v972_v38, 0.0  ;;  %v581_v44 = vpop.f32.mrf.mxu2 }
  0xe7   : > { %v1374_v46 = vpack.c.bf16 %v683_v41, %v682_v40  ;;  %v631_v47 = vmul.f32 %v1710_v33, %v581_v44  ;;  %v902_v48 = vpop.f32.mrf.mxu3 }
  0xe8   : > { %v1454_v50 = vpack.c.bf16 %v1004_v43, %v1003_v42  ;;  %v952_v51 = vmul.f32 %v1715_v35, %v902_v48  ;;  %v544_v52 = vpop.f32.mrf.mxu0 }
  0xe9   : > { %1518 = vst [vmem:[%s1741_s12 + $0x18] sm:$0xff] %v1374_v46   ;;  %v667_v53 = vadd.f32 %v1721_v37, %v631_v47  ;;  %v865_v54 = vpop.f32.mrf.mxu1  ;;  %v616_v61 = vmul.f32 %v1710_v33, %v544_v52 }
  0xea   : > { %1533 = vst [vmem:[%s1748_s16 + $0x18] sm:$0xff] %v1454_v50   ;;  %v988_v55 = vadd.f32 %v1727_v39, %v952_v51  ;;  %v937_v63 = vmul.f32 %v1715_v35, %v865_v54 }
  0xeb   : > { %v699_v57 = vmax.f32 %v667_v53, 0.0  ;;  %v652_v3 = vadd.f32 %v1721_v37, %v616_v61 }
  0xec   : > { %v1020_v59 = vmax.f32 %v988_v55, 0.0  ;;  %v973_v6 = vadd.f32 %v1727_v39, %v937_v63 }
  0xed   : > { %v1414_v60 = vpack.c.bf16 %v699_v57, %v698_v56  ;;  %v684_v12 = vmax.f32 %v652_v3, 0.0 }
  0xee   : > { %v1494_v62 = vpack.c.bf16 %v1020_v59, %v1019_v58  ;;  %v584_v0 = vpop.f32.mrf.mxu2  ;;  %v1005_v14 = vmax.f32 %v973_v6, 0.0 }
  0xef   : > { %1526 = vst [vmem:[%s1741_s12 + $0x58] sm:$0xff] %v1414_v60   ;;  %v905_v1 = vpop.f32.mrf.mxu3  ;;  %v632_v8 = vmul.f32 %v1710_v33, %v584_v0 }
  0xf0   : > { %1541 = vst [vmem:[%s1748_s16 + $0x58] sm:$0xff] %v1494_v62   ;;  %v546_v2 = vpop.f32.mrf.mxu0  ;;  %v953_v10 = vmul.f32 %v1715_v35, %v905_v1 }
  0xf1   : > { %v617_v4 = vmul.f32 %v1710_v33, %v546_v2  ;;  %v867_v5 = vpop.f32.mrf.mxu1  ;;  %v668_v17 = vadd.f32 %v1721_v37, %v632_v8 }
  0xf2   : > { %v938_v7 = vmul.f32 %v1715_v35, %v867_v5  ;;  %v989_v21 = vadd.f32 %v1727_v39, %v953_v10 }
  0xf3   : > { %v653_v9 = vadd.f32 %v1721_v37, %v617_v4  ;;  %v700_v28 = vmax.f32 %v668_v17, 0.0 }
  0xf4   : > { %v974_v11 = vadd.f32 %v1727_v39, %v938_v7  ;;  %v1021_v30 = vmax.f32 %v989_v21, 0.0 }
  0xf5   : > { %v685_v13 = vmax.f32 %v653_v9, 0.0 }
  0xf6   : > { %v1006_v15 = vmax.f32 %v974_v11, 0.0  ;;  %v586_v16 = vpop.f32.mrf.mxu2 }
  0xf7   : > { %v1379_v18 = vpack.c.bf16 %v685_v13, %v684_v12  ;;  %v633_v19 = vmul.f32 %v1710_v33, %v586_v16  ;;  %v907_v20 = vpop.f32.mrf.mxu3 }
  0xf8   : > { %v1459_v22 = vpack.c.bf16 %v1006_v15, %v1005_v14  ;;  %v954_v23 = vmul.f32 %v1715_v35, %v907_v20  ;;  %v549_v24 = vpop.f32.mrf.mxu0 }
  0xf9   : > { %1519 = vst [vmem:[%s1741_s12 + $0x20] sm:$0xff] %v1379_v18   ;;  %v669_v25 = vadd.f32 %v1721_v37, %v633_v19  ;;  %v870_v26 = vpop.f32.mrf.mxu1  ;;  %v618_v34 = vmul.f32 %v1710_v33, %v549_v24 }
  0xfa   : > { %1534 = vst [vmem:[%s1748_s16 + $0x20] sm:$0xff] %v1459_v22   ;;  %v990_v27 = vadd.f32 %v1727_v39, %v954_v23  ;;  %v939_v38 = vmul.f32 %v1715_v35, %v870_v26 }
  0xfb   : > { %v701_v29 = vmax.f32 %v669_v25, 0.0  ;;  %v654_v43 = vadd.f32 %v1721_v37, %v618_v34 }
  0xfc   : > { %v1022_v31 = vmax.f32 %v990_v27, 0.0  ;;  %v975_v46 = vadd.f32 %v1727_v39, %v939_v38 }
  0xfd   : > { %v1419_v32 = vpack.c.bf16 %v701_v29, %v700_v28  ;;  %v686_v52 = vmax.f32 %v654_v43, 0.0 }
  0xfe   : > { %v1499_v36 = vpack.c.bf16 %v1022_v31, %v1021_v30  ;;  %v589_v40 = vpop.f32.mrf.mxu2  ;;  %v1007_v54 = vmax.f32 %v975_v46, 0.0 }
  0xff   : > { %1527 = vst [vmem:[%s1741_s12 + $0x60] sm:$0xff] %v1419_v32   ;;  %v910_v41 = vpop.f32.mrf.mxu3  ;;  %v634_v48 = vmul.f32 %v1710_v33, %v589_v40 }
 0x100   : > { %1542 = vst [vmem:[%s1748_s16 + $0x60] sm:$0xff] %v1499_v36   ;;  %v551_v42 = vpop.f32.mrf.mxu0  ;;  %v955_v50 = vmul.f32 %v1715_v35, %v910_v41 }
 0x101   : > { %v619_v44 = vmul.f32 %v1710_v33, %v551_v42  ;;  %v872_v45 = vpop.f32.mrf.mxu1  ;;  %v670_v57 = vadd.f32 %v1721_v37, %v634_v48 }
 0x102   : > { %v940_v47 = vmul.f32 %v1715_v35, %v872_v45  ;;  %v991_v61 = vadd.f32 %v1727_v39, %v955_v50 }
 0x103   : > { %v655_v49 = vadd.f32 %v1721_v37, %v619_v44  ;;  %v702_v4 = vmax.f32 %v670_v57, 0.0 }
 0x104   : > { %v976_v51 = vadd.f32 %v1727_v39, %v940_v47  ;;  %v1023_v6 = vmax.f32 %v991_v61, 0.0 }
 0x105   : > { %v687_v53 = vmax.f32 %v655_v49, 0.0 }
 0x106   : > { %v1008_v55 = vmax.f32 %v976_v51, 0.0  ;;  %v591_v56 = vpop.f32.mrf.mxu2 }
 0x107   : > { %v1384_v58 = vpack.c.bf16 %v687_v53, %v686_v52  ;;  %v635_v59 = vmul.f32 %v1710_v33, %v591_v56  ;;  %v912_v60 = vpop.f32.mrf.mxu3 }
 0x108   : > { %v1464_v62 = vpack.c.bf16 %v1008_v55, %v1007_v54  ;;  %v956_v63 = vmul.f32 %v1715_v35, %v912_v60  ;;  %v554_v0 = vpop.f32.mrf.mxu0 }
 0x109   : > { %1520 = vst [vmem:[%s1741_s12 + $0x28] sm:$0xff] %v1384_v58   ;;  %v671_v1 = vadd.f32 %v1721_v37, %v635_v59  ;;  %v875_v2 = vpop.f32.mrf.mxu1  ;;  %v620_v9 = vmul.f32 %v1710_v33, %v554_v0 }
 0x10a   : > { %1535 = vst [vmem:[%s1748_s16 + $0x28] sm:$0xff] %v1464_v62   ;;  %v992_v3 = vadd.f32 %v1727_v39, %v956_v63  ;;  %v941_v11 = vmul.f32 %v1715_v35, %v875_v2 }
 0x10b   : > { %v703_v5 = vmax.f32 %v671_v1, 0.0  ;;  %v656_v15 = vadd.f32 %v1721_v37, %v620_v9 }
 0x10c   : > { %v1024_v7 = vmax.f32 %v992_v3, 0.0  ;;  %v977_v18 = vadd.f32 %v1727_v39, %v941_v11 }
 0x10d   : > { %v1424_v8 = vpack.c.bf16 %v703_v5, %v702_v4  ;;  %v688_v24 = vmax.f32 %v656_v15, 0.0 }
 0x10e   : > { %v1504_v10 = vpack.c.bf16 %v1024_v7, %v1023_v6  ;;  %v594_v12 = vpop.f32.mrf.mxu2  ;;  %v1009_v26 = vmax.f32 %v977_v18, 0.0 }
 0x10f   : > { %1528 = vst [vmem:[%s1741_s12 + $0x68] sm:$0xff] %v1424_v8   ;;  %v915_v13 = vpop.f32.mrf.mxu3  ;;  %v636_v20 = vmul.f32 %v1710_v33, %v594_v12 }
 0x110   : > { %1543 = vst [vmem:[%s1748_s16 + $0x68] sm:$0xff] %v1504_v10   ;;  %v556_v14 = vpop.f32.mrf.mxu0  ;;  %v957_v22 = vmul.f32 %v1715_v35, %v915_v13 }
 0x111   : > { %v621_v16 = vmul.f32 %v1710_v33, %v556_v14  ;;  %v877_v17 = vpop.f32.mrf.mxu1  ;;  %v672_v29 = vadd.f32 %v1721_v37, %v636_v20 }
 0x112   : > { %v942_v19 = vmul.f32 %v1715_v35, %v877_v17  ;;  %v993_v34 = vadd.f32 %v1727_v39, %v957_v22 }
 0x113   : > { %v657_v21 = vadd.f32 %v1721_v37, %v621_v16  ;;  %v704_v44 = vmax.f32 %v672_v29, 0.0 }
 0x114   : > { %v978_v23 = vadd.f32 %v1727_v39, %v942_v19  ;;  %v1025_v46 = vmax.f32 %v993_v34, 0.0 }
 0x115   : > { %v689_v25 = vmax.f32 %v657_v21, 0.0 }
 0x116   : > { %v1010_v27 = vmax.f32 %v978_v23, 0.0  ;;  %v596_v28 = vpop.f32.mrf.mxu2 }
 0x117   : > { %v1389_v30 = vpack.c.bf16 %v689_v25, %v688_v24  ;;  %v637_v31 = vmul.f32 %v1710_v33, %v596_v28  ;;  %v917_v32 = vpop.f32.mrf.mxu3 }
 0x118   : > { %v1469_v36 = vpack.c.bf16 %v1010_v27, %v1009_v26  ;;  %v958_v38 = vmul.f32 %v1715_v35, %v917_v32  ;;  %v559_v40 = vpop.f32.mrf.mxu0 }
 0x119   : > { %1521 = vst [vmem:[%s1741_s12 + $0x30] sm:$0xff] %v1389_v30   ;;  %v673_v41 = vadd.f32 %v1721_v37, %v637_v31  ;;  %v880_v42 = vpop.f32.mrf.mxu1  ;;  %v622_v49 = vmul.f32 %v1710_v33, %v559_v40 }
 0x11a   : > { %1536 = vst [vmem:[%s1748_s16 + $0x30] sm:$0xff] %v1469_v36   ;;  %v994_v43 = vadd.f32 %v1727_v39, %v958_v38  ;;  %v943_v51 = vmul.f32 %v1715_v35, %v880_v42 }
 0x11b   : > { %v705_v45 = vmax.f32 %v673_v41, 0.0  ;;  %v658_v55 = vadd.f32 %v1721_v37, %v622_v49 }
 0x11c   : > { %v1026_v47 = vmax.f32 %v994_v43, 0.0  ;;  %v979_v58 = vadd.f32 %v1727_v39, %v943_v51 }
 0x11d   : > { %v1429_v48 = vpack.c.bf16 %v705_v45, %v704_v44  ;;  %v690_v0 = vmax.f32 %v658_v55, 0.0 }
 0x11e   : > { %v1509_v50 = vpack.c.bf16 %v1026_v47, %v1025_v46  ;;  %v599_v52 = vpop.f32.mrf.mxu2  ;;  %v1011_v2 = vmax.f32 %v979_v58, 0.0 }
 0x11f   : > { %1529 = vst [vmem:[%s1741_s12 + $0x70] sm:$0xff] %v1429_v48   ;;  %v920_v53 = vpop.f32.mrf.mxu3  ;;  %v638_v60 = vmul.f32 %v1710_v33, %v599_v52 }
 0x120   : > { %1544 = vst [vmem:[%s1748_s16 + $0x70] sm:$0xff] %v1509_v50   ;;  %v561_v54 = vpop.f32.mrf.mxu0  ;;  %v959_v62 = vmul.f32 %v1715_v35, %v920_v53 }
 0x121   : > { %v623_v56 = vmul.f32 %v1710_v33, %v561_v54  ;;  %v882_v57 = vpop.f32.mrf.mxu1  ;;  %v674_v5 = vadd.f32 %v1721_v37, %v638_v60 }
 0x122   : > { %v944_v59 = vmul.f32 %v1715_v35, %v882_v57  ;;  %v995_v9 = vadd.f32 %v1727_v39, %v959_v62 }
 0x123   : > { %v659_v61 = vadd.f32 %v1721_v37, %v623_v56  ;;  %v706_v14 = vmax.f32 %v674_v5, 0.0 }
 0x124   : > { %v980_v63 = vadd.f32 %v1727_v39, %v944_v59  ;;  %v1027_v16 = vmax.f32 %v995_v9, 0.0 }
 0x125   : > { %v691_v1 = vmax.f32 %v659_v61, 0.0 }
 0x126   : > { %v1012_v3 = vmax.f32 %v980_v63, 0.0  ;;  %v601_v4 = vpop.f32.mrf.mxu2 }
 0x127   : > { %v1394_v6 = vpack.c.bf16 %v691_v1, %v690_v0  ;;  %v639_v7 = vmul.f32 %v1710_v33, %v601_v4  ;;  %v922_v8 = vpop.f32.mrf.mxu3 }
 0x128   : > { %v1474_v10 = vpack.c.bf16 %v1012_v3, %v1011_v2  ;;  %v960_v11 = vmul.f32 %v1715_v35, %v922_v8 }
 0x129   : > { %1522 = vst [vmem:[%s1741_s12 + $0x38] sm:$0xff] %v1394_v6   ;;  %v675_v12 = vadd.f32 %v1721_v37, %v639_v7 }
 0x12a   : > { %1537 = vst [vmem:[%s1748_s16 + $0x38] sm:$0xff] %v1474_v10   ;;  %v996_v13 = vadd.f32 %v1727_v39, %v960_v11 }
 0x12b   : > { %v707_v15 = vmax.f32 %v675_v12, 0.0 }
 0x12c   : > { %v1028_v17 = vmax.f32 %v996_v13, 0.0 }
 0x12d   : > { %v1434_v18 = vpack.c.bf16 %v707_v15, %v706_v14 }
 0x12e   : > { %v1514_v19 = vpack.c.bf16 %v1028_v17, %v1027_v16 }
 0x12f   : > { %1530 = vst [vmem:[%s1741_s12 + $0x78] sm:$0xff] %v1434_v18  }
 0x130   : > { %1545 = vst [vmem:[%s1748_s16 + $0x78] sm:$0xff] %v1514_v19  }
 0x131 PF: > { %s19_s27 = sadd.s32 1, %s1580_s27  }
 0x132   : > { %p16_p4 = scmp.ge.s32.totalorder %s19_s27, 4  }
 0x134   :  { %18 = sbr.rel (!%p16_p4) target bundleno = 1 (0x1), region = 90 }

// kernel: dappm_forward.17
= control target key start
LH: loop header
LB: loop body
LE: loop exit
PB: predicated region body
PF: predicated region fallthrough
CT: control target
= control target key end

     0   :  { %s3150_s30 = smov 0   ;;  %s3607_s0 = inlined_call_operand.vmem [shape: bf16[512,128], index: 0, kind: input, shape index: {}]   ;;  %s3608_s1 = inlined_call_operand.vmem [shape: bf16[512,128], index: 1, kind: input, shape index: {}]   ;;  %s3609_s2 = inlined_call_operand.vmem [shape: bf16[512,128], index: 2, kind: input, shape index: {}]   ;;  %s3610_s3 = inlined_call_operand.vmem [shape: bf16[512,128], index: 3, kind: input, shape index: {}]   ;;  %s3611_s4 = inlined_call_operand.vmem [shape: bf16[512,128], index: 4, kind: input, shape index: {}]   ;;  %s3612_s5 = inlined_call_operand.vmem [shape: bf16[512,128], index: 5, kind: input, shape index: {}]   ;;  %s3613_s6 = inlined_call_operand.vmem [shape: bf16[640,128], index: 6, kind: input, shape index: {}]   ;;  %s3614_s7 = inlined_call_operand.vmem [shape: f32[1,128], index: 7, kind: input, shape index: {}]   ;;  %s3615_s8 = inlined_call_operand.vmem [shape: f32[1,128], index: 8, kind: input, shape index: {}]   ;;  %s3616_s9 = inlined_call_operand.vmem [shape: bf16[512,128], index: 9, kind: output, shape index: {}]  }
   0x1 LB: > { %s2263_s10 = sadd.s32 4294967295, %s3098_s30   ;;  %p2267_p0 = scmp.ge.s32.totalorder %s3098_s30, 1  ;;  %s3098_s30 = sphi %s3150_s30, %s19_s30  }
   0x2   : > { %p343_p1 = scmp.lt.s32.totalorder %s3098_s30, 3 }
   0x4   : > { %p344_p2 = pnand %p2267_p0, %p343_p1 }
   0x5   : > { %s2268_s19 = sshll.u32 (!%p344_p2), %s2263_s10, 5 }
   0x6   : > { %347 = sbr.rel (%p344_p2) target bundleno = 504 (0x1f8), region = 56  ;;  %p405_p3 = scmp.lt.s32.totalorder (!%p344_p2), %s2268_s19, 63 }
   0xb   : > { %v2851_v0 = vld [vmem:[%s3613_s6 + $0xb8] sm:$0xff]  ;;  %v2850_v1 = vld [vmem:[%s3613_s6 + $0xb0] sm:$0xff]  ;;  %v2849_v2 = vld [vmem:[%s3613_s6 + $0xa8] sm:$0xff]  ;;  %s3618_s19 = smov (!%p405_p3, %s2268_s19), 63 }
   0xc   : > { %3058 = vmatpush.bf16.msra.mxu1 %v2851_v0  ;;  %3059 = vmatpush.bf16.msra.mxu2 %v2851_v0  ;;  %v2848_v3 = vld [vmem:[%s3613_s6 + $0xa0] sm:$0xff]  ;;  %v2847_v4 = vld [vmem:[%s3613_s6 + $0x98] sm:$0xff]  ;;  %v2846_v5 = vld [vmem:[%s3613_s6 + $0x90] sm:$0xff]  ;;  %s3179_s26 = sshll.u32 %s3618_s19, 2 }
   0xd   : > { %3060 = vmatpush.bf16.msra.mxu3 %v2851_v0  ;;  %1118 = vmatpush.bf16.msra.mxu0 %v2851_v0  ;;  %v2845_v6 = vld [vmem:[%s3613_s6 + $0x88] sm:$0xff]  ;;  %v2844_v7 = vld [vmem:[%s3613_s6 + $0x80] sm:$0xff]  ;;  %s3188_s11 = scalar_lea.vmem %s3609_s2, %s3179_s26  ;;  %v2803_v8 = vld [vmem:[%s3613_s6 + $0x38] sm:$0xff]  ;;  %s3306_s24 = scalar_lea.vmem %s3610_s3, %s3179_s26 }
   0xe   : > { %v2811_v9 = vld [vmem:[%s3613_s6 + $0x78] sm:$0xff]  ;;  %v2816_v10 = vld [vmem:[%s3188_s11 + $0x20] sm:$0xff]  ;;  %v2802_v16 = vld [vmem:[%s3613_s6 + $0x30] sm:$0xff]  ;;  %s3312_s28 = scalar_lea.vmem %s3607_s0, %s3179_s26  ;;  %s3324_s14 = scalar_lea.vmem %s3611_s4, %s3179_s26 }
   0xf   : > { %v2820_v11 = vld [vmem:[%s3188_s11 + $0x40] sm:$0xff]  ;;  %v2859_v14 = vld [vmem:[%s3613_s6 + $0xf8] sm:$0xff]  ;;  %v2810_v17 = vld [vmem:[%s3613_s6 + $0x70] sm:$0xff]  ;;  %s3445_s21 = scalar_lea.vmem %s3612_s5, %s3179_s26  ;;  %s3458_s25 = scalar_lea.vmem %s3616_s9, %s3179_s26 }
  0x10   : > { %3061 = vmatpush.bf16.msra.mxu1 %v2850_v1  ;;  %3062 = vmatpush.bf16.msra.mxu2 %v2850_v1  ;;  %v2824_v12 = vld [vmem:[%s3188_s11 + $0x60] sm:$0xff]  ;;  %v2883_v15 = vld [vmem:[%s3613_s6 + $0x138] sm:$0xff]  ;;  %v2858_v18 = vld [vmem:[%s3613_s6 + $0xf0] sm:$0xff] }
  0x11   : > { %3063 = vmatpush.bf16.msra.mxu3 %v2850_v1  ;;  %1119 = vmatpush.bf16.msra.mxu0 %v2850_v1  ;;  %v2812_v13 = vld [vmem:[%s3188_s11] sm:$0xff]  ;;  %v2882_v19 = vld [vmem:[%s3613_s6 + $0x130] sm:$0xff]  ;;  %v2801_v20 = vld [vmem:[%s3613_s6 + $0x28] sm:$0xff] }
  0x12   : > { %v2809_v21 = vld [vmem:[%s3613_s6 + $0x68] sm:$0xff]  ;;  %v2800_v24 = vld [vmem:[%s3613_s6 + $0x20] sm:$0xff]  ;;  %v2799_v28 = vld [vmem:[%s3613_s6 + $0x18] sm:$0xff] }
  0x13   : > { %v2857_v22 = vld [vmem:[%s3613_s6 + $0xe8] sm:$0xff]  ;;  %v2808_v25 = vld [vmem:[%s3613_s6 + $0x60] sm:$0xff]  ;;  %v2807_v29 = vld [vmem:[%s3613_s6 + $0x58] sm:$0xff] }
  0x14   : > { %3064 = vmatpush.bf16.msra.mxu1 %v2849_v2  ;;  %3065 = vmatpush.bf16.msra.mxu2 %v2849_v2  ;;  %v2881_v23 = vld [vmem:[%s3613_s6 + $0x128] sm:$0xff]  ;;  %v2856_v26 = vld [vmem:[%s3613_s6 + $0xe0] sm:$0xff]  ;;  %v2855_v34 = vld [vmem:[%s3613_s6 + $0xd8] sm:$0xff] }
  0x15   : > { %3066 = vmatpush.bf16.msra.mxu3 %v2849_v2  ;;  %1120 = vmatpush.bf16.msra.mxu0 %v2849_v2  ;;  %v2880_v27 = vld [vmem:[%s3613_s6 + $0x120] sm:$0xff]  ;;  %v2817_v30 = vld [vmem:[%s3188_s11 + $0x28] sm:$0xff]  ;;  %v2879_v35 = vld [vmem:[%s3613_s6 + $0x118] sm:$0xff] }
  0x16   : > { %v2821_v31 = vld [vmem:[%s3188_s11 + $0x48] sm:$0xff]  ;;  %v2798_v36 = vld [vmem:[%s3613_s6 + $0x10] sm:$0xff]  ;;  %v2796_v44 = vld [vmem:[%s3613_s6] sm:$0xff] }
  0x17   : > { %v2825_v32 = vld [vmem:[%s3188_s11 + $0x68] sm:$0xff]  ;;  %v2806_v37 = vld [vmem:[%s3613_s6 + $0x50] sm:$0xff]  ;;  %v2804_v45 = vld [vmem:[%s3613_s6 + $0x40] sm:$0xff] }
  0x18   : > { %3067 = vmatpush.bf16.msra.mxu1 %v2848_v3  ;;  %3068 = vmatpush.bf16.msra.mxu2 %v2848_v3  ;;  %v2813_v33 = vld [vmem:[%s3188_s11 + $0x8] sm:$0xff]  ;;  %v2854_v38 = vld [vmem:[%s3613_s6 + $0xd0] sm:$0xff]  ;;  %v2852_v46 = vld [vmem:[%s3613_s6 + $0xc0] sm:$0xff] }
  0x19   : > { %3069 = vmatpush.bf16.msra.mxu3 %v2848_v3  ;;  %1121 = vmatpush.bf16.msra.mxu0 %v2848_v3  ;;  %v2878_v39 = vld [vmem:[%s3613_s6 + $0x110] sm:$0xff]  ;;  %v2797_v40 = vld [vmem:[%s3613_s6 + $0x8] sm:$0xff]  ;;  %v2876_v47 = vld [vmem:[%s3613_s6 + $0x100] sm:$0xff] }
  0x1a   : > { %v2805_v41 = vld [vmem:[%s3613_s6 + $0x48] sm:$0xff]  ;;  %v2818_v48 = vld [vmem:[%s3188_s11 + $0x30] sm:$0xff]  ;;  %v2819_v52 = vld [vmem:[%s3188_s11 + $0x38] sm:$0xff] }
  0x1b   : > { %v2853_v42 = vld [vmem:[%s3613_s6 + $0xc8] sm:$0xff]  ;;  %v2822_v49 = vld [vmem:[%s3188_s11 + $0x50] sm:$0xff]  ;;  %v2823_v53 = vld [vmem:[%s3188_s11 + $0x58] sm:$0xff] }
  0x1c   : > { %3070 = vmatpush.bf16.msra.mxu1 %v2847_v4  ;;  %3071 = vmatpush.bf16.msra.mxu2 %v2847_v4  ;;  %v2877_v43 = vld [vmem:[%s3613_s6 + $0x108] sm:$0xff]  ;;  %v2826_v50 = vld [vmem:[%s3188_s11 + $0x70] sm:$0xff]  ;;  %v2827_v54 = vld [vmem:[%s3188_s11 + $0x78] sm:$0xff] }
  0x1d   : > { %3072 = vmatpush.bf16.msra.mxu3 %v2847_v4  ;;  %1122 = vmatpush.bf16.msra.mxu0 %v2847_v4  ;;  %v2814_v51 = vld [vmem:[%s3188_s11 + $0x10] sm:$0xff]  ;;  %v2815_v55 = vld [vmem:[%s3188_s11 + $0x18] sm:$0xff]  ;;  %s3318_s11 = scalar_lea.vmem %s3608_s1, %s3179_s26  ;;  %v2828_v56 = vld [vmem:[%s3306_s24] sm:$0xff] }
  0x1e   : > { %v2764_v57 = vld [vmem:[%s3312_s28] sm:$0xff]  ;;  %v2829_v60 = vld [vmem:[%s3306_s24 + $0x8] sm:$0xff]  ;;  %v2830_v0 = vld [vmem:[%s3306_s24 + $0x10] sm:$0xff] }
  0x1f   : > { %v2780_v58 = vld [vmem:[%s3318_s11] sm:$0xff]  ;;  %v2765_v61 = vld [vmem:[%s3312_s28 + $0x8] sm:$0xff]  ;;  %v2766_v1 = vld [vmem:[%s3312_s28 + $0x10] sm:$0xff] }
  0x20   : > { %3073 = vmatpush.bf16.msra.mxu1 %v2846_v5  ;;  %3074 = vmatpush.bf16.msra.mxu2 %v2846_v5  ;;  %v2860_v59 = vld [vmem:[%s3324_s14] sm:$0xff]  ;;  %v2781_v62 = vld [vmem:[%s3318_s11 + $0x8] sm:$0xff]  ;;  %v2782_v2 = vld [vmem:[%s3318_s11 + $0x10] sm:$0xff] }
  0x21   : > { %3075 = vmatpush.bf16.msra.mxu3 %v2846_v5  ;;  %1123 = vmatpush.bf16.msra.mxu0 %v2846_v5  ;;  %v2861_v63 = vld [vmem:[%s3324_s14 + $0x8] sm:$0xff]  ;;  %v2862_v3 = vld [vmem:[%s3324_s14 + $0x10] sm:$0xff]  ;;  %v2831_v4 = vld [vmem:[%s3306_s24 + $0x18] sm:$0xff] }
  0x22   : > { %v2767_v5 = vld [vmem:[%s3312_s28 + $0x18] sm:$0xff] }
  0x24   : > { %3076 = vmatpush.bf16.msra.mxu1 %v2845_v6  ;;  %3077 = vmatpush.bf16.msra.mxu2 %v2845_v6 }
  0x25   : > { %3078 = vmatpush.bf16.msra.mxu3 %v2845_v6  ;;  %1124 = vmatpush.bf16.msra.mxu0 %v2845_v6  ;;  %v2783_v6 = vld [vmem:[%s3318_s11 + $0x18] sm:$0xff] }
  0x28   : > { %3079 = vmatpush.bf16.msra.mxu1 %v2844_v7  ;;  %3080 = vmatpush.bf16.msra.mxu2 %v2844_v7 }
  0x29   : > { %3081 = vmatpush.bf16.msra.mxu3 %v2844_v7  ;;  %1125 = vmatpush.bf16.msra.mxu0 %v2844_v7  ;;  %v2863_v7 = vld [vmem:[%s3324_s14 + $0x18] sm:$0xff] }
  0x2b   : > { %1146 = vmatmul.bf16.vlgmr.msra.gmra.mxu1 %v2816_v10  ;;  %1166 = vmatmul.bf16.vlgmr.msra.gmra.mxu2 %v2820_v11  ;;  %v2784_v11 = vld [vmem:[%s3318_s11 + $0x20] sm:$0xff] }
  0x2c   : > { %1392 = vmatpush.bf16.msrb.mxu2 %v2803_v8  ;;  %1186 = vmatmul.bf16.vlgmr.msra.gmra.mxu3 %v2824_v12  ;;  %v2832_v8 = vld [vmem:[%s3306_s24 + $0x20] sm:$0xff] }
  0x2d   : > { %1481 = vmatpush.bf16.msrb.mxu3 %v2811_v9  ;;  %1126 = vmatmul.bf16.vlgmr.msra.gmra.mxu0 %v2812_v13  ;;  %v2768_v9 = vld [vmem:[%s3312_s28 + $0x20] sm:$0xff] }
  0x2e   : > { %1207 = vmatpush.bf16.msrb.mxu1 %v2859_v14  ;;  %1762 = vmatpush.bf16.msrb.mxu0 %v2883_v15  ;;  %v2864_v12 = vld [vmem:[%s3324_s14 + $0x20] sm:$0xff] }
  0x30   : > { %1393 = vmatpush.bf16.msrb.mxu2 %v2802_v16 }
  0x31   : > { %1482 = vmatpush.bf16.msrb.mxu3 %v2810_v17 }
  0x32   : > { %1208 = vmatpush.bf16.msrb.mxu1 %v2858_v18  ;;  %1763 = vmatpush.bf16.msrb.mxu0 %v2882_v19 }
  0x34   : > { %1394 = vmatpush.bf16.msrb.mxu2 %v2801_v20  ;;  %v2833_v20 = vld [vmem:[%s3306_s24 + $0x28] sm:$0xff] }
  0x35   : > { %1483 = vmatpush.bf16.msrb.mxu3 %v2809_v21  ;;  %v2769_v21 = vld [vmem:[%s3312_s28 + $0x28] sm:$0xff] }
  0x36   : > { %1209 = vmatpush.bf16.msrb.mxu1 %v2857_v22  ;;  %1764 = vmatpush.bf16.msrb.mxu0 %v2881_v23  ;;  %v2785_v23 = vld [vmem:[%s3318_s11 + $0x28] sm:$0xff] }
  0x38   : > { %1395 = vmatpush.bf16.msrb.mxu2 %v2800_v24  ;;  %v2865_v24 = vld [vmem:[%s3324_s14 + $0x28] sm:$0xff] }
  0x39   : > { %1484 = vmatpush.bf16.msrb.mxu3 %v2808_v25 }
  0x3a   : > { %1210 = vmatpush.bf16.msrb.mxu1 %v2856_v26  ;;  %1765 = vmatpush.bf16.msrb.mxu0 %v2880_v27 }
  0x3b   : > { %1151 = vmatmul.bf16.gmra.mxu1 %v2817_v30  ;;  %1171 = vmatmul.bf16.gmra.mxu2 %v2821_v31 }
  0x3c   : > { %1396 = vmatpush.bf16.msrb.mxu2 %v2799_v28  ;;  %1191 = vmatmul.bf16.gmra.mxu3 %v2825_v32  ;;  %v2834_v32 = vld [vmem:[%s3306_s24 + $0x30] sm:$0xff] }
  0x3d   : > { %1485 = vmatpush.bf16.msrb.mxu3 %v2807_v29  ;;  %1131 = vmatmul.bf16.gmra.mxu0 %v2813_v33  ;;  %v2770_v33 = vld [vmem:[%s3312_s28 + $0x30] sm:$0xff] }
  0x3e   : > { %1211 = vmatpush.bf16.msrb.mxu1 %v2855_v34  ;;  %1766 = vmatpush.bf16.msrb.mxu0 %v2879_v35  ;;  %v2786_v35 = vld [vmem:[%s3318_s11 + $0x30] sm:$0xff] }
  0x40   : > { %1397 = vmatpush.bf16.msrb.mxu2 %v2798_v36  ;;  %v2866_v36 = vld [vmem:[%s3324_s14 + $0x30] sm:$0xff] }
  0x41   : > { %1486 = vmatpush.bf16.msrb.mxu3 %v2806_v37 }
  0x42   : > { %1212 = vmatpush.bf16.msrb.mxu1 %v2854_v38  ;;  %1767 = vmatpush.bf16.msrb.mxu0 %v2878_v39 }
  0x44   : > { %1398 = vmatpush.bf16.msrb.mxu2 %v2797_v40 }
  0x45   : > { %1487 = vmatpush.bf16.msrb.mxu3 %v2805_v41 }
  0x46   : > { %1213 = vmatpush.bf16.msrb.mxu1 %v2853_v42  ;;  %1768 = vmatpush.bf16.msrb.mxu0 %v2877_v43 }
  0x48   : > { %1399 = vmatpush.bf16.msrb.mxu2 %v2796_v44  ;;  %v2835_v44 = vld [vmem:[%s3306_s24 + $0x38] sm:$0xff] }
  0x49   : > { %1488 = vmatpush.bf16.msrb.mxu3 %v2804_v45  ;;  %v2771_v45 = vld [vmem:[%s3312_s28 + $0x38] sm:$0xff] }
  0x4a   : > { %1214 = vmatpush.bf16.msrb.mxu1 %v2852_v46  ;;  %1769 = vmatpush.bf16.msrb.mxu0 %v2876_v47  ;;  %v2787_v47 = vld [vmem:[%s3318_s11 + $0x38] sm:$0xff] }
  0x4b   : > { %1156 = vmatmul.bf16.gmra.mxu1 %v2818_v48  ;;  %1176 = vmatmul.bf16.gmra.mxu2 %v2822_v49  ;;  %v2867_v48 = vld [vmem:[%s3324_s14 + $0x38] sm:$0xff] }
  0x4c   : > { %1196 = vmatmul.bf16.gmra.mxu3 %v2826_v50 }
  0x4d   : > { %1136 = vmatmul.bf16.gmra.mxu0 %v2814_v51 }
  0x5b   : > { %1161 = vmatmul.bf16.gmra.mxu1 %v2819_v52  ;;  %1181 = vmatmul.bf16.gmra.mxu2 %v2823_v53 }
  0x5c   : > { %1201 = vmatmul.bf16.gmra.mxu3 %v2827_v54 }
  0x5d   : > { %1141 = vmatmul.bf16.gmra.mxu0 %v2815_v55 }
  0x6b   : > { %1215 = vmatmul.bf16.vlgmr.msrb.gmra.mxu1 %v2828_v56  ;;  %1400 = vmatmul.bf16.vlgmr.msrb.gmra.mxu2 %v2764_v57  ;;  %v2836_v56 = vld [vmem:[%s3306_s24 + $0x40] sm:$0xff] }
  0x6c   : > { %1489 = vmatmul.bf16.vlgmr.msrb.gmra.mxu3 %v2780_v58  ;;  %v2772_v57 = vld [vmem:[%s3312_s28 + $0x40] sm:$0xff] }
  0x6d   : > { %1770 = vmatmul.bf16.vlgmr.msrb.gmra.mxu0 %v2860_v59  ;;  %v2788_v59 = vld [vmem:[%s3318_s11 + $0x40] sm:$0xff] }
  0x7b   : > { %1220 = vmatmul.bf16.gmra.mxu1 %v2829_v60  ;;  %1405 = vmatmul.bf16.gmra.mxu2 %v2765_v61  ;;  %v2868_v60 = vld [vmem:[%s3324_s14 + $0x40] sm:$0xff] }
  0x7c   : > { %1494 = vmatmul.bf16.gmra.mxu3 %v2781_v62 }
  0x7d   : > { %1775 = vmatmul.bf16.gmra.mxu0 %v2861_v63 }
  0x8b   : > { %1225 = vmatmul.bf16.gmra.mxu1 %v2830_v0  ;;  %1410 = vmatmul.bf16.gmra.mxu2 %v2766_v1 }
  0x8c   : > { %1499 = vmatmul.bf16.gmra.mxu3 %v2782_v2 }
  0x8d   : > { %1780 = vmatmul.bf16.gmra.mxu0 %v2862_v3 }
  0x9b   : > { %1230 = vmatmul.bf16.gmra.mxu1 %v2831_v4  ;;  %1415 = vmatmul.bf16.gmra.mxu2 %v2767_v5 }
  0x9c   : > { %1504 = vmatmul.bf16.gmra.mxu3 %v2783_v6  ;;  %v3430_v6 = vld [vmem:[%s3614_s7] ss:$0 sm:$0xff] }
  0x9d   : > { %1785 = vmatmul.bf16.gmra.mxu0 %v2863_v7 }
  0xa8   : > { %v3344_v10 = vpop.f32.mrf.mxu1 }
  0xaa   : > { %v3348_v13 = vpop.f32.mrf.mxu0 }
  0xab   : > { %1235 = vmatmul.bf16.gmra.mxu1 %v2832_v8  ;;  %1420 = vmatmul.bf16.gmra.mxu2 %v2768_v9 }
  0xac   : > { %1509 = vmatmul.bf16.gmra.mxu3 %v2784_v11  ;;  %v3437_v11 = vld [vmem:[%s3615_s8] ss:$0 sm:$0xff] }
  0xad   : > { %1790 = vmatmul.bf16.gmra.mxu0 %v2864_v12 }
  0xae   : > { %v3350_v14 = vpop.f32.mrf.mxu2 }
  0xaf   : > { %v3352_v15 = vpop.f32.mrf.mxu3 }
  0xb0   : > { %v3354_v16 = vpop.f32.mrf.mxu1 }
  0xb2   : > { %v3356_v17 = vpop.f32.mrf.mxu0 }
  0xb6   : > { %v3358_v18 = vpop.f32.mrf.mxu2 }
  0xb7   : > { %v3360_v19 = vpop.f32.mrf.mxu3 }
  0xb8   : > { %v3364_v22 = vpop.f32.mrf.mxu1 }
  0xba   : > { %v3368_v25 = vpop.f32.mrf.mxu0 }
  0xbb   : > { %1240 = vmatmul.bf16.gmra.mxu1 %v2833_v20  ;;  %1425 = vmatmul.bf16.gmra.mxu2 %v2769_v21  ;;  %v2837_v20 = vld [vmem:[%s3306_s24 + $0x48] sm:$0xff] }
  0xbc   : > { %1514 = vmatmul.bf16.gmra.mxu3 %v2785_v23  ;;  %v2773_v21 = vld [vmem:[%s3312_s28 + $0x48] sm:$0xff] }
  0xbd   : > { %1795 = vmatmul.bf16.gmra.mxu0 %v2865_v24  ;;  %v2869_v24 = vld [vmem:[%s3324_s14 + $0x48] sm:$0xff] }
  0xbe   : > { %v3370_v26 = vpop.f32.mrf.mxu2 }
  0xbf   : > { %v3372_v27 = vpop.f32.mrf.mxu3 }
  0xc0   : > { %v3374_v28 = vpop.f32.mrf.mxu1 }
  0xc2   : > { %v3376_v29 = vpop.f32.mrf.mxu0 }
  0xc6   : > { %v3378_v30 = vpop.f32.mrf.mxu2 }
  0xc7   : > { %v3380_v31 = vpop.f32.mrf.mxu3 }
  0xc8   : > { %v3384_v34 = vpop.f32.mrf.mxu1 }
  0xca   : > { %v3388_v37 = vpop.f32.mrf.mxu0 }
  0xcb   : > { %1245 = vmatmul.bf16.gmra.mxu1 %v2834_v32  ;;  %1430 = vmatmul.bf16.gmra.mxu2 %v2770_v33 }
  0xcc   : > { %1519 = vmatmul.bf16.gmra.mxu3 %v2786_v35 }
  0xcd   : > { %1800 = vmatmul.bf16.gmra.mxu0 %v2866_v36  ;;  %v2885_v36 = vld [vmem:[%s3445_s21] sm:$0xff]  }
  0xce   : > { %v3390_v38 = vpop.f32.mrf.mxu2 }
  0xcf   : > { %v3392_v39 = vpop.f32.mrf.mxu3 }
  0xd0   : > { %v3394_v40 = vpop.f32.mrf.mxu1 }
  0xd2   : > { %v3396_v41 = vpop.f32.mrf.mxu0 }
  0xd6   : > { %v3398_v42 = vpop.f32.mrf.mxu2 }
  0xd7   : > { %v3400_v43 = vpop.f32.mrf.mxu3 }
  0xd8   : > { %v3404_v46 = vpop.f32.mrf.mxu1 }
  0xda   : > { %v3408_v49 = vpop.f32.mrf.mxu0 }
  0xdb   : > { %1250 = vmatmul.bf16.gmra.mxu1 %v2835_v44  ;;  %1435 = vmatmul.bf16.gmra.mxu2 %v2771_v45 }
  0xdc   : > { %1524 = vmatmul.bf16.gmra.mxu3 %v2787_v47 }
  0xdd   : > { %1805 = vmatmul.bf16.gmra.mxu0 %v2867_v48  ;;  %v2886_v48 = vunpack.c.l.bf16 %v2885_v36 }
  0xde   : > { %v3410_v50 = vpop.f32.mrf.mxu2 }
  0xdf   : > { %v3412_v51 = vpop.f32.mrf.mxu3 }
  0xe0   : > { %v3414_v52 = vpop.f32.mrf.mxu1 }
  0xe2   : > { %v3416_v53 = vpop.f32.mrf.mxu0 }
  0xe6   : > { %v3418_v54 = vpop.f32.mrf.mxu2 }
  0xe7   : > { %v3420_v55 = vpop.f32.mrf.mxu3 }
  0xe8   : > { %v1216_v58 = vpop.f32.mrf.mxu1 }
  0xe9   : > { %v1217_v62 = vadd.f32 %v1216_v58, %v3348_v13 }
  0xea   : > { %v1771_v61 = vpop.f32.mrf.mxu0 }
  0xeb   : > { %1255 = vmatmul.bf16.gmra.mxu1 %v2836_v56  ;;  %1440 = vmatmul.bf16.gmra.mxu2 %v2772_v57 }
  0xec   : > { %1529 = vmatmul.bf16.gmra.mxu3 %v2788_v59  ;;  %v2887_v59 = vunpack.c.h.bf16 %v2885_v36 }
  0xed   : > { %1810 = vmatmul.bf16.gmra.mxu0 %v2868_v60 }
  0xee   : > { %v1401_v63 = vpop.f32.mrf.mxu2 }
  0xef   : > { %v1402_v0 = vadd.f32 %v1401_v63, %v1217_v62  ;;  %v1490_v1 = vpop.f32.mrf.mxu3 }
  0xf0   : > { %v1218_v2 = vpop.f32.mrf.mxu1 }
  0xf1   : > { %v1491_v3 = vadd.f32 %v1490_v1, %v1402_v0  ;;  %v1219_v7 = vadd.f32 %v1218_v2, %v3356_v17  ;;  %v2789_v17 = vld [vmem:[%s3318_s11 + $0x48] sm:$0xff] }
  0xf2   : > { %v1773_v4 = vpop.f32.mrf.mxu0 }
  0xf3   : > { %v1851_v5 = vadd.f32 %v1771_v61, %v1491_v3 }
  0xf5   : > { %v1887_v9 = vmul.f32 %v3430_v6, %v1851_v5 }
  0xf6   : > { %v1403_v8 = vpop.f32.mrf.mxu2 }
  0xf7   : > { %v1404_v12 = vadd.f32 %v1403_v8, %v1219_v7  ;;  %v1492_v13 = vpop.f32.mrf.mxu3  ;;  %v1923_v35 = vadd.f32 %v3437_v11, %v1887_v9 }
  0xf8   : > { %v1221_v23 = vpop.f32.mrf.mxu1 }
  0xf9   : > { %v1493_v32 = vadd.f32 %v1492_v13, %v1404_v12  ;;  %v1222_v47 = vadd.f32 %v1221_v23, %v3368_v25  ;;  %v1955_v57 = vmax.f32 %v1923_v35, 0.0  ;;  %v2838_v13 = vld [vmem:[%s3306_s24 + $0x50] sm:$0xff]  ;;  %v3028_v35 = vld [vmem:[%s3445_s21 + $0x8] sm:$0xff]  }
  0xfa   : > { %v1776_v33 = vpop.f32.mrf.mxu0  ;;  %v2790_v23 = vld [vmem:[%s3318_s11 + $0x50] sm:$0xff] }
  0xfb   : > { %v1852_v44 = vadd.f32 %v1773_v4, %v1493_v32  ;;  %1260 = vmatmul.bf16.gmra.mxu1 %v2837_v20  ;;  %1445 = vmatmul.bf16.gmra.mxu2 %v2773_v21  ;;  %v2051_v2 = vadd.f32 %v2886_v48, %v1955_v57  ;;  %v2774_v20 = vld [vmem:[%s3312_s28 + $0x50] sm:$0xff]  ;;  %v2891_v57 = vunpack.c.h.bf16 %v3028_v35 }
  0xfc   : > { %1534 = vmatmul.bf16.gmra.mxu3 %v2789_v17  ;;  %v2870_v17 = vld [vmem:[%s3324_s14 + $0x50] sm:$0xff] }
  0xfd   : > { %1815 = vmatmul.bf16.gmra.mxu0 %v2869_v24  ;;  %v1888_v45 = vmul.f32 %v3430_v6, %v1852_v44 }
  0xfe   : > { %v1406_v56 = vpop.f32.mrf.mxu2 }
  0xff   : > { %v1924_v58 = vadd.f32 %v3437_v11, %v1888_v45  ;;  %v1407_v60 = vadd.f32 %v1406_v56, %v1222_v47  ;;  %v1495_v61 = vpop.f32.mrf.mxu3  ;;  %v2890_v45 = vunpack.c.l.bf16 %v3028_v35 }
 0x100   : > { %v1223_v62 = vpop.f32.mrf.mxu1 }
 0x101   : > { %v1956_v63 = vmax.f32 %v1924_v58, 0.0  ;;  %v1496_v0 = vadd.f32 %v1495_v61, %v1407_v60  ;;  %v1224_v5 = vadd.f32 %v1223_v62, %v3376_v29 }
 0x102   : > { %v1778_v1 = vpop.f32.mrf.mxu0 }
 0x103   : > { %v2052_v3 = vadd.f32 %v2887_v59, %v1956_v63  ;;  %v1853_v4 = vadd.f32 %v1776_v33, %v1496_v0 }
 0x105   : > { %v2951_v25 = vpack.c.bf16 %v2052_v3, %v2051_v2  ;;  %v1889_v8 = vmul.f32 %v3430_v6, %v1853_v4 }
 0x106   : > { %v1408_v7 = vpop.f32.mrf.mxu2 }
 0x107   : > { %2952 = vst [vmem:[%s3458_s25] sm:$0xff] %v2951_v25   ;;  %v1409_v9 = vadd.f32 %v1408_v7, %v1224_v5  ;;  %v1497_v12 = vpop.f32.mrf.mxu3  ;;  %v1925_v33 = vadd.f32 %v3437_v11, %v1889_v8  ;;  %v2839_v8 = vld [vmem:[%s3306_s24 + $0x58] sm:$0xff] }
 0x108   : > { %v1226_v21 = vpop.f32.mrf.mxu1 }
 0x109   : > { %v1498_v24 = vadd.f32 %v1497_v12, %v1409_v9  ;;  %v1227_v44 = vadd.f32 %v1226_v21, %v3388_v37  ;;  %v1957_v48 = vmax.f32 %v1925_v33, 0.0  ;;  %v2775_v9 = vld [vmem:[%s3312_s28 + $0x58] sm:$0xff] }
 0x10a   : > { %v1781_v32 = vpop.f32.mrf.mxu0 }
 0x10b   : > { %v1854_v36 = vadd.f32 %v1778_v1, %v1498_v24  ;;  %1265 = vmatmul.bf16.gmra.mxu1 %v2838_v13  ;;  %1450 = vmatmul.bf16.gmra.mxu2 %v2774_v20  ;;  %v2053_v0 = vadd.f32 %v2890_v45, %v1957_v48  ;;  %v2791_v13 = vld [vmem:[%s3318_s11 + $0x58] sm:$0xff]  ;;  %v3029_v24 = vld [vmem:[%s3445_s21 + $0x10] sm:$0xff]  }
 0x10c   : > { %1539 = vmatmul.bf16.gmra.mxu3 %v2790_v23  ;;  %v2871_v20 = vld [vmem:[%s3324_s14 + $0x58] sm:$0xff]  ;;  %v2894_v35 = vunpack.c.l.bf16 %v3029_v24  ;;  %v2895_v45 = vunpack.c.h.bf16 %v3029_v24 }
 0x10d   : > { %1820 = vmatmul.bf16.gmra.mxu0 %v2870_v17  ;;  %v1890_v29 = vmul.f32 %v3430_v6, %v1854_v36 }
 0x10e   : > { %v1411_v47 = vpop.f32.mrf.mxu2 }
 0x10f   : > { %v1926_v56 = vadd.f32 %v3437_v11, %v1890_v29  ;;  %v1412_v58 = vadd.f32 %v1411_v47, %v1227_v44  ;;  %v1500_v59 = vpop.f32.mrf.mxu3 }
 0x110   : > { %v1228_v60 = vpop.f32.mrf.mxu1 }
 0x111   : > { %v1958_v61 = vmax.f32 %v1926_v56, 0.0  ;;  %v1501_v62 = vadd.f32 %v1500_v59, %v1412_v58  ;;  %v1229_v3 = vadd.f32 %v1228_v60, %v3396_v41 }
 0x112   : > { %v1783_v63 = vpop.f32.mrf.mxu0 }
 0x113   : > { %v2054_v1 = vadd.f32 %v2891_v57, %v1958_v61  ;;  %v1855_v37 = vadd.f32 %v1781_v32, %v1501_v62 }
 0x115   : > { %v2956_v2 = vpack.c.bf16 %v2054_v1, %v2053_v0  ;;  %v1891_v25 = vmul.f32 %v3430_v6, %v1855_v37 }
 0x116   : > { %v1413_v4 = vpop.f32.mrf.mxu2 }
 0x117   : > { %3043 = vst [vmem:[%s3458_s25 + $0x8] sm:$0xff] %v2956_v2   ;;  %v1414_v5 = vadd.f32 %v1413_v4, %v1229_v3  ;;  %v1502_v7 = vpop.f32.mrf.mxu3  ;;  %v1927_v17 = vadd.f32 %v3437_v11, %v1891_v25  ;;  %v2840_v3 = vld [vmem:[%s3306_s24 + $0x60] sm:$0xff] }
 0x118   : > { %v1231_v12 = vpop.f32.mrf.mxu1  ;;  %v2776_v4 = vld [vmem:[%s3312_s28 + $0x60] sm:$0xff] }
 0x119   : > { %v1503_v21 = vadd.f32 %v1502_v7, %v1414_v5  ;;  %v1232_v33 = vadd.f32 %v1231_v12, %v3408_v49  ;;  %v1959_v29 = vmax.f32 %v1927_v17, 0.0  ;;  %v2792_v5 = vld [vmem:[%s3318_s11 + $0x60] sm:$0xff] }
 0x11a   : > { %v1786_v23 = vpop.f32.mrf.mxu0  ;;  %v2872_v7 = vld [vmem:[%s3324_s14 + $0x60] sm:$0xff] }
 0x11b   : > { %v1856_v32 = vadd.f32 %v1783_v63, %v1503_v21  ;;  %1270 = vmatmul.bf16.gmra.mxu1 %v2839_v8  ;;  %1455 = vmatmul.bf16.gmra.mxu2 %v2775_v9  ;;  %v2055_v60 = vadd.f32 %v2894_v35, %v1959_v29 }
 0x11c   : > { %1544 = vmatmul.bf16.gmra.mxu3 %v2791_v13  ;;  %v3030_v13 = vld [vmem:[%s3445_s21 + $0x18] sm:$0xff]  }
 0x11d   : > { %1825 = vmatmul.bf16.gmra.mxu0 %v2871_v20  ;;  %v1892_v41 = vmul.f32 %v3430_v6, %v1856_v32 }
 0x11e   : > { %v1416_v36 = vpop.f32.mrf.mxu2 }
 0x11f   : > { %v1928_v44 = vadd.f32 %v3437_v11, %v1892_v41  ;;  %v1417_v47 = vadd.f32 %v1416_v36, %v1232_v33  ;;  %v1505_v48 = vpop.f32.mrf.mxu3  ;;  %v2899_v41 = vunpack.c.h.bf16 %v3030_v13 }
 0x120   : > { %v1233_v56 = vpop.f32.mrf.mxu1 }
 0x121   : > { %v1960_v57 = vmax.f32 %v1928_v44, 0.0  ;;  %v1506_v58 = vadd.f32 %v1505_v48, %v1417_v47  ;;  %v1234_v63 = vadd.f32 %v1233_v56, %v3416_v53 }
 0x122   : > { %v1788_v59 = vpop.f32.mrf.mxu0 }
 0x123   : > { %v2056_v61 = vadd.f32 %v2895_v45, %v1960_v57  ;;  %v1857_v49 = vadd.f32 %v1786_v23, %v1506_v58  ;;  %v2898_v23 = vunpack.c.l.bf16 %v3030_v13 }
 0x125   : > { %v2961_v62 = vpack.c.bf16 %v2056_v61, %v2055_v60  ;;  %v1893_v1 = vmul.f32 %v3430_v6, %v1857_v49  ;;  %v2841_v49 = vld [vmem:[%s3306_s24 + $0x68] sm:$0xff] }
 0x126   : > { %v1418_v0 = vpop.f32.mrf.mxu2 }
 0x127   : > { %3044 = vst [vmem:[%s3458_s25 + $0x10] sm:$0xff] %v2961_v62   ;;  %v1419_v37 = vadd.f32 %v1418_v0, %v1234_v63  ;;  %v1507_v2 = vpop.f32.mrf.mxu3  ;;  %v1929_v12 = vadd.f32 %v3437_v11, %v1893_v1  ;;  %v2777_v62 = vld [vmem:[%s3312_s28 + $0x68] sm:$0xff] }
 0x128   : > { %v1236_v25 = vpop.f32.mrf.mxu1  ;;  %v2793_v0 = vld [vmem:[%s3318_s11 + $0x68] sm:$0xff] }
 0x129   : > { %v1508_v8 = vadd.f32 %v1507_v2, %v1419_v37  ;;  %v1237_v21 = vadd.f32 %v1236_v25, %v3344_v10  ;;  %v1961_v24 = vmax.f32 %v1929_v12, 0.0  ;;  %v2873_v1 = vld [vmem:[%s3324_s14 + $0x68] sm:$0xff] }
 0x12a   : > { %v1791_v9 = vpop.f32.mrf.mxu0 }
 0x12b   : > { %v1858_v20 = vadd.f32 %v1788_v59, %v1508_v8  ;;  %1275 = vmatmul.bf16.gmra.mxu1 %v2840_v3  ;;  %1460 = vmatmul.bf16.gmra.mxu2 %v2776_v4  ;;  %v2057_v47 = vadd.f32 %v2898_v23, %v1961_v24  ;;  %v3031_v4 = vld [vmem:[%s3445_s21 + $0x20] sm:$0xff]  }
 0x12c   : > { %1549 = vmatmul.bf16.gmra.mxu3 %v2792_v5  ;;  %v2903_v13 = vunpack.c.h.bf16 %v3031_v4 }
 0x12d   : > { %1830 = vmatmul.bf16.gmra.mxu0 %v2872_v7  ;;  %v1894_v53 = vmul.f32 %v3430_v6, %v1858_v20  ;;  %v2902_v7 = vunpack.c.l.bf16 %v3031_v4 }
 0x12e   : > { %v1421_v17 = vpop.f32.mrf.mxu2 }
 0x12f   : > { %v1930_v32 = vadd.f32 %v3437_v11, %v1894_v53  ;;  %v1422_v33 = vadd.f32 %v1421_v17, %v1237_v21  ;;  %v1510_v35 = vpop.f32.mrf.mxu3 }
 0x130   : > { %v1238_v36 = vpop.f32.mrf.mxu1 }
 0x131   : > { %v1962_v29 = vmax.f32 %v1930_v32, 0.0  ;;  %v1511_v44 = vadd.f32 %v1510_v35, %v1422_v33  ;;  %v1239_v57 = vadd.f32 %v1238_v36, %v3354_v16 }
 0x132   : > { %v1793_v45 = vpop.f32.mrf.mxu0 }
 0x133   : > { %v2058_v48 = vadd.f32 %v2899_v41, %v1962_v29  ;;  %v1859_v10 = vadd.f32 %v1791_v9, %v1511_v44 }
 0x135   : > { %v2966_v56 = vpack.c.bf16 %v2058_v48, %v2057_v47  ;;  %v1895_v59 = vmul.f32 %v3430_v6, %v1859_v10  ;;  %v2842_v47 = vld [vmem:[%s3306_s24 + $0x70] sm:$0xff] }
 0x136   : > { %v1423_v58 = vpop.f32.mrf.mxu2  ;;  %v2778_v48 = vld [vmem:[%s3312_s28 + $0x70] sm:$0xff] }
 0x137   : > { %3045 = vst [vmem:[%s3458_s25 + $0x18] sm:$0xff] %v2966_v56   ;;  %v1424_v60 = vadd.f32 %v1423_v58, %v1239_v57  ;;  %v1512_v61 = vpop.f32.mrf.mxu3  ;;  %v1931_v3 = vadd.f32 %v3437_v11, %v1895_v59  ;;  %v2794_v56 = vld [vmem:[%s3318_s11 + $0x70] sm:$0xff] }
 0x138   : > { %v1241_v63 = vpop.f32.mrf.mxu1  ;;  %v2874_v57 = vld [vmem:[%s3324_s14 + $0x70] sm:$0xff] }
 0x139   : > { %v1513_v37 = vadd.f32 %v1512_v61, %v1424_v60  ;;  %v1242_v5 = vadd.f32 %v1241_v63, %v3364_v22  ;;  %v1963_v9 = vmax.f32 %v1931_v3, 0.0  ;;  %v3032_v61 = vld [vmem:[%s3445_s21 + $0x28] sm:$0xff]  }
 0x13a   : > { %v1796_v2 = vpop.f32.mrf.mxu0  ;;  %v2906_v63 = vunpack.c.l.bf16 %v3032_v61 }
 0x13b   : > { %v1860_v25 = vadd.f32 %v1793_v45, %v1513_v37  ;;  %1280 = vmatmul.bf16.gmra.mxu1 %v2841_v49  ;;  %1465 = vmatmul.bf16.gmra.mxu2 %v2777_v62  ;;  %v2059_v32 = vadd.f32 %v2902_v7, %v1963_v9 }
 0x13c   : > { %1554 = vmatmul.bf16.gmra.mxu3 %v2793_v0 }
 0x13d   : > { %1835 = vmatmul.bf16.gmra.mxu0 %v2873_v1  ;;  %v1896_v16 = vmul.f32 %v3430_v6, %v1860_v25 }
 0x13e   : > { %v1426_v8 = vpop.f32.mrf.mxu2 }
 0x13f   : > { %v1932_v12 = vadd.f32 %v3437_v11, %v1896_v16  ;;  %v1427_v20 = vadd.f32 %v1426_v8, %v1242_v5  ;;  %v1515_v53 = vpop.f32.mrf.mxu3 }
 0x140   : > { %v1243_v21 = vpop.f32.mrf.mxu1 }
 0x141   : > { %v1964_v23 = vmax.f32 %v1932_v12, 0.0  ;;  %v1516_v17 = vadd.f32 %v1515_v53, %v1427_v20  ;;  %v1244_v35 = vadd.f32 %v1243_v21, %v3374_v28 }
 0x142   : > { %v1798_v24 = vpop.f32.mrf.mxu0 }
 0x143   : > { %v2060_v41 = vadd.f32 %v2903_v13, %v1964_v23  ;;  %v1861_v22 = vadd.f32 %v1796_v2, %v1516_v17  ;;  %v2907_v2 = vunpack.c.h.bf16 %v3032_v61  ;;  %v2843_v17 = vld [vmem:[%s3306_s24 + $0x78] sm:$0xff] }
 0x145   : > { %v2971_v33 = vpack.c.bf16 %v2060_v41, %v2059_v32  ;;  %v1897_v29 = vmul.f32 %v3430_v6, %v1861_v22  ;;  %v2795_v41 = vld [vmem:[%s3318_s11 + $0x78] sm:$0xff] }
 0x146   : > { %v1428_v36 = vpop.f32.mrf.mxu2  ;;  %v2875_v22 = vld [vmem:[%s3324_s14 + $0x78] sm:$0xff] }
 0x147   : > { %3046 = vst [vmem:[%s3458_s25 + $0x20] sm:$0xff] %v2971_v33   ;;  %v1429_v44 = vadd.f32 %v1428_v36, %v1244_v35  ;;  %v1517_v45 = vpop.f32.mrf.mxu3  ;;  %v1933_v60 = vadd.f32 %v3437_v11, %v1897_v29  ;;  %v3033_v29 = vld [vmem:[%s3445_s21 + $0x30] sm:$0xff]  }
 0x148   : > { %v1246_v10 = vpop.f32.mrf.mxu1 }
 0x149   : > { %v1518_v58 = vadd.f32 %v1517_v45, %v1429_v44  ;;  %v1247_v62 = vadd.f32 %v1246_v10, %v3384_v34  ;;  %v1965_v1 = vmax.f32 %v1933_v60, 0.0 }
 0x14a   : > { %v1801_v59 = vpop.f32.mrf.mxu0 }
 0x14b   : > { %v1862_v49 = vadd.f32 %v1798_v24, %v1518_v58  ;;  %1285 = vmatmul.bf16.gmra.mxu1 %v2842_v47  ;;  %1470 = vmatmul.bf16.gmra.mxu2 %v2778_v48  ;;  %v2061_v8 = vadd.f32 %v2906_v63, %v1965_v1  ;;  %v2779_v24 = vld [vmem:[%s3312_s28 + $0x78] sm:$0xff]  ;;  %v2910_v47 = vunpack.c.l.bf16 %v3033_v29 }
 0x14c   : > { %1559 = vmatmul.bf16.gmra.mxu3 %v2794_v56 }
 0x14d   : > { %1840 = vmatmul.bf16.gmra.mxu0 %v2874_v57  ;;  %v1898_v28 = vmul.f32 %v3430_v6, %v1862_v49  ;;  %v2911_v57 = vunpack.c.h.bf16 %v3033_v29 }
 0x14e   : > { %v1431_v0 = vpop.f32.mrf.mxu2 }
 0x14f   : > { %v1934_v37 = vadd.f32 %v3437_v11, %v1898_v28  ;;  %v1432_v3 = vadd.f32 %v1431_v0, %v1247_v62  ;;  %v1520_v4 = vpop.f32.mrf.mxu3 }
 0x150   : > { %v1248_v25 = vpop.f32.mrf.mxu1 }
 0x151   : > { %v1966_v16 = vmax.f32 %v1934_v37, 0.0  ;;  %v1521_v5 = vadd.f32 %v1520_v4, %v1432_v3  ;;  %v1249_v13 = vadd.f32 %v1248_v25, %v3394_v40 }
 0x152   : > { %v1803_v7 = vpop.f32.mrf.mxu0 }
 0x153   : > { %v2062_v9 = vadd.f32 %v2907_v2, %v1966_v16  ;;  %v1863_v34 = vadd.f32 %v1801_v59, %v1521_v5 }
 0x155   : > { %v2976_v12 = vpack.c.bf16 %v2062_v9, %v2061_v8  ;;  %v1899_v53 = vmul.f32 %v3430_v6, %v1863_v34  ;;  %v3034_v8 = vld [vmem:[%s3445_s21 + $0x38] sm:$0xff]  }
 0x156   : > { %v1433_v20 = vpop.f32.mrf.mxu2 }
 0x157   : > { %3047 = vst [vmem:[%s3458_s25 + $0x28] sm:$0xff] %v2976_v12   ;;  %v1434_v21 = vadd.f32 %v1433_v20, %v1249_v13  ;;  %v1522_v23 = vpop.f32.mrf.mxu3  ;;  %v1935_v36 = vadd.f32 %v3437_v11, %v1899_v53  ;;  %v2914_v13 = vunpack.c.l.bf16 %v3034_v8 }
 0x158   : > { %v1251_v32 = vpop.f32.mrf.mxu1 }
 0x159   : > { %v1523_v33 = vadd.f32 %v1522_v23, %v1434_v21  ;;  %v1252_v45 = vadd.f32 %v1251_v32, %v3404_v46  ;;  %v1967_v10 = vmax.f32 %v1935_v36, 0.0  ;;  %v2915_v21 = vunpack.c.h.bf16 %v3034_v8 }
 0x15a   : > { %v1806_v35 = vpop.f32.mrf.mxu0 }
 0x15b   : > { %v1864_v44 = vadd.f32 %v1803_v7, %v1523_v33  ;;  %1290 = vmatmul.bf16.gmra.mxu1 %v2843_v17  ;;  %1475 = vmatmul.bf16.gmra.mxu2 %v2779_v24  ;;  %v2063_v62 = vadd.f32 %v2910_v47, %v1967_v10 }
 0x15c   : > { %1564 = vmatmul.bf16.gmra.mxu3 %v2795_v41 }
 0x15d   : > { %1845 = vmatmul.bf16.gmra.mxu0 %v2875_v22  ;;  %v1900_v40 = vmul.f32 %v3430_v6, %v1864_v44 }
 0x15e   : > { %v1436_v48 = vpop.f32.mrf.mxu2 }
 0x15f   : > { %v1936_v56 = vadd.f32 %v3437_v11, %v1900_v40  ;;  %v1437_v58 = vadd.f32 %v1436_v48, %v1252_v45  ;;  %v1525_v59 = vpop.f32.mrf.mxu3 }
 0x160   : > { %v1253_v60 = vpop.f32.mrf.mxu1 }
 0x161   : > { %v1968_v61 = vmax.f32 %v1936_v56, 0.0  ;;  %v1526_v49 = vadd.f32 %v1525_v59, %v1437_v58  ;;  %v1254_v46 = vadd.f32 %v1253_v60, %v3414_v52  ;;  %v3035_v58 = vld [vmem:[%s3445_s21 + $0x40] sm:$0xff]  }
 0x162   : > { %v1808_v28 = vpop.f32.mrf.mxu0 }
 0x163   : > { %v2064_v63 = vadd.f32 %v2911_v57, %v1968_v61  ;;  %v1865_v0 = vadd.f32 %v1806_v35, %v1526_v49  ;;  %v2918_v49 = vunpack.c.l.bf16 %v3035_v58 }
 0x165   : > { %v2981_v1 = vpack.c.bf16 %v2064_v63, %v2063_v62  ;;  %v1901_v2 = vmul.f32 %v3430_v6, %v1865_v0  ;;  %v2919_v63 = vunpack.c.h.bf16 %v3035_v58 }
 0x166   : > { %v1438_v37 = vpop.f32.mrf.mxu2 }
 0x167   : > { %3048 = vst [vmem:[%s3458_s25 + $0x30] sm:$0xff] %v2981_v1   ;;  %v1439_v3 = vadd.f32 %v1438_v37, %v1254_v46  ;;  %v1527_v4 = vpop.f32.mrf.mxu3  ;;  %v1937_v7 = vadd.f32 %v3437_v11, %v1901_v2 }
 0x168   : > { %v1256_v25 = vpop.f32.mrf.mxu1 }
 0x169   : > { %v1528_v16 = vadd.f32 %v1527_v4, %v1439_v3  ;;  %v1257_v12 = vadd.f32 %v1256_v25, %v3350_v14  ;;  %v1969_v52 = vmax.f32 %v1937_v7, 0.0 }
 0x16a   : > { %v1811_v5 = vpop.f32.mrf.mxu0 }
 0x16b   : > { %v1866_v9 = vadd.f32 %v1808_v28, %v1528_v16  ;;  %v2065_v33 = vadd.f32 %v2914_v13, %v1969_v52 }
 0x16d   : > { %v1902_v34 = vmul.f32 %v3430_v6, %v1866_v9 }
 0x16e   : > { %v1441_v20 = vpop.f32.mrf.mxu2 }
 0x16f   : > { %v1938_v53 = vadd.f32 %v3437_v11, %v1902_v34  ;;  %v1442_v23 = vadd.f32 %v1441_v20, %v1257_v12  ;;  %v1530_v17 = vpop.f32.mrf.mxu3 }
 0x170   : > { %v1258_v24 = vpop.f32.mrf.mxu1 }
 0x171   : > { %v1970_v32 = vmax.f32 %v1938_v53, 0.0  ;;  %v1531_v41 = vadd.f32 %v1530_v17, %v1442_v23  ;;  %v1259_v14 = vadd.f32 %v1258_v24, %v3358_v18  ;;  %v3036_v53 = vld [vmem:[%s3445_s21 + $0x48] sm:$0xff]  }
 0x172   : > { %v1813_v22 = vpop.f32.mrf.mxu0  ;;  %v2922_v24 = vunpack.c.l.bf16 %v3036_v53 }
 0x173   : > { %v2066_v35 = vadd.f32 %v2915_v21, %v1970_v32  ;;  %v1867_v36 = vadd.f32 %v1811_v5, %v1531_v41 }
 0x175   : > { %v2986_v29 = vpack.c.bf16 %v2066_v35, %v2065_v33  ;;  %v1903_v40 = vmul.f32 %v3430_v6, %v1867_v36 }
 0x176   : > { %v1443_v44 = vpop.f32.mrf.mxu2 }
 0x177   : > { %3049 = vst [vmem:[%s3458_s25 + $0x38] sm:$0xff] %v2986_v29   ;;  %v1444_v45 = vadd.f32 %v1443_v44, %v1259_v14  ;;  %v1532_v47 = vpop.f32.mrf.mxu3  ;;  %v1939_v57 = vadd.f32 %v3437_v11, %v1903_v40 }
 0x178   : > { %v1261_v48 = vpop.f32.mrf.mxu1 }
 0x179   : > { %v1533_v10 = vadd.f32 %v1532_v47, %v1444_v45  ;;  %v1262_v61 = vadd.f32 %v1261_v48, %v3370_v26  ;;  %v1971_v18 = vmax.f32 %v1939_v57, 0.0 }
 0x17a   : > { %v1816_v56 = vpop.f32.mrf.mxu0 }
 0x17b   : > { %v1868_v59 = vadd.f32 %v1813_v22, %v1533_v10  ;;  %v2067_v4 = vadd.f32 %v2918_v49, %v1971_v18  ;;  %v2923_v22 = vunpack.c.h.bf16 %v3036_v53 }
 0x17d   : > { %v1904_v60 = vmul.f32 %v3430_v6, %v1868_v59 }
 0x17e   : > { %v1446_v28 = vpop.f32.mrf.mxu2 }
 0x17f   : > { %v1940_v62 = vadd.f32 %v3437_v11, %v1904_v60  ;;  %v1447_v0 = vadd.f32 %v1446_v28, %v1262_v61  ;;  %v1535_v1 = vpop.f32.mrf.mxu3  ;;  %v3037_v28 = vld [vmem:[%s3445_s21 + $0x50] sm:$0xff]  }
 0x180   : > { %v1263_v46 = vpop.f32.mrf.mxu1 }
 0x181   : > { %v1972_v37 = vmax.f32 %v1940_v62, 0.0  ;;  %v1536_v2 = vadd.f32 %v1535_v1, %v1447_v0  ;;  %v1264_v26 = vadd.f32 %v1263_v46, %v3378_v30  ;;  %v2926_v0 = vunpack.c.l.bf16 %v3037_v28 }
 0x182   : > { %v1818_v3 = vpop.f32.mrf.mxu0 }
 0x183   : > { %v2068_v25 = vadd.f32 %v2919_v63, %v1972_v37  ;;  %v1869_v16 = vadd.f32 %v1816_v56, %v1536_v2  ;;  %v2927_v37 = vunpack.c.h.bf16 %v3037_v28 }
 0x185   : > { %v2991_v5 = vpack.c.bf16 %v2068_v25, %v2067_v4  ;;  %v1905_v8 = vmul.f32 %v3430_v6, %v1869_v16 }
 0x186   : > { %v1448_v7 = vpop.f32.mrf.mxu2 }
 0x187   : > { %3050 = vst [vmem:[%s3458_s25 + $0x40] sm:$0xff] %v2991_v5   ;;  %v1449_v9 = vadd.f32 %v1448_v7, %v1264_v26  ;;  %v1537_v34 = vpop.f32.mrf.mxu3  ;;  %v1941_v52 = vadd.f32 %v3437_v11, %v1905_v8 }
 0x188   : > { %v1266_v12 = vpop.f32.mrf.mxu1 }
 0x189   : > { %v1538_v13 = vadd.f32 %v1537_v34, %v1449_v9  ;;  %v1267_v17 = vadd.f32 %v1266_v12, %v3390_v38  ;;  %v1973_v30 = vmax.f32 %v1941_v52, 0.0 }
 0x18a   : > { %v1821_v20 = vpop.f32.mrf.mxu0 }
 0x18b   : > { %v1870_v21 = vadd.f32 %v1818_v3, %v1538_v13  ;;  %v2069_v40 = vadd.f32 %v2922_v24, %v1973_v30 }
 0x18d   : > { %v1906_v23 = vmul.f32 %v3430_v6, %v1870_v21 }
 0x18e   : > { %v1451_v32 = vpop.f32.mrf.mxu2 }
 0x18f   : > { %v1942_v41 = vadd.f32 %v3437_v11, %v1906_v23  ;;  %v1452_v33 = vadd.f32 %v1451_v32, %v1267_v17  ;;  %v1540_v35 = vpop.f32.mrf.mxu3  ;;  %v3038_v17 = vld [vmem:[%s3445_s21 + $0x58] sm:$0xff]  }
 0x190   : > { %v1268_v36 = vpop.f32.mrf.mxu1 }
 0x191   : > { %v1974_v29 = vmax.f32 %v1942_v41, 0.0  ;;  %v1541_v14 = vadd.f32 %v1540_v35, %v1452_v33  ;;  %v1269_v38 = vadd.f32 %v1268_v36, %v3398_v42  ;;  %v2930_v41 = vunpack.c.l.bf16 %v3038_v17 }
 0x192   : > { %v1823_v44 = vpop.f32.mrf.mxu0  ;;  %v2931_v35 = vunpack.c.h.bf16 %v3038_v17 }
 0x193   : > { %v2070_v45 = vadd.f32 %v2923_v22, %v1974_v29  ;;  %v1871_v47 = vadd.f32 %v1821_v20, %v1541_v14 }
 0x195   : > { %v2996_v48 = vpack.c.bf16 %v2070_v45, %v2069_v40  ;;  %v1907_v56 = vmul.f32 %v3430_v6, %v1871_v47 }
 0x196   : > { %v1453_v10 = vpop.f32.mrf.mxu2 }
 0x197   : > { %3051 = vst [vmem:[%s3458_s25 + $0x48] sm:$0xff] %v2996_v48   ;;  %v1454_v57 = vadd.f32 %v1453_v10, %v1269_v38  ;;  %v1542_v58 = vpop.f32.mrf.mxu3  ;;  %v1943_v49 = vadd.f32 %v3437_v11, %v1907_v56 }
 0x198   : > { %v1271_v59 = vpop.f32.mrf.mxu1 }
 0x199   : > { %v1543_v60 = vadd.f32 %v1542_v58, %v1454_v57  ;;  %v1272_v63 = vadd.f32 %v1271_v59, %v3410_v50  ;;  %v1975_v42 = vmax.f32 %v1943_v49, 0.0 }
 0x19a   : > { %v1826_v61 = vpop.f32.mrf.mxu0 }
 0x19b   : > { %v1872_v18 = vadd.f32 %v1823_v44, %v1543_v60  ;;  %v2071_v26 = vadd.f32 %v2926_v0, %v1975_v42 }
 0x19d   : > { %v1908_v62 = vmul.f32 %v3430_v6, %v1872_v18  ;;  %v3039_v18 = vld [vmem:[%s3445_s21 + $0x60] sm:$0xff]  }
 0x19e   : > { %v1456_v1 = vpop.f32.mrf.mxu2 }
 0x19f   : > { %v1944_v46 = vadd.f32 %v3437_v11, %v1908_v62  ;;  %v1457_v2 = vadd.f32 %v1456_v1, %v1272_v63  ;;  %v1545_v3 = vpop.f32.mrf.mxu3  ;;  %v2934_v1 = vunpack.c.l.bf16 %v3039_v18 }
 0x1a0   : > { %v1273_v4 = vpop.f32.mrf.mxu1 }
 0x1a1   : > { %v1976_v25 = vmax.f32 %v1944_v46, 0.0  ;;  %v1546_v16 = vadd.f32 %v1545_v3, %v1457_v2  ;;  %v1274_v50 = vadd.f32 %v1273_v4, %v3418_v54 }
 0x1a2   : > { %v1828_v5 = vpop.f32.mrf.mxu0 }
 0x1a3   : > { %v2072_v7 = vadd.f32 %v2927_v37, %v1976_v25  ;;  %v1873_v8 = vadd.f32 %v1826_v61, %v1546_v16  ;;  %v2935_v37 = vunpack.c.h.bf16 %v3039_v18 }
 0x1a5   : > { %v3001_v9 = vpack.c.bf16 %v2072_v7, %v2071_v26  ;;  %v1909_v12 = vmul.f32 %v3430_v6, %v1873_v8 }
 0x1a6   : > { %v1458_v34 = vpop.f32.mrf.mxu2 }
 0x1a7   : > { %3052 = vst [vmem:[%s3458_s25 + $0x50] sm:$0xff] %v3001_v9   ;;  %v1459_v13 = vadd.f32 %v1458_v34, %v1274_v50  ;;  %v1547_v20 = vpop.f32.mrf.mxu3  ;;  %v1945_v23 = vadd.f32 %v3437_v11, %v1909_v12 }
 0x1a8   : > { %v1276_v52 = vpop.f32.mrf.mxu1 }
 0x1a9   : > { %v1548_v53 = vadd.f32 %v1547_v20, %v1459_v13  ;;  %v1277_v30 = vadd.f32 %v1276_v52, %v3352_v15  ;;  %v1977_v54 = vmax.f32 %v1945_v23, 0.0 }
 0x1aa   : > { %v1831_v21 = vpop.f32.mrf.mxu0 }
 0x1ab   : > { %v1874_v24 = vadd.f32 %v1828_v5, %v1548_v53  ;;  %v2073_v47 = vadd.f32 %v2930_v41, %v1977_v54 }
 0x1ad   : > { %v1910_v32 = vmul.f32 %v3430_v6, %v1874_v24 }
 0x1ae   : > { %v1461_v22 = vpop.f32.mrf.mxu2 }
 0x1af   : > { %v1946_v33 = vadd.f32 %v3437_v11, %v1910_v32  ;;  %v1462_v36 = vadd.f32 %v1461_v22, %v1277_v30  ;;  %v1550_v29 = vpop.f32.mrf.mxu3 }
 0x1b0   : > { %v1278_v14 = vpop.f32.mrf.mxu1 }
 0x1b1   : > { %v1978_v44 = vmax.f32 %v1946_v33, 0.0  ;;  %v1551_v40 = vadd.f32 %v1550_v29, %v1462_v36  ;;  %v1279_v15 = vadd.f32 %v1278_v14, %v3360_v19 }
 0x1b2   : > { %v1833_v45 = vpop.f32.mrf.mxu0 }
 0x1b3   : > { %v2074_v48 = vadd.f32 %v2931_v35, %v1978_v44  ;;  %v1875_v38 = vadd.f32 %v1831_v21, %v1551_v40  ;;  %v3040_v21 = vld [vmem:[%s3445_s21 + $0x68] sm:$0xff]  }
 0x1b4   : > { %v2938_v30 = vunpack.c.l.bf16 %v3040_v21  ;;  %v2939_v54 = vunpack.c.h.bf16 %v3040_v21 }
 0x1b5   : > { %v3006_v10 = vpack.c.bf16 %v2074_v48, %v2073_v47  ;;  %v1911_v57 = vmul.f32 %v3430_v6, %v1875_v38 }
 0x1b6   : > { %v1463_v56 = vpop.f32.mrf.mxu2 }
 0x1b7   : > { %3053 = vst [vmem:[%s3458_s25 + $0x58] sm:$0xff] %v3006_v10   ;;  %v1464_v58 = vadd.f32 %v1463_v56, %v1279_v15  ;;  %v1552_v59 = vpop.f32.mrf.mxu3  ;;  %v1947_v28 = vadd.f32 %v3437_v11, %v1911_v57 }
 0x1b8   : > { %v1281_v60 = vpop.f32.mrf.mxu1 }
 0x1b9   : > { %v1553_v61 = vadd.f32 %v1552_v59, %v1464_v58  ;;  %v1282_v0 = vadd.f32 %v1281_v60, %v3372_v27  ;;  %v1979_v19 = vmax.f32 %v1947_v28, 0.0  ;;  %v3041_v60 = vld [vmem:[%s3445_s21 + $0x70] sm:$0xff]  }
 0x1ba   : > { %v1836_v49 = vpop.f32.mrf.mxu0  ;;  %v2942_v18 = vunpack.c.l.bf16 %v3041_v60 }
 0x1bb   : > { %v1876_v62 = vadd.f32 %v1833_v45, %v1553_v61  ;;  %v2075_v26 = vadd.f32 %v2934_v1, %v1979_v19 }
 0x1bd   : > { %v1912_v63 = vmul.f32 %v3430_v6, %v1876_v62 }
 0x1be   : > { %v1466_v42 = vpop.f32.mrf.mxu2 }
 0x1bf   : > { %v1948_v46 = vadd.f32 %v3437_v11, %v1912_v63  ;;  %v1467_v2 = vadd.f32 %v1466_v42, %v1282_v0  ;;  %v1555_v3 = vpop.f32.mrf.mxu3  ;;  %v2943_v0 = vunpack.c.h.bf16 %v3041_v60 }
 0x1c0   : > { %v1283_v4 = vpop.f32.mrf.mxu1 }
 0x1c1   : > { %v1980_v25 = vmax.f32 %v1948_v46, 0.0  ;;  %v1556_v16 = vadd.f32 %v1555_v3, %v1467_v2  ;;  %v1284_v27 = vadd.f32 %v1283_v4, %v3380_v31 }
 0x1c2   : > { %v1838_v5 = vpop.f32.mrf.mxu0 }
 0x1c3   : > { %v2076_v7 = vadd.f32 %v2935_v37, %v1980_v25  ;;  %v1877_v8 = vadd.f32 %v1836_v49, %v1556_v16 }
 0x1c5   : > { %v3011_v9 = vpack.c.bf16 %v2076_v7, %v2075_v26  ;;  %v1913_v34 = vmul.f32 %v3430_v6, %v1877_v8 }
 0x1c6   : > { %v1468_v50 = vpop.f32.mrf.mxu2 }
 0x1c7   : > { %3054 = vst [vmem:[%s3458_s25 + $0x60] sm:$0xff] %v3011_v9   ;;  %v1469_v12 = vadd.f32 %v1468_v50, %v1284_v27  ;;  %v1557_v13 = vpop.f32.mrf.mxu3  ;;  %v1949_v53 = vadd.f32 %v3437_v11, %v1913_v34 }
 0x1c8   : > { %v1286_v20 = vpop.f32.mrf.mxu1 }
 0x1c9   : > { %v1558_v52 = vadd.f32 %v1557_v13, %v1469_v12  ;;  %v1287_v32 = vadd.f32 %v1286_v20, %v3392_v39  ;;  %v1981_v31 = vmax.f32 %v1949_v53, 0.0  ;;  %v3042_v12 = vld [vmem:[%s3445_s21 + $0x78] sm:$0xff]  }
 0x1ca   : > { %v1841_v17 = vpop.f32.mrf.mxu0 }
 0x1cb   : > { %v1878_v23 = vadd.f32 %v1838_v5, %v1558_v52  ;;  %v2077_v44 = vadd.f32 %v2938_v30, %v1981_v31  ;;  %v2946_v52 = vunpack.c.l.bf16 %v3042_v12 }
 0x1cd   : > { %v1914_v24 = vmul.f32 %v3430_v6, %v1878_v23 }
 0x1ce   : > { %v1471_v41 = vpop.f32.mrf.mxu2 }
 0x1cf   : > { %v1950_v22 = vadd.f32 %v3437_v11, %v1914_v24  ;;  %v1472_v33 = vadd.f32 %v1471_v41, %v1287_v32  ;;  %v1560_v35 = vpop.f32.mrf.mxu3 }
 0x1d0   : > { %v1288_v36 = vpop.f32.mrf.mxu1 }
 0x1d1   : > { %v1982_v29 = vmax.f32 %v1950_v22, 0.0  ;;  %v1561_v14 = vadd.f32 %v1560_v35, %v1472_v33  ;;  %v1289_v48 = vadd.f32 %v1288_v36, %v3400_v43 }
 0x1d2   : > { %v1843_v39 = vpop.f32.mrf.mxu0 }
 0x1d3   : > { %v2078_v40 = vadd.f32 %v2939_v54, %v1982_v29  ;;  %v1879_v45 = vadd.f32 %v1841_v17, %v1561_v14 }
 0x1d5   : > { %v3016_v47 = vpack.c.bf16 %v2078_v40, %v2077_v44  ;;  %v1915_v10 = vmul.f32 %v3430_v6, %v1879_v45 }
 0x1d6   : > { %v1473_v38 = vpop.f32.mrf.mxu2 }
 0x1d7   : > { %3055 = vst [vmem:[%s3458_s25 + $0x68] sm:$0xff] %v3016_v47   ;;  %v1474_v15 = vadd.f32 %v1473_v38, %v1289_v48  ;;  %v1562_v56 = vpop.f32.mrf.mxu3  ;;  %v1951_v59 = vadd.f32 %v3437_v11, %v1915_v10 }
 0x1d8   : > { %v1291_v57 = vpop.f32.mrf.mxu1 }
 0x1d9   : > { %v1563_v58 = vadd.f32 %v1562_v56, %v1474_v15  ;;  %v1292_v28 = vadd.f32 %v1291_v57, %v3412_v51  ;;  %v1983_v43 = vmax.f32 %v1951_v59, 0.0 }
 0x1da   : > { %v1846_v19 = vpop.f32.mrf.mxu0 }
 0x1db   : > { %v1880_v61 = vadd.f32 %v1843_v39, %v1563_v58  ;;  %v2079_v3 = vadd.f32 %v2942_v18, %v1983_v43 }
 0x1dd   : > { %v1916_v49 = vmul.f32 %v3430_v6, %v1880_v61 }
 0x1de   : > { %v1476_v62 = vpop.f32.mrf.mxu2 }
 0x1df   : > { %v1952_v63 = vadd.f32 %v3437_v11, %v1916_v49  ;;  %v1477_v1 = vadd.f32 %v1476_v62, %v1292_v28  ;;  %v1565_v42 = vpop.f32.mrf.mxu3 }
 0x1e0   : > { %v1293_v2 = vpop.f32.mrf.mxu1 }
 0x1e1   : > { %v1984_v46 = vmax.f32 %v1952_v63, 0.0  ;;  %v1566_v37 = vadd.f32 %v1565_v42, %v1477_v1  ;;  %v1294_v51 = vadd.f32 %v1293_v2, %v3420_v55  ;;  %v2947_v55 = vunpack.c.h.bf16 %v3042_v12 }
 0x1e2   : > { %v1848_v27 = vpop.f32.mrf.mxu0 }
 0x1e3   : > { %v2080_v4 = vadd.f32 %v2943_v0, %v1984_v46  ;;  %v1881_v25 = vadd.f32 %v1846_v19, %v1566_v37 }
 0x1e5   : > { %v3021_v16 = vpack.c.bf16 %v2080_v4, %v2079_v3  ;;  %v1917_v26 = vmul.f32 %v3430_v6, %v1881_v25 }
 0x1e6   : > { %v1478_v5 = vpop.f32.mrf.mxu2 }
 0x1e7   : > { %3056 = vst [vmem:[%s3458_s25 + $0x70] sm:$0xff] %v3021_v16   ;;  %v1479_v7 = vadd.f32 %v1478_v5, %v1294_v51  ;;  %v1567_v8 = vpop.f32.mrf.mxu3  ;;  %v1953_v50 = vadd.f32 %v3437_v11, %v1917_v26 }
 0x1e9   : > { %v1568_v9 = vadd.f32 %v1567_v8, %v1479_v7  ;;  %v1985_v20 = vmax.f32 %v1953_v50, 0.0 }
 0x1eb   : > { %v1882_v34 = vadd.f32 %v1848_v27, %v1568_v9  ;;  %v2081_v23 = vadd.f32 %v2946_v52, %v1985_v20 }
 0x1ed   : > { %v1918_v13 = vmul.f32 %v3430_v6, %v1882_v34 }
 0x1ef   : > { %v1954_v53 = vadd.f32 %v3437_v11, %v1918_v13 }
 0x1f1   : > { %v1986_v21 = vmax.f32 %v1954_v53, 0.0 }
 0x1f3   : > { %v2082_v17 = vadd.f32 %v2947_v55, %v1986_v21 }
 0x1f5   : > { %v3026_v24 = vpack.c.bf16 %v2082_v17, %v2081_v23 }
 0x1f7   : > { %3057 = vst [vmem:[%s3458_s25 + $0x78] sm:$0xff] %v3026_v24  }
 0x1f8 PF: > { %s19_s30 = sadd.s32 1, %s3098_s30  }
 0x1f9   : > { %p16_p4 = scmp.ge.s32.totalorder %s19_s30, 4  }
 0x1fb   :  { %18 = sbr.rel (!%p16_p4) target bundleno = 1 (0x1), region = 101 }

// kernel: dappm_forward.11
= control target key start
LH: loop header
LB: loop body
LE: loop exit
PB: predicated region body
PF: predicated region fallthrough
CT: control target
= control target key end

     0   :  { %s6444_s18 = smov 0   ;;  %s7923_s0 = inlined_call_operand.vmem [shape: bf16[2,16,16,128], index: 0, kind: input, shape index: {}]   ;;  %s7924_s1 = inlined_call_operand.vmem [shape: bf16[2,16,16,128], index: 1, kind: input, shape index: {}]   ;;  %s7925_s2 = inlined_call_operand.vmem [shape: bf16[3,384,128], index: 2, kind: input, shape index: {}]   ;;  %s7926_s3 = inlined_call_operand.vmem [shape: f32[1,128], index: 3, kind: input, shape index: {}]   ;;  %s7927_s4 = inlined_call_operand.vmem [shape: f32[1,128], index: 4, kind: input, shape index: {}]   ;;  %s7928_s5 = inlined_call_operand.vmem [shape: bf16[2,16,16,128], index: 5, kind: output, shape index: {}]  }
   0x1 LB: > { %s4459_s19 = sadd.s32 4294967295, %s6411_s18   ;;  %p4463_p0 = scmp.ge.s32.totalorder %s6411_s18, 1  ;;  %s6411_s18 = sphi %s6444_s18, %s15_s18  }
   0x2   : > { %p197_p1 = scmp.lt.s32.totalorder %s6411_s18, 3 }
   0x4   : > { %p198_p2 = pnand %p4463_p0, %p197_p1 }
   0x6   : > { %201 = sbr.rel (%p198_p2) target bundleno = 762 (0x2fa), region = 40 }
   0xb   : > { %v5914_v0 = vld [vmem:[%s7925_s2 + $0xf8] sm:$0xff]  ;;  %p230_p3 = scmp.lt.s32.totalorder %s4459_s19, 1  ;;  %v5913_v2 = vld [vmem:[%s7925_s2 + $0xf0] sm:$0xff]  ;;  %vm256_vm0 = vcmask 1040384   ;;  %vm257_vm1 = vsmask.f32 256 }
   0xc   : > { %v5922_v1 = vld [vmem:[%s7925_s2 + $0x138] sm:$0xff]  ;;  %1616 = vmatpush.bf16.msra.mxu0 %v5914_v0  ;;  %6376 = vmatpush.bf16.msra.mxu2 %v5914_v0  ;;  %v5921_v3 = vld [vmem:[%s7925_s2 + $0x130] sm:$0xff]  ;;  %vm6479_vm2 = vmand %vm256_vm0, %vm257_vm1  ;;  %vm840_vm3 = vcmask 1043456   ;;  %vm550_vm4 = vsmask.f32 4368  ;;  %vm307_vm8 = vcmask 1043459  }
   0xd   : > { %s8028_s19 = smov (!%p230_p3, %s4459_s19), 1  ;;  %1665 = vmatpush.bf16.msra.mxu1 %v5922_v1  ;;  %6384 = vmatpush.bf16.msra.mxu3 %v5922_v1  ;;  %v259_v5 = vld [vmem:[#allocation2 + $0x18] sm:$0x1]  ;;  %v5912_v6 = vld [vmem:[%s7925_s2 + $0xe8] sm:$0xff]  ;;  %v5911_v21 = vld [vmem:[%s7925_s2 + $0xe0] sm:$0xff] }
   0xe   : > { %s6464_s28 = sshll.u32 %s8028_s19, 7  ;;  %v260_v7 = vsel %vm6479_vm2, 0, %v259_v5  ;;  %v5920_v10 = vld [vmem:[%s7925_s2 + $0x128] sm:$0xff]  ;;  %v271_v15 = vld [vmem:[#allocation2 + $0x78] sm:$0x1]  ;;  %v5919_v22 = vld [vmem:[%s7925_s2 + $0x120] sm:$0xff] }
   0xf   : > { %s6470_s6 = scalar_lea.vmem %s7923_s0, %s6464_s28  ;;  %s6476_s9 = scalar_lea.vmem %s7924_s1, %s6464_s28  ;;  %261 = vst [vmem:[#allocation2 + $0x18] sm:$0x1] %v260_v7  ;;  %v272_v17 = vsel %vm6479_vm2, 0, %v271_v15  ;;  %vm841_vm5 = vsmask.f32 7938  ;;  %v5910_v43 = vld [vmem:[%s7925_s2 + $0xd8] sm:$0xff]  ;;  %vm6531_vm6 = vmor %vm257_vm1, %vm550_vm4 }
  0x10   : > { %1617 = vmatpush.bf16.msra.mxu0 %v5913_v2  ;;  %6377 = vmatpush.bf16.msra.mxu2 %v5913_v2  ;;  %v6124_v8 = vld [vmem:[%s6470_s6] sm:$0xff]   ;;  %273 = vst [vmem:[#allocation2 + $0x78] sm:$0x1] %v272_v17  ;;  %v262_v27 = vld [vmem:[#allocation2 + $0x30] sm:$0x1]  ;;  %v6331_v32 = vld [vmem:[%s6470_s6 + $0x8] sm:$0xff]  }
  0x11   : > { %v6188_v9 = vld [vmem:[%s6476_s9] sm:$0xff]   ;;  %1666 = vmatpush.bf16.msra.mxu1 %v5921_v3  ;;  %6385 = vmatpush.bf16.msra.mxu3 %v5921_v3  ;;  %v6125_v11 = vunpack.c.l.bf16 %v6124_v8  ;;  %v6126_v12 = vunpack.c.h.bf16 %v6124_v8  ;;  %v263_v31 = vsel %vm6479_vm2, 0, %v262_v27  ;;  %v6346_v33 = vld [vmem:[%s6476_s9 + $0x8] sm:$0xff]   ;;  %v274_v34 = vld [vmem:[#allocation2 + $0x90] sm:$0x1]  ;;  %v6129_v36 = vunpack.c.l.bf16 %v6331_v32 }
  0x12   : > { %v6189_v13 = vunpack.c.l.bf16 %v6188_v9  ;;  %v6190_v14 = vunpack.c.h.bf16 %v6188_v9  ;;  %v6334_v16 = vld [vmem:[%s6470_s6 + $0x20] sm:$0xff]   ;;  %264 = vst [vmem:[#allocation2 + $0x30] sm:$0x1] %v263_v31  ;;  %v6130_v37 = vunpack.c.h.bf16 %v6331_v32  ;;  %v6193_v38 = vunpack.c.l.bf16 %v6346_v33  ;;  %v5918_v48 = vld [vmem:[%s7925_s2 + $0x118] sm:$0xff]  ;;  %v6335_v53 = vld [vmem:[%s6470_s6 + $0x28] sm:$0xff]  }
  0x13   : > { %v6141_v18 = vunpack.c.l.bf16 %v6334_v16  ;;  %v6142_v19 = vunpack.c.h.bf16 %v6334_v16  ;;  %v6349_v20 = vld [vmem:[%s6476_s9 + $0x20] sm:$0xff]   ;;  %v6194_v46 = vunpack.c.h.bf16 %v6346_v33  ;;  %v275_v47 = vsel %vm6479_vm2, 0, %v274_v34  ;;  %vm6542_vm7 = vmand %vm840_vm3, %vm841_vm5  ;;  %v5909_v0 = vld [vmem:[%s7925_s2 + $0xd0] sm:$0xff] }
  0x14   : > { %v486_v23 = vadd.f32 %v6189_v13, %v6125_v11  ;;  %v487_v24 = vadd.f32 %v6190_v14, %v6126_v12  ;;  %v6205_v25 = vunpack.c.l.bf16 %v6349_v20  ;;  %v6206_v26 = vunpack.c.h.bf16 %v6349_v20  ;;  %1618 = vmatpush.bf16.msra.mxu0 %v5912_v6  ;;  %6378 = vmatpush.bf16.msra.mxu2 %v5912_v6  ;;  %276 = vst [vmem:[#allocation2 + $0x90] sm:$0x1] %v275_v47  ;;  %v6350_v6 = vld [vmem:[%s6476_s9 + $0x28] sm:$0xff]   ;;  %v5917_v7 = vld [vmem:[%s7925_s2 + $0x110] sm:$0xff] }
  0x15   : > { %1667 = vmatpush.bf16.msra.mxu1 %v5920_v10  ;;  %6386 = vmatpush.bf16.msra.mxu3 %v5920_v10  ;;  %v488_v52 = vadd.f32 %v6193_v38, %v6129_v36  ;;  %v489_v63 = vadd.f32 %v6194_v46, %v6130_v37  ;;  %v6145_v5 = vunpack.c.l.bf16 %v6335_v53  ;;  %v6146_v12 = vunpack.c.h.bf16 %v6335_v53  ;;  %v5908_v13 = vld [vmem:[%s7925_s2 + $0xc8] sm:$0xff]  ;;  %v6347_v32 = vld [vmem:[%s6476_s9 + $0x10] sm:$0xff]   ;;  %v5907_v38 = vld [vmem:[%s7925_s2 + $0xc0] sm:$0xff] }
  0x16   : > { %v6503_v28 = vpack.c.bf16 %v486_v23, %v486_v23  ;;  %v6505_v29 = vpack.c.bf16 %v487_v24, %v487_v24  ;;  %v494_v30 = vadd.f32 %v6205_v25, %v6141_v18  ;;  %v495_v35 = vadd.f32 %v6206_v26, %v6142_v19  ;;  %v843_v55 = vld [vmem:[#allocation2 + $0x18] sm:$0xf]  ;;  %v6584_v18 = vld [vmem:[%s6470_s6 + $0x10] sm:$0xff]   ;;  %v5916_v19 = vld [vmem:[%s7925_s2 + $0x108] sm:$0xff] }
  0x17   : > { %v6563_v3 = vpack.c.bf16 %v488_v52, %v488_v52  ;;  %v859_v10 = vld [vmem:[#allocation2 + $0x78] sm:$0xf]  ;;  %v6573_v11 = vpack.c.bf16 %v489_v63, %v489_v63  ;;  %v6210_v23 = vunpack.c.h.bf16 %v6350_v6  ;;  %v6591_v24 = vld [vmem:[#allocation2 + $0x48] sm:$0x1]  ;;  %v6619_v52 = vld [vmem:[%s6470_s6 + $0x30] sm:$0xff]  }
  0x18   : > { %v553_v39 = vshrl.u32 %v6503_v28, 16  ;;  %v556_v40 = vshll.u32 %v6503_v28, 16  ;;  %v561_v41 = vshrl.u32 %v6505_v29, 16  ;;  %v564_v42 = vshll.u32 %v6505_v29, 16  ;;  %907 = vst [vmem:[#allocation2 + $0x1c] sm:$0xf] %v6503_v28  ;;  %1619 = vmatpush.bf16.msra.mxu0 %v5911_v21  ;;  %6379 = vmatpush.bf16.msra.mxu2 %v5911_v21 }
  0x19   : > { %908 = vst [vmem:[#allocation2 + $0x28] sm:$0xf] %v6505_v29  ;;  %v6520_v44 = vpack.c.bf16 %v494_v30, %v494_v30  ;;  %v6522_v45 = vpack.c.bf16 %v495_v35, %v495_v35  ;;  %1668 = vmatpush.bf16.msra.mxu1 %v5919_v22  ;;  %6387 = vmatpush.bf16.msra.mxu3 %v5919_v22  ;;  %v569_v17 = vshrl.u32 %v6563_v3, 16  ;;  %v572_v20 = vshll.u32 %v6563_v3, 16  ;;  %v847_v31 = vld [vmem:[#allocation2 + $0x30] sm:$0xf] }
  0x1a   : > { %v555_v50 = vrot.slane %v553_v39, 7  ;;  %v563_v51 = vrot.slane %v561_v41, 7  ;;  %v577_v21 = vshrl.u32 %v6573_v11, 16  ;;  %v6209_v22 = vunpack.c.l.bf16 %v6350_v6  ;;  %v5915_v53 = vld [vmem:[%s7925_s2 + $0x100] sm:$0xff]  ;;  %909 = vst [vmem:[#allocation2 + $0x34] sm:$0xf] %v6563_v3 }
  0x1b   : > { %v617_v56 = vshrl.u32 %v6520_v44, 16  ;;  %v620_v57 = vshll.u32 %v6520_v44, 16  ;;  %v7937_v58 = vshrl.u32 %v6522_v45, 16  ;;  %v628_v59 = vshll.u32 %v6522_v45, 16  ;;  %915 = vst [vmem:[#allocation2 + $0x7c] sm:$0xf] %v6520_v44 }
  0x1c   : > { %v558_v60 = vor.u32 %v556_v40, %v555_v50  ;;  %v559_v61 = vrot.slane %v555_v50, 4  ;;  %v566_v62 = vor.u32 %v564_v42, %v563_v51  ;;  %1620 = vmatpush.bf16.msra.mxu0 %v5910_v43  ;;  %6380 = vmatpush.bf16.msra.mxu2 %v5910_v43  ;;  %916 = vst [vmem:[#allocation2 + $0x88] sm:$0xf] %v6522_v45  ;;  %v571_v30 = vrot.slane %v569_v17, 7  ;;  %v6616_v51 = vld [vmem:[#allocation2 + $0xa8] sm:$0x1] }
  0x1d   : > { %v619_v1 = vrot.slane %v617_v56, 7  ;;  %v627_v2 = vrot.slane %v7937_v58, 7  ;;  %1669 = vmatpush.bf16.msra.mxu1 %v5918_v48  ;;  %6388 = vmatpush.bf16.msra.mxu3 %v5918_v48  ;;  %v579_v34 = vrot.slane %v577_v21, 7  ;;  %v580_v35 = vshll.u32 %v6573_v11, 16  ;;  %910 = vst [vmem:[#allocation2 + $0x40] sm:$0xf] %v6573_v11 }
  0x1e   : > { %v567_v8 = vsel %vm6531_vm6, %v559_v61, %v566_v62  ;;  %v844_v9 = vsel %vm6542_vm7, %v558_v60, %v843_v55  ;;  %v496_v36 = vadd.f32 %v6209_v22, %v6145_v5  ;;  %v497_v37 = vadd.f32 %v6210_v23, %v6146_v12  ;;  %v5930_v5 = vld [vmem:[%s7925_s2 + $0x178] sm:$0xff] }
  0x1f   : > { %845 = vst [vmem:[#allocation2 + $0x18] sm:$0xf] %v844_v9  ;;  %v622_v14 = vor.u32 %v620_v57, %v619_v1  ;;  %v623_v15 = vrot.slane %v619_v1, 4  ;;  %v630_v16 = vor.u32 %v628_v59, %v627_v2  ;;  %v6597_v27 = vld [vmem:[#allocation2 + $0x1c] sm:$0xf]  ;;  %v574_v46 = vor.u32 %v572_v20, %v571_v30 }
  0x20   : > { %846 = vst [vmem:[#allocation2 + $0x24] sm:$0xf] %v567_v8  ;;  %1621 = vmatpush.bf16.msra.mxu0 %v5909_v0  ;;  %6381 = vmatpush.bf16.msra.mxu2 %v5909_v0  ;;  %v6602_v33 = vld [vmem:[#allocation2 + $0x24] sm:$0xf0]  ;;  %v575_v47 = vrot.slane %v571_v30, 4  ;;  %v6133_v48 = vunpack.c.l.bf16 %v6584_v18  ;;  %v6134_v50 = vunpack.c.h.bf16 %v6584_v18  ;;  %v582_v60 = vor.u32 %v580_v35, %v579_v34  ;;  %v6637_v0 = vld [vmem:[%s6476_s9 + $0x30] sm:$0xff]  }
  0x21   : > { %v631_v25 = vsel %vm6531_vm6, %v623_v15, %v630_v16  ;;  %v860_v26 = vsel %vm6542_vm7, %v622_v14, %v859_v10  ;;  %1670 = vmatpush.bf16.msra.mxu1 %v5917_v7  ;;  %6389 = vmatpush.bf16.msra.mxu3 %v5917_v7  ;;  %v6629_v61 = vpack.c.bf16 %v496_v36, %v496_v36  ;;  %v266_v63 = vsel %vm6479_vm2, 0, %v6591_v24  ;;  %v5866_v2 = vld [vmem:[%s7925_s2 + $0x38] sm:$0xff]  ;;  %v863_v30 = vld [vmem:[#allocation2 + $0x90] sm:$0xf] }
  0x22   : > { %861 = vst [vmem:[#allocation2 + $0x78] sm:$0xf] %v860_v26  ;;  %v6610_v43 = vld [vmem:[#allocation2 + $0x7c] sm:$0xf]  ;;  %v6631_v62 = vpack.c.bf16 %v497_v37, %v497_v37  ;;  %v4525_v1 = vor.u32 %v6597_v27, %v6602_v33  ;;  %v848_v6 = vsel %vm6542_vm7, %v574_v46, %v847_v31  ;;  %v6197_v7 = vunpack.c.l.bf16 %v6347_v32  ;;  %v5865_v36 = vld [vmem:[%s7925_s2 + $0x30] sm:$0xff] }
  0x23   : > { %862 = vst [vmem:[#allocation2 + $0x84] sm:$0xf] %v631_v25  ;;  %v6624_v55 = vld [vmem:[#allocation2 + $0x84] sm:$0xf0]  ;;  %v6198_v8 = vunpack.c.h.bf16 %v6347_v32  ;;  %v5882_v12 = vld [vmem:[%s7925_s2 + $0xb8] sm:$0xff]  ;;  %v7936_v14 = vshrl.u32 %v6629_v61, 16  ;;  %v6149_v32 = vunpack.c.l.bf16 %v6619_v52 }
  0x24   : > { %1622 = vmatpush.bf16.msra.mxu0 %v5908_v13  ;;  %6382 = vmatpush.bf16.msra.mxu2 %v5908_v13  ;;  %v4573_v10 = vor.u32 %v6610_v43, %v6624_v55  ;;  %v583_v13 = vsel %vm6531_vm6, %v575_v47, %v582_v60  ;;  %849 = vst [vmem:[#allocation2 + $0x30] sm:$0xf] %v848_v6  ;;  %v7935_v15 = vshll.u32 %v6629_v61, 16  ;;  %v7930_v18 = vshrl.u32 %v6631_v62, 16  ;;  %v5874_v25 = vld [vmem:[%s7925_s2 + $0x78] sm:$0xff] }
  0x25   : > { %1671 = vmatpush.bf16.msra.mxu1 %v5916_v19  ;;  %6390 = vmatpush.bf16.msra.mxu3 %v5916_v19  ;;  %850 = vst [vmem:[#allocation2 + $0x3c] sm:$0xf] %v583_v13  ;;  %v7931_v19 = vshll.u32 %v6631_v62, 16  ;;  %v490_v22 = vadd.f32 %v6197_v7, %v6133_v48  ;;  %v491_v23 = vadd.f32 %v6198_v8, %v6134_v50  ;;  %v635_v26 = vrot.slane %v7936_v14, 7  ;;  %v6333_v60 = vld [vmem:[%s6470_s6 + $0x18] sm:$0xff]   ;;  %v5929_v7 = vld [vmem:[%s7925_s2 + $0x170] sm:$0xff] }
  0x26   : > { %v4520_v9 = vld [vmem:[#allocation2 + $0x18] sm:$0xf]  ;;  %917 = vst [vmem:[#allocation2 + $0x94] sm:$0xf] %v6629_v61  ;;  %v278_v31 = vsel %vm6479_vm2, 0, %v6616_v51  ;;  %v643_v37 = vrot.slane %v7930_v18, 7  ;;  %v6213_v47 = vunpack.c.l.bf16 %v6637_v0  ;;  %v6150_v51 = vunpack.c.h.bf16 %v6619_v52 }
  0x27   : > { %v5884_v16 = vld [vmem:[#allocation2 + $0x20] sm:$0xf0]  ;;  %918 = vst [vmem:[#allocation2 + $0xa0] sm:$0xf] %v6631_v62  ;;  %v6677_v43 = vpack.c.bf16 %v490_v22, %v490_v22  ;;  %v6679_v46 = vpack.c.bf16 %v491_v23, %v491_v23  ;;  %v638_v48 = vor.u32 %v7935_v15, %v635_v26  ;;  %v639_v50 = vrot.slane %v635_v26, 4  ;;  %v6348_v52 = vld [vmem:[%s6476_s9 + $0x18] sm:$0xff]  }
  0x28   : > { %v4521_v24 = vor.u32 %v5884_v16, %v4520_v9  ;;  %1623 = vmatpush.bf16.msra.mxu0 %v5907_v38  ;;  %6383 = vmatpush.bf16.msra.mxu2 %v5907_v38  ;;  %267 = vst [vmem:[#allocation2 + $0x48] sm:$0x1] %v266_v63  ;;  %v6214_v55 = vunpack.c.h.bf16 %v6637_v0  ;;  %v5881_v0 = vld [vmem:[%s7925_s2 + $0xb0] sm:$0xff]  ;;  %v498_v13 = vadd.f32 %v6213_v47, %v6149_v32  ;;  %v6137_v22 = vunpack.c.l.bf16 %v6333_v60 }
  0x29   : > { %v4568_v34 = vld [vmem:[#allocation2 + $0x78] sm:$0xf]  ;;  %1672 = vmatpush.bf16.msra.mxu1 %v5915_v53  ;;  %6391 = vmatpush.bf16.msra.mxu3 %v5915_v53  ;;  %v646_v53 = vor.u32 %v7931_v19, %v643_v37  ;;  %v585_v8 = vshrl.u32 %v6677_v43, 16  ;;  %v588_v9 = vshll.u32 %v6677_v43, 16  ;;  %911 = vst [vmem:[#allocation2 + $0x4c] sm:$0xf] %v6677_v43  ;;  %v864_v63 = vsel %vm6542_vm7, %v638_v48, %v863_v30 }
  0x2a   : > { %v5896_v38 = vld [vmem:[#allocation2 + $0x80] sm:$0xf0]  ;;  %912 = vst [vmem:[#allocation2 + $0x58] sm:$0xf] %v6679_v46  ;;  %v6138_v23 = vunpack.c.h.bf16 %v6333_v60  ;;  %v499_v33 = vadd.f32 %v6214_v55, %v6150_v51  ;;  %v6201_v26 = vunpack.c.l.bf16 %v6348_v52  ;;  %v5880_v37 = vld [vmem:[%s7925_s2 + $0xa8] sm:$0xff]  ;;  %v6413_v28 = vmov 0  }
  0x2b   : > { %v4569_v6 = vor.u32 %v5896_v38, %v4568_v34  ;;  %1624 = vmatmul.bf16.vlgmr.msra.gmra.mxu0 %v4521_v24  ;;  %865 = vst [vmem:[#allocation2 + $0x90] sm:$0xf] %v864_v63  ;;  %v587_v16 = vrot.slane %v585_v8, 7  ;;  %v5873_v24 = vld [vmem:[%s7925_s2 + $0x70] sm:$0xff]  ;;  %v6202_v34 = vunpack.c.h.bf16 %v6348_v52  ;;  %v5863_v51 = vld [vmem:[%s7925_s2 + $0x20] sm:$0xff] }
  0x2c   : > { %1714 = vmatpush.bf16.msrb.mxu2 %v5930_v5  ;;  %v596_v5 = vshll.u32 %v6679_v46, 16  ;;  %1673 = vmatmul.bf16.vlgmr.msra.gmra.mxu1 %v4525_v1  ;;  %v6716_v1 = vpack.c.bf16 %v498_v13, %v498_v13  ;;  %279 = vst [vmem:[#allocation2 + $0xa8] sm:$0x1] %v278_v31  ;;  %v6734_v38 = vpack.c.bf16 %v499_v33, %v499_v33  ;;  %v5927_v55 = vld [vmem:[%s7925_s2 + $0x160] sm:$0xff]  ;;  %v6747_v52 = vld [vmem:[#allocation2 + $0x30] sm:$0xf] }
  0x2d   : > { %2035 = vmatpush.bf16.msrb.mxu3 %v5866_v2  ;;  %2133 = vmatpush.bf16.msrb.mxu1 %v5882_v12  ;;  %v593_v2 = vshrl.u32 %v6679_v46, 16  ;;  %v647_v12 = vsel %vm6531_vm6, %v639_v50, %v646_v53  ;;  %v590_v30 = vor.u32 %v588_v9, %v587_v16  ;;  %v591_v32 = vrot.slane %v587_v16, 4  ;;  %v6337_v50 = vld [vmem:[%s6470_s6 + $0x38] sm:$0xff]   ;;  %246 = vst [vmem:[#allocation2] sm:$0xff] %v6413_v28  ;;  %v5977_v43 = vld [vmem:[%s7925_s2 + $0x230] sm:$0xff] }
  0x2e   : > { %1644 = vmatmul.bf16.vlgmr.msra.gmra.mxu2 %v4569_v6  ;;  %1693 = vmatmul.bf16.vlgmr.msra.gmra.mxu3 %v4573_v10  ;;  %866 = vst [vmem:[#allocation2 + $0x9c] sm:$0xf] %v647_v12  ;;  %v5864_v10 = vld [vmem:[%s7925_s2 + $0x28] sm:$0xff]  ;;  %v7929_v48 = vshrl.u32 %v6716_v1, 16  ;;  %v7934_v31 = vshll.u32 %v6716_v1, 16  ;;  %v492_v6 = vadd.f32 %v6201_v26, %v6137_v22  ;;  %v6352_v53 = vld [vmem:[%s6476_s9 + $0x38] sm:$0xff]   ;;  %v6153_v33 = vunpack.c.l.bf16 %v6337_v50 }
  0x2f   : > { %2084 = vmatpush.bf16.msrb.mxu0 %v5874_v25  ;;  %v595_v27 = vrot.slane %v593_v2, 7  ;;  %v5928_v25 = vld [vmem:[%s7925_s2 + $0x168] sm:$0xff]  ;;  %919 = vst [vmem:[#allocation2 + $0xac] sm:$0xf] %v6716_v1  ;;  %v7932_v12 = vshrl.u32 %v6734_v38, 16  ;;  %v7933_v22 = vshll.u32 %v6734_v38, 16  ;;  %v6218_v18 = vunpack.c.h.bf16 %v6352_v53 }
  0x30   : > { %1715 = vmatpush.bf16.msrb.mxu2 %v5929_v7  ;;  %v851_v60 = vld [vmem:[#allocation2 + $0x48] sm:$0xf]  ;;  %v493_v7 = vadd.f32 %v6202_v34, %v6138_v23  ;;  %v651_v13 = vrot.slane %v7929_v48, 7  ;;  %920 = vst [vmem:[#allocation2 + $0xb8] sm:$0xf] %v6734_v38  ;;  %v5879_v23 = vld [vmem:[%s7925_s2 + $0xa0] sm:$0xff]  ;;  %v6217_v48 = vunpack.c.l.bf16 %v6352_v53 }
  0x31   : > { %2036 = vmatpush.bf16.msrb.mxu3 %v5865_v36  ;;  %2134 = vmatpush.bf16.msrb.mxu1 %v5881_v0  ;;  %v5872_v36 = vld [vmem:[%s7925_s2 + $0x68] sm:$0xff]  ;;  %v598_v47 = vor.u32 %v596_v5, %v595_v27  ;;  %v852_v0 = vsel %vm6542_vm7, %v590_v30, %v851_v60  ;;  %v6757_v16 = vld [vmem:[#allocation2 + $0x38] sm:$0xf0]  ;;  %v6767_v26 = vld [vmem:[#allocation2 + $0x34] sm:$0xf]  ;;  %v6154_v60 = vunpack.c.h.bf16 %v6337_v50  ;;  %248 = vst [vmem:[#allocation2 + $0xc] sm:$0xff] %v6413_v28 }
  0x32   : > { %853 = vst [vmem:[#allocation2 + $0x48] sm:$0xf] %v852_v0  ;;  %v6765_v27 = vpack.c.bf16 %v493_v7, %v493_v7  ;;  %v6769_v30 = vld [vmem:[#allocation2 + $0x3c] sm:$0xf0]  ;;  %v655_v34 = vrot.slane %v651_v13, 4  ;;  %v4533_v19 = vor.u32 %v6757_v16, %v6747_v52  ;;  %v5926_v52 = vld [vmem:[%s7925_s2 + $0x158] sm:$0xff] }
  0x33   : > { %2085 = vmatpush.bf16.msrb.mxu0 %v5873_v24  ;;  %v599_v63 = vsel %vm6531_vm6, %v591_v32, %v598_v47  ;;  %v6763_v24 = vpack.c.bf16 %v492_v6, %v492_v6  ;;  %v6771_v32 = vld [vmem:[#allocation2 + $0x94] sm:$0xf]  ;;  %v659_v47 = vrot.slane %v7932_v12, 7  ;;  %v4580_v6 = vld [vmem:[#allocation2 + $0x90] sm:$0xf]  ;;  %v4537_v14 = vor.u32 %v6767_v26, %v6769_v30  ;;  %251 = vst [vmem:[#allocation2 + $0x198] sm:$0xff] %v6413_v28 }
  0x34   : > { %1716 = vmatpush.bf16.msrb.mxu2 %v5928_v25  ;;  %854 = vst [vmem:[#allocation2 + $0x54] sm:$0xf] %v599_v63  ;;  %v654_v25 = vor.u32 %v7934_v31, %v651_v13  ;;  %v867_v13 = vld [vmem:[#allocation2 + $0xa8] sm:$0xf]  ;;  %v268_v12 = vld [vmem:[#allocation2 + $0x60] sm:$0x1]  ;;  %v500_v31 = vadd.f32 %v6217_v48, %v6153_v33 }
  0x35   : > { %2037 = vmatpush.bf16.msrb.mxu3 %v5864_v10  ;;  %v6773_v10 = vld [vmem:[#allocation2 + $0x9c] sm:$0xf0]  ;;  %2135 = vmatpush.bf16.msrb.mxu1 %v5880_v37  ;;  %v5899_v7 = vld [vmem:[#allocation2 + $0x98] sm:$0xf0]  ;;  %v601_v0 = vshrl.u32 %v6763_v24, 16  ;;  %v662_v63 = vor.u32 %v7933_v22, %v659_v47  ;;  %v609_v50 = vshrl.u32 %v6765_v27, 16 }
  0x36   : > { %v5871_v37 = vld [vmem:[%s7925_s2 + $0x60] sm:$0xff]  ;;  %v868_v53 = vsel %vm6542_vm7, %v654_v25, %v867_v13  ;;  %v269_v16 = vsel %vm6479_vm2, 0, %v268_v12  ;;  %v5878_v25 = vld [vmem:[%s7925_s2 + $0x98] sm:$0xff]  ;;  %v501_v12 = vadd.f32 %v6218_v18, %v6154_v60  ;;  %v4581_v15 = vor.u32 %v5899_v7, %v4580_v6  ;;  %v5925_v26 = vld [vmem:[%s7925_s2 + $0x150] sm:$0xff]  ;;  %913 = vst [vmem:[#allocation2 + $0x64] sm:$0xf] %v6763_v24 }
  0x37   : > { %2086 = vmatpush.bf16.msrb.mxu0 %v5872_v36  ;;  %v5862_v36 = vld [vmem:[%s7925_s2 + $0x18] sm:$0xff]  ;;  %v603_v47 = vrot.slane %v601_v0, 7  ;;  %869 = vst [vmem:[#allocation2 + $0xa8] sm:$0xf] %v868_v53  ;;  %v611_v13 = vrot.slane %v609_v50, 7  ;;  %v4585_v58 = vor.u32 %v6771_v32, %v6773_v10  ;;  %v604_v18 = vshll.u32 %v6763_v24, 16 }
  0x38   : > { %1717 = vmatpush.bf16.msrb.mxu2 %v5927_v55  ;;  %v663_v55 = vsel %vm6531_vm6, %v655_v34, %v662_v63  ;;  %v280_v22 = vld [vmem:[#allocation2 + $0xc0] sm:$0x1]  ;;  %v5861_v63 = vld [vmem:[%s7925_s2 + $0x10] sm:$0xff]  ;;  %270 = vst [vmem:[#allocation2 + $0x60] sm:$0x1] %v269_v16  ;;  %v6821_v33 = vpack.c.bf16 %v500_v31, %v500_v31  ;;  %v6829_v32 = vpack.c.bf16 %v501_v12, %v501_v12  ;;  %v5924_v16 = vld [vmem:[%s7925_s2 + $0x148] sm:$0xff] }
  0x39   : > { %2038 = vmatpush.bf16.msrb.mxu3 %v5863_v51  ;;  %v612_v51 = vshll.u32 %v6765_v27, 16  ;;  %2136 = vmatpush.bf16.msrb.mxu1 %v5879_v23  ;;  %870 = vst [vmem:[#allocation2 + $0xb4] sm:$0xf] %v663_v55  ;;  %v607_v34 = vrot.slane %v603_v47, 4  ;;  %v5870_v23 = vld [vmem:[%s7925_s2 + $0x58] sm:$0xff]  ;;  %v281_v30 = vsel %vm6479_vm2, 0, %v280_v22 }
  0x3a   : > { %vm308_vm9 = vsmask.f32 7950  ;;  %914 = vst [vmem:[#allocation2 + $0x70] sm:$0xf] %v6765_v27  ;;  %v665_v10 = vshrl.u32 %v6821_v33, 16  ;;  %v5869_v22 = vld [vmem:[%s7925_s2 + $0x50] sm:$0xff] }
  0x3b   : > { %2087 = vmatpush.bf16.msrb.mxu0 %v5871_v37  ;;  %v614_v48 = vor.u32 %v612_v51, %v611_v13  ;;  %vm6835_vm10 = vmand %vm307_vm8, %vm308_vm9  ;;  %v310_v6 = vld [vmem:[#allocation2 + $0x2c] sm:$0x8]  ;;  %v676_v7 = vshll.u32 %v6829_v32, 16  ;;  %v606_v37 = vor.u32 %v604_v18, %v603_v47  ;;  %282 = vst [vmem:[#allocation2 + $0xc0] sm:$0x1] %v281_v30  ;;  %v948_v12 = vrot.slane %v561_v41, 4 }
  0x3c   : > { %1718 = vmatpush.bf16.msrb.mxu2 %v5926_v52  ;;  %1629 = vmatmul.bf16.gmra.mxu0 %v4533_v19  ;;  %v673_v19 = vshrl.u32 %v6829_v32, 16  ;;  %v667_v53 = vrot.slane %v665_v10, 7  ;;  %921 = vst [vmem:[#allocation2 + $0xc4] sm:$0xf] %v6821_v33  ;;  %v5860_v52 = vld [vmem:[%s7925_s2 + $0x8] sm:$0xff] }
  0x3d   : > { %2039 = vmatpush.bf16.msrb.mxu3 %v5862_v36  ;;  %2137 = vmatpush.bf16.msrb.mxu1 %v5878_v25  ;;  %v615_v31 = vsel %vm6531_vm6, %v607_v34, %v614_v48  ;;  %v311_v36 = vsel %vm6835_vm10, 0, %v310_v6  ;;  %922 = vst [vmem:[#allocation2 + $0xd0] sm:$0xf] %v6829_v32  ;;  %v5876_v13 = vld [vmem:[%s7925_s2 + $0x88] sm:$0xff]  ;;  %v5859_v48 = vld [vmem:[%s7925_s2] sm:$0xff] }
  0x3e   : > { %1649 = vmatmul.bf16.gmra.mxu2 %v4581_v15  ;;  %1678 = vmatmul.bf16.gmra.mxu1 %v4537_v14  ;;  %858 = vst [vmem:[#allocation2 + $0x6c] sm:$0xf] %v615_v31  ;;  %v668_v14 = vshll.u32 %v6821_v33, 16  ;;  %v5877_v15 = vld [vmem:[%s7925_s2 + $0x90] sm:$0xff]  ;;  %v671_v47 = vrot.slane %v667_v53, 4  ;;  %v5923_v6 = vld [vmem:[%s7925_s2 + $0x140] sm:$0xff] }
  0x3f   : > { %1698 = vmatmul.bf16.gmra.mxu3 %v4585_v58  ;;  %2088 = vmatpush.bf16.msrb.mxu0 %v5870_v23  ;;  %v675_v58 = vrot.slane %v673_v19, 7  ;;  %v855_v55 = vld [vmem:[#allocation2 + $0x60] sm:$0xf]  ;;  %312 = vst [vmem:[#allocation2 + $0x2c] sm:$0x8] %v311_v36  ;;  %v943_v36 = vrot.slane %v556_v40, 5 }
  0x40   : > { %1719 = vmatpush.bf16.msrb.mxu2 %v5925_v26  ;;  %v856_v34 = vsel %vm6542_vm7, %v606_v37, %v855_v55  ;;  %v670_v23 = vor.u32 %v668_v14, %v667_v53  ;;  %v942_v26 = vrot.slane %v553_v39, 4  ;;  %v4544_v30 = vld [vmem:[#allocation2 + $0x48] sm:$0xf]  ;;  %v5890_v41 = vld [vmem:[#allocation2 + $0x50] sm:$0xf0]  ;;  %253 = vst [vmem:[#allocation2 + $0x1a4] sm:$0xff] %v6413_v28 }
  0x41   : > { %2040 = vmatpush.bf16.msrb.mxu3 %v5861_v63  ;;  %2138 = vmatpush.bf16.msrb.mxu1 %v5877_v15  ;;  %v678_v25 = vor.u32 %v676_v7, %v675_v58  ;;  %v5868_v63 = vld [vmem:[%s7925_s2 + $0x48] sm:$0xff]  ;;  %857 = vst [vmem:[#allocation2 + $0x60] sm:$0xf] %v856_v34  ;;  %vm939_vm11 = vsmask.f32 3328  ;;  %v946_v58 = vrot.slane %v564_v42, 5 }
  0x42   : > { %v4592_v37 = vld [vmem:[#allocation2 + $0xa8] sm:$0xf]  ;;  %v5902_v53 = vld [vmem:[#allocation2 + $0xb0] sm:$0xf0]  ;;  %v5889_v39 = vld [vmem:[#allocation2 + $0x4c] sm:$0xf]  ;;  %v944_v55 = vor.u32 %v943_v36, %v942_v26 }
  0x43   : > { %2089 = vmatpush.bf16.msrb.mxu0 %v5869_v22  ;;  %v679_v31 = vsel %vm6531_vm6, %v671_v47, %v678_v25  ;;  %v5875_v22 = vld [vmem:[%s7925_s2 + $0x80] sm:$0xff]  ;;  %v4546_v15 = vld [vmem:[#allocation2 + $0x54] sm:$0xf0]  ;;  %vm940_vm12 = vsmask.f32 7440  ;;  %v949_v25 = vor.u32 %v948_v12, %v946_v58  ;;  %vm6902_vm13 = vmand %vm840_vm3, %vm939_vm11  ;;  %v4545_v12 = vor.u32 %v5890_v41, %v4544_v30 }
  0x44   : > { %1720 = vmatpush.bf16.msrb.mxu2 %v5924_v16  ;;  %874 = vst [vmem:[#allocation2 + $0xcc] sm:$0xf] %v679_v31  ;;  %v5867_v47 = vld [vmem:[%s7925_s2 + $0x40] sm:$0xff]  ;;  %v5901_v29 = vld [vmem:[#allocation2 + $0xac] sm:$0xf]  ;;  %vm6908_vm14 = vmor %vm939_vm11, %vm940_vm12  ;;  %v945_v34 = vrot.slane %v944_v55, 4  ;;  %v4593_v26 = vor.u32 %v5902_v53, %v4592_v37  ;;  %v4549_v31 = vor.u32 %v5889_v39, %v4546_v15 }
  0x45   : > { %2041 = vmatpush.bf16.msrb.mxu3 %v5860_v52  ;;  %2139 = vmatpush.bf16.msrb.mxu1 %v5876_v13  ;;  %v871_v52 = vld [vmem:[#allocation2 + $0xc0] sm:$0xf]  ;;  %v4594_v40 = vld [vmem:[#allocation2 + $0xb4] sm:$0xf0]  ;;  %247 = vst [vmem:[#allocation2 + $0x8] sm:$0xf] %v6413_v28 }
  0x46   : > { %v872_v16 = vsel %vm6542_vm7, %v670_v23, %v871_v52  ;;  %v950_v23 = vrot.slane %v949_v25, 4  ;;  %v4597_v36 = vor.u32 %v5901_v29, %v4594_v40  ;;  %249 = vst [vmem:[#allocation2 + $0x14] sm:$0xf] %v6413_v28  ;;  %v313_v52 = vld [vmem:[#allocation2 + $0x44] sm:$0x8]  ;;  %v5970_v30 = vld [vmem:[%s7925_s2 + $0x1f8] sm:$0xff] }
  0x47   : > { %2090 = vmatpush.bf16.msrb.mxu0 %v5868_v63  ;;  %873 = vst [vmem:[#allocation2 + $0xc0] sm:$0xf] %v872_v16  ;;  %v1120_v63 = vld [vmem:[#allocation2 + $0x2c] sm:$0xf]  ;;  %v5962_v41 = vld [vmem:[%s7925_s2 + $0x1b8] sm:$0xff]  ;;  %v951_v37 = vrot.slane %v569_v17, 4 }
  0x48   : > { %1721 = vmatpush.bf16.msrb.mxu2 %v5923_v6  ;;  %v1121_v6 = vsel %vm6902_vm13, %v950_v23, %v1120_v63  ;;  %252 = vst [vmem:[#allocation2 + $0x1a0] sm:$0xf] %v6413_v28  ;;  %v5978_v53 = vld [vmem:[%s7925_s2 + $0x238] sm:$0xff]  ;;  %v952_v15 = vrot.slane %v572_v20, 5  ;;  %v955_v17 = vrot.slane %v580_v35, 5  ;;  %v5972_v32 = vld [vmem:[%s7925_s2 + $0x208] sm:$0xff] }
  0x49   : > { %2042 = vmatpush.bf16.msrb.mxu3 %v5859_v48  ;;  %2140 = vmatpush.bf16.msrb.mxu1 %v5875_v22  ;;  %v947_v48 = vsel %vm6908_vm14, %v945_v34, %v946_v58  ;;  %1122 = vst [vmem:[#allocation2 + $0x2c] sm:$0xf] %v1121_v6  ;;  %v314_v22 = vsel %vm6835_vm10, 0, %v313_v52  ;;  %v6058_v39 = vld [vmem:[%s7925_s2 + $0xf8] sm:$0xff]  ;;  %v957_v58 = vrot.slane %v577_v21, 4  ;;  %v960_v52 = vrot.slane %v585_v8, 4 }
  0x4a   : > { %1118 = vst [vmem:[#allocation2 + $0x20] sm:$0xf] %v947_v48  ;;  %v953_v16 = vor.u32 %v952_v15, %v951_v37  ;;  %v5892_v55 = vld [vmem:[#allocation2 + $0x64] sm:$0xf]  ;;  %v5893_v29 = vld [vmem:[#allocation2 + $0x68] sm:$0xf0] }
  0x4b   : > { %2091 = vmatpush.bf16.msrb.mxu0 %v5867_v47  ;;  %254 = vst [vmem:[#allocation2 + $0x1ac] sm:$0xf] %v6413_v28  ;;  %v958_v47 = vor.u32 %v957_v58, %v955_v17  ;;  %v4556_v28 = vld [vmem:[#allocation2 + $0x60] sm:$0xf]  ;;  %v5905_v34 = vld [vmem:[#allocation2 + $0xc8] sm:$0xf0] }
  0x4c   : > { %1634 = vmatmul.bf16.gmra.mxu0 %v4545_v12  ;;  %2536 = vmatpush.bf16.msra.mxu2 %v5962_v41  ;;  %315 = vst [vmem:[#allocation2 + $0x44] sm:$0x8] %v314_v22  ;;  %v954_v25 = vrot.slane %v953_v16, 4  ;;  %v4558_v3 = vld [vmem:[#allocation2 + $0x6c] sm:$0xf0]  ;;  %v4557_v35 = vor.u32 %v5893_v29, %v4556_v28  ;;  %v964_v37 = vrot.slane %v596_v5, 5 }
  0x4d   : > { %2585 = vmatpush.bf16.msra.mxu3 %v5970_v30  ;;  %3221 = vmatpush.bf16.msra.mxu1 %v6058_v39  ;;  %v959_v40 = vrot.slane %v958_v47, 4  ;;  %v5904_v23 = vld [vmem:[#allocation2 + $0xc4] sm:$0xf]  ;;  %v4606_v63 = vld [vmem:[#allocation2 + $0xcc] sm:$0xf0]  ;;  %v961_v30 = vrot.slane %v588_v9, 5 }
  0x4e   : > { %1654 = vmatmul.bf16.gmra.mxu2 %v4593_v26  ;;  %1683 = vmatmul.bf16.gmra.mxu1 %v4549_v31  ;;  %v4604_v12 = vld [vmem:[#allocation2 + $0xc0] sm:$0xf]  ;;  %v956_v20 = vsel %vm6908_vm14, %v954_v25, %v955_v17  ;;  %v4561_v26 = vor.u32 %v5892_v55, %v4558_v3  ;;  %v4609_v48 = vor.u32 %v5904_v23, %v4606_v63  ;;  %v5969_v41 = vld [vmem:[%s7925_s2 + $0x1f0] sm:$0xff]  ;;  %v4720_v16 = vld [vmem:[#allocation2 + $0x8] sm:$0xf] }
  0x4f   : > { %1703 = vmatmul.bf16.gmra.mxu3 %v4597_v36  ;;  %2634 = vmatpush.bf16.msra.mxu0 %v5978_v53  ;;  %1123 = vst [vmem:[#allocation2 + $0x38] sm:$0xf] %v956_v20  ;;  %v4605_v21 = vor.u32 %v5905_v34, %v4604_v12  ;;  %v316_v36 = vld [vmem:[#allocation2 + $0x5c] sm:$0x8]  ;;  %v5961_v22 = vld [vmem:[%s7925_s2 + $0x1b0] sm:$0xff]  ;;  %v966_v53 = vrot.slane %v593_v2, 4  ;;  %v962_v9 = vor.u32 %v961_v30, %v960_v52 }
  0x50   : > { %v317_v6 = vsel %vm6835_vm10, 0, %v316_v36  ;;  %v6057_v8 = vld [vmem:[%s7925_s2 + $0xf0] sm:$0xff]  ;;  %2537 = vmatpush.bf16.msra.mxu2 %v5961_v22  ;;  %v5835_v2 = vld [vmem:[#allocation2 + $0x4] sm:$0xf]  ;;  %v5885_v28 = vld [vmem:[#allocation2 + $0x28] sm:$0xf0] }
  0x51   : > { %318 = vst [vmem:[#allocation2 + $0x5c] sm:$0x8] %v317_v6  ;;  %2586 = vmatpush.bf16.msra.mxu3 %v5969_v41  ;;  %v967_v39 = vor.u32 %v966_v53, %v964_v37  ;;  %3222 = vmatpush.bf16.msra.mxu1 %v6057_v8  ;;  %v963_v15 = vrot.slane %v962_v9, 4  ;;  %v4714_v58 = vld [vmem:[#allocation2 + $0xc] sm:$0xf0]  ;;  %v6056_v36 = vld [vmem:[%s7925_s2 + $0xe8] sm:$0xff] }
  0x52   : > { %v5837_v47 = vld [vmem:[#allocation2 + $0x10] sm:$0xf0]  ;;  %v4528_v25 = vld [vmem:[#allocation2 + $0x20] sm:$0xf]  ;;  %v4717_v12 = vor.u32 %v5835_v2, %v4714_v58  ;;  %v975_v6 = vrot.slane %v609_v50, 4  ;;  %v6100_v42 = vld [vmem:[%s7925_s2 + $0x188] sm:$0xff] }
  0x53   : > { %v1124_v11 = vld [vmem:[#allocation2 + $0x44] sm:$0xf]  ;;  %2635 = vmatpush.bf16.msra.mxu0 %v5977_v43  ;;  %v968_v17 = vrot.slane %v967_v39, 4  ;;  %v965_v46 = vsel %vm6908_vm14, %v963_v15, %v964_v37  ;;  %v4712_v29 = vld [vmem:[#allocation2] sm:$0xf]  ;;  %v4529_v34 = vor.u32 %v5885_v28, %v4528_v25  ;;  %v4721_v3 = vor.u32 %v5837_v47, %v4720_v16 }
  0x54   : > { %v1125_v31 = vsel %vm6902_vm13, %v959_v40, %v1124_v11  ;;  %1127 = vst [vmem:[#allocation2 + $0x50] sm:$0xf] %v965_v46  ;;  %v5836_v40 = vld [vmem:[#allocation2 + $0x8] sm:$0xf0]  ;;  %v319_v20 = vld [vmem:[#allocation2 + $0x74] sm:$0x8] }
  0x55   : > { %1126 = vst [vmem:[#allocation2 + $0x44] sm:$0xf] %v1125_v31  ;;  %v4713_v23 = vor.u32 %v5836_v40, %v4712_v29  ;;  %v320_v63 = vsel %vm6835_vm10, 0, %v319_v20  ;;  %v5960_v11 = vld [vmem:[%s7925_s2 + $0x1a8] sm:$0xff]  ;;  %v970_v31 = vrot.slane %v604_v18, 5  ;;  %3223 = vmatpush.bf16.msra.mxu1 %v6056_v36  ;;  %v5967_v58 = vld [vmem:[%s7925_s2 + $0x1e0] sm:$0xff] }
  0x56   : > { %321 = vst [vmem:[#allocation2 + $0x74] sm:$0x8] %v320_v63  ;;  %2538 = vmatpush.bf16.msra.mxu2 %v5960_v11  ;;  %v5838_v24 = vld [vmem:[#allocation2 + $0x1c] sm:$0xf]  ;;  %v4726_v18 = vld [vmem:[#allocation2 + $0x24] sm:$0xf0] }
  0x57   : > { %v4732_v53 = vld [vmem:[#allocation2 + $0x20] sm:$0xf]  ;;  %v5840_v43 = vld [vmem:[#allocation2 + $0x28] sm:$0xf0]  ;;  %v4540_v50 = vld [vmem:[#allocation2 + $0x38] sm:$0xf]  ;;  %v4729_v39 = vor.u32 %v5838_v24, %v4726_v18 }
  0x58   : > { %v1128_v5 = vld [vmem:[#allocation2 + $0x5c] sm:$0xf]  ;;  %v4724_v8 = vld [vmem:[#allocation2 + $0x18] sm:$0xf]  ;;  %v5839_v9 = vld [vmem:[#allocation2 + $0x20] sm:$0xf0] }
  0x59   : > { %v1129_v55 = vsel %vm6902_vm13, %v968_v17, %v1128_v5  ;;  %v4733_v17 = vor.u32 %v5840_v43, %v4732_v53  ;;  %v322_v46 = vld [vmem:[#allocation2 + $0x8c] sm:$0x8]  ;;  %v4725_v2 = vor.u32 %v5839_v9, %v4724_v8  ;;  %v5959_v16 = vld [vmem:[%s7925_s2 + $0x1a0] sm:$0xff]  ;;  %v979_v25 = vrot.slane %v620_v57, 5  ;;  %v5841_v57 = vld [vmem:[#allocation2 + $0x34] sm:$0xf] }
  0x5a   : > { %1130 = vst [vmem:[#allocation2 + $0x5c] sm:$0xf] %v1129_v55  ;;  %v323_v5 = vsel %vm6835_vm10, 0, %v322_v46  ;;  %v5975_v47 = vld [vmem:[%s7925_s2 + $0x220] sm:$0xff]  ;;  %v978_v55 = vrot.slane %v617_v56, 4  ;;  %v982_v29 = vrot.slane %v628_v59, 5  ;;  %2539 = vmatpush.bf16.msra.mxu2 %v5959_v16 }
  0x5b   : > { %324 = vst [vmem:[#allocation2 + $0x8c] sm:$0x8] %v323_v5  ;;  %v6055_v28 = vld [vmem:[%s7925_s2 + $0xe0] sm:$0xff]  ;;  %v7982_v40 = vshrl.u32 %v6522_v45, 16  ;;  %v4552_v44 = vld [vmem:[#allocation2 + $0x50] sm:$0xf] }
  0x5c   : > { %1639 = vmatmul.bf16.gmra.mxu0 %v4557_v35  ;;  %v5968_v35 = vld [vmem:[%s7925_s2 + $0x1e8] sm:$0xff]  ;;  %3224 = vmatpush.bf16.msra.mxu1 %v6055_v28  ;;  %v4744_v11 = vld [vmem:[#allocation2 + $0x38] sm:$0xf]  ;;  %v7983_v18 = vshrl.u32 %v6629_v61, 16  ;;  %v7985_v43 = vshll.u32 %v6631_v62, 16 }
  0x5d   : > { %2587 = vmatpush.bf16.msra.mxu3 %v5968_v35  ;;  %v1132_v37 = vld [vmem:[#allocation2 + $0x74] sm:$0xf]  ;;  %v4738_v35 = vld [vmem:[#allocation2 + $0x3c] sm:$0xf0]  ;;  %v5958_v24 = vld [vmem:[%s7925_s2 + $0x198] sm:$0xff] }
  0x5e   : > { %1659 = vmatmul.bf16.gmra.mxu2 %v4605_v21  ;;  %1688 = vmatmul.bf16.gmra.mxu1 %v4561_v26  ;;  %v5976_v21 = vld [vmem:[%s7925_s2 + $0x228] sm:$0xff]  ;;  %v969_v26 = vrot.slane %v601_v0, 4  ;;  %v4741_v36 = vor.u32 %v5841_v57, %v4738_v35  ;;  %v4756_v16 = vld [vmem:[#allocation2 + $0x50] sm:$0xf]  ;;  %v7988_v35 = vshll.u32 %v6716_v1, 16 }
  0x5f   : > { %1708 = vmatmul.bf16.gmra.mxu3 %v4609_v48  ;;  %v973_v48 = vrot.slane %v612_v51, 5  ;;  %2636 = vmatpush.bf16.msra.mxu0 %v5976_v21  ;;  %v5888_v51 = vld [vmem:[#allocation2 + $0x40] sm:$0xf0]  ;;  %v4748_v28 = vld [vmem:[#allocation2 + $0x48] sm:$0xf]  ;;  %v5957_v57 = vld [vmem:[%s7925_s2 + $0x190] sm:$0xff] }
  0x60   : > { %v971_v52 = vor.u32 %v970_v31, %v969_v26  ;;  %v4541_v15 = vor.u32 %v5888_v51, %v4540_v50  ;;  %v5843_v21 = vld [vmem:[#allocation2 + $0x40] sm:$0xf0]  ;;  %v4736_v26 = vld [vmem:[#allocation2 + $0x30] sm:$0xf]  ;;  %v5842_v31 = vld [vmem:[#allocation2 + $0x38] sm:$0xf0]  ;;  %2540 = vmatpush.bf16.msra.mxu2 %v5958_v24 }
  0x61   : > { %v976_v30 = vor.u32 %v975_v6, %v973_v48  ;;  %2588 = vmatpush.bf16.msra.mxu3 %v5967_v58  ;;  %v5891_v59 = vld [vmem:[#allocation2 + $0x58] sm:$0xf0]  ;;  %v4745_v6 = vor.u32 %v5843_v21, %v4744_v11  ;;  %v7986_v50 = vshrl.u32 %v6631_v62, 16  ;;  %v4750_v58 = vld [vmem:[#allocation2 + $0x54] sm:$0xf0]  ;;  %v997_v11 = vrot.slane %v7988_v35, 5 }
  0x62   : > { %v972_v0 = vrot.slane %v971_v52, 4  ;;  %v1136_v63 = vld [vmem:[#allocation2 + $0x8c] sm:$0xf]  ;;  %v325_v52 = vld [vmem:[#allocation2 + $0xa4] sm:$0x8]  ;;  %v7990_v21 = vshrl.u32 %v6734_v38, 16 }
  0x63   : > { %v977_v41 = vrot.slane %v976_v30, 4  ;;  %2637 = vmatpush.bf16.msra.mxu0 %v5975_v47  ;;  %v4737_v30 = vor.u32 %v5842_v31, %v4736_v26  ;;  %v993_v51 = vrot.slane %v7986_v50, 4  ;;  %v4762_v24 = vld [vmem:[#allocation2 + $0x6c] sm:$0xf0]  ;;  %v5850_v33 = vld [vmem:[#allocation2 + $0x7c] sm:$0xf] }
  0x64   : > { %v974_v22 = vsel %vm6908_vm14, %v972_v0, %v973_v48  ;;  %v4553_v48 = vor.u32 %v5891_v59, %v4552_v44  ;;  %v326_v0 = vsel %vm6835_vm10, 0, %v325_v52  ;;  %v5965_v44 = vld [vmem:[%s7925_s2 + $0x1d0] sm:$0xff]  ;;  %v1002_v26 = vrot.slane %v7990_v21, 4  ;;  %2541 = vmatpush.bf16.msra.mxu2 %v5957_v57  ;;  %v5851_v21 = vld [vmem:[#allocation2 + $0x80] sm:$0xf0] }
  0x65   : > { %1131 = vst [vmem:[#allocation2 + $0x68] sm:$0xf] %v974_v22  ;;  %v1133_v27 = vsel %vm6902_vm13, %v977_v41, %v1132_v37  ;;  %v5966_v41 = vld [vmem:[%s7925_s2 + $0x1d8] sm:$0xff]  ;;  %v987_v22 = vrot.slane %v7983_v18, 4  ;;  %v7984_v37 = vshll.u32 %v6629_v61, 16 }
  0x66   : > { %1134 = vst [vmem:[#allocation2 + $0x74] sm:$0xf] %v1133_v27  ;;  %v991_v27 = vrot.slane %v7985_v43, 5  ;;  %2589 = vmatpush.bf16.msra.mxu3 %v5966_v41  ;;  %v6054_v61 = vld [vmem:[%s7925_s2 + $0xd8] sm:$0xff]  ;;  %v4760_v43 = vld [vmem:[#allocation2 + $0x60] sm:$0xf] }
  0x67   : > { %327 = vst [vmem:[#allocation2 + $0xa4] sm:$0x8] %v326_v0  ;;  %v988_v53 = vrot.slane %v7984_v37, 5  ;;  %3225 = vmatpush.bf16.msra.mxu1 %v6054_v61  ;;  %v5847_v0 = vld [vmem:[#allocation2 + $0x64] sm:$0xf] }
  0x68   : > { %v994_v9 = vor.u32 %v993_v51, %v991_v27  ;;  %v4765_v50 = vor.u32 %v5847_v0, %v4762_v24 }
  0x69   : > { %v989_v8 = vor.u32 %v988_v53, %v987_v22 }
  0x6a   : > { %2590 = vmatpush.bf16.msra.mxu3 %v5965_v44 }
  0x6c   : > { %2092 = vmatmul.bf16.vlgmr.msrb.gmra.mxu0 %v4717_v12  ;;  %v984_v12 = vrot.slane %v7982_v40, 4  ;;  %v4564_v46 = vld [vmem:[#allocation2 + $0x68] sm:$0xf] }
  0x6d   : > { %v4768_v18 = vld [vmem:[#allocation2 + $0x68] sm:$0xf]  ;;  %v5849_v53 = vld [vmem:[#allocation2 + $0x70] sm:$0xf0] }
  0x6e   : > { %1722 = vmatmul.bf16.vlgmr.msrb.gmra.mxu2 %v4529_v34  ;;  %2141 = vmatmul.bf16.vlgmr.msrb.gmra.mxu1 %v4721_v3  ;;  %v980_v34 = vor.u32 %v979_v25, %v978_v55  ;;  %v985_v3 = vor.u32 %v984_v12, %v982_v29  ;;  %v1140_v5 = vld [vmem:[#allocation2 + $0xa4] sm:$0xf]  ;;  %v5894_v55 = vld [vmem:[#allocation2 + $0x70] sm:$0xf0]  ;;  %v5846_v25 = vld [vmem:[#allocation2 + $0x58] sm:$0xf0] }
  0x6f   : > { %2043 = vmatmul.bf16.vlgmr.msrb.gmra.mxu3 %v4713_v23  ;;  %v4565_v12 = vor.u32 %v5894_v55, %v4564_v46 }
  0x70   : > { %v981_v56 = vrot.slane %v980_v34, 4  ;;  %v986_v20 = vrot.slane %v985_v3, 4  ;;  %v4757_v34 = vor.u32 %v5846_v25, %v4756_v16  ;;  %v328_v3 = vld [vmem:[#allocation2 + $0xbc] sm:$0x8]  ;;  %v1009_v16 = vrot.slane %v676_v7, 5 }
  0x72   : > { %v983_v23 = vsel %vm6908_vm14, %v981_v56, %v982_v29  ;;  %v1137_v45 = vsel %vm6902_vm13, %v986_v20, %v1136_v63  ;;  %v5845_v29 = vld [vmem:[#allocation2 + $0x50] sm:$0xf0]  ;;  %v329_v20 = vsel %vm6835_vm10, 0, %v328_v3 }
  0x73   : > { %1135 = vst [vmem:[#allocation2 + $0x80] sm:$0xf] %v983_v23  ;;  %v4749_v56 = vor.u32 %v5845_v29, %v4748_v28  ;;  %v7987_v23 = vshrl.u32 %v6716_v1, 16  ;;  %v6053_v1 = vld [vmem:[%s7925_s2 + $0xd0] sm:$0xff] }
  0x74   : > { %1138 = vst [vmem:[#allocation2 + $0x8c] sm:$0xf] %v1137_v45  ;;  %v7989_v45 = vshll.u32 %v6734_v38, 16  ;;  %3226 = vmatpush.bf16.msra.mxu1 %v6053_v1 }
  0x75   : > { %330 = vst [vmem:[#allocation2 + $0xbc] sm:$0x8] %v329_v20  ;;  %v996_v63 = vrot.slane %v7987_v23, 4 }
  0x76   : > { %v1000_v59 = vrot.slane %v7989_v45, 5  ;;  %v6353_v45 = vld [vmem:[%s6476_s9 + $0x40] sm:$0xff]  }
  0x77   : > { %v998_v31 = vor.u32 %v997_v11, %v996_v63  ;;  %v6338_v11 = vld [vmem:[%s6470_s6 + $0x40] sm:$0xff]  }
  0x7a   : > { %v4780_v23 = vld [vmem:[#allocation2 + $0x80] sm:$0xf] }
  0x7b   : > { %v5897_v37 = vld [vmem:[#allocation2 + $0x88] sm:$0xf0] }
  0x7c   : > { %2097 = vmatmul.bf16.gmra.mxu0 %v4729_v39  ;;  %v990_v39 = vrot.slane %v989_v8, 4  ;;  %v1144_v41 = vld [vmem:[#allocation2 + $0xbc] sm:$0xf]  ;;  %v5852_v35 = vld [vmem:[#allocation2 + $0x88] sm:$0xf0] }
  0x7e   : > { %1727 = vmatmul.bf16.gmra.mxu2 %v4541_v15  ;;  %2146 = vmatmul.bf16.gmra.mxu1 %v4733_v17  ;;  %v5974_v15 = vld [vmem:[%s7925_s2 + $0x218] sm:$0xff]  ;;  %v995_v17 = vrot.slane %v994_v9, 4  ;;  %v992_v62 = vsel %vm6908_vm14, %v990_v39, %v991_v27  ;;  %v5848_v27 = vld [vmem:[#allocation2 + $0x68] sm:$0xf0]  ;;  %v4769_v9 = vor.u32 %v5849_v53, %v4768_v18  ;;  %v331_v39 = vld [vmem:[#allocation2 + $0xd4] sm:$0x8] }
  0x7f   : > { %2048 = vmatmul.bf16.gmra.mxu3 %v4725_v2  ;;  %v5844_v2 = vld [vmem:[#allocation2 + $0x4c] sm:$0xf]  ;;  %2638 = vmatpush.bf16.msra.mxu0 %v5974_v15  ;;  %1139 = vst [vmem:[#allocation2 + $0x98] sm:$0xf] %v992_v62  ;;  %v4761_v61 = vor.u32 %v5848_v27, %v4760_v43 }
  0x80   : > { %v1141_v47 = vsel %vm6902_vm13, %v995_v17, %v1140_v5  ;;  %v4753_v40 = vor.u32 %v5844_v2, %v4750_v58  ;;  %v332_v17 = vsel %vm6835_vm10, 0, %v331_v39  ;;  %v5964_v2 = vld [vmem:[%s7925_s2 + $0x1c8] sm:$0xff]  ;;  %v1005_v5 = vrot.slane %v665_v10, 4 }
  0x81   : > { %1142 = vst [vmem:[#allocation2 + $0xa4] sm:$0xf] %v1141_v47  ;;  %v5956_v62 = vld [vmem:[%s7925_s2 + $0x188] sm:$0xff]  ;;  %v1006_v58 = vrot.slane %v668_v14, 5  ;;  %v1011_v47 = vrot.slane %v673_v19, 4  ;;  %2591 = vmatpush.bf16.msra.mxu3 %v5964_v2 }
  0x82   : > { %333 = vst [vmem:[#allocation2 + $0xd4] sm:$0x8] %v332_v17  ;;  %2542 = vmatpush.bf16.msra.mxu2 %v5956_v62  ;;  %v6052_v19 = vld [vmem:[%s7925_s2 + $0xc8] sm:$0xff] }
  0x83   : > { %v1007_v25 = vor.u32 %v1006_v58, %v1005_v5  ;;  %3227 = vmatpush.bf16.msra.mxu1 %v6052_v19  ;;  %v4786_v19 = vld [vmem:[#allocation2 + $0x9c] sm:$0xf0] }
  0x85   : > { %v1008_v10 = vrot.slane %v1007_v25, 4 }
  0x86   : > { %v4588_v14 = vld [vmem:[#allocation2 + $0x98] sm:$0xf] }
  0x87   : > { %v1010_v20 = vsel %vm6908_vm14, %v1008_v10, %v1009_v16  ;;  %v5971_v10 = vld [vmem:[%s7925_s2 + $0x200] sm:$0xff] }
  0x88   : > { %v5900_v57 = vld [vmem:[#allocation2 + $0xa0] sm:$0xf0]  ;;  %1147 = vst [vmem:[#allocation2 + $0xc8] sm:$0xf] %v1010_v20  ;;  %v4792_v20 = vld [vmem:[#allocation2 + $0x98] sm:$0xf] }
  0x89   : > { %v1148_v44 = vld [vmem:[#allocation2 + $0xd4] sm:$0xf]  ;;  %v4589_v0 = vor.u32 %v5900_v57, %v4588_v14  ;;  %v5855_v57 = vld [vmem:[#allocation2 + $0xa0] sm:$0xf0] }
  0x8c   : > { %2102 = vmatmul.bf16.gmra.mxu0 %v4741_v36  ;;  %v1003_v36 = vor.u32 %v1002_v26, %v1000_v59  ;;  %v6157_v26 = vunpack.c.l.bf16 %v6338_v11 }
  0x8e   : > { %1732 = vmatmul.bf16.gmra.mxu2 %v4553_v48  ;;  %2151 = vmatmul.bf16.gmra.mxu1 %v4745_v6  ;;  %v999_v48 = vrot.slane %v998_v31, 4  ;;  %v5973_v6 = vld [vmem:[%s7925_s2 + $0x210] sm:$0xff]  ;;  %v1004_v52 = vrot.slane %v1003_v36, 4  ;;  %v6158_v31 = vunpack.c.h.bf16 %v6338_v11  ;;  %v6221_v36 = vunpack.c.l.bf16 %v6353_v45  ;;  %v5854_v11 = vld [vmem:[#allocation2 + $0x98] sm:$0xf0] }
  0x8f   : > { %2053 = vmatmul.bf16.gmra.mxu3 %v4737_v30  ;;  %v4576_v30 = vld [vmem:[#allocation2 + $0x80] sm:$0xf]  ;;  %2639 = vmatpush.bf16.msra.mxu0 %v5973_v6 }
  0x90   : > { %v1001_v38 = vsel %vm6908_vm14, %v999_v48, %v1000_v59  ;;  %v1145_v22 = vsel %vm6902_vm13, %v1004_v52, %v1144_v41  ;;  %v4577_v8 = vor.u32 %v5897_v37, %v4576_v30  ;;  %v4772_v59 = vld [vmem:[#allocation2 + $0x78] sm:$0xf]  ;;  %v6222_v48 = vunpack.c.h.bf16 %v6353_v45 }
  0x91   : > { %1143 = vst [vmem:[#allocation2 + $0xb0] sm:$0xf] %v1001_v38  ;;  %v4781_v38 = vor.u32 %v5852_v35, %v4780_v23  ;;  %v283_v41 = vld [vmem:[#allocation2 + $0xd8] sm:$0x1]  ;;  %v502_v24 = vadd.f32 %v6221_v36, %v6157_v26  ;;  %v4773_v53 = vor.u32 %v5851_v21, %v4772_v59  ;;  %v6339_v23 = vld [vmem:[%s6470_s6 + $0x48] sm:$0xff]  }
  0x92   : > { %1146 = vst [vmem:[#allocation2 + $0xbc] sm:$0xf] %v1145_v22  ;;  %v503_v18 = vadd.f32 %v6222_v48, %v6158_v31  ;;  %v284_v43 = vsel %vm6479_vm2, 0, %v283_v41  ;;  %v4784_v35 = vld [vmem:[#allocation2 + $0x90] sm:$0xf]  ;;  %v6161_v45 = vunpack.c.l.bf16 %v6339_v23  ;;  %v6162_v59 = vunpack.c.h.bf16 %v6339_v23 }
  0x93   : > { %2640 = vmatpush.bf16.msra.mxu0 %v5972_v32  ;;  %285 = vst [vmem:[#allocation2 + $0xd8] sm:$0x1] %v284_v43  ;;  %v4798_v23 = vld [vmem:[#allocation2 + $0xb4] sm:$0xf0] }
  0x97   : > { %2641 = vmatpush.bf16.msra.mxu0 %v5971_v10 }
  0x98   : > { %v4600_v32 = vld [vmem:[#allocation2 + $0xb0] sm:$0xf] }
  0x9a   : > { %v875_v14 = vld [vmem:[#allocation2 + $0xd8] sm:$0xf] }
  0x9c   : > { %2107 = vmatmul.bf16.gmra.mxu0 %v4753_v40  ;;  %v1012_v40 = vor.u32 %v1011_v47, %v1009_v16 }
  0x9e   : > { %1737 = vmatmul.bf16.gmra.mxu2 %v4565_v12  ;;  %2156 = vmatmul.bf16.gmra.mxu1 %v4757_v34  ;;  %v1013_v7 = vrot.slane %v1012_v40, 4 }
  0x9f   : > { %2058 = vmatmul.bf16.gmra.mxu3 %v4749_v56  ;;  %v4774_v56 = vld [vmem:[#allocation2 + $0x84] sm:$0xf0] }
  0xa0   : > { %v1149_v63 = vsel %vm6902_vm13, %v1013_v7, %v1148_v44  ;;  %v4777_v1 = vor.u32 %v5850_v33, %v4774_v56  ;;  %v6051_v33 = vld [vmem:[%s7925_s2 + $0xc0] sm:$0xff]  ;;  %v5903_v56 = vld [vmem:[#allocation2 + $0xb8] sm:$0xf0] }
  0xa1   : > { %1150 = vst [vmem:[#allocation2 + $0xd4] sm:$0xf] %v1149_v63  ;;  %3228 = vmatpush.bf16.msra.mxu1 %v6051_v33  ;;  %v6354_v63 = vld [vmem:[%s6476_s9 + $0x48] sm:$0xff]  }
  0xa2   : > { %v6225_v21 = vunpack.c.l.bf16 %v6354_v63  ;;  %v6226_v26 = vunpack.c.h.bf16 %v6354_v63 }
  0xa8   : > { %v1625_v51 = vpop.f32.mrf.mxu0 }
  0xa9   : > { %v1674_v15 = vpop.f32.mrf.mxu1 }
  0xaa   : > { %v7074_v46 = vadd.f32 %v1674_v15, %v1625_v51  ;;  %v7114_v51 = vpack.c.bf16 %v503_v18, %v503_v18  ;;  %v4785_v18 = vor.u32 %v5854_v11, %v4784_v35  ;;  %v5906_v35 = vld [vmem:[#allocation2 + $0xd0] sm:$0xf0]  ;;  %v4796_v11 = vld [vmem:[#allocation2 + $0xa8] sm:$0xf] }
  0xac   : > { %2112 = vmatmul.bf16.gmra.mxu0 %v4765_v50  ;;  %v7112_v50 = vpack.c.bf16 %v502_v24, %v502_v24  ;;  %v7950_v15 = vshrl.u32 %v7114_v51, 16  ;;  %v7951_v17 = vshll.u32 %v7114_v51, 16  ;;  %924 = vst [vmem:[#allocation2 + $0xe8] sm:$0xf] %v7114_v51 }
  0xae   : > { %1742 = vmatmul.bf16.gmra.mxu2 %v4577_v8  ;;  %2161 = vmatmul.bf16.gmra.mxu1 %v4769_v9  ;;  %v5963_v8 = vld [vmem:[%s7925_s2 + $0x1c0] sm:$0xff]  ;;  %v7957_v39 = vshrl.u32 %v7112_v50, 16  ;;  %923 = vst [vmem:[#allocation2 + $0xdc] sm:$0xf] %v7112_v50  ;;  %v691_v5 = vrot.slane %v7950_v15, 7 }
  0xaf   : > { %2063 = vmatmul.bf16.gmra.mxu3 %v4761_v61  ;;  %v5955_v9 = vld [vmem:[%s7925_s2 + $0x180] sm:$0xff]  ;;  %v7956_v61 = vshll.u32 %v7112_v50, 16 }
  0xb0   : > { %v1627_v29 = vpop.f32.mrf.mxu0  ;;  %2592 = vmatpush.bf16.msra.mxu3 %v5963_v8  ;;  %2543 = vmatpush.bf16.msra.mxu2 %v5955_v9  ;;  %v683_v62 = vrot.slane %v7957_v39, 7 }
  0xb1   : > { %v1645_v55 = vpop.f32.mrf.mxu2  ;;  %v1694_v28 = vpop.f32.mrf.mxu3 }
  0xb2   : > { %v7090_v12 = vadd.f32 %v1694_v28, %v1645_v55  ;;  %v1676_v34 = vpop.f32.mrf.mxu1  ;;  %v686_v25 = vor.u32 %v7956_v61, %v683_v62  ;;  %v687_v28 = vrot.slane %v683_v62, 4  ;;  %v6074_v62 = vld [vmem:[%s7925_s2 + $0x178] sm:$0xff] }
  0xb3   : > { %v7092_v3 = vadd.f32 %v1676_v34, %v1627_v29  ;;  %v694_v29 = vor.u32 %v7951_v17, %v691_v5  ;;  %v5853_v34 = vld [vmem:[#allocation2 + $0x94] sm:$0xf]  ;;  %v6066_v5 = vld [vmem:[%s7925_s2 + $0x138] sm:$0xff] }
  0xb4   : > { %v876_v44 = vsel %vm6542_vm7, %v686_v25, %v875_v14  ;;  %v4789_v36 = vor.u32 %v5853_v34, %v4786_v19  ;;  %3319 = vmatpush.bf16.msrb.mxu3 %v6074_v62  ;;  %3270 = vmatpush.bf16.msrb.mxu2 %v6066_v5  ;;  %v289_v5 = vld [vmem:[#allocation2 + $0x108] sm:$0x1] }
  0xb5   : > { %v695_v7 = vsel %vm6531_vm6, %v687_v28, %v694_v29  ;;  %877 = vst [vmem:[#allocation2 + $0xd8] sm:$0xf] %v876_v44 }
  0xb6   : > { %878 = vst [vmem:[#allocation2 + $0xe4] sm:$0xf] %v695_v7 }
  0xb9   : > { %v1647_v6 = vpop.f32.mrf.mxu2  ;;  %v1696_v52 = vpop.f32.mrf.mxu3 }
  0xba   : > { %v1630_v30 = vpop.f32.mrf.mxu0  ;;  %v7106_v22 = vadd.f32 %v1696_v52, %v1647_v6  ;;  %v4793_v52 = vor.u32 %v5855_v57, %v4792_v20  ;;  %v4612_v57 = vld [vmem:[#allocation2 + $0xc8] sm:$0xf] }
  0xbb   : > { %v1679_v37 = vpop.f32.mrf.mxu1 }
  0xbc   : > { %v7110_v27 = vadd.f32 %v1679_v37, %v1630_v30  ;;  %2117 = vmatmul.bf16.gmra.mxu0 %v4777_v1  ;;  %v4601_v1 = vor.u32 %v5903_v56, %v4600_v32  ;;  %v286_v30 = vld [vmem:[#allocation2 + $0xf0] sm:$0x1]  ;;  %v5856_v56 = vld [vmem:[#allocation2 + $0xac] sm:$0xf] }
  0xbd   : > { %v287_v37 = vsel %vm6479_vm2, 0, %v286_v30 }
  0xbe   : > { %1747 = vmatmul.bf16.gmra.mxu2 %v4589_v0  ;;  %2166 = vmatmul.bf16.gmra.mxu1 %v4781_v38  ;;  %v504_v0 = vadd.f32 %v6225_v21, %v6161_v45  ;;  %v505_v38 = vadd.f32 %v6226_v26, %v6162_v59  ;;  %288 = vst [vmem:[#allocation2 + $0xf0] sm:$0x1] %v287_v37  ;;  %v4804_v45 = vld [vmem:[#allocation2 + $0xb0] sm:$0xf]  ;;  %v5858_v59 = vld [vmem:[#allocation2 + $0xb8] sm:$0xf0] }
  0xbf   : > { %2068 = vmatmul.bf16.gmra.mxu3 %v4773_v53  ;;  %v6340_v21 = vld [vmem:[%s6470_s6 + $0x50] sm:$0xff]   ;;  %v4805_v62 = vor.u32 %v5858_v59, %v4804_v45 }
  0xc0   : > { %v7158_v43 = vpack.c.bf16 %v504_v0, %v504_v0  ;;  %v7160_v8 = vpack.c.bf16 %v505_v38, %v505_v38  ;;  %v6355_v26 = vld [vmem:[%s6476_s9 + $0x50] sm:$0xff]   ;;  %v4613_v38 = vor.u32 %v5906_v35, %v4612_v57 }
  0xc1   : > { %v1650_v2 = vpop.f32.mrf.mxu2  ;;  %v6230_v30 = vunpack.c.h.bf16 %v6355_v26  ;;  %v6065_v57 = vld [vmem:[%s7925_s2 + $0x130] sm:$0xff] }
  0xc2   : > { %v1699_v58 = vpop.f32.mrf.mxu3  ;;  %v1632_v16 = vpop.f32.mrf.mxu0  ;;  %v7949_v9 = vshrl.u32 %v7158_v43, 16  ;;  %925 = vst [vmem:[#allocation2 + $0xf4] sm:$0xf] %v7158_v43  ;;  %v7947_v25 = vshll.u32 %v7160_v8, 16  ;;  %3271 = vmatpush.bf16.msrb.mxu2 %v6065_v57 }
  0xc3   : > { %v7132_v47 = vadd.f32 %v1699_v58, %v1650_v2  ;;  %v1681_v55 = vpop.f32.mrf.mxu1  ;;  %v7946_v2 = vshrl.u32 %v7160_v8, 16  ;;  %926 = vst [vmem:[#allocation2 + $0x100] sm:$0xf] %v7160_v8 }
  0xc4   : > { %v7138_v40 = vadd.f32 %v1681_v55, %v1632_v16  ;;  %v699_v58 = vrot.slane %v7949_v9, 7  ;;  %v7948_v16 = vshll.u32 %v7158_v43, 16 }
  0xc5   : > { %v707_v55 = vrot.slane %v7946_v2, 7  ;;  %v879_v44 = vld [vmem:[#allocation2 + $0xf0] sm:$0xf] }
  0xc6   : > { %v702_v10 = vor.u32 %v7948_v16, %v699_v58  ;;  %v703_v33 = vrot.slane %v699_v58, 4 }
  0xc7   : > { %v710_v32 = vor.u32 %v7947_v25, %v707_v55 }
  0xc8   : > { %v880_v63 = vsel %vm6542_vm7, %v702_v10, %v879_v44  ;;  %v290_v10 = vsel %vm6479_vm2, 0, %v289_v5  ;;  %v6073_v44 = vld [vmem:[%s7925_s2 + $0x170] sm:$0xff] }
  0xc9   : > { %v1652_v31 = vpop.f32.mrf.mxu2  ;;  %v711_v20 = vsel %vm6531_vm6, %v703_v33, %v710_v32  ;;  %881 = vst [vmem:[#allocation2 + $0xf0] sm:$0xf] %v880_v63  ;;  %3320 = vmatpush.bf16.msrb.mxu3 %v6073_v44  ;;  %v6017_v44 = vld [vmem:[%s7925_s2 + $0x70] sm:$0xff] }
  0xca   : > { %v1701_v48 = vpop.f32.mrf.mxu3  ;;  %v1635_v6 = vpop.f32.mrf.mxu0  ;;  %882 = vst [vmem:[#allocation2 + $0xfc] sm:$0xf] %v711_v20 }
  0xcb   : > { %v7152_v41 = vadd.f32 %v1701_v48, %v1652_v31  ;;  %v1684_v24 = vpop.f32.mrf.mxu1  ;;  %v5857_v31 = vld [vmem:[#allocation2 + $0xb0] sm:$0xf0]  ;;  %v6018_v48 = vld [vmem:[%s7925_s2 + $0x78] sm:$0xff]  ;;  %291 = vst [vmem:[#allocation2 + $0x108] sm:$0x1] %v290_v10 }
  0xcc   : > { %v7156_v53 = vadd.f32 %v1684_v24, %v1635_v6  ;;  %2122 = vmatmul.bf16.gmra.mxu0 %v4789_v36  ;;  %v6010_v36 = vld [vmem:[%s7925_s2 + $0x38] sm:$0xff]  ;;  %v6165_v6 = vunpack.c.l.bf16 %v6340_v21  ;;  %v4801_v24 = vor.u32 %v5856_v56, %v4798_v23  ;;  %3689 = vmatpush.bf16.msrb.mxu1 %v6018_v48  ;;  %v6009_v10 = vld [vmem:[%s7925_s2 + $0x30] sm:$0xff] }
  0xcd   : > { %3640 = vmatpush.bf16.msrb.mxu0 %v6010_v36 }
  0xce   : > { %1752 = vmatmul.bf16.gmra.mxu2 %v4601_v1  ;;  %2171 = vmatmul.bf16.gmra.mxu1 %v4793_v52  ;;  %v6166_v1 = vunpack.c.h.bf16 %v6340_v21  ;;  %v6229_v52 = vunpack.c.l.bf16 %v6355_v26 }
  0xcf   : > { %2073 = vmatmul.bf16.gmra.mxu3 %v4785_v18 }
  0xd0   : > { %v506_v58 = vadd.f32 %v6229_v52, %v6165_v6  ;;  %v507_v55 = vadd.f32 %v6230_v30, %v6166_v1  ;;  %v4952_v52 = vld [vmem:[#allocation2 + $0x30] sm:$0xf]  ;;  %v5932_v30 = vld [vmem:[#allocation2 + $0x38] sm:$0xf0]  ;;  %3690 = vmatpush.bf16.msrb.mxu1 %v6017_v44 }
  0xd1   : > { %v1655_v28 = vpop.f32.mrf.mxu2  ;;  %3641 = vmatpush.bf16.msrb.mxu0 %v6009_v10 }
  0xd2   : > { %v1704_v29 = vpop.f32.mrf.mxu3  ;;  %v1637_v34 = vpop.f32.mrf.mxu0  ;;  %v7204_v32 = vpack.c.bf16 %v506_v58, %v506_v58  ;;  %v5192_v58 = vld [vmem:[#allocation2 + $0xd8] sm:$0xf] }
  0xd3   : > { %v7182_v19 = vadd.f32 %v1704_v29, %v1655_v28  ;;  %v1686_v7 = vpop.f32.mrf.mxu1 }
  0xd4   : > { %v7184_v14 = vadd.f32 %v1686_v7, %v1637_v34  ;;  %v4797_v34 = vor.u32 %v5857_v31, %v4796_v11  ;;  %v7206_v7 = vpack.c.bf16 %v507_v55, %v507_v55  ;;  %v7941_v56 = vshrl.u32 %v7204_v32, 16  ;;  %927 = vst [vmem:[#allocation2 + $0x10c] sm:$0xf] %v7204_v32  ;;  %v6341_v55 = vld [vmem:[%s6470_s6 + $0x58] sm:$0xff]  }
  0xd5   : > { %v7940_v23 = vshll.u32 %v7204_v32, 16  ;;  %v6169_v57 = vunpack.c.l.bf16 %v6341_v55 }
  0xd6   : > { %v7938_v20 = vshrl.u32 %v7206_v7, 16  ;;  %v7939_v63 = vshll.u32 %v7206_v7, 16  ;;  %928 = vst [vmem:[#allocation2 + $0x118] sm:$0xf] %v7206_v7  ;;  %v715_v11 = vrot.slane %v7941_v56, 7 }
  0xd8   : > { %v723_v45 = vrot.slane %v7938_v20, 7  ;;  %v718_v36 = vor.u32 %v7940_v23, %v715_v11  ;;  %v719_v48 = vrot.slane %v715_v11, 4 }
  0xd9   : > { %v1657_v0 = vpop.f32.mrf.mxu2 }
  0xda   : > { %v1706_v18 = vpop.f32.mrf.mxu3  ;;  %v1640_v37 = vpop.f32.mrf.mxu0  ;;  %v726_v6 = vor.u32 %v7939_v63, %v723_v45 }
  0xdb   : > { %v7198_v28 = vadd.f32 %v1706_v18, %v1657_v0  ;;  %v1689_v29 = vpop.f32.mrf.mxu1  ;;  %v4960_v0 = vld [vmem:[#allocation2 + $0x38] sm:$0xf]  ;;  %v5931_v18 = vld [vmem:[#allocation2 + $0x34] sm:$0xf] }
  0xdc   : > { %v7202_v33 = vadd.f32 %v1689_v29, %v1640_v37  ;;  %2127 = vmatmul.bf16.gmra.mxu0 %v4801_v24  ;;  %v883_v24 = vld [vmem:[#allocation2 + $0x108] sm:$0xf]  ;;  %v5933_v37 = vld [vmem:[#allocation2 + $0x40] sm:$0xf0]  ;;  %v6356_v29 = vld [vmem:[%s6476_s9 + $0x58] sm:$0xff]  }
  0xdd   : > { %v884_v5 = vsel %vm6542_vm7, %v718_v36, %v883_v24  ;;  %v6233_v11 = vunpack.c.l.bf16 %v6356_v29  ;;  %v6234_v45 = vunpack.c.h.bf16 %v6356_v29 }
  0xde   : > { %1757 = vmatmul.bf16.gmra.mxu2 %v4613_v38  ;;  %2176 = vmatmul.bf16.gmra.mxu1 %v4805_v62  ;;  %v727_v38 = vsel %vm6531_vm6, %v719_v48, %v726_v6  ;;  %v6028_v62 = vld [vmem:[#allocation2 + $0xe0] sm:$0xf0]  ;;  %885 = vst [vmem:[#allocation2 + $0x108] sm:$0xf] %v884_v5 }
  0xdf   : > { %2078 = vmatmul.bf16.gmra.mxu3 %v4797_v34  ;;  %886 = vst [vmem:[#allocation2 + $0x114] sm:$0xf] %v727_v38  ;;  %v4954_v34 = vld [vmem:[#allocation2 + $0x3c] sm:$0xf0]  ;;  %v5193_v6 = vor.u32 %v6028_v62, %v5192_v58  ;;  %v508_v24 = vadd.f32 %v6233_v11, %v6169_v57 }
  0xe0   : > { %v292_v38 = vld [vmem:[#allocation2 + $0x120] sm:$0x1]  ;;  %v4957_v23 = vor.u32 %v5931_v18, %v4954_v34  ;;  %v6064_v18 = vld [vmem:[%s7925_s2 + $0x128] sm:$0xff] }
  0xe1   : > { %v1660_v35 = vpop.f32.mrf.mxu2  ;;  %v7248_v56 = vpack.c.bf16 %v508_v24, %v508_v24  ;;  %3272 = vmatpush.bf16.msrb.mxu2 %v6064_v18 }
  0xe2   : > { %v1709_v59 = vpop.f32.mrf.mxu3  ;;  %v1642_v21 = vpop.f32.mrf.mxu0 }
  0xe3   : > { %v7224_v26 = vadd.f32 %v1709_v59, %v1660_v35  ;;  %v1691_v31 = vpop.f32.mrf.mxu1  ;;  %v6170_v35 = vunpack.c.h.bf16 %v6341_v55  ;;  %v293_v55 = vsel %vm6479_vm2, 0, %v292_v38  ;;  %929 = vst [vmem:[#allocation2 + $0x124] sm:$0xf] %v7248_v56 }
  0xe4   : > { %v7230_v1 = vadd.f32 %v1691_v31, %v1642_v21  ;;  %v4953_v21 = vor.u32 %v5932_v30, %v4952_v52  ;;  %v4961_v31 = vor.u32 %v5933_v37, %v4960_v0  ;;  %294 = vst [vmem:[#allocation2 + $0x120] sm:$0x1] %v293_v55  ;;  %v7945_v52 = vshrl.u32 %v7248_v56, 16  ;;  %v6072_v0 = vld [vmem:[%s7925_s2 + $0x168] sm:$0xff]  ;;  %v5936_v55 = vld [vmem:[#allocation2 + $0x58] sm:$0xf0] }
  0xe5   : > { %v509_v5 = vadd.f32 %v6234_v45, %v6170_v35  ;;  %v7944_v37 = vshll.u32 %v7248_v56, 16  ;;  %3321 = vmatpush.bf16.msrb.mxu3 %v6072_v0  ;;  %v5204_v0 = vld [vmem:[#allocation2 + $0xf0] sm:$0xf] }
  0xe6   : > { %v731_v58 = vrot.slane %v7945_v52, 7  ;;  %v295_v52 = vld [vmem:[#allocation2 + $0x138] sm:$0x1] }
  0xe7   : > { %v7250_v29 = vpack.c.bf16 %v509_v5, %v509_v5  ;;  %v5934_v5 = vld [vmem:[#allocation2 + $0x4c] sm:$0xf]  ;;  %v296_v9 = vsel %vm6479_vm2, 0, %v295_v52 }
  0xe8   : > { %v734_v11 = vor.u32 %v7944_v37, %v731_v58  ;;  %v735_v45 = vrot.slane %v731_v58, 4  ;;  %v6342_v58 = vld [vmem:[%s6470_s6 + $0x60] sm:$0xff]   ;;  %297 = vst [vmem:[#allocation2 + $0x138] sm:$0x1] %v296_v9 }
  0xe9   : > { %v1662_v59 = vpop.f32.mrf.mxu2  ;;  %v7942_v30 = vshrl.u32 %v7250_v29, 16  ;;  %v7943_v62 = vshll.u32 %v7250_v29, 16  ;;  %930 = vst [vmem:[#allocation2 + $0x130] sm:$0xf] %v7250_v29 }
  0xea   : > { %v1711_v36 = vpop.f32.mrf.mxu3  ;;  %v2093_v48 = vpop.f32.mrf.mxu0 }
  0xeb   : > { %v7244_v20 = vadd.f32 %v1711_v36, %v1662_v59  ;;  %v2142_v63 = vpop.f32.mrf.mxu1  ;;  %v739_v34 = vrot.slane %v7942_v30, 7  ;;  %v5935_v36 = vld [vmem:[#allocation2 + $0x50] sm:$0xf0]  ;;  %v887_v38 = vld [vmem:[#allocation2 + $0x120] sm:$0xf] }
  0xec   : > { %2642 = vmatmul.bf16.vlgmr.msra.gmra.mxu0 %v4961_v31  ;;  %v4964_v31 = vld [vmem:[#allocation2 + $0x48] sm:$0xf]  ;;  %v888_v18 = vsel %vm6542_vm7, %v734_v11, %v887_v38 }
  0xed   : > { %v742_v59 = vor.u32 %v7943_v62, %v739_v34  ;;  %889 = vst [vmem:[#allocation2 + $0x120] sm:$0xf] %v888_v18  ;;  %v6357_v34 = vld [vmem:[%s6476_s9 + $0x60] sm:$0xff]  }
  0xee   : > { %2544 = vmatmul.bf16.vlgmr.msra.gmra.mxu2 %v4953_v21  ;;  %3229 = vmatmul.bf16.vlgmr.msra.gmra.mxu1 %v5193_v6  ;;  %v4972_v6 = vld [vmem:[#allocation2 + $0x50] sm:$0xf]  ;;  %v6237_v30 = vunpack.c.l.bf16 %v6357_v34  ;;  %v6238_v18 = vunpack.c.h.bf16 %v6357_v34 }
  0xef   : > { %2593 = vmatmul.bf16.vlgmr.msra.gmra.mxu3 %v4957_v23  ;;  %v4973_v38 = vor.u32 %v5936_v55, %v4972_v6 }
  0xf1   : > { %v1723_v23 = vpop.f32.mrf.mxu2 }
  0xf2   : > { %v1724_v10 = vadd.f32 %v1723_v23, %v7074_v46  ;;  %v2044_v44 = vpop.f32.mrf.mxu3  ;;  %v2095_v57 = vpop.f32.mrf.mxu0  ;;  %v743_v46 = vsel %vm6531_vm6, %v735_v45, %v742_v59  ;;  %v6031_v23 = vld [vmem:[#allocation2 + $0xf8] sm:$0xf0]  ;;  %v6008_v45 = vld [vmem:[%s7925_s2 + $0x28] sm:$0xff]  ;;  %v6173_v59 = vunpack.c.l.bf16 %v6342_v58 }
  0xf3   : > { %v2144_v35 = vpop.f32.mrf.mxu1  ;;  %890 = vst [vmem:[#allocation2 + $0x12c] sm:$0xf] %v743_v46  ;;  %v4965_v46 = vor.u32 %v5935_v36, %v4964_v31  ;;  %v5205_v37 = vor.u32 %v6031_v23, %v5204_v0  ;;  %3642 = vmatpush.bf16.msrb.mxu0 %v6008_v45  ;;  %v4976_v45 = vld [vmem:[#allocation2 + $0x60] sm:$0xf] }
  0xf4   : > { %v2045_v21 = vadd.f32 %v2044_v44, %v1724_v10  ;;  %v4966_v44 = vld [vmem:[#allocation2 + $0x54] sm:$0xf0]  ;;  %v510_v2 = vadd.f32 %v6237_v30, %v6173_v59  ;;  %v4984_v59 = vld [vmem:[#allocation2 + $0x68] sm:$0xf] }
  0xf5   : > { %v4969_v16 = vor.u32 %v5934_v5, %v4966_v44 }
  0xf6   : > { %v2094_v24 = vadd.f32 %v2093_v48, %v2045_v21  ;;  %v6016_v48 = vld [vmem:[%s7925_s2 + $0x68] sm:$0xff]  ;;  %v6174_v21 = vunpack.c.h.bf16 %v6342_v58  ;;  %v7290_v17 = vpack.c.bf16 %v510_v2, %v510_v2  ;;  %v6071_v2 = vld [vmem:[%s7925_s2 + $0x160] sm:$0xff] }
  0xf7   : > { %3691 = vmatpush.bf16.msrb.mxu1 %v6016_v48  ;;  %3322 = vmatpush.bf16.msrb.mxu3 %v6071_v2  ;;  %v5938_v48 = vld [vmem:[#allocation2 + $0x68] sm:$0xf0] }
  0xf8   : > { %v7279_v10 = vadd.f32 %v2142_v63, %v2094_v24  ;;  %v511_v58 = vadd.f32 %v6238_v18, %v6174_v21  ;;  %v7955_v36 = vshrl.u32 %v7290_v17, 16  ;;  %931 = vst [vmem:[#allocation2 + $0x13c] sm:$0xf] %v7290_v17  ;;  %v7954_v52 = vshll.u32 %v7290_v17, 16  ;;  %v891_v21 = vld [vmem:[#allocation2 + $0x138] sm:$0xf] }
  0xf9   : > { %v1725_v11 = vpop.f32.mrf.mxu2  ;;  %v5216_v18 = vld [vmem:[#allocation2 + $0x108] sm:$0xf] }
  0xfa   : > { %v1726_v62 = vadd.f32 %v1725_v11, %v7092_v3  ;;  %v2046_v63 = vpop.f32.mrf.mxu3  ;;  %v2098_v24 = vpop.f32.mrf.mxu0  ;;  %v7292_v31 = vpack.c.bf16 %v511_v58, %v511_v58  ;;  %v6034_v58 = vld [vmem:[#allocation2 + $0x110] sm:$0xf0]  ;;  %v6358_v2 = vld [vmem:[%s6476_s9 + $0x68] sm:$0xff]  }
  0xfb   : > { %v2147_v25 = vpop.f32.mrf.mxu1 }
  0xfc   : > { %v2047_v15 = vadd.f32 %v2046_v63, %v1726_v62  ;;  %2647 = vmatmul.bf16.gmra.mxu0 %v4973_v38  ;;  %v7952_v30 = vshrl.u32 %v7292_v31, 16  ;;  %v7953_v9 = vshll.u32 %v7292_v31, 16  ;;  %932 = vst [vmem:[#allocation2 + $0x148] sm:$0xf] %v7292_v31  ;;  %v5939_v38 = vld [vmem:[#allocation2 + $0x70] sm:$0xf0] }
  0xfe   : > { %v2096_v3 = vadd.f32 %v2095_v57, %v2047_v15  ;;  %2549 = vmatmul.bf16.gmra.mxu2 %v4965_v46  ;;  %3234 = vmatmul.bf16.gmra.mxu1 %v5205_v37  ;;  %v6063_v15 = vld [vmem:[%s7925_s2 + $0x120] sm:$0xff]  ;;  %v747_v37 = vrot.slane %v7955_v36, 7  ;;  %v755_v62 = vrot.slane %v7952_v30, 7 }
  0xff   : > { %2598 = vmatmul.bf16.gmra.mxu3 %v4969_v16  ;;  %3273 = vmatpush.bf16.msrb.mxu2 %v6063_v15  ;;  %v5937_v46 = vld [vmem:[#allocation2 + $0x64] sm:$0xf] }
 0x100   : > { %v7297_v6 = vadd.f32 %v2144_v35, %v2096_v3  ;;  %v750_v0 = vor.u32 %v7954_v52, %v747_v37  ;;  %v751_v23 = vrot.slane %v747_v37, 4  ;;  %v758_v34 = vor.u32 %v7953_v9, %v755_v62  ;;  %v6343_v3 = vld [vmem:[%s6470_s6 + $0x68] sm:$0xff]   ;;  %v6007_v37 = vld [vmem:[%s7925_s2 + $0x20] sm:$0xff] }
 0x101   : > { %v1728_v16 = vpop.f32.mrf.mxu2  ;;  %v6177_v62 = vunpack.c.l.bf16 %v6343_v3  ;;  %3643 = vmatpush.bf16.msrb.mxu0 %v6007_v37 }
 0x102   : > { %v1729_v57 = vadd.f32 %v1728_v16, %v7110_v27  ;;  %v2049_v35 = vpop.f32.mrf.mxu3  ;;  %v2100_v5 = vpop.f32.mrf.mxu0  ;;  %v759_v27 = vsel %vm6531_vm6, %v751_v23, %v758_v34  ;;  %v892_v63 = vsel %vm6542_vm7, %v750_v0, %v891_v21  ;;  %v4978_v16 = vld [vmem:[#allocation2 + $0x6c] sm:$0xf0]  ;;  %v4977_v23 = vor.u32 %v5938_v48, %v4976_v45 }
 0x103   : > { %v2149_v55 = vpop.f32.mrf.mxu1  ;;  %894 = vst [vmem:[#allocation2 + $0x144] sm:$0xf] %v759_v27  ;;  %v4985_v34 = vor.u32 %v5939_v38, %v4984_v59  ;;  %v4981_v52 = vor.u32 %v5937_v46, %v4978_v16 }
 0x104   : > { %v2050_v44 = vadd.f32 %v2049_v35, %v1729_v57  ;;  %893 = vst [vmem:[#allocation2 + $0x138] sm:$0xf] %v892_v63  ;;  %v6178_v57 = vunpack.c.h.bf16 %v6343_v3  ;;  %v6241_v35 = vunpack.c.l.bf16 %v6358_v2  ;;  %v298_v63 = vld [vmem:[#allocation2 + $0x150] sm:$0x1] }
 0x105   : > { %v299_v36 = vsel %vm6479_vm2, 0, %v298_v63 }
 0x106   : > { %v2099_v11 = vadd.f32 %v2098_v24, %v2050_v44  ;;  %v6015_v24 = vld [vmem:[%s7925_s2 + $0x60] sm:$0xff]  ;;  %v6242_v44 = vunpack.c.h.bf16 %v6358_v2  ;;  %v512_v30 = vadd.f32 %v6241_v35, %v6177_v62  ;;  %300 = vst [vmem:[#allocation2 + $0x150] sm:$0x1] %v299_v36  ;;  %v4988_v35 = vld [vmem:[#allocation2 + $0x78] sm:$0xf] }
 0x107   : > { %3692 = vmatpush.bf16.msrb.mxu1 %v6015_v24 }
 0x108   : > { %v7323_v15 = vadd.f32 %v2147_v25, %v2099_v11  ;;  %v5217_v11 = vor.u32 %v6034_v58, %v5216_v18  ;;  %v513_v3 = vadd.f32 %v6242_v44, %v6178_v57  ;;  %v7334_v39 = vpack.c.bf16 %v512_v30, %v512_v30  ;;  %v6070_v30 = vld [vmem:[%s7925_s2 + $0x158] sm:$0xff] }
 0x109   : > { %v1730_v0 = vpop.f32.mrf.mxu2  ;;  %3323 = vmatpush.bf16.msrb.mxu3 %v6070_v30  ;;  %v6359_v30 = vld [vmem:[%s6476_s9 + $0x70] sm:$0xff]  }
 0x10a   : > { %v1731_v27 = vadd.f32 %v1730_v0, %v7138_v40  ;;  %v2051_v25 = vpop.f32.mrf.mxu3  ;;  %v2103_v21 = vpop.f32.mrf.mxu0  ;;  %v7336_v45 = vpack.c.bf16 %v513_v3, %v513_v3  ;;  %v7961_v48 = vshrl.u32 %v7334_v39, 16  ;;  %933 = vst [vmem:[#allocation2 + $0x154] sm:$0xf] %v7334_v39  ;;  %v5941_v0 = vld [vmem:[#allocation2 + $0x80] sm:$0xf0] }
 0x10b   : > { %v2152_v9 = vpop.f32.mrf.mxu1  ;;  %v6037_v3 = vld [vmem:[#allocation2 + $0x128] sm:$0xf0] }
 0x10c   : > { %v2052_v61 = vadd.f32 %v2051_v25, %v1731_v27  ;;  %2652 = vmatmul.bf16.gmra.mxu0 %v4985_v34  ;;  %7991 = vst [vmem:[#allocation3_spill] sm:$0xff] %v7336_v45  ;;  %v7958_v59 = vshrl.u32 %v7336_v45, 16  ;;  %v7959_v36 = vshll.u32 %v7336_v45, 16  ;;  %v763_v38 = vrot.slane %v7961_v48, 7  ;;  %v5940_v27 = vld [vmem:[#allocation2 + $0x7c] sm:$0xf] }
 0x10d   : > { %934 = vst [vmem:[#allocation2 + $0x160] sm:$0xf] %v7336_v45  ;;  %v895_v34 = vld [vmem:[#allocation2 + $0x150] sm:$0xf]  ;;  %v5942_v25 = vld [vmem:[#allocation2 + $0x88] sm:$0xf0] }
 0x10e   : > { %v2101_v40 = vadd.f32 %v2100_v5, %v2052_v61  ;;  %2554 = vmatmul.bf16.gmra.mxu2 %v4977_v23  ;;  %3239 = vmatmul.bf16.gmra.mxu1 %v5217_v11  ;;  %v6062_v61 = vld [vmem:[%s7925_s2 + $0x118] sm:$0xff]  ;;  %v7960_v5 = vshll.u32 %v7334_v39, 16  ;;  %v767_v24 = vrot.slane %v763_v38, 4  ;;  %v4996_v23 = vld [vmem:[#allocation2 + $0x80] sm:$0xf] }
 0x10f   : > { %2603 = vmatmul.bf16.gmra.mxu3 %v4981_v52  ;;  %3274 = vmatpush.bf16.msrb.mxu2 %v6062_v61  ;;  %v5228_v11 = vld [vmem:[#allocation2 + $0x120] sm:$0xf] }
 0x110   : > { %v7341_v46 = vadd.f32 %v2149_v55, %v2101_v40  ;;  %v771_v55 = vrot.slane %v7958_v59, 7  ;;  %v766_v37 = vor.u32 %v7960_v5, %v763_v38  ;;  %v6344_v40 = vld [vmem:[%s6470_s6 + $0x70] sm:$0xff]   ;;  %v6006_v38 = vld [vmem:[%s7925_s2 + $0x18] sm:$0xff] }
 0x111   : > { %v1733_v52 = vpop.f32.mrf.mxu2  ;;  %3644 = vmatpush.bf16.msrb.mxu0 %v6006_v38 }
 0x112   : > { %v1734_v18 = vadd.f32 %v1733_v52, %v7156_v53  ;;  %v2054_v58 = vpop.f32.mrf.mxu3  ;;  %v2105_v2 = vpop.f32.mrf.mxu0  ;;  %v774_v62 = vor.u32 %v7959_v36, %v771_v55  ;;  %v896_v63 = vsel %vm6542_vm7, %v766_v37, %v895_v34  ;;  %v4990_v52 = vld [vmem:[#allocation2 + $0x84] sm:$0xf0]  ;;  %v6181_v55 = vunpack.c.l.bf16 %v6344_v40 }
 0x113   : > { %v2154_v16 = vpop.f32.mrf.mxu1  ;;  %897 = vst [vmem:[#allocation2 + $0x150] sm:$0xf] %v896_v63  ;;  %v301_v63 = vld [vmem:[#allocation2 + $0x168] sm:$0x1]  ;;  %v4993_v5 = vor.u32 %v5940_v27, %v4990_v52 }
 0x114   : > { %v2055_v57 = vadd.f32 %v2054_v58, %v1734_v18  ;;  %v775_v53 = vsel %vm6531_vm6, %v767_v24, %v774_v62  ;;  %v6182_v18 = vunpack.c.h.bf16 %v6344_v40  ;;  %v6245_v58 = vunpack.c.l.bf16 %v6359_v30 }
 0x115   : > { %898 = vst [vmem:[#allocation2 + $0x15c] sm:$0xf] %v775_v53  ;;  %v4989_v24 = vor.u32 %v5941_v0, %v4988_v35  ;;  %v4997_v62 = vor.u32 %v5942_v25, %v4996_v23  ;;  %v302_v48 = vsel %vm6479_vm2, 0, %v301_v63 }
 0x116   : > { %v2104_v44 = vadd.f32 %v2103_v21, %v2055_v57  ;;  %v6014_v21 = vld [vmem:[%s7925_s2 + $0x58] sm:$0xff]  ;;  %v6246_v57 = vunpack.c.h.bf16 %v6359_v30  ;;  %v514_v59 = vadd.f32 %v6245_v58, %v6181_v55  ;;  %303 = vst [vmem:[#allocation2 + $0x168] sm:$0x1] %v302_v48  ;;  %v5000_v58 = vld [vmem:[#allocation2 + $0x90] sm:$0xf] }
 0x117   : > { %3693 = vmatpush.bf16.msrb.mxu1 %v6014_v21 }
 0x118   : > { %v7367_v61 = vadd.f32 %v2152_v9, %v2104_v44  ;;  %v5229_v44 = vor.u32 %v6037_v3, %v5228_v11  ;;  %v515_v40 = vadd.f32 %v6246_v57, %v6182_v18  ;;  %v7378_v45 = vpack.c.bf16 %v514_v59, %v514_v59  ;;  %v6069_v59 = vld [vmem:[%s7925_s2 + $0x150] sm:$0xff] }
 0x119   : > { %v1735_v37 = vpop.f32.mrf.mxu2  ;;  %3324 = vmatpush.bf16.msrb.mxu3 %v6069_v59  ;;  %v6360_v59 = vld [vmem:[%s6476_s9 + $0x78] sm:$0xff]  }
 0x11a   : > { %7992 = vst [vmem:[#allocation4_spill] sm:$0xff] %v7367_v61  ;;  %v1736_v53 = vadd.f32 %v1735_v37, %v7184_v14  ;;  %v2056_v9 = vpop.f32.mrf.mxu3  ;;  %v2108_v34 = vpop.f32.mrf.mxu0  ;;  %v7380_v35 = vpack.c.bf16 %v515_v40, %v515_v40  ;;  %v7967_v0 = vshrl.u32 %v7378_v45, 16  ;;  %v7966_v25 = vshll.u32 %v7378_v45, 16  ;;  %v5944_v37 = vld [vmem:[#allocation2 + $0x98] sm:$0xf0] }
 0x11b   : > { %v2157_v36 = vpop.f32.mrf.mxu1  ;;  %935 = vst [vmem:[#allocation2 + $0x16c] sm:$0xf] %v7378_v45  ;;  %v6040_v40 = vld [vmem:[#allocation2 + $0x140] sm:$0xf0] }
 0x11c   : > { %v2057_v61 = vadd.f32 %v2056_v9, %v1736_v53  ;;  %2657 = vmatmul.bf16.gmra.mxu0 %v4997_v62  ;;  %7993 = vst [vmem:[#allocation5_spill] sm:$0xff] %v7380_v35  ;;  %v7964_v23 = vshrl.u32 %v7380_v35, 16  ;;  %v7965_v48 = vshll.u32 %v7380_v35, 16  ;;  %v779_v11 = vrot.slane %v7967_v0, 7  ;;  %v5943_v53 = vld [vmem:[#allocation2 + $0x94] sm:$0xf] }
 0x11d   : > { %936 = vst [vmem:[#allocation2 + $0x178] sm:$0xf] %v7380_v35  ;;  %v899_v62 = vld [vmem:[#allocation2 + $0x168] sm:$0xf]  ;;  %v5945_v9 = vld [vmem:[#allocation2 + $0xa0] sm:$0xf0] }
 0x11e   : > { %v2106_v14 = vadd.f32 %v2105_v2, %v2057_v61  ;;  %2559 = vmatmul.bf16.gmra.mxu2 %v4989_v24  ;;  %3244 = vmatmul.bf16.gmra.mxu1 %v5229_v44  ;;  %v6061_v2 = vld [vmem:[%s7925_s2 + $0x110] sm:$0xff]  ;;  %v782_v38 = vor.u32 %v7966_v25, %v779_v11  ;;  %v783_v21 = vrot.slane %v779_v11, 4  ;;  %v5008_v24 = vld [vmem:[#allocation2 + $0x98] sm:$0xf] }
 0x11f   : > { %2608 = vmatmul.bf16.gmra.mxu3 %v4993_v5  ;;  %3275 = vmatpush.bf16.msrb.mxu2 %v6061_v2  ;;  %v5240_v44 = vld [vmem:[#allocation2 + $0x138] sm:$0xf]  ;;  %v6005_v11 = vld [vmem:[%s7925_s2 + $0x10] sm:$0xff] }
 0x120   : > { %v7385_v27 = vadd.f32 %v2154_v16, %v2106_v14  ;;  %v787_v16 = vrot.slane %v7964_v23, 7  ;;  %v900_v63 = vsel %vm6542_vm7, %v782_v38, %v899_v62  ;;  %v6345_v14 = vld [vmem:[%s6470_s6 + $0x78] sm:$0xff]   ;;  %3645 = vmatpush.bf16.msrb.mxu0 %v6005_v11  ;;  %v304_v23 = vld [vmem:[#allocation2 + $0x180] sm:$0x1]  ;;  %s7624_s6 = scalar_lea.vmem %s7928_s5, %s6464_s28 }
 0x121   : > { %v1738_v5 = vpop.f32.mrf.mxu2  ;;  %901 = vst [vmem:[#allocation2 + $0x168] sm:$0xf] %v900_v63  ;;  %v334_v63 = vld [vmem:[#allocation2 + $0xec] sm:$0x8] }
 0x122   : > { %v1739_v3 = vadd.f32 %v1738_v5, %v7202_v33  ;;  %v2059_v30 = vpop.f32.mrf.mxu3  ;;  %v2110_v61 = vpop.f32.mrf.mxu0  ;;  %v790_v55 = vor.u32 %v7965_v48, %v787_v16  ;;  %v5002_v5 = vld [vmem:[#allocation2 + $0x9c] sm:$0xf0]  ;;  %v6185_v16 = vunpack.c.l.bf16 %v6345_v14 }
 0x123   : > { %v2159_v52 = vpop.f32.mrf.mxu1  ;;  %v5005_v0 = vor.u32 %v5943_v53, %v5002_v5  ;;  %v7995_v53 = vshrl.u32 %v7112_v50, 16 }
 0x124   : > { %v2060_v18 = vadd.f32 %v2059_v30, %v1739_v3  ;;  %v791_v33 = vsel %vm6531_vm6, %v783_v21, %v790_v55  ;;  %v6186_v3 = vunpack.c.h.bf16 %v6345_v14  ;;  %v6249_v30 = vunpack.c.l.bf16 %v6360_v59 }
 0x125   : > { %902 = vst [vmem:[#allocation2 + $0x174] sm:$0xf] %v791_v33  ;;  %v5001_v21 = vor.u32 %v5944_v37, %v5000_v58  ;;  %v5009_v55 = vor.u32 %v5945_v9, %v5008_v24  ;;  %v335_v14 = vsel %vm6835_vm10, 0, %v334_v63  ;;  %v305_v58 = vsel %vm6479_vm2, 0, %v304_v23  ;;  %v5012_v63 = vld [vmem:[#allocation2 + $0xa8] sm:$0xf] }
 0x126   : > { %v2109_v57 = vadd.f32 %v2108_v34, %v2060_v18  ;;  %v6013_v34 = vld [vmem:[%s7925_s2 + $0x50] sm:$0xff]  ;;  %v6250_v18 = vunpack.c.h.bf16 %v6360_v59  ;;  %v516_v48 = vadd.f32 %v6249_v30, %v6185_v16  ;;  %336 = vst [vmem:[#allocation2 + $0xec] sm:$0x8] %v335_v14  ;;  %v1014_v9 = vrot.slane %v7995_v53, 4 }
 0x127   : > { %3694 = vmatpush.bf16.msrb.mxu1 %v6013_v34  ;;  %v7997_v59 = vshll.u32 %v7114_v51, 16  ;;  %306 = vst [vmem:[#allocation2 + $0x180] sm:$0x1] %v305_v58  ;;  %v5947_v14 = vld [vmem:[#allocation2 + $0xb0] sm:$0xf0] }
 0x128   : > { %v7411_v2 = vadd.f32 %v2157_v36, %v2109_v57  ;;  %v5241_v57 = vor.u32 %v6040_v40, %v5240_v44  ;;  %v7424_v37 = vpack.c.bf16 %v516_v48, %v516_v48  ;;  %v7996_v44 = vshll.u32 %v7112_v50, 16  ;;  %v5020_v58 = vld [vmem:[#allocation2 + $0xb0] sm:$0xf] }
 0x129   : > { %v1740_v38 = vpop.f32.mrf.mxu2  ;;  %v1018_v4 = vrot.slane %v7997_v59, 5  ;;  %v7998_v48 = vshrl.u32 %v7114_v51, 16  ;;  %v5948_v59 = vld [vmem:[#allocation2 + $0xb8] sm:$0xf0] }
 0x12a   : > { %7994 = vst [vmem:[#allocation6_spill] sm:$0xff] %v7411_v2  ;;  %v1741_v33 = vadd.f32 %v1740_v38, %v7230_v1  ;;  %v2061_v36 = vpop.f32.mrf.mxu3  ;;  %v2113_v62 = vpop.f32.mrf.mxu0  ;;  %v517_v2 = vadd.f32 %v6250_v18, %v6186_v3  ;;  %v1015_v40 = vrot.slane %v7996_v44, 5  ;;  %v793_v50 = vshrl.u32 %v7424_v37, 16 }
 0x12b   : > { %v2162_v25 = vpop.f32.mrf.mxu1  ;;  %937 = vst [vmem:[#allocation2 + $0x184] sm:$0xf] %v7424_v37 }
 0x12c   : > { %v2062_v35 = vadd.f32 %v2061_v36, %v1741_v33  ;;  %2662 = vmatmul.bf16.gmra.mxu0 %v5009_v55  ;;  %v7426_v1 = vpack.c.bf16 %v517_v2, %v517_v2  ;;  %v796_v2 = vshll.u32 %v7424_v37, 16  ;;  %v1016_v11 = vor.u32 %v1015_v40, %v1014_v9  ;;  %v5946_v40 = vld [vmem:[#allocation2 + $0xac] sm:$0xf] }
 0x12d   : > { %v795_v38 = vrot.slane %v793_v50, 7  ;;  %v1152_v53 = vld [vmem:[#allocation2 + $0xec] sm:$0xf]  ;;  %v1077_v60 = vrot.slane %v793_v50, 4 }
 0x12e   : > { %v2111_v24 = vadd.f32 %v2110_v61, %v2062_v35  ;;  %2564 = vmatmul.bf16.gmra.mxu2 %v5001_v21  ;;  %3249 = vmatmul.bf16.gmra.mxu1 %v5241_v57  ;;  %v6068_v35 = vld [vmem:[%s7925_s2 + $0x148] sm:$0xff]  ;;  %v1020_v61 = vrot.slane %v7998_v48, 4  ;;  %v804_v34 = vshll.u32 %v7426_v1, 16  ;;  %938 = vst [vmem:[#allocation2 + $0x190] sm:$0xf] %v7426_v1  ;;  %v1017_v55 = vrot.slane %v1016_v11, 4 }
 0x12f   : > { %2613 = vmatmul.bf16.gmra.mxu3 %v5005_v0  ;;  %v6060_v0 = vld [vmem:[%s7925_s2 + $0x108] sm:$0xff]  ;;  %v799_v57 = vrot.slane %v795_v38, 4  ;;  %v5252_v48 = vld [vmem:[#allocation2 + $0x150] sm:$0xf] }
 0x130   : > { %v7434_v23 = vadd.f32 %v2159_v52, %v2111_v24  ;;  %v801_v52 = vshrl.u32 %v7426_v1, 16  ;;  %3325 = vmatpush.bf16.msrb.mxu3 %v6068_v35  ;;  %3276 = vmatpush.bf16.msrb.mxu2 %v6060_v0  ;;  %v1021_v51 = vor.u32 %v1020_v61, %v1018_v4  ;;  %v1019_v24 = vsel %vm6908_vm14, %v1017_v55, %v1018_v4  ;;  %v903_v0 = vld [vmem:[#allocation2 + $0x180] sm:$0xf]  ;;  %v6043_v61 = vld [vmem:[#allocation2 + $0x158] sm:$0xf0] }
 0x131   : > { %v1743_v5 = vpop.f32.mrf.mxu2  ;;  %1151 = vst [vmem:[#allocation2 + $0xe0] sm:$0xf] %v1019_v24 }
 0x132   : > { %v1744_v16 = vadd.f32 %v1743_v5, %v7090_v12  ;;  %v2064_v3 = vpop.f32.mrf.mxu3  ;;  %v2115_v30 = vpop.f32.mrf.mxu0  ;;  %v803_v18 = vrot.slane %v801_v52, 7  ;;  %v1022_v36 = vrot.slane %v1021_v51, 4  ;;  %v798_v12 = vor.u32 %v796_v2, %v795_v38 }
 0x133   : > { %v2164_v21 = vpop.f32.mrf.mxu1  ;;  %v5021_v38 = vor.u32 %v5948_v59, %v5020_v58  ;;  %v5950_v59 = vld [vmem:[#allocation2 + $0xc8] sm:$0xf0] }
 0x134   : > { %v2065_v33 = vadd.f32 %v2064_v3, %v1744_v16  ;;  %v806_v9 = vor.u32 %v804_v34, %v803_v18  ;;  %v1153_v35 = vsel %vm6902_vm13, %v1022_v36, %v1152_v53  ;;  %v904_v4 = vsel %vm6542_vm7, %v798_v12, %v903_v0  ;;  %v5014_v16 = vld [vmem:[#allocation2 + $0xb4] sm:$0xf0]  ;;  %v6012_v3 = vld [vmem:[%s7925_s2 + $0x48] sm:$0xff]  ;;  %v5951_v0 = vld [vmem:[#allocation2 + $0xd0] sm:$0xf0] }
 0x135   : > { %1154 = vst [vmem:[#allocation2 + $0xec] sm:$0xf] %v1153_v35  ;;  %v5013_v18 = vor.u32 %v5947_v14, %v5012_v63  ;;  %3695 = vmatpush.bf16.msrb.mxu1 %v6012_v3  ;;  %v5017_v36 = vor.u32 %v5946_v40, %v5014_v16  ;;  %v6059_v63 = vld [vmem:[%s7925_s2 + $0x100] sm:$0xff]  ;;  %v5032_v35 = vld [vmem:[#allocation2 + $0xc8] sm:$0xf] }
 0x136   : > { %v2114_v44 = vadd.f32 %v2113_v62, %v2065_v33  ;;  %v807_v5 = vsel %vm6531_vm6, %v799_v57, %v806_v9  ;;  %v6004_v62 = vld [vmem:[%s7925_s2 + $0x8] sm:$0xff]  ;;  %905 = vst [vmem:[#allocation2 + $0x180] sm:$0xf] %v904_v4  ;;  %3277 = vmatpush.bf16.msrb.mxu2 %v6059_v63  ;;  %v5024_v40 = vld [vmem:[#allocation2 + $0xc0] sm:$0xf] }
 0x137   : > { %906 = vst [vmem:[#allocation2 + $0x18c] sm:$0xf] %v807_v5  ;;  %3646 = vmatpush.bf16.msrb.mxu0 %v6004_v62  ;;  %v6046_v5 = vld [vmem:[#allocation2 + $0x170] sm:$0xf0]  ;;  %v5026_v16 = vld [vmem:[#allocation2 + $0xcc] sm:$0xf0] }
 0x138   : > { %v7467_v11 = vadd.f32 %v2162_v25, %v2114_v44  ;;  %v5253_v25 = vor.u32 %v6043_v61, %v5252_v48  ;;  %v5949_v48 = vld [vmem:[#allocation2 + $0xc4] sm:$0xf]  ;;  %v5264_v61 = vld [vmem:[#allocation2 + $0x168] sm:$0xf] }
 0x139   : > { %v1745_v51 = vpop.f32.mrf.mxu2  ;;  %v6011_v62 = vld [vmem:[%s7925_s2 + $0x40] sm:$0xff] }
 0x13a   : > { %v1746_v49 = vadd.f32 %v1745_v51, %v7106_v22  ;;  %v2066_v55 = vpop.f32.mrf.mxu3  ;;  %v2118_v54 = vpop.f32.mrf.mxu0  ;;  %v6067_v22 = vld [vmem:[%s7925_s2 + $0x140] sm:$0xff]  ;;  %v5033_v51 = vor.u32 %v5951_v0, %v5032_v35  ;;  %3696 = vmatpush.bf16.msrb.mxu1 %v6011_v62 }
 0x13b   : > { %v2167_v33 = vpop.f32.mrf.mxu1  ;;  %3326 = vmatpush.bf16.msrb.mxu3 %v6067_v22 }
 0x13c   : > { %v2067_v12 = vadd.f32 %v2066_v55, %v1746_v49  ;;  %2667 = vmatmul.bf16.gmra.mxu0 %v5021_v38 }
 0x13e   : > { %v2116_v57 = vadd.f32 %v2115_v30, %v2067_v12  ;;  %2569 = vmatmul.bf16.gmra.mxu2 %v5013_v18  ;;  %3254 = vmatmul.bf16.gmra.mxu1 %v5253_v25  ;;  %v5265_v18 = vor.u32 %v6046_v5, %v5264_v61  ;;  %v337_v25 = vld [vmem:[#allocation2 + $0x104] sm:$0x8] }
 0x13f   : > { %2618 = vmatmul.bf16.gmra.mxu3 %v5017_v36  ;;  %v5029_v36 = vor.u32 %v5949_v48, %v5026_v16  ;;  %v338_v12 = vsel %vm6835_vm10, 0, %v337_v25  ;;  %v5954_v25 = vld [vmem:[#allocation2 + $0xe8] sm:$0xf0] }
 0x140   : > { %v7476_v24 = vadd.f32 %v2164_v21, %v2116_v57  ;;  %339 = vst [vmem:[#allocation2 + $0x104] sm:$0x8] %v338_v12  ;;  %v6049_v12 = vld [vmem:[#allocation2 + $0x188] sm:$0xf0] }
 0x141   : > { %v1748_v14 = vpop.f32.mrf.mxu2 }
 0x142   : > { %v1749_v58 = vadd.f32 %v1748_v14, %v7132_v47  ;;  %v2069_v53 = vpop.f32.mrf.mxu3  ;;  %v2120_v9 = vpop.f32.mrf.mxu0  ;;  %v6003_v47 = vld [vmem:[%s7925_s2] sm:$0xff]  ;;  %v8000_v14 = vshll.u32 %v7158_v43, 16 }
 0x143   : > { %v2169_v30 = vpop.f32.mrf.mxu1  ;;  %3647 = vmatpush.bf16.msrb.mxu0 %v6003_v47 }
 0x144   : > { %v2070_v44 = vadd.f32 %v2069_v53, %v1749_v58  ;;  %v1024_v58 = vrot.slane %v8000_v14, 5  ;;  %v8001_v53 = vshll.u32 %v7160_v8, 16 }
 0x146   : > { %v2119_v21 = vadd.f32 %v2118_v54, %v2070_v44  ;;  %v5025_v54 = vor.u32 %v5950_v59, %v5024_v40  ;;  %v1027_v44 = vrot.slane %v8001_v53, 5  ;;  %v8002_v59 = vshrl.u32 %v7160_v8, 16 }
 0x147   : > { %v1156_v8 = vld [vmem:[#allocation2 + $0x104] sm:$0xf] }
 0x148   : > { %v7485_v4 = vadd.f32 %v2167_v33, %v2119_v21  ;;  %v6106_v21 = vld [vmem:[%s7925_s2 + $0x1b8] sm:$0xff]  ;;  %v1029_v35 = vrot.slane %v8002_v59, 4 }
 0x149   : > { %v1750_v3 = vpop.f32.mrf.mxu2  ;;  %4140 = vmatpush.bf16.msra.mxu3 %v6106_v21 }
 0x14a   : > { %v1751_v38 = vadd.f32 %v1750_v3, %v7152_v41  ;;  %v2071_v49 = vpop.f32.mrf.mxu3  ;;  %v2123_v55 = vpop.f32.mrf.mxu0  ;;  %v7999_v41 = vshrl.u32 %v7158_v43, 16 }
 0x14b   : > { %v2172_v33 = vpop.f32.mrf.mxu1 }
 0x14c   : > { %v2072_v57 = vadd.f32 %v2071_v49, %v1751_v38  ;;  %2672 = vmatmul.bf16.gmra.mxu0 %v5033_v51  ;;  %v1023_v63 = vrot.slane %v7999_v41, 4  ;;  %v5036_v51 = vld [vmem:[#allocation2 + $0xd8] sm:$0xf]  ;;  %v5953_v38 = vld [vmem:[#allocation2 + $0xe0] sm:$0xf0] }
 0x14d   : > { %v5038_v41 = vld [vmem:[#allocation2 + $0xe4] sm:$0xf0] }
 0x14e   : > { %v2121_v22 = vadd.f32 %v2120_v9, %v2072_v57  ;;  %2574 = vmatmul.bf16.gmra.mxu2 %v5025_v54  ;;  %3259 = vmatmul.bf16.gmra.mxu1 %v5265_v18  ;;  %v6026_v9 = vld [vmem:[%s7925_s2 + $0xb8] sm:$0xff]  ;;  %v1025_v48 = vor.u32 %v1024_v58, %v1023_v63  ;;  %v5044_v18 = vld [vmem:[#allocation2 + $0xe0] sm:$0xf] }
 0x14f   : > { %2623 = vmatmul.bf16.gmra.mxu3 %v5029_v36  ;;  %3738 = vmatpush.bf16.msra.mxu2 %v6026_v9  ;;  %v5276_v36 = vld [vmem:[#allocation2 + $0x180] sm:$0xf]  ;;  %v5045_v14 = vor.u32 %v5954_v25, %v5044_v18  ;;  %v340_v9 = vld [vmem:[#allocation2 + $0x11c] sm:$0x8] }
 0x150   : > { %v7502_v40 = vadd.f32 %v2169_v30, %v2121_v22  ;;  %v1030_v30 = vor.u32 %v1029_v35, %v1027_v44  ;;  %v1026_v47 = vrot.slane %v1025_v48, 4  ;;  %v5952_v22 = vld [vmem:[#allocation2 + $0xdc] sm:$0xf]  ;;  %v5277_v21 = vor.u32 %v6049_v12, %v5276_v36 }
 0x151   : > { %v1753_v0 = vpop.f32.mrf.mxu2  ;;  %v5041_v35 = vor.u32 %v5952_v22, %v5038_v41 }
 0x152   : > { %v1754_v43 = vadd.f32 %v1753_v0, %v7182_v19  ;;  %v2074_v61 = vpop.f32.mrf.mxu3  ;;  %v2125_v5 = vpop.f32.mrf.mxu0  ;;  %v1031_v3 = vrot.slane %v1030_v30, 4  ;;  %v1028_v49 = vsel %vm6908_vm14, %v1026_v47, %v1027_v44  ;;  %v341_v0 = vsel %vm6835_vm10, 0, %v340_v9  ;;  %v5386_v9 = vld [vmem:[#allocation2 + $0xcc] sm:$0xf0] }
 0x153   : > { %v2174_v16 = vpop.f32.mrf.mxu1  ;;  %1155 = vst [vmem:[#allocation2 + $0xf8] sm:$0xf] %v1028_v49  ;;  %v8004_v47 = vshll.u32 %v7204_v32, 16  ;;  %v8006_v49 = vshrl.u32 %v7206_v7, 16 }
 0x154   : > { %v2075_v62 = vadd.f32 %v2074_v61, %v1754_v43  ;;  %v1157_v19 = vsel %vm6902_vm13, %v1031_v3, %v1156_v8  ;;  %342 = vst [vmem:[#allocation2 + $0x11c] sm:$0x8] %v341_v0  ;;  %v8003_v61 = vshrl.u32 %v7204_v32, 16  ;;  %v5200_v0 = vld [vmem:[#allocation2 + $0xe0] sm:$0xf] }
 0x155   : > { %1158 = vst [vmem:[#allocation2 + $0x104] sm:$0xf] %v1157_v19  ;;  %v1038_v8 = vrot.slane %v8006_v49, 4 }
 0x156   : > { %v2124_v54 = vadd.f32 %v2123_v55, %v2075_v62  ;;  %v5037_v55 = vor.u32 %v5953_v38, %v5036_v51  ;;  %v1032_v30 = vrot.slane %v8003_v61, 4  ;;  %v1033_v62 = vrot.slane %v8004_v47, 5 }
 0x157   : > { %v8005_v51 = vshll.u32 %v7206_v7, 16  ;;  %v5384_v7 = vld [vmem:[#allocation2 + $0xc0] sm:$0xf] }
 0x158   : > { %v7517_v57 = vadd.f32 %v2172_v33, %v2124_v54  ;;  %v6114_v33 = vld [vmem:[%s7925_s2 + $0x1f8] sm:$0xff]  ;;  %v1034_v54 = vor.u32 %v1033_v62, %v1032_v30 }
 0x159   : > { %v1755_v63 = vpop.f32.mrf.mxu2  ;;  %4189 = vmatpush.bf16.msra.mxu0 %v6114_v33  ;;  %v1036_v38 = vrot.slane %v8005_v51, 5 }
 0x15a   : > { %v1756_v58 = vadd.f32 %v1755_v63, %v7198_v28  ;;  %v2076_v53 = vpop.f32.mrf.mxu3  ;;  %v2128_v44 = vpop.f32.mrf.mxu0  ;;  %v6122_v28 = vld [vmem:[%s7925_s2 + $0x238] sm:$0xff]  ;;  %v1035_v22 = vrot.slane %v1034_v54, 4  ;;  %v6113_v54 = vld [vmem:[%s7925_s2 + $0x1f0] sm:$0xff] }
 0x15b   : > { %v2177_v59 = vpop.f32.mrf.mxu1  ;;  %4238 = vmatpush.bf16.msra.mxu1 %v6122_v28  ;;  %v1039_v36 = vor.u32 %v1038_v8, %v1036_v38  ;;  %v6027_v63 = vld [vmem:[#allocation2 + $0xdc] sm:$0xf] }
 0x15c   : > { %v2077_v48 = vadd.f32 %v2076_v53, %v1756_v58  ;;  %2677 = vmatmul.bf16.gmra.mxu0 %v5045_v14  ;;  %v5194_v14 = vld [vmem:[#allocation2 + $0xe4] sm:$0xf0]  ;;  %v1037_v58 = vsel %vm6908_vm14, %v1035_v22, %v1036_v38  ;;  %v8008_v22 = vshll.u32 %v7248_v56, 16 }
 0x15d   : > { %v1040_v41 = vrot.slane %v1039_v36, 4  ;;  %1159 = vst [vmem:[#allocation2 + $0x110] sm:$0xf] %v1037_v58  ;;  %v5197_v62 = vor.u32 %v6027_v63, %v5194_v14  ;;  %4190 = vmatpush.bf16.msra.mxu0 %v6113_v54  ;;  %v8010_v14 = vshrl.u32 %v7250_v29, 16  ;;  %v6104_v54 = vld [vmem:[%s7925_s2 + $0x1a8] sm:$0xff] }
 0x15e   : > { %v2126_v43 = vadd.f32 %v2125_v5, %v2077_v48  ;;  %2579 = vmatmul.bf16.gmra.mxu2 %v5037_v55  ;;  %3264 = vmatmul.bf16.gmra.mxu1 %v5277_v21  ;;  %v5980_v55 = vld [vmem:[#allocation2 + $0xc8] sm:$0xf0]  ;;  %v5979_v21 = vld [vmem:[#allocation2 + $0xc4] sm:$0xf] }
 0x15f   : > { %2628 = vmatmul.bf16.gmra.mxu3 %v5041_v35  ;;  %v6029_v48 = vld [vmem:[#allocation2 + $0xe8] sm:$0xf0]  ;;  %v5385_v28 = vor.u32 %v5980_v55, %v5384_v7  ;;  %v5389_v51 = vor.u32 %v5979_v21, %v5386_v9  ;;  %v1047_v58 = vrot.slane %v8010_v14, 4 }
 0x160   : > { %v7532_v3 = vadd.f32 %v2174_v16, %v2126_v43  ;;  %v1160_v16 = vld [vmem:[#allocation2 + $0x11c] sm:$0xf]  ;;  %v6105_v43 = vld [vmem:[%s7925_s2 + $0x1b0] sm:$0xff]  ;;  %v5201_v49 = vor.u32 %v6029_v48, %v5200_v0 }
 0x161   : > { %v1758_v5 = vpop.f32.mrf.mxu2  ;;  %4141 = vmatpush.bf16.msra.mxu3 %v6105_v43 }
 0x162   : > { %v1759_v18 = vadd.f32 %v1758_v5, %v7224_v26  ;;  %v2079_v25 = vpop.f32.mrf.mxu3  ;;  %v2130_v19 = vpop.f32.mrf.mxu0  ;;  %v1161_v26 = vsel %vm6902_vm13, %v1040_v41, %v1160_v16  ;;  %v8009_v16 = vshll.u32 %v7250_v29, 16  ;;  %v5983_v29 = vld [vmem:[#allocation2 + $0xe0] sm:$0xf0] }
 0x163   : > { %v2179_v12 = vpop.f32.mrf.mxu1  ;;  %1162 = vst [vmem:[#allocation2 + $0x11c] sm:$0xf] %v1161_v26 }
 0x164   : > { %v2080_v32 = vadd.f32 %v2079_v25, %v1759_v18  ;;  %v8007_v25 = vshrl.u32 %v7248_v56, 16  ;;  %v1045_v63 = vrot.slane %v8009_v16, 5 }
 0x165   : > { %4142 = vmatpush.bf16.msra.mxu3 %v6104_v54 }
 0x166   : > { %v2129_v53 = vadd.f32 %v2128_v44, %v2080_v32  ;;  %v6025_v44 = vld [vmem:[%s7925_s2 + $0xb0] sm:$0xff]  ;;  %v1041_v36 = vrot.slane %v8007_v25, 4  ;;  %v1042_v32 = vrot.slane %v8008_v22, 5  ;;  %v1048_v26 = vor.u32 %v1047_v58, %v1045_v63 }
 0x167   : > { %3739 = vmatpush.bf16.msra.mxu2 %v6025_v44  ;;  %v5396_v44 = vld [vmem:[#allocation2 + $0xd8] sm:$0xf] }
 0x168   : > { %v7543_v35 = vadd.f32 %v2177_v59, %v2129_v53  ;;  %v343_v59 = vld [vmem:[#allocation2 + $0x134] sm:$0x8]  ;;  %v1043_v53 = vor.u32 %v1042_v32, %v1041_v36  ;;  %v1049_v56 = vrot.slane %v1048_v26, 4  ;;  %v6120_v26 = vld [vmem:[%s7925_s2 + $0x228] sm:$0xff] }
 0x169   : > { %v1760_v33 = vpop.f32.mrf.mxu2  ;;  %v344_v8 = vsel %vm6835_vm10, 0, %v343_v59  ;;  %v6032_v59 = vld [vmem:[#allocation2 + $0x100] sm:$0xf0] }
 0x16a   : > { %v1761_v61 = vadd.f32 %v1760_v33, %v7244_v20  ;;  %v2081_v30 = vpop.f32.mrf.mxu3  ;;  %v2643_v47 = vpop.f32.mrf.mxu0  ;;  %v6121_v20 = vld [vmem:[%s7925_s2 + $0x230] sm:$0xff]  ;;  %345 = vst [vmem:[#allocation2 + $0x134] sm:$0x8] %v344_v8  ;;  %v1044_v0 = vrot.slane %v1043_v53, 4 }
 0x16b   : > { %v7552_v38 = vpop.f32.mrf.mxu1  ;;  %4239 = vmatpush.bf16.msra.mxu1 %v6121_v20  ;;  %v6030_v33 = vld [vmem:[#allocation2 + $0xf4] sm:$0xf]  ;;  %v6024_v20 = vld [vmem:[%s7925_s2 + $0xa8] sm:$0xff] }
 0x16c   : > { %v2082_v5 = vadd.f32 %v2081_v30, %v1761_v61  ;;  %3648 = vmatmul.bf16.vlgmr.msrb.gmra.mxu0 %v5385_v28  ;;  %v5206_v28 = vld [vmem:[#allocation2 + $0xfc] sm:$0xf0]  ;;  %v1046_v43 = vsel %vm6908_vm14, %v1044_v0, %v1045_v63  ;;  %v5982_v30 = vld [vmem:[#allocation2 + $0xdc] sm:$0xf]  ;;  %3740 = vmatpush.bf16.msra.mxu2 %v6024_v20  ;;  %v8011_v0 = vshrl.u32 %v7290_v17, 16 }
 0x16d   : > { %1163 = vst [vmem:[#allocation2 + $0x128] sm:$0xf] %v1046_v43  ;;  %v5209_v36 = vor.u32 %v6030_v33, %v5206_v28 }
 0x16e   : > { %v2131_v18 = vadd.f32 %v2130_v19, %v2082_v5  ;;  %3278 = vmatmul.bf16.vlgmr.msrb.gmra.mxu2 %v5197_v62  ;;  %3697 = vmatmul.bf16.vlgmr.msrb.gmra.mxu1 %v5389_v51  ;;  %v5398_v62 = vld [vmem:[#allocation2 + $0xe4] sm:$0xf0]  ;;  %v5212_v51 = vld [vmem:[#allocation2 + $0xf8] sm:$0xf]  ;;  %v5397_v5 = vor.u32 %v5983_v29, %v5396_v44 }
 0x16f   : > { %3327 = vmatmul.bf16.vlgmr.msrb.gmra.mxu3 %v5201_v49  ;;  %v5401_v22 = vor.u32 %v5982_v30, %v5398_v62  ;;  %v5213_v63 = vor.u32 %v6032_v59, %v5212_v51  ;;  %4240 = vmatpush.bf16.msra.mxu1 %v6120_v26  ;;  %v6035_v26 = vld [vmem:[#allocation2 + $0x118] sm:$0xf0] }
 0x170   : > { %v7566_v41 = vadd.f32 %v2179_v12, %v2131_v18 }
 0x171   : > { %v2545_v19 = vpop.f32.mrf.mxu2  ;;  %v1164_v48 = vld [vmem:[#allocation2 + $0x134] sm:$0xf] }
 0x172   : > { %v2594_v7 = vpop.f32.mrf.mxu3  ;;  %v2645_v55 = vpop.f32.mrf.mxu0  ;;  %v1165_v61 = vsel %vm6902_vm13, %v1049_v56, %v1164_v48  ;;  %v8012_v56 = vshll.u32 %v7290_v17, 16 }
 0x173   : > { %v2595_v21 = vadd.f32 %v2594_v7, %v2545_v19  ;;  %v7572_v9 = vpop.f32.mrf.mxu1  ;;  %1166 = vst [vmem:[#allocation2 + $0x134] sm:$0xf] %v1165_v61  ;;  %v7598_v19 = vld [vmem:[%s7927_s4] ss:$0 sm:$0xff]  ;;  %v6112_v7 = vld [vmem:[%s7925_s2 + $0x1e8] sm:$0xff] }
 0x174   : > { %4191 = vmatpush.bf16.msra.mxu0 %v6112_v7  ;;  %v1051_v48 = vrot.slane %v8012_v56, 5  ;;  %v5224_v7 = vld [vmem:[#allocation2 + $0x110] sm:$0xf]  ;;  %v6103_v56 = vld [vmem:[%s7925_s2 + $0x1a0] sm:$0xff] }
 0x175   : > { %v2644_v12 = vadd.f32 %v2643_v47, %v2595_v21  ;;  %v7582_v47 = vld [vmem:[%s7926_s3] ss:$0 sm:$0xff]  ;;  %4143 = vmatpush.bf16.msra.mxu3 %v6103_v56 }
 0x177   : > { %v2683_v49 = vadd.f32 %v2644_v12, %v7279_v10  ;;  %v346_v10 = vld [vmem:[#allocation2 + $0x14c] sm:$0x8]  ;;  %v8013_v12 = vshll.u32 %v7292_v31, 16 }
 0x178   : > { %v347_v14 = vsel %vm6835_vm10, 0, %v346_v10  ;;  %v5986_v10 = vld [vmem:[#allocation2 + $0xf8] sm:$0xf0] }
 0x179   : > { %v2547_v8 = vpop.f32.mrf.mxu2  ;;  %v2703_v58 = vmul.f32 %v7582_v47, %v2683_v49  ;;  %348 = vst [vmem:[#allocation2 + $0x14c] sm:$0x8] %v347_v14  ;;  %v1054_v33 = vrot.slane %v8013_v12, 5 }
 0x17a   : > { %v2596_v18 = vpop.f32.mrf.mxu3  ;;  %v2648_v25 = vpop.f32.mrf.mxu0 }
 0x17b   : > { %v2597_v32 = vadd.f32 %v2596_v18, %v2547_v8  ;;  %v7590_v16 = vpop.f32.mrf.mxu1  ;;  %v2723_v28 = vadd.f32 %v7598_v19, %v2703_v58  ;;  %v6033_v18 = vld [vmem:[#allocation2 + $0x10c] sm:$0xf]  ;;  %v5985_v58 = vld [vmem:[#allocation2 + $0xf4] sm:$0xf] }
 0x17c   : > { %3653 = vmatmul.bf16.gmra.mxu0 %v5397_v5 }
 0x17d   : > { %v2646_v53 = vadd.f32 %v2645_v55, %v2597_v32  ;;  %v1050_v55 = vrot.slane %v8011_v0, 4  ;;  %v2739_v5 = vmax.f32 %v2723_v28, 0.0 }
 0x17e   : > { %3283 = vmatmul.bf16.gmra.mxu2 %v5209_v36  ;;  %3702 = vmatmul.bf16.gmra.mxu1 %v5401_v22  ;;  %v5218_v36 = vld [vmem:[#allocation2 + $0x114] sm:$0xf0] }
 0x17f   : > { %v2684_v21 = vadd.f32 %v2646_v53, %v7297_v6  ;;  %3332 = vmatmul.bf16.gmra.mxu3 %v5213_v63  ;;  %v8014_v6 = vshrl.u32 %v7292_v31, 16  ;;  %v1052_v62 = vor.u32 %v1051_v48, %v1050_v55  ;;  %v5408_v31 = vld [vmem:[#allocation2 + $0xf0] sm:$0xf]  ;;  %v5410_v53 = vld [vmem:[#allocation2 + $0xfc] sm:$0xf0]  ;;  %v5221_v28 = vor.u32 %v6033_v18, %v5218_v36 }
 0x180   : > { %v1168_v63 = vld [vmem:[#allocation2 + $0x14c] sm:$0xf]  ;;  %v5409_v55 = vor.u32 %v5986_v10, %v5408_v31  ;;  %v6023_v48 = vld [vmem:[%s7925_s2 + $0xa0] sm:$0xff]  ;;  %v8017_v18 = vld [vmem:[#allocation3_spill] sm:$0xff] }
 0x181   : > { %v2704_v43 = vmul.f32 %v7582_v47, %v2684_v21  ;;  %v2550_v44 = vpop.f32.mrf.mxu2  ;;  %v1056_v29 = vrot.slane %v8014_v6, 4  ;;  %v1053_v8 = vrot.slane %v1052_v62, 4  ;;  %3741 = vmatpush.bf16.msra.mxu2 %v6023_v48  ;;  %v8018_v36 = vshll.u32 %v8017_v18, 16 }
 0x182   : > { %v2599_v61 = vpop.f32.mrf.mxu3  ;;  %v2650_v30 = vpop.f32.mrf.mxu0  ;;  %v8019_v31 = vshrl.u32 %v8017_v18, 16  ;;  %v6022_v18 = vld [vmem:[%s7925_s2 + $0x98] sm:$0xff] }
 0x183   : > { %v2724_v51 = vadd.f32 %v7598_v19, %v2704_v43  ;;  %v2600_v59 = vadd.f32 %v2599_v61, %v2550_v44  ;;  %v7618_v17 = vpop.f32.mrf.mxu1  ;;  %v1057_v49 = vor.u32 %v1056_v29, %v1054_v33  ;;  %v1055_v32 = vsel %vm6908_vm14, %v1053_v8, %v1054_v33  ;;  %v349_v44 = vld [vmem:[#allocation2 + $0x164] sm:$0x8] }
 0x184   : > { %1167 = vst [vmem:[#allocation2 + $0x140] sm:$0xf] %v1055_v32  ;;  %v5413_v43 = vor.u32 %v5985_v58, %v5410_v53  ;;  %v5225_v61 = vor.u32 %v6035_v26, %v5224_v7  ;;  %v1065_v10 = vrot.slane %v8019_v31, 4 }
 0x185   : > { %v2740_v54 = vmax.f32 %v2724_v51, 0.0  ;;  %v2649_v20 = vadd.f32 %v2648_v25, %v2600_v59  ;;  %v1058_v22 = vrot.slane %v1057_v49, 4  ;;  %v6111_v59 = vld [vmem:[%s7925_s2 + $0x1e0] sm:$0xff]  ;;  %3742 = vmatpush.bf16.msra.mxu2 %v6022_v18  ;;  %v6039_v18 = vld [vmem:[#allocation2 + $0x13c] sm:$0xf] }
 0x186   : > { %v6119_v49 = vld [vmem:[%s7925_s2 + $0x220] sm:$0xff]  ;;  %4192 = vmatpush.bf16.msra.mxu0 %v6111_v59 }
 0x187   : > { %v6254_v14 = vpack.c.bf16 %v2740_v54, %v2739_v5  ;;  %v1169_v25 = vsel %vm6902_vm13, %v1058_v22, %v1168_v63  ;;  %v2685_v21 = vadd.f32 %v2649_v20, %v7323_v15  ;;  %v350_v15 = vsel %vm6835_vm10, 0, %v349_v44  ;;  %4241 = vmatpush.bf16.msra.mxu1 %v6119_v49  ;;  %v5989_v44 = vld [vmem:[#allocation2 + $0x110] sm:$0xf0]  ;;  %v5236_v49 = vld [vmem:[#allocation2 + $0x128] sm:$0xf] }
 0x188   : > { %1170 = vst [vmem:[#allocation2 + $0x14c] sm:$0xf] %v1169_v25  ;;  %v8015_v5 = vshrl.u32 %v7334_v39, 16  ;;  %v1063_v22 = vrot.slane %v8018_v36, 5 }
 0x189   : > { %6255 = vst [vmem:[%s7624_s6] sm:$0xff] %v6254_v14   ;;  %v2552_v0 = vpop.f32.mrf.mxu2  ;;  %v2705_v62 = vmul.f32 %v7582_v47, %v2685_v21 }
 0x18a   : > { %v2601_v12 = vpop.f32.mrf.mxu3  ;;  %v2653_v33 = vpop.f32.mrf.mxu0  ;;  %351 = vst [vmem:[#allocation2 + $0x164] sm:$0x8] %v350_v15  ;;  %v1059_v54 = vrot.slane %v8015_v5, 4  ;;  %v1066_v25 = vor.u32 %v1065_v10, %v1063_v22  ;;  %v5230_v15 = vld [vmem:[#allocation2 + $0x12c] sm:$0xf0] }
 0x18b   : > { %v2602_v6 = vadd.f32 %v2601_v12, %v2552_v0  ;;  %v7638_v29 = vpop.f32.mrf.mxu1  ;;  %v2725_v32 = vadd.f32 %v7598_v19, %v2705_v62  ;;  %v6036_v12 = vld [vmem:[#allocation2 + $0x124] sm:$0xf]  ;;  %v5988_v62 = vld [vmem:[#allocation2 + $0x10c] sm:$0xf] }
 0x18c   : > { %3658 = vmatmul.bf16.gmra.mxu0 %v5409_v55  ;;  %v1067_v0 = vrot.slane %v1066_v25, 4  ;;  %v5233_v31 = vor.u32 %v6036_v12, %v5230_v15  ;;  %v8023_v12 = vld [vmem:[#allocation5_spill] sm:$0xff] }
 0x18d   : > { %v2651_v51 = vadd.f32 %v2650_v30, %v2602_v6  ;;  %v8016_v30 = vshll.u32 %v7334_v39, 16  ;;  %v2741_v55 = vmax.f32 %v2725_v32, 0.0  ;;  %v352_v32 = vld [vmem:[#allocation2 + $0x17c] sm:$0x8] }
 0x18e   : > { %3288 = vmatmul.bf16.gmra.mxu2 %v5221_v28  ;;  %3707 = vmatmul.bf16.gmra.mxu1 %v5413_v43  ;;  %v5420_v28 = vld [vmem:[#allocation2 + $0x108] sm:$0xf] }
 0x18f   : > { %v2686_v8 = vadd.f32 %v2651_v51, %v7341_v46  ;;  %3337 = vmatmul.bf16.gmra.mxu3 %v5225_v61  ;;  %v1060_v20 = vrot.slane %v8016_v30, 5  ;;  %v5422_v51 = vld [vmem:[#allocation2 + $0x114] sm:$0xf0]  ;;  %v5421_v30 = vor.u32 %v5989_v44, %v5420_v28  ;;  %v8024_v28 = vshll.u32 %v8023_v12, 16 }
 0x190   : > { %v5425_v10 = vor.u32 %v5988_v62, %v5422_v51 }
 0x191   : > { %v2706_v46 = vmul.f32 %v7582_v47, %v2686_v8  ;;  %v2555_v63 = vpop.f32.mrf.mxu2  ;;  %v1061_v14 = vor.u32 %v1060_v20, %v1059_v54  ;;  %v1172_v6 = vld [vmem:[#allocation2 + $0x164] sm:$0xf]  ;;  %v6038_v8 = vld [vmem:[#allocation2 + $0x130] sm:$0xf0]  ;;  %v6102_v20 = vld [vmem:[%s7925_s2 + $0x198] sm:$0xff] }
 0x192   : > { %v2604_v58 = vpop.f32.mrf.mxu3  ;;  %v2655_v53 = vpop.f32.mrf.mxu0  ;;  %v1173_v59 = vsel %vm6902_vm13, %v1067_v0, %v1172_v6  ;;  %4144 = vmatpush.bf16.msra.mxu3 %v6102_v20 }
 0x193   : > { %v2726_v7 = vadd.f32 %v7598_v19, %v2706_v46  ;;  %v2605_v39 = vadd.f32 %v2604_v58, %v2555_v63  ;;  %v7661_v26 = vpop.f32.mrf.mxu1  ;;  %v1062_v21 = vrot.slane %v1061_v14, 4  ;;  %1174 = vst [vmem:[#allocation2 + $0x164] sm:$0xf] %v1173_v59  ;;  %v5237_v14 = vor.u32 %v6038_v8, %v5236_v49 }
 0x194   : > { %v353_v58 = vsel %vm6835_vm10, 0, %v352_v32  ;;  %v5992_v32 = vld [vmem:[#allocation2 + $0x128] sm:$0xf0] }
 0x195   : > { %v2742_v56 = vmax.f32 %v2726_v7, 0.0  ;;  %v2654_v48 = vadd.f32 %v2653_v33, %v2605_v39  ;;  %v1064_v43 = vsel %vm6908_vm14, %v1062_v21, %v1063_v22  ;;  %v8020_v33 = vld [vmem:[#allocation4_spill] sm:$0xff]  ;;  %354 = vst [vmem:[#allocation2 + $0x17c] sm:$0x8] %v353_v58 }
 0x196   : > { %1171 = vst [vmem:[#allocation2 + $0x158] sm:$0xf] %v1064_v43  ;;  %v6110_v39 = vld [vmem:[%s7925_s2 + $0x1d8] sm:$0xff]  ;;  %v1072_v43 = vrot.slane %v8024_v28, 5 }
 0x197   : > { %v6259_v61 = vpack.c.bf16 %v2742_v56, %v2741_v55  ;;  %v2687_v5 = vadd.f32 %v2654_v48, %v8020_v33  ;;  %v6118_v21 = vld [vmem:[%s7925_s2 + $0x218] sm:$0xff]  ;;  %4193 = vmatpush.bf16.msra.mxu0 %v6110_v39  ;;  %v8021_v55 = vshrl.u32 %v7378_v45, 16  ;;  %v8022_v56 = vshll.u32 %v7378_v45, 16 }
 0x198   : > { %4242 = vmatpush.bf16.msra.mxu1 %v6118_v21  ;;  %v5248_v21 = vld [vmem:[#allocation2 + $0x140] sm:$0xf] }
 0x199   : > { %6361 = vst [vmem:[%s7624_s6 + $0x8] sm:$0xff] %v6259_v61   ;;  %v2557_v54 = vpop.f32.mrf.mxu2  ;;  %v2707_v25 = vmul.f32 %v7582_v47, %v2687_v5  ;;  %v1069_v48 = vrot.slane %v8022_v56, 5 }
 0x19a   : > { %v2606_v36 = vpop.f32.mrf.mxu3  ;;  %v2658_v22 = vpop.f32.mrf.mxu0 }
 0x19b   : > { %v2607_v46 = vadd.f32 %v2606_v36, %v2557_v54  ;;  %v7675_v63 = vpop.f32.mrf.mxu1  ;;  %v2727_v44 = vadd.f32 %v7598_v19, %v2707_v25  ;;  %v5242_v36 = vld [vmem:[#allocation2 + $0x144] sm:$0xf0]  ;;  %v5991_v25 = vld [vmem:[#allocation2 + $0x124] sm:$0xf] }
 0x19c   : > { %3663 = vmatmul.bf16.gmra.mxu0 %v5421_v30 }
 0x19d   : > { %v2656_v7 = vadd.f32 %v2655_v53, %v2607_v46  ;;  %v1068_v53 = vrot.slane %v8021_v55, 4  ;;  %v2743_v54 = vmax.f32 %v2727_v44, 0.0  ;;  %v5245_v44 = vor.u32 %v6039_v18, %v5242_v36 }
 0x19e   : > { %3293 = vmatmul.bf16.gmra.mxu2 %v5233_v31  ;;  %3712 = vmatmul.bf16.gmra.mxu1 %v5425_v10  ;;  %v5432_v10 = vld [vmem:[#allocation2 + $0x120] sm:$0xf] }
 0x19f   : > { %v2688_v0 = vadd.f32 %v2656_v7, %v7385_v27  ;;  %3342 = vmatmul.bf16.gmra.mxu3 %v5237_v14  ;;  %v8025_v27 = vshrl.u32 %v8023_v12, 16  ;;  %v1070_v59 = vor.u32 %v1069_v48, %v1068_v53  ;;  %v1176_v14 = vld [vmem:[#allocation2 + $0x17c] sm:$0xf]  ;;  %v5434_v7 = vld [vmem:[#allocation2 + $0x12c] sm:$0xf0]  ;;  %v5433_v56 = vor.u32 %v5992_v32, %v5432_v10 }
 0x1a0   : > { %v6101_v48 = vld [vmem:[%s7925_s2 + $0x190] sm:$0xff] }
 0x1a1   : > { %v2708_v6 = vmul.f32 %v7582_v47, %v2688_v0  ;;  %v2560_v61 = vpop.f32.mrf.mxu2  ;;  %v1074_v15 = vrot.slane %v8025_v27, 4  ;;  %v1071_v5 = vrot.slane %v1070_v59, 4  ;;  %v6041_v0 = vld [vmem:[#allocation2 + $0x148] sm:$0xf0]  ;;  %v6021_v12 = vld [vmem:[%s7925_s2 + $0x90] sm:$0xff]  ;;  %4145 = vmatpush.bf16.msra.mxu3 %v6101_v48 }
 0x1a2   : > { %v2609_v62 = vpop.f32.mrf.mxu3  ;;  %v2660_v51 = vpop.f32.mrf.mxu0  ;;  %3743 = vmatpush.bf16.msra.mxu2 %v6021_v12  ;;  %v5260_v12 = vld [vmem:[#allocation2 + $0x158] sm:$0xf] }
 0x1a3   : > { %v2728_v49 = vadd.f32 %v7598_v19, %v2708_v6  ;;  %v2610_v8 = vadd.f32 %v2609_v62, %v2560_v61  ;;  %v7698_v33 = vpop.f32.mrf.mxu1  ;;  %v1075_v45 = vor.u32 %v1074_v15, %v1072_v43  ;;  %v1073_v46 = vsel %vm6908_vm14, %v1071_v5, %v1072_v43  ;;  %v355_v61 = vld [vmem:[#allocation2 + $0x194] sm:$0x8] }
 0x1a4   : > { %1175 = vst [vmem:[#allocation2 + $0x170] sm:$0xf] %v1073_v46  ;;  %v5437_v6 = vor.u32 %v5991_v25, %v5434_v7  ;;  %v5249_v62 = vor.u32 %v6041_v0, %v5248_v21  ;;  %v356_v59 = vsel %vm6835_vm10, 0, %v355_v61  ;;  %v6117_v5 = vld [vmem:[%s7925_s2 + $0x210] sm:$0xff]  ;;  %v5444_v7 = vld [vmem:[#allocation2 + $0x138] sm:$0xf] }
 0x1a5   : > { %v2744_v30 = vmax.f32 %v2728_v49, 0.0  ;;  %v2659_v20 = vadd.f32 %v2658_v22, %v2610_v8  ;;  %v1076_v31 = vrot.slane %v1075_v45, 4  ;;  %v8026_v22 = vld [vmem:[#allocation6_spill] sm:$0xff]  ;;  %v6109_v45 = vld [vmem:[%s7925_s2 + $0x1d0] sm:$0xff]  ;;  %357 = vst [vmem:[#allocation2 + $0x194] sm:$0x8] %v356_v59  ;;  %4243 = vmatpush.bf16.msra.mxu1 %v6117_v5  ;;  %4146 = vmatpush.bf16.msra.mxu3 %v6100_v42 }
 0x1a6   : > { %4194 = vmatpush.bf16.msra.mxu0 %v6109_v45  ;;  %v5995_v21 = vld [vmem:[#allocation2 + $0x140] sm:$0xf0]  ;;  %v6020_v61 = vld [vmem:[%s7925_s2 + $0x88] sm:$0xff] }
 0x1a7   : > { %v6264_v58 = vpack.c.bf16 %v2744_v30, %v2743_v54  ;;  %v1177_v39 = vsel %vm6902_vm13, %v1076_v31, %v1176_v14  ;;  %v2689_v55 = vadd.f32 %v2659_v20, %v8026_v22  ;;  %v1081_v30 = vrot.slane %v804_v34, 5  ;;  %3744 = vmatpush.bf16.msra.mxu2 %v6020_v61 }
 0x1a8   : > { %1178 = vst [vmem:[#allocation2 + $0x17c] sm:$0xf] %v1177_v39  ;;  %v1083_v20 = vrot.slane %v801_v52, 4  ;;  %v6042_v52 = vld [vmem:[#allocation2 + $0x154] sm:$0xf] }
 0x1a9   : > { %6362 = vst [vmem:[%s7624_s6 + $0x10] sm:$0xff] %v6264_v58   ;;  %v2562_v53 = vpop.f32.mrf.mxu2  ;;  %v2709_v49 = vmul.f32 %v7582_v47, %v2689_v55  ;;  %v5254_v55 = vld [vmem:[#allocation2 + $0x15c] sm:$0xf0] }
 0x1aa   : > { %v2611_v28 = vpop.f32.mrf.mxu3  ;;  %v2663_v43 = vpop.f32.mrf.mxu0  ;;  %v1084_v46 = vor.u32 %v1083_v20, %v1081_v30  ;;  %v5257_v13 = vor.u32 %v6042_v52, %v5254_v55  ;;  %v5458_v52 = vld [vmem:[#allocation2 + $0x15c] sm:$0xf0] }
 0x1ab   : > { %v2612_v27 = vadd.f32 %v2611_v28, %v2562_v53  ;;  %v7712_v15 = vpop.f32.mrf.mxu1  ;;  %v2729_v18 = vadd.f32 %v7598_v19, %v2709_v49  ;;  %v5994_v53 = vld [vmem:[#allocation2 + $0x13c] sm:$0xf]  ;;  %v6044_v28 = vld [vmem:[#allocation2 + $0x160] sm:$0xf0] }
 0x1ac   : > { %3668 = vmatmul.bf16.gmra.mxu0 %v5433_v56  ;;  %v1085_v58 = vrot.slane %v1084_v46, 4  ;;  %v1180_v0 = vld [vmem:[#allocation2 + $0x194] sm:$0xf]  ;;  %v5446_v56 = vld [vmem:[#allocation2 + $0x144] sm:$0xf0]  ;;  %v5261_v45 = vor.u32 %v6044_v28, %v5260_v12  ;;  %v6099_v55 = vld [vmem:[%s7925_s2 + $0x180] sm:$0xff] }
 0x1ad   : > { %v2661_v8 = vadd.f32 %v2660_v51, %v2612_v27  ;;  %v1078_v51 = vrot.slane %v796_v2, 5  ;;  %v2745_v34 = vmax.f32 %v2729_v18, 0.0  ;;  %v5449_v59 = vor.u32 %v5994_v53, %v5446_v56  ;;  %v6019_v53 = vld [vmem:[%s7925_s2 + $0x80] sm:$0xff]  ;;  %4147 = vmatpush.bf16.msra.mxu3 %v6099_v55 }
 0x1ae   : > { %3298 = vmatmul.bf16.gmra.mxu2 %v5245_v44  ;;  %3717 = vmatmul.bf16.gmra.mxu1 %v5437_v6  ;;  %v1181_v48 = vsel %vm6902_vm13, %v1085_v58, %v1180_v0  ;;  %v5445_v6 = vor.u32 %v5995_v21, %v5444_v7  ;;  %v5998_v58 = vld [vmem:[#allocation2 + $0x158] sm:$0xf0]  ;;  %v5272_v7 = vld [vmem:[#allocation2 + $0x170] sm:$0xf] }
 0x1af   : > { %v2690_v54 = vadd.f32 %v2661_v8, %v7434_v23  ;;  %3347 = vmatmul.bf16.gmra.mxu3 %v5249_v62  ;;  %v1079_v31 = vor.u32 %v1078_v51, %v1077_v60  ;;  %1182 = vst [vmem:[#allocation2 + $0x194] sm:$0xf] %v1181_v48  ;;  %v6116_v60 = vld [vmem:[%s7925_s2 + $0x208] sm:$0xff]  ;;  %3745 = vmatpush.bf16.msra.mxu2 %v6019_v53 }
 0x1b0   : > { %4244 = vmatpush.bf16.msra.mxu1 %v6116_v60 }
 0x1b1   : > { %v2710_v23 = vmul.f32 %v7582_v47, %v2690_v54  ;;  %v2565_v36 = vpop.f32.mrf.mxu2  ;;  %v1080_v14 = vrot.slane %v1079_v31, 4  ;;  %v6108_v54 = vld [vmem:[%s7925_s2 + $0x1c8] sm:$0xff] }
 0x1b2   : > { %v2614_v10 = vpop.f32.mrf.mxu3  ;;  %v2665_v32 = vpop.f32.mrf.mxu0  ;;  %4195 = vmatpush.bf16.msra.mxu0 %v6108_v54 }
 0x1b3   : > { %v2730_v50 = vadd.f32 %v7598_v19, %v2710_v23  ;;  %v2615_v37 = vadd.f32 %v2614_v10, %v2565_v36  ;;  %v7735_v2 = vpop.f32.mrf.mxu1  ;;  %v1082_v39 = vsel %vm6908_vm14, %v1080_v14, %v1081_v30  ;;  %v5456_v14 = vld [vmem:[#allocation2 + $0x150] sm:$0xf] }
 0x1b4   : > { %1179 = vst [vmem:[#allocation2 + $0x188] sm:$0xf] %v1082_v39  ;;  %v6047_v39 = vld [vmem:[#allocation2 + $0x178] sm:$0xf0] }
 0x1b5   : > { %v2746_v25 = vmax.f32 %v2730_v50, 0.0  ;;  %v2664_v1 = vadd.f32 %v2663_v43, %v2615_v37  ;;  %v5273_v42 = vor.u32 %v6047_v39, %v5272_v7 }
 0x1b7   : > { %v6269_v22 = vpack.c.bf16 %v2746_v25, %v2745_v34  ;;  %v2691_v43 = vadd.f32 %v2664_v1, %v7467_v11  ;;  %v5266_v25 = vld [vmem:[#allocation2 + $0x174] sm:$0xf0]  ;;  %v5997_v1 = vld [vmem:[#allocation2 + $0x154] sm:$0xf] }
 0x1b8   : > { %v5461_v28 = vor.u32 %v5997_v1, %v5458_v52 }
 0x1b9   : > { %6363 = vst [vmem:[%s7624_s6 + $0x18] sm:$0xff] %v6269_v22   ;;  %v2567_v44 = vpop.f32.mrf.mxu2  ;;  %v2711_v11 = vmul.f32 %v7582_v47, %v2691_v43  ;;  %v5457_v22 = vor.u32 %v5998_v58, %v5456_v14  ;;  %v6107_v43 = vld [vmem:[%s7925_s2 + $0x1c0] sm:$0xff] }
 0x1ba   : > { %v2616_v27 = vpop.f32.mrf.mxu3  ;;  %v2668_v62 = vpop.f32.mrf.mxu0  ;;  %4196 = vmatpush.bf16.msra.mxu0 %v6107_v43 }
 0x1bb   : > { %v2617_v49 = vadd.f32 %v2616_v27, %v2567_v44  ;;  %v7749_v8 = vpop.f32.mrf.mxu1  ;;  %v2731_v30 = vadd.f32 %v7598_v19, %v2711_v11 }
 0x1bc   : > { %3673 = vmatmul.bf16.gmra.mxu0 %v5445_v6 }
 0x1bd   : > { %v2666_v5 = vadd.f32 %v2665_v32, %v2617_v49  ;;  %v2747_v46 = vmax.f32 %v2731_v30, 0.0 }
 0x1be   : > { %3303 = vmatmul.bf16.gmra.mxu2 %v5257_v13  ;;  %3722 = vmatmul.bf16.gmra.mxu1 %v5449_v59 }
 0x1bf   : > { %v2692_v51 = vadd.f32 %v2666_v5, %v7476_v24  ;;  %3352 = vmatmul.bf16.gmra.mxu3 %v5261_v45  ;;  %v6045_v24 = vld [vmem:[#allocation2 + $0x16c] sm:$0xf] }
 0x1c0   : > { %v5269_v12 = vor.u32 %v6045_v24, %v5266_v25 }
 0x1c1   : > { %v2712_v20 = vmul.f32 %v7582_v47, %v2692_v51  ;;  %v2570_v18 = vpop.f32.mrf.mxu2 }
 0x1c2   : > { %v2619_v23 = vpop.f32.mrf.mxu3  ;;  %v2670_v36 = vpop.f32.mrf.mxu0 }
 0x1c3   : > { %v2732_v31 = vadd.f32 %v7598_v19, %v2712_v20  ;;  %v2620_v10 = vadd.f32 %v2619_v23, %v2570_v18  ;;  %v7762_v32 = vpop.f32.mrf.mxu1  ;;  %v6048_v18 = vld [vmem:[#allocation2 + $0x184] sm:$0xf]  ;;  %v5468_v23 = vld [vmem:[#allocation2 + $0x168] sm:$0xf] }
 0x1c5   : > { %v2748_v50 = vmax.f32 %v2732_v31, 0.0  ;;  %v2669_v37 = vadd.f32 %v2668_v62, %v2620_v10  ;;  %v5278_v31 = vld [vmem:[#allocation2 + $0x18c] sm:$0xf0]  ;;  %v6000_v10 = vld [vmem:[#allocation2 + $0x16c] sm:$0xf] }
 0x1c6   : > { %v5281_v1 = vor.u32 %v6048_v18, %v5278_v31 }
 0x1c7   : > { %v6274_v34 = vpack.c.bf16 %v2748_v50, %v2747_v46  ;;  %v2693_v21 = vadd.f32 %v2669_v37, %v7485_v4  ;;  %v6115_v4 = vld [vmem:[%s7925_s2 + $0x200] sm:$0xff]  ;;  %v5470_v46 = vld [vmem:[#allocation2 + $0x174] sm:$0xf0]  ;;  %v5284_v50 = vld [vmem:[#allocation2 + $0x188] sm:$0xf] }
 0x1c8   : > { %4245 = vmatpush.bf16.msra.mxu1 %v6115_v4  ;;  %v6050_v37 = vld [vmem:[#allocation2 + $0x190] sm:$0xf0]  ;;  %v5473_v52 = vor.u32 %v6000_v10, %v5470_v46 }
 0x1c9   : > { %6364 = vst [vmem:[%s7624_s6 + $0x20] sm:$0xff] %v6274_v34   ;;  %v2572_v0 = vpop.f32.mrf.mxu2  ;;  %v2713_v61 = vmul.f32 %v7582_v47, %v2693_v21  ;;  %v5285_v21 = vor.u32 %v6050_v37, %v5284_v50 }
 0x1ca   : > { %v2621_v56 = vpop.f32.mrf.mxu3  ;;  %v2673_v48 = vpop.f32.mrf.mxu0 }
 0x1cb   : > { %v2622_v44 = vadd.f32 %v2621_v56, %v2572_v0  ;;  %v7778_v6 = vpop.f32.mrf.mxu1  ;;  %v2733_v13 = vadd.f32 %v7598_v19, %v2713_v61 }
 0x1cc   : > { %3678 = vmatmul.bf16.gmra.mxu0 %v5457_v22 }
 0x1cd   : > { %v2671_v27 = vadd.f32 %v2670_v36, %v2622_v44  ;;  %v2749_v51 = vmax.f32 %v2733_v13, 0.0 }
 0x1ce   : > { %3308 = vmatmul.bf16.gmra.mxu2 %v5269_v12  ;;  %3727 = vmatmul.bf16.gmra.mxu1 %v5461_v28 }
 0x1cf   : > { %v2694_v62 = vadd.f32 %v2671_v27, %v7502_v40  ;;  %3357 = vmatmul.bf16.gmra.mxu3 %v5273_v42  ;;  %v6001_v40 = vld [vmem:[#allocation2 + $0x170] sm:$0xf0]  ;;  %v5392_v27 = vld [vmem:[#allocation2 + $0xc8] sm:$0xf] }
 0x1d0   : > { %v5469_v58 = vor.u32 %v6001_v40, %v5468_v23 }
 0x1d1   : > { %v2714_v59 = vmul.f32 %v7582_v47, %v2694_v62  ;;  %v2575_v49 = vpop.f32.mrf.mxu2  ;;  %v6075_v62 = vld [vmem:[#allocation2 + $0xf4] sm:$0xf] }
 0x1d2   : > { %v2624_v45 = vpop.f32.mrf.mxu3  ;;  %v2675_v11 = vpop.f32.mrf.mxu0 }
 0x1d3   : > { %v2734_v5 = vadd.f32 %v7598_v19, %v2714_v59  ;;  %v2625_v54 = vadd.f32 %v2624_v45, %v2575_v49  ;;  %v7785_v60 = vpop.f32.mrf.mxu1  ;;  %v5981_v59 = vld [vmem:[#allocation2 + $0xd0] sm:$0xf0]  ;;  %v5632_v49 = vld [vmem:[#allocation2 + $0xf8] sm:$0xf]  ;;  %v6077_v45 = vld [vmem:[#allocation2 + $0x100] sm:$0xf0] }
 0x1d4   : > { %v5393_v23 = vor.u32 %v5981_v59, %v5392_v27  ;;  %v5633_v40 = vor.u32 %v6077_v45, %v5632_v49 }
 0x1d5   : > { %v2750_v30 = vmax.f32 %v2734_v5, 0.0  ;;  %v2674_v20 = vadd.f32 %v2673_v48, %v2625_v54  ;;  %v6076_v5 = vld [vmem:[#allocation2 + $0xf8] sm:$0xf0] }
 0x1d7   : > { %v6279_v36 = vpack.c.bf16 %v2750_v30, %v2749_v51  ;;  %v2695_v24 = vadd.f32 %v2674_v20, %v7517_v57 }
 0x1d9   : > { %6365 = vst [vmem:[%s7624_s6 + $0x28] sm:$0xff] %v6279_v36   ;;  %v2577_v14 = vpop.f32.mrf.mxu2  ;;  %v2715_v0 = vmul.f32 %v7582_v47, %v2695_v24 }
 0x1da   : > { %v2626_v34 = vpop.f32.mrf.mxu3  ;;  %v2678_v25 = vpop.f32.mrf.mxu0 }
 0x1db   : > { %v2627_v7 = vadd.f32 %v2626_v34, %v2577_v14  ;;  %v7789_v39 = vpop.f32.mrf.mxu1  ;;  %v2735_v57 = vadd.f32 %v7598_v19, %v2715_v0 }
 0x1dc   : > { %3683 = vmatmul.bf16.gmra.mxu0 %v5469_v58 }
 0x1dd   : > { %v2676_v22 = vadd.f32 %v2675_v11, %v2627_v7  ;;  %v2751_v44 = vmax.f32 %v2735_v57, 0.0  ;;  %v5624_v11 = vld [vmem:[#allocation2 + $0xf0] sm:$0xf]  ;;  %v5638_v57 = vld [vmem:[#allocation2 + $0x114] sm:$0xf0] }
 0x1de   : > { %3313 = vmatmul.bf16.gmra.mxu2 %v5281_v1  ;;  %3732 = vmatmul.bf16.gmra.mxu1 %v5473_v52  ;;  %v5625_v10 = vor.u32 %v6076_v5, %v5624_v11 }
 0x1df   : > { %v2696_v55 = vadd.f32 %v2676_v22, %v7532_v3  ;;  %3362 = vmatmul.bf16.gmra.mxu3 %v5285_v21  ;;  %v5626_v3 = vld [vmem:[#allocation2 + $0xfc] sm:$0xf0] }
 0x1e0   : > { %v5629_v30 = vor.u32 %v6075_v62, %v5626_v3 }
 0x1e1   : > { %v2716_v53 = vmul.f32 %v7582_v47, %v2696_v55  ;;  %v2580_v56 = vpop.f32.mrf.mxu2  ;;  %v5404_v55 = vld [vmem:[#allocation2 + $0xe0] sm:$0xf] }
 0x1e2   : > { %v2629_v48 = vpop.f32.mrf.mxu3  ;;  %v2680_v12 = vpop.f32.mrf.mxu0 }
 0x1e3   : > { %v2736_v28 = vadd.f32 %v7598_v19, %v2716_v53  ;;  %v2630_v43 = vadd.f32 %v2629_v48, %v2580_v56  ;;  %v7796_v4 = vpop.f32.mrf.mxu1  ;;  %v5984_v56 = vld [vmem:[#allocation2 + $0xe8] sm:$0xf0]  ;;  %v5644_v48 = vld [vmem:[#allocation2 + $0x110] sm:$0xf] }
 0x1e4   : > { %v5405_v27 = vor.u32 %v5984_v56, %v5404_v55 }
 0x1e5   : > { %v2752_v42 = vmax.f32 %v2736_v28, 0.0  ;;  %v2679_v61 = vadd.f32 %v2678_v25, %v2630_v43  ;;  %v6079_v28 = vld [vmem:[#allocation2 + $0x110] sm:$0xf0] }
 0x1e7   : > { %v6284_v13 = vpack.c.bf16 %v2752_v42, %v2751_v44  ;;  %v2697_v54 = vadd.f32 %v2679_v61, %v7543_v35 }
 0x1e9   : > { %6366 = vst [vmem:[%s7624_s6 + $0x30] sm:$0xff] %v6284_v13   ;;  %v2582_v51 = vpop.f32.mrf.mxu2  ;;  %v2717_v46 = vmul.f32 %v7582_v47, %v2697_v54 }
 0x1ea   : > { %v2631_v20 = vpop.f32.mrf.mxu3  ;;  %v3649_v18 = vpop.f32.mrf.mxu0 }
 0x1eb   : > { %v2632_v36 = vadd.f32 %v2631_v20, %v2582_v51  ;;  %v3698_v31 = vpop.f32.mrf.mxu1  ;;  %v2737_v35 = vadd.f32 %v7598_v19, %v2717_v46  ;;  %v5648_v46 = vld [vmem:[#allocation2 + $0x120] sm:$0xf] }
 0x1ec   : > { %4197 = vmatmul.bf16.vlgmr.msra.gmra.mxu0 %v5629_v30 }
 0x1ed   : > { %v2681_v50 = vadd.f32 %v2680_v12, %v2632_v36  ;;  %v2753_v21 = vmax.f32 %v2737_v35, 0.0  ;;  %v5636_v12 = vld [vmem:[#allocation2 + $0x108] sm:$0xf]  ;;  %v5987_v36 = vld [vmem:[#allocation2 + $0x100] sm:$0xf0] }
 0x1ee   : > { %3746 = vmatmul.bf16.vlgmr.msra.gmra.mxu2 %v5393_v23  ;;  %4246 = vmatmul.bf16.vlgmr.msra.gmra.mxu1 %v5633_v40  ;;  %v5637_v13 = vor.u32 %v6079_v28, %v5636_v12  ;;  %v6081_v23 = vld [vmem:[#allocation2 + $0x124] sm:$0xf]  ;;  %v5650_v40 = vld [vmem:[#allocation2 + $0x12c] sm:$0xf0]  ;;  %v5662_v12 = vld [vmem:[#allocation2 + $0x144] sm:$0xf0] }
 0x1ef   : > { %v2698_v37 = vadd.f32 %v2681_v50, %v7566_v41  ;;  %4148 = vmatmul.bf16.vlgmr.msra.gmra.mxu3 %v5625_v10  ;;  %v6078_v41 = vld [vmem:[#allocation2 + $0x10c] sm:$0xf]  ;;  %v6083_v10 = vld [vmem:[#allocation2 + $0x130] sm:$0xf0]  ;;  %v5990_v28 = vld [vmem:[#allocation2 + $0x118] sm:$0xf0] }
 0x1f0   : > { %v6082_v50 = vld [vmem:[#allocation2 + $0x128] sm:$0xf0] }
 0x1f1   : > { %v2718_v24 = vmul.f32 %v7582_v47, %v2698_v37  ;;  %v3279_v14 = vpop.f32.mrf.mxu2  ;;  %v6080_v47 = vld [vmem:[#allocation2 + $0x118] sm:$0xf0] }
 0x1f2   : > { %v3280_v58 = vadd.f32 %v3279_v14, %v7552_v38  ;;  %v3328_v34 = vpop.f32.mrf.mxu3  ;;  %v3651_v25 = vpop.f32.mrf.mxu0  ;;  %v5645_v62 = vor.u32 %v6080_v47, %v5644_v48  ;;  %v5428_v48 = vld [vmem:[#allocation2 + $0x110] sm:$0xf]  ;;  %v6084_v47 = vld [vmem:[#allocation2 + $0x13c] sm:$0xf] }
 0x1f3   : > { %v2738_v1 = vadd.f32 %v7598_v19, %v2718_v24  ;;  %v3700_v52 = vpop.f32.mrf.mxu1  ;;  %v5641_v19 = vor.u32 %v6078_v41, %v5638_v57  ;;  %v5653_v24 = vor.u32 %v6081_v23, %v5650_v40 }
 0x1f4   : > { %v3329_v7 = vadd.f32 %v3328_v34, %v3280_v58 }
 0x1f5   : > { %v2754_v0 = vmax.f32 %v2738_v1, 0.0 }
 0x1f6   : > { %v3650_v22 = vadd.f32 %v3649_v18, %v3329_v7  ;;  %v5416_v18 = vld [vmem:[#allocation2 + $0xf8] sm:$0xf] }
 0x1f7   : > { %v6289_v53 = vpack.c.bf16 %v2754_v0, %v2753_v21  ;;  %v5417_v34 = vor.u32 %v5987_v36, %v5416_v18 }
 0x1f8   : > { %v7806_v38 = vadd.f32 %v3698_v31, %v3650_v22  ;;  %v5656_v31 = vld [vmem:[#allocation2 + $0x128] sm:$0xf] }
 0x1f9   : > { %6367 = vst [vmem:[%s7624_s6 + $0x38] sm:$0xff] %v6289_v53   ;;  %v3281_v43 = vpop.f32.mrf.mxu2 }
 0x1fa   : > { %v3282_v44 = vadd.f32 %v3281_v43, %v7572_v9  ;;  %v3330_v42 = vpop.f32.mrf.mxu3  ;;  %v3654_v61 = vpop.f32.mrf.mxu0  ;;  %v5668_v43 = vld [vmem:[#allocation2 + $0x140] sm:$0xf] }
 0x1fb   : > { %v3703_v3 = vpop.f32.mrf.mxu1 }
 0x1fc   : > { %v3331_v59 = vadd.f32 %v3330_v42, %v3282_v44  ;;  %4202 = vmatmul.bf16.gmra.mxu0 %v5641_v19  ;;  %v6086_v19 = vld [vmem:[#allocation2 + $0x148] sm:$0xf0]  ;;  %v5660_v44 = vld [vmem:[#allocation2 + $0x138] sm:$0xf]  ;;  %v6085_v42 = vld [vmem:[#allocation2 + $0x140] sm:$0xf0] }
 0x1fe   : > { %v3652_v49 = vadd.f32 %v3651_v25, %v3331_v59  ;;  %3751 = vmatmul.bf16.gmra.mxu2 %v5405_v27  ;;  %4251 = vmatmul.bf16.gmra.mxu1 %v5645_v62  ;;  %v5657_v25 = vor.u32 %v6083_v10, %v5656_v31  ;;  %v5665_v62 = vor.u32 %v6084_v47, %v5662_v12  ;;  %v5440_v31 = vld [vmem:[#allocation2 + $0x128] sm:$0xf]  ;;  %v6087_v10 = vld [vmem:[#allocation2 + $0x154] sm:$0xf] }
 0x1ff   : > { %4153 = vmatmul.bf16.gmra.mxu3 %v5637_v13  ;;  %v5429_v59 = vor.u32 %v5990_v28, %v5428_v48 }
 0x200   : > { %v7810_v45 = vadd.f32 %v3700_v52, %v3652_v49  ;;  %v5649_v52 = vor.u32 %v6082_v50, %v5648_v46  ;;  %v5669_v49 = vor.u32 %v6086_v19, %v5668_v43  ;;  %v5674_v46 = vld [vmem:[#allocation2 + $0x15c] sm:$0xf0]  ;;  %v5993_v50 = vld [vmem:[#allocation2 + $0x130] sm:$0xf0]  ;;  %v6090_v19 = vld [vmem:[#allocation2 + $0x16c] sm:$0xf] }
 0x201   : > { %v3284_v11 = vpop.f32.mrf.mxu2  ;;  %v5452_v43 = vld [vmem:[#allocation2 + $0x140] sm:$0xf] }
 0x202   : > { %v3285_v5 = vadd.f32 %v3284_v11, %v7590_v16  ;;  %v3333_v54 = vpop.f32.mrf.mxu3  ;;  %v3656_v51 = vpop.f32.mrf.mxu0 }
 0x203   : > { %v3705_v9 = vpop.f32.mrf.mxu1 }
 0x204   : > { %v3334_v30 = vadd.f32 %v3333_v54, %v3285_v5  ;;  %v5661_v5 = vor.u32 %v6085_v42, %v5660_v44  ;;  %v5686_v44 = vld [vmem:[#allocation2 + $0x174] sm:$0xf0]  ;;  %v5996_v42 = vld [vmem:[#allocation2 + $0x148] sm:$0xf0] }
 0x206   : > { %v3655_v20 = vadd.f32 %v3654_v61, %v3334_v30 }
 0x208   : > { %v7813_v37 = vadd.f32 %v3703_v3, %v3655_v20 }
 0x209   : > { %v3286_v35 = vpop.f32.mrf.mxu2 }
 0x20a   : > { %v3287_v14 = vadd.f32 %v3286_v35, %v7618_v17  ;;  %v3335_v16 = vpop.f32.mrf.mxu3  ;;  %v3659_v58 = vpop.f32.mrf.mxu0  ;;  %v5680_v35 = vld [vmem:[#allocation2 + $0x158] sm:$0xf] }
 0x20b   : > { %v3708_v1 = vpop.f32.mrf.mxu1 }
 0x20c   : > { %v3336_v7 = vadd.f32 %v3335_v16, %v3287_v14  ;;  %4207 = vmatmul.bf16.gmra.mxu0 %v5653_v24  ;;  %v6089_v24 = vld [vmem:[#allocation2 + $0x160] sm:$0xf0]  ;;  %v5672_v14 = vld [vmem:[#allocation2 + $0x150] sm:$0xf]  ;;  %v6088_v16 = vld [vmem:[#allocation2 + $0x158] sm:$0xf0] }
 0x20e   : > { %v3657_v21 = vadd.f32 %v3656_v51, %v3336_v7  ;;  %3756 = vmatmul.bf16.gmra.mxu2 %v5417_v34  ;;  %4256 = vmatmul.bf16.gmra.mxu1 %v5657_v25  ;;  %v5677_v25 = vor.u32 %v6087_v10, %v5674_v46  ;;  %v5441_v7 = vor.u32 %v5993_v50, %v5440_v31 }
 0x20f   : > { %4158 = vmatmul.bf16.gmra.mxu3 %v5649_v52 }
 0x210   : > { %v7816_v0 = vadd.f32 %v3705_v9, %v3657_v21  ;;  %v5681_v21 = vor.u32 %v6089_v24, %v5680_v35  ;;  %v5464_v35 = vld [vmem:[#allocation2 + $0x158] sm:$0xf]  ;;  %v6093_v24 = vld [vmem:[#allocation2 + $0x184] sm:$0xf] }
 0x211   : > { %v3289_v22 = vpop.f32.mrf.mxu2 }
 0x212   : > { %v3290_v55 = vadd.f32 %v3289_v22, %v7638_v29  ;;  %v3338_v41 = vpop.f32.mrf.mxu3  ;;  %v3661_v57 = vpop.f32.mrf.mxu0 }
 0x213   : > { %v3710_v17 = vpop.f32.mrf.mxu1 }
 0x214   : > { %v3339_v53 = vadd.f32 %v3338_v41, %v3290_v55  ;;  %v5673_v55 = vor.u32 %v6088_v16, %v5672_v14  ;;  %v5698_v14 = vld [vmem:[#allocation2 + $0x18c] sm:$0xf0]  ;;  %v5999_v16 = vld [vmem:[#allocation2 + $0x160] sm:$0xf0] }
 0x216   : > { %v3660_v56 = vadd.f32 %v3659_v58, %v3339_v53 }
 0x218   : > { %v7819_v61 = vadd.f32 %v3708_v1, %v3660_v56 }
 0x219   : > { %v3291_v27 = vpop.f32.mrf.mxu2 }
 0x21a   : > { %v3292_v3 = vadd.f32 %v3291_v27, %v7661_v26  ;;  %v3340_v29 = vpop.f32.mrf.mxu3  ;;  %v3664_v13 = vpop.f32.mrf.mxu0  ;;  %v5692_v27 = vld [vmem:[#allocation2 + $0x170] sm:$0xf] }
 0x21b   : > { %v3713_v11 = vpop.f32.mrf.mxu1 }
 0x21c   : > { %v3341_v54 = vadd.f32 %v3340_v29, %v3292_v3  ;;  %4212 = vmatmul.bf16.gmra.mxu0 %v5665_v62  ;;  %v6092_v62 = vld [vmem:[#allocation2 + $0x178] sm:$0xf0]  ;;  %v5684_v3 = vld [vmem:[#allocation2 + $0x168] sm:$0xf]  ;;  %v6091_v29 = vld [vmem:[#allocation2 + $0x170] sm:$0xf0] }
 0x21e   : > { %v3662_v51 = vadd.f32 %v3661_v57, %v3341_v54  ;;  %3761 = vmatmul.bf16.gmra.mxu2 %v5429_v59  ;;  %4261 = vmatmul.bf16.gmra.mxu1 %v5669_v49  ;;  %v5689_v49 = vor.u32 %v6090_v19, %v5686_v44  ;;  %v5453_v54 = vor.u32 %v5996_v42, %v5452_v43 }
 0x21f   : > { %4163 = vmatmul.bf16.gmra.mxu3 %v5661_v5 }
 0x220   : > { %v7822_v9 = vadd.f32 %v3710_v17, %v3662_v51  ;;  %v5693_v51 = vor.u32 %v6092_v62, %v5692_v27  ;;  %v5476_v27 = vld [vmem:[#allocation2 + $0x170] sm:$0xf]  ;;  %v6096_v62 = vld [vmem:[#allocation2 + $0x19c] sm:$0xf] }
 0x221   : > { %v3294_v30 = vpop.f32.mrf.mxu2 }
 0x222   : > { %v3295_v20 = vadd.f32 %v3294_v30, %v7675_v63  ;;  %v3343_v18 = vpop.f32.mrf.mxu3  ;;  %v3666_v23 = vpop.f32.mrf.mxu0 }
 0x223   : > { %v3715_v26 = vpop.f32.mrf.mxu1 }
 0x224   : > { %v3344_v40 = vadd.f32 %v3343_v18, %v3295_v20  ;;  %v5685_v20 = vor.u32 %v6091_v29, %v5684_v3  ;;  %v5710_v3 = vld [vmem:[#allocation2 + $0x1a4] sm:$0xf0]  ;;  %v6002_v29 = vld [vmem:[#allocation2 + $0x178] sm:$0xf0] }
 0x226   : > { %v3665_v36 = vadd.f32 %v3664_v13, %v3344_v40 }
 0x228   : > { %v7825_v58 = vadd.f32 %v3713_v11, %v3665_v36 }
 0x229   : > { %v3296_v34 = vpop.f32.mrf.mxu2 }
 0x22a   : > { %v3297_v1 = vadd.f32 %v3296_v34, %v7698_v33  ;;  %v3345_v63 = vpop.f32.mrf.mxu3  ;;  %v3669_v52 = vpop.f32.mrf.mxu0  ;;  %v5704_v34 = vld [vmem:[#allocation2 + $0x188] sm:$0xf] }
 0x22b   : > { %v3718_v22 = vpop.f32.mrf.mxu1 }
 0x22c   : > { %v3346_v41 = vadd.f32 %v3345_v63, %v3297_v1  ;;  %4217 = vmatmul.bf16.gmra.mxu0 %v5677_v25  ;;  %v6095_v25 = vld [vmem:[#allocation2 + $0x190] sm:$0xf0]  ;;  %v5696_v1 = vld [vmem:[#allocation2 + $0x180] sm:$0xf]  ;;  %v6094_v63 = vld [vmem:[#allocation2 + $0x188] sm:$0xf0] }
 0x22e   : > { %v3667_v57 = vadd.f32 %v3666_v23, %v3346_v41  ;;  %3766 = vmatmul.bf16.gmra.mxu2 %v5441_v7  ;;  %4266 = vmatmul.bf16.gmra.mxu1 %v5681_v21  ;;  %v5701_v21 = vor.u32 %v6093_v24, %v5698_v14  ;;  %v5465_v41 = vor.u32 %v5999_v16, %v5464_v35 }
 0x22f   : > { %4168 = vmatmul.bf16.gmra.mxu3 %v5673_v55 }
 0x230   : > { %v7828_v17 = vadd.f32 %v3715_v26, %v3667_v57  ;;  %v5705_v57 = vor.u32 %v6095_v25, %v5704_v34 }
 0x231   : > { %v3299_v53 = vpop.f32.mrf.mxu2 }
 0x232   : > { %v3300_v56 = vadd.f32 %v3299_v53, %v7712_v15  ;;  %v3348_v48 = vpop.f32.mrf.mxu3  ;;  %v3671_v47 = vpop.f32.mrf.mxu0 }
 0x233   : > { %v3720_v33 = vpop.f32.mrf.mxu1 }
 0x234   : > { %v3349_v12 = vadd.f32 %v3348_v48, %v3300_v56  ;;  %v5697_v56 = vor.u32 %v6094_v63, %v5696_v1 }
 0x236   : > { %v3670_v28 = vadd.f32 %v3669_v52, %v3349_v12 }
 0x238   : > { %v7831_v13 = vadd.f32 %v3718_v22, %v3670_v28 }
 0x239   : > { %v3301_v59 = vpop.f32.mrf.mxu2 }
 0x23a   : > { %v3302_v11 = vadd.f32 %v3301_v59, %v7735_v2  ;;  %v3350_v15 = vpop.f32.mrf.mxu3  ;;  %v3674_v5 = vpop.f32.mrf.mxu0  ;;  %v5716_v59 = vld [vmem:[#allocation2 + $0x1a0] sm:$0xf] }
 0x23b   : > { %v3723_v30 = vpop.f32.mrf.mxu1 }
 0x23c   : > { %v3351_v18 = vadd.f32 %v3350_v15, %v3302_v11  ;;  %4222 = vmatmul.bf16.gmra.mxu0 %v5689_v49  ;;  %v6098_v49 = vld [vmem:[#allocation2 + $0x1a8] sm:$0xf0]  ;;  %v5708_v11 = vld [vmem:[#allocation2 + $0x198] sm:$0xf]  ;;  %v6097_v15 = vld [vmem:[#allocation2 + $0x1a0] sm:$0xf0] }
 0x23e   : > { %v3672_v23 = vadd.f32 %v3671_v47, %v3351_v18  ;;  %3771 = vmatmul.bf16.gmra.mxu2 %v5453_v54  ;;  %4271 = vmatmul.bf16.gmra.mxu1 %v5693_v51  ;;  %v5713_v51 = vor.u32 %v6096_v62, %v5710_v3  ;;  %v5477_v18 = vor.u32 %v6002_v29, %v5476_v27  ;;  %v7864_v27 = vld [vmem:[%s7927_s4] ss:$0 sm:$0xff] }
 0x23f   : > { %4173 = vmatmul.bf16.gmra.mxu3 %v5685_v20 }
 0x240   : > { %v7834_v26 = vadd.f32 %v3720_v33, %v3672_v23  ;;  %v5717_v23 = vor.u32 %v6098_v49, %v5716_v59 }
 0x241   : > { %v3304_v40 = vpop.f32.mrf.mxu2 }
 0x242   : > { %v3305_v36 = vadd.f32 %v3304_v40, %v7749_v8  ;;  %v3353_v31 = vpop.f32.mrf.mxu3  ;;  %v3676_v10 = vpop.f32.mrf.mxu0 }
 0x243   : > { %v3725_v2 = vpop.f32.mrf.mxu1 }
 0x244   : > { %v3354_v46 = vadd.f32 %v3353_v31, %v3305_v36  ;;  %v5709_v36 = vor.u32 %v6097_v15, %v5708_v11 }
 0x246   : > { %v3675_v50 = vadd.f32 %v3674_v5, %v3354_v46 }
 0x248   : > { %v7837_v52 = vadd.f32 %v3723_v30, %v3675_v50 }
 0x249   : > { %v3306_v7 = vpop.f32.mrf.mxu2 }
 0x24a   : > { %v3307_v22 = vadd.f32 %v3306_v7, %v7762_v32  ;;  %v3355_v8 = vpop.f32.mrf.mxu3  ;;  %v3679_v55 = vpop.f32.mrf.mxu0 }
 0x24b   : > { %v3728_v53 = vpop.f32.mrf.mxu1 }
 0x24c   : > { %v3356_v48 = vadd.f32 %v3355_v8, %v3307_v22  ;;  %4227 = vmatmul.bf16.gmra.mxu0 %v5701_v21 }
 0x24e   : > { %v3677_v47 = vadd.f32 %v3676_v10, %v3356_v48  ;;  %3776 = vmatmul.bf16.gmra.mxu2 %v5465_v41  ;;  %4276 = vmatmul.bf16.gmra.mxu1 %v5705_v57 }
 0x24f   : > { %4178 = vmatmul.bf16.gmra.mxu3 %v5697_v56 }
 0x250   : > { %v7840_v33 = vadd.f32 %v3725_v2, %v3677_v47 }
 0x251   : > { %v3309_v12 = vpop.f32.mrf.mxu2 }
 0x252   : > { %v3310_v28 = vadd.f32 %v3309_v12, %v7778_v6  ;;  %v3358_v43 = vpop.f32.mrf.mxu3  ;;  %v3681_v19 = vpop.f32.mrf.mxu0 }
 0x253   : > { %v3730_v32 = vpop.f32.mrf.mxu1 }
 0x254   : > { %v3359_v44 = vadd.f32 %v3358_v43, %v3310_v28 }
 0x256   : > { %v3680_v42 = vadd.f32 %v3679_v55, %v3359_v44 }
 0x258   : > { %v7843_v5 = vadd.f32 %v3728_v53, %v3680_v42 }
 0x259   : > { %v3311_v54 = vpop.f32.mrf.mxu2 }
 0x25a   : > { %v3312_v30 = vadd.f32 %v3311_v54, %v7785_v60  ;;  %v3360_v6 = vpop.f32.mrf.mxu3  ;;  %v3684_v20 = vpop.f32.mrf.mxu0 }
 0x25b   : > { %v3733_v40 = vpop.f32.mrf.mxu1 }
 0x25c   : > { %v3361_v31 = vadd.f32 %v3360_v6, %v3312_v30  ;;  %4232 = vmatmul.bf16.gmra.mxu0 %v5713_v51 }
 0x25e   : > { %v3682_v10 = vadd.f32 %v3681_v19, %v3361_v31  ;;  %3781 = vmatmul.bf16.gmra.mxu2 %v5477_v18  ;;  %4281 = vmatmul.bf16.gmra.mxu1 %v5717_v23 }
 0x25f   : > { %4183 = vmatmul.bf16.gmra.mxu3 %v5709_v36 }
 0x260   : > { %v7846_v2 = vadd.f32 %v3730_v32, %v3682_v10 }
 0x261   : > { %v3314_v46 = vpop.f32.mrf.mxu2 }
 0x262   : > { %v3315_v50 = vadd.f32 %v3314_v46, %v7789_v39  ;;  %v3363_v35 = vpop.f32.mrf.mxu3  ;;  %v3686_v24 = vpop.f32.mrf.mxu0 }
 0x263   : > { %v3735_v60 = vpop.f32.mrf.mxu1 }
 0x264   : > { %v3364_v14 = vadd.f32 %v3363_v35, %v3315_v50 }
 0x266   : > { %v3685_v16 = vadd.f32 %v3684_v20, %v3364_v14 }
 0x268   : > { %v7849_v34 = vadd.f32 %v3733_v40, %v3685_v16 }
 0x269   : > { %v3316_v25 = vpop.f32.mrf.mxu2 }
 0x26a   : > { %v3317_v1 = vadd.f32 %v3316_v25, %v7796_v4  ;;  %v3365_v63 = vpop.f32.mrf.mxu3  ;;  %v4198_v7 = vpop.f32.mrf.mxu0  ;;  %v7858_v4 = vld [vmem:[%s7926_s3] ss:$0 sm:$0xff] }
 0x26b   : > { %v4247_v21 = vpop.f32.mrf.mxu1 }
 0x26c   : > { %v3366_v22 = vadd.f32 %v3365_v63, %v3317_v1 }
 0x26e   : > { %v3687_v8 = vadd.f32 %v3686_v24, %v3366_v22 }
 0x270   : > { %v7852_v55 = vadd.f32 %v3735_v60, %v3687_v8 }
 0x271   : > { %v3747_v41 = vpop.f32.mrf.mxu2 }
 0x272   : > { %v4149_v57 = vpop.f32.mrf.mxu3  ;;  %v4200_v39 = vpop.f32.mrf.mxu0  ;;  %v3748_v47 = vadd.f32 %v3747_v41, %v7806_v38 }
 0x273   : > { %v4199_v53 = vadd.f32 %v4198_v7, %v4149_v57  ;;  %v4249_v56 = vpop.f32.mrf.mxu1 }
 0x275   : > { %v4248_v48 = vadd.f32 %v4247_v21, %v4199_v53 }
 0x277   : > { %v4287_v12 = vadd.f32 %v4248_v48, %v3748_v47 }
 0x279   : > { %v3749_v28 = vpop.f32.mrf.mxu2  ;;  %v4307_v42 = vmul.f32 %v7858_v4, %v4287_v12 }
 0x27a   : > { %v4151_v43 = vpop.f32.mrf.mxu3  ;;  %v4203_v19 = vpop.f32.mrf.mxu0  ;;  %v3750_v38 = vadd.f32 %v3749_v28, %v7810_v45 }
 0x27b   : > { %v4201_v32 = vadd.f32 %v4200_v39, %v4151_v43  ;;  %v4252_v44 = vpop.f32.mrf.mxu1  ;;  %v4327_v29 = vadd.f32 %v7864_v27, %v4307_v42 }
 0x27d   : > { %v4250_v62 = vadd.f32 %v4249_v56, %v4201_v32  ;;  %v4343_v6 = vmax.f32 %v4327_v29, 0.0 }
 0x27f   : > { %v4288_v3 = vadd.f32 %v4250_v62, %v3750_v38 }
 0x281   : > { %v4308_v59 = vmul.f32 %v7858_v4, %v4288_v3  ;;  %v3752_v49 = vpop.f32.mrf.mxu2 }
 0x282   : > { %v4154_v11 = vpop.f32.mrf.mxu3  ;;  %v4205_v15 = vpop.f32.mrf.mxu0  ;;  %v3753_v45 = vadd.f32 %v3752_v49, %v7813_v37 }
 0x283   : > { %v4328_v54 = vadd.f32 %v7864_v27, %v4308_v59  ;;  %v4204_v51 = vadd.f32 %v4203_v19, %v4154_v11  ;;  %v4254_v30 = vpop.f32.mrf.mxu1 }
 0x285   : > { %v4344_v20 = vmax.f32 %v4328_v54, 0.0  ;;  %v4253_v18 = vadd.f32 %v4252_v44, %v4204_v51 }
 0x287   : > { %v6294_v23 = vpack.c.bf16 %v4344_v20, %v4343_v6  ;;  %v4289_v40 = vadd.f32 %v4253_v18, %v3753_v45 }
 0x289   : > { %6368 = vst [vmem:[%s7624_s6 + $0x40] sm:$0xff] %v6294_v23   ;;  %v3754_v36 = vpop.f32.mrf.mxu2  ;;  %v4309_v35 = vmul.f32 %v7858_v4, %v4289_v40 }
 0x28a   : > { %v4156_v31 = vpop.f32.mrf.mxu3  ;;  %v4208_v10 = vpop.f32.mrf.mxu0  ;;  %v3755_v24 = vadd.f32 %v3754_v36, %v7816_v0 }
 0x28b   : > { %v4206_v46 = vadd.f32 %v4205_v15, %v4156_v31  ;;  %v4257_v50 = vpop.f32.mrf.mxu1  ;;  %v4329_v16 = vadd.f32 %v7864_v27, %v4309_v35 }
 0x28d   : > { %v4255_v60 = vadd.f32 %v4254_v30, %v4206_v46  ;;  %v4345_v8 = vmax.f32 %v4329_v16, 0.0 }
 0x28f   : > { %v4290_v14 = vadd.f32 %v4255_v60, %v3755_v24 }
 0x291   : > { %v4310_v25 = vmul.f32 %v7858_v4, %v4290_v14  ;;  %v3757_v1 = vpop.f32.mrf.mxu2 }
 0x292   : > { %v4159_v37 = vpop.f32.mrf.mxu3  ;;  %v4210_v63 = vpop.f32.mrf.mxu0  ;;  %v3758_v0 = vadd.f32 %v3757_v1, %v7819_v61 }
 0x293   : > { %v4330_v7 = vadd.f32 %v7864_v27, %v4310_v25  ;;  %v4209_v21 = vadd.f32 %v4208_v10, %v4159_v37  ;;  %v4259_v22 = vpop.f32.mrf.mxu1 }
 0x295   : > { %v4346_v41 = vmax.f32 %v4330_v7, 0.0  ;;  %v4258_v57 = vadd.f32 %v4257_v50, %v4209_v21 }
 0x297   : > { %v6299_v39 = vpack.c.bf16 %v4346_v41, %v4345_v8  ;;  %v4291_v53 = vadd.f32 %v4258_v57, %v3758_v0 }
 0x299   : > { %6369 = vst [vmem:[%s7624_s6 + $0x48] sm:$0xff] %v6299_v39   ;;  %v3759_v56 = vpop.f32.mrf.mxu2  ;;  %v4311_v43 = vmul.f32 %v7858_v4, %v4291_v53 }
 0x29a   : > { %v4161_v48 = vpop.f32.mrf.mxu3  ;;  %v4213_v47 = vpop.f32.mrf.mxu0  ;;  %v3760_v19 = vadd.f32 %v3759_v56, %v7822_v9 }
 0x29b   : > { %v4211_v12 = vadd.f32 %v4210_v63, %v4161_v48  ;;  %v4262_v28 = vpop.f32.mrf.mxu1  ;;  %v4331_v42 = vadd.f32 %v7864_v27, %v4311_v43 }
 0x29d   : > { %v4260_v32 = vadd.f32 %v4259_v22, %v4211_v12  ;;  %v4347_v11 = vmax.f32 %v4331_v42, 0.0 }
 0x29f   : > { %v4292_v44 = vadd.f32 %v4260_v32, %v3760_v19 }
 0x2a1   : > { %v4312_v38 = vmul.f32 %v7858_v4, %v4292_v44  ;;  %v3762_v62 = vpop.f32.mrf.mxu2 }
 0x2a2   : > { %v4164_v61 = vpop.f32.mrf.mxu3  ;;  %v4215_v3 = vpop.f32.mrf.mxu0  ;;  %v3763_v9 = vadd.f32 %v3762_v62, %v7825_v58 }
 0x2a3   : > { %v4332_v29 = vadd.f32 %v7864_v27, %v4312_v38  ;;  %v4214_v59 = vadd.f32 %v4213_v47, %v4164_v61  ;;  %v4264_v49 = vpop.f32.mrf.mxu1 }
 0x2a5   : > { %v4348_v15 = vmax.f32 %v4332_v29, 0.0  ;;  %v4263_v54 = vadd.f32 %v4262_v28, %v4214_v59 }
 0x2a7   : > { %v6304_v51 = vpack.c.bf16 %v4348_v15, %v4347_v11  ;;  %v4293_v30 = vadd.f32 %v4263_v54, %v3763_v9 }
 0x2a9   : > { %6370 = vst [vmem:[%s7624_s6 + $0x50] sm:$0xff] %v6304_v51   ;;  %v3764_v6 = vpop.f32.mrf.mxu2  ;;  %v4313_v40 = vmul.f32 %v7858_v4, %v4293_v30 }
 0x2aa   : > { %v4166_v20 = vpop.f32.mrf.mxu3  ;;  %v4218_v18 = vpop.f32.mrf.mxu0  ;;  %v3765_v36 = vadd.f32 %v3764_v6, %v7828_v17 }
 0x2ab   : > { %v4216_v23 = vadd.f32 %v4215_v3, %v4166_v20  ;;  %v4267_v45 = vpop.f32.mrf.mxu1  ;;  %v4333_v46 = vadd.f32 %v7864_v27, %v4313_v40 }
 0x2ad   : > { %v4265_v31 = vadd.f32 %v4264_v49, %v4216_v23  ;;  %v4349_v25 = vmax.f32 %v4333_v46, 0.0 }
 0x2af   : > { %v4294_v10 = vadd.f32 %v4265_v31, %v3765_v36 }
 0x2b1   : > { %v4314_v50 = vmul.f32 %v7858_v4, %v4294_v10  ;;  %v3767_v35 = vpop.f32.mrf.mxu2 }
 0x2b2   : > { %v4169_v58 = vpop.f32.mrf.mxu3  ;;  %v4220_v24 = vpop.f32.mrf.mxu0  ;;  %v3768_v17 = vadd.f32 %v3767_v35, %v7831_v13 }
 0x2b3   : > { %v4334_v60 = vadd.f32 %v7864_v27, %v4314_v50  ;;  %v4219_v14 = vadd.f32 %v4218_v18, %v4169_v58  ;;  %v4269_v16 = vpop.f32.mrf.mxu1 }
 0x2b5   : > { %v4350_v1 = vmax.f32 %v4334_v60, 0.0  ;;  %v4268_v37 = vadd.f32 %v4267_v45, %v4219_v14 }
 0x2b7   : > { %v6309_v63 = vpack.c.bf16 %v4350_v1, %v4349_v25  ;;  %v4295_v7 = vadd.f32 %v4268_v37, %v3768_v17 }
 0x2b9   : > { %6371 = vst [vmem:[%s7624_s6 + $0x58] sm:$0xff] %v6309_v63   ;;  %v3769_v21 = vpop.f32.mrf.mxu2  ;;  %v4315_v39 = vmul.f32 %v7858_v4, %v4295_v7 }
 0x2ba   : > { %v4171_v22 = vpop.f32.mrf.mxu3  ;;  %v4223_v8 = vpop.f32.mrf.mxu0  ;;  %v3770_v0 = vadd.f32 %v3769_v21, %v7834_v26 }
 0x2bb   : > { %v4221_v41 = vadd.f32 %v4220_v24, %v4171_v22  ;;  %v4272_v57 = vpop.f32.mrf.mxu1  ;;  %v4335_v48 = vadd.f32 %v7864_v27, %v4315_v39 }
 0x2bd   : > { %v4270_v53 = vadd.f32 %v4269_v16, %v4221_v41  ;;  %v4351_v44 = vmax.f32 %v4335_v48, 0.0 }
 0x2bf   : > { %v4296_v56 = vadd.f32 %v4270_v53, %v3770_v0 }
 0x2c1   : > { %v4316_v47 = vmul.f32 %v7858_v4, %v4296_v56  ;;  %v3772_v12 = vpop.f32.mrf.mxu2 }
 0x2c2   : > { %v4174_v13 = vpop.f32.mrf.mxu3  ;;  %v4225_v28 = vpop.f32.mrf.mxu0  ;;  %v3773_v26 = vadd.f32 %v3772_v12, %v7837_v52 }
 0x2c3   : > { %v4336_v43 = vadd.f32 %v7864_v27, %v4316_v47  ;;  %v4224_v19 = vadd.f32 %v4223_v8, %v4174_v13  ;;  %v4274_v32 = vpop.f32.mrf.mxu1 }
 0x2c5   : > { %v4352_v42 = vmax.f32 %v4336_v43, 0.0  ;;  %v4273_v38 = vadd.f32 %v4272_v57, %v4224_v19 }
 0x2c7   : > { %v6314_v62 = vpack.c.bf16 %v4352_v42, %v4351_v44  ;;  %v4297_v61 = vadd.f32 %v4273_v38, %v3773_v26 }
 0x2c9   : > { %6372 = vst [vmem:[%s7624_s6 + $0x60] sm:$0xff] %v6314_v62   ;;  %v3774_v3 = vpop.f32.mrf.mxu2  ;;  %v4317_v11 = vmul.f32 %v7858_v4, %v4297_v61 }
 0x2ca   : > { %v4176_v29 = vpop.f32.mrf.mxu3  ;;  %v4228_v49 = vpop.f32.mrf.mxu0  ;;  %v3775_v15 = vadd.f32 %v3774_v3, %v7840_v33 }
 0x2cb   : > { %v4226_v59 = vadd.f32 %v4225_v28, %v4176_v29  ;;  %v4277_v51 = vpop.f32.mrf.mxu1  ;;  %v4337_v30 = vadd.f32 %v7864_v27, %v4317_v11 }
 0x2cd   : > { %v4275_v54 = vadd.f32 %v4274_v32, %v4226_v59  ;;  %v4353_v45 = vmax.f32 %v4337_v30, 0.0 }
 0x2cf   : > { %v4298_v9 = vadd.f32 %v4275_v54, %v3775_v15 }
 0x2d1   : > { %v4318_v6 = vmul.f32 %v7858_v4, %v4298_v9  ;;  %v3777_v20 = vpop.f32.mrf.mxu2 }
 0x2d2   : > { %v4179_v52 = vpop.f32.mrf.mxu3  ;;  %v4230_v31 = vpop.f32.mrf.mxu0  ;;  %v3778_v33 = vadd.f32 %v3777_v20, %v7843_v5 }
 0x2d3   : > { %v4338_v18 = vadd.f32 %v7864_v27, %v4318_v6  ;;  %v4229_v23 = vadd.f32 %v4228_v49, %v4179_v52  ;;  %v4279_v46 = vpop.f32.mrf.mxu1 }
 0x2d5   : > { %v4354_v40 = vmax.f32 %v4338_v18, 0.0  ;;  %v4278_v36 = vadd.f32 %v4277_v51, %v4229_v23 }
 0x2d7   : > { %v6319_v10 = vpack.c.bf16 %v4354_v40, %v4353_v45  ;;  %v4299_v50 = vadd.f32 %v4278_v36, %v3778_v33 }
 0x2d9   : > { %6373 = vst [vmem:[%s7624_s6 + $0x68] sm:$0xff] %v6319_v10   ;;  %v3779_v35 = vpop.f32.mrf.mxu2  ;;  %v4319_v60 = vmul.f32 %v7858_v4, %v4299_v50 }
 0x2da   : > { %v4181_v58 = vpop.f32.mrf.mxu3  ;;  %v3780_v14 = vadd.f32 %v3779_v35, %v7846_v2  ;;  %v4233_v1 = vpop.f32.mrf.mxu0 }
 0x2db   : > { %v4231_v24 = vadd.f32 %v4230_v31, %v4181_v58  ;;  %v4339_v37 = vadd.f32 %v7864_v27, %v4319_v60  ;;  %v4282_v5 = vpop.f32.mrf.mxu1 }
 0x2dd   : > { %v4280_v16 = vadd.f32 %v4279_v46, %v4231_v24  ;;  %v4355_v8 = vmax.f32 %v4339_v37, 0.0 }
 0x2df   : > { %v4300_v25 = vadd.f32 %v4280_v16, %v3780_v14 }
 0x2e1   : > { %v4320_v63 = vmul.f32 %v7858_v4, %v4300_v25  ;;  %v3782_v17 = vpop.f32.mrf.mxu2 }
 0x2e2   : > { %v4184_v7 = vpop.f32.mrf.mxu3  ;;  %v3783_v2 = vadd.f32 %v3782_v17, %v7849_v34  ;;  %v4235_v53 = vpop.f32.mrf.mxu0 }
 0x2e3   : > { %v4340_v21 = vadd.f32 %v7864_v27, %v4320_v63  ;;  %v4234_v22 = vadd.f32 %v4233_v1, %v4184_v7  ;;  %v4284_v12 = vpop.f32.mrf.mxu1 }
 0x2e5   : > { %v4356_v41 = vmax.f32 %v4340_v21, 0.0  ;;  %v4283_v57 = vadd.f32 %v4282_v5, %v4234_v22 }
 0x2e7   : > { %v6324_v39 = vpack.c.bf16 %v4356_v41, %v4355_v8  ;;  %v4301_v0 = vadd.f32 %v4283_v57, %v3783_v2 }
 0x2e9   : > { %6374 = vst [vmem:[%s7624_s6 + $0x70] sm:$0xff] %v6324_v39   ;;  %v3784_v56 = vpop.f32.mrf.mxu2  ;;  %v4321_v13 = vmul.f32 %v7858_v4, %v4301_v0 }
 0x2ea   : > { %v4186_v48 = vpop.f32.mrf.mxu3  ;;  %v3785_v28 = vadd.f32 %v3784_v56, %v7852_v55 }
 0x2eb   : > { %v4236_v47 = vadd.f32 %v4235_v53, %v4186_v48  ;;  %v4341_v32 = vadd.f32 %v7864_v27, %v4321_v13 }
 0x2ed   : > { %v4285_v43 = vadd.f32 %v4284_v12, %v4236_v47  ;;  %v4357_v42 = vmax.f32 %v4341_v32, 0.0 }
 0x2ef   : > { %v4302_v19 = vadd.f32 %v4285_v43, %v3785_v28 }
 0x2f1   : > { %v4322_v44 = vmul.f32 %v7858_v4, %v4302_v19 }
 0x2f3   : > { %v4342_v34 = vadd.f32 %v7864_v27, %v4322_v44 }
 0x2f5   : > { %v4358_v38 = vmax.f32 %v4342_v34, 0.0 }
 0x2f7   : > { %v6329_v62 = vpack.c.bf16 %v4358_v38, %v4357_v42 }
 0x2f9   : > { %6375 = vst [vmem:[%s7624_s6 + $0x78] sm:$0xff] %v6329_v62  }
 0x2fa PF: > { %s15_s18 = sadd.s32 1, %s6411_s18  }
 0x2fb   : > { %p12_p4 = scmp.ge.s32.totalorder %s15_s18, 4  }
 0x2fd   :  { %14 = sbr.rel (!%p12_p4) target bundleno = 1 (0x1), region = 82 }

// kernel: dappm_forward.16
= control target key start
LH: loop header
LB: loop body
LE: loop exit
PB: predicated region body
PF: predicated region fallthrough
CT: control target
= control target key end

     0   :  { %s6292_s18 = smov 0   ;;  %s7789_s0 = inlined_call_operand.vmem [shape: bf16[2,1,1,128], index: 0, kind: input, shape index: {}]   ;;  %s7790_s1 = inlined_call_operand.vmem [shape: bf16[2,16,16,128], index: 1, kind: input, shape index: {}]   ;;  %s7791_s2 = inlined_call_operand.vmem [shape: bf16[3,384,128], index: 2, kind: input, shape index: {}]   ;;  %s7792_s3 = inlined_call_operand.vmem [shape: f32[1,128], index: 3, kind: input, shape index: {}]   ;;  %s7793_s4 = inlined_call_operand.vmem [shape: f32[1,128], index: 4, kind: input, shape index: {}]   ;;  %s7794_s5 = inlined_call_operand.vmem [shape: bf16[2,16,16,128], index: 5, kind: output, shape index: {}]  }
   0x1 LB: > { %s4389_s19 = sadd.s32 4294967295, %s6259_s18   ;;  %p4393_p0 = scmp.ge.s32.totalorder %s6259_s18, 1  ;;  %s6259_s18 = sphi %s6292_s18, %s15_s18  }
   0x2   : > { %p195_p1 = scmp.lt.s32.totalorder %s6259_s18, 3 }
   0x4   : > { %p196_p2 = pnand %p4393_p0, %p195_p1 }
   0x5   : > { %p226_p3 = scmp.lt.s32.totalorder (!%p196_p2), %s4389_s19, 1 }
   0x6   : > { %199 = sbr.rel (%p196_p2) target bundleno = 761 (0x2f9), region = 40 }
   0xb   : > { %v5841_v0 = vld [vmem:[%s7791_s2 + $0xf8] sm:$0xff]  ;;  %v5840_v2 = vld [vmem:[%s7791_s2 + $0xf0] sm:$0xff]  ;;  %s7880_s19 = smov (!%p226_p3, %s4389_s19), 1  ;;  %vm250_vm0 = vcmask 1040384   ;;  %vm251_vm1 = vsmask.f32 256 }
   0xc   : > { %v5849_v1 = vld [vmem:[%s7791_s2 + $0x138] sm:$0xff]  ;;  %1549 = vmatpush.bf16.msra.mxu0 %v5841_v0  ;;  %6224 = vmatpush.bf16.msra.mxu2 %v5841_v0  ;;  %v5848_v3 = vld [vmem:[%s7791_s2 + $0x130] sm:$0xff]  ;;  %s228_s30 = scalar_lea.vmem %s7789_s0, %s7880_s19  ;;  %s5760_s6 = sshll.u32 %s7880_s19, 7  ;;  %vm6327_vm2 = vmand %vm250_vm0, %vm251_vm1  ;;  %vm483_vm3 = vsmask.f32 4368  ;;  %vm773_vm4 = vcmask 1043456  }
   0xd   : > { %1598 = vmatpush.bf16.msra.mxu1 %v5849_v1  ;;  %6232 = vmatpush.bf16.msra.mxu3 %v5849_v1  ;;  %s6324_s9 = scalar_lea.vmem %s7790_s1, %s5760_s6  ;;  %v253_v5 = vld [vmem:[#allocation2 + $0x18] sm:$0x1]  ;;  %v5839_v6 = vld [vmem:[%s7791_s2 + $0xe8] sm:$0xff]  ;;  %v352_v8 = vld [vmem:[%s228_s30] sm:$0x1]  ;;  %vm301_vm8 = vcmask 1043459   ;;  %s7490_s24 = scalar_lea.vmem %s7794_s5, %s5760_s6 }
   0xe   : > { %v254_v7 = vsel %vm6327_vm2, 0, %v253_v5  ;;  %v6051_v9 = vld [vmem:[%s6324_s9] sm:$0xff]   ;;  %v5847_v10 = vld [vmem:[%s7791_s2 + $0x128] sm:$0xff]  ;;  %v353_v11 = vunpack.c.l.bf16 %v352_v8  ;;  %v265_v14 = vld [vmem:[#allocation2 + $0x78] sm:$0x1] }
   0xf   : > { %255 = vst [vmem:[#allocation2 + $0x18] sm:$0x1] %v254_v7  ;;  %v6052_v12 = vunpack.c.l.bf16 %v6051_v9  ;;  %v6053_v13 = vunpack.c.h.bf16 %v6051_v9  ;;  %v6197_v15 = vld [vmem:[%s6324_s9 + $0x20] sm:$0xff]   ;;  %v266_v16 = vsel %vm6327_vm2, 0, %v265_v14  ;;  %vm774_vm5 = vsmask.f32 7938  ;;  %vm6398_vm6 = vmor %vm251_vm1, %vm483_vm3 }
  0x10   : > { %1550 = vmatpush.bf16.msra.mxu0 %v5840_v2  ;;  %6225 = vmatpush.bf16.msra.mxu2 %v5840_v2  ;;  %v6068_v17 = vunpack.c.l.bf16 %v6197_v15  ;;  %v6069_v18 = vunpack.c.h.bf16 %v6197_v15  ;;  %v6343_v19 = vperm.slane %v353_v11, 0  ;;  %267 = vst [vmem:[#allocation2 + $0x78] sm:$0x1] %v266_v16  ;;  %v5838_v20 = vld [vmem:[%s7791_s2 + $0xe0] sm:$0xff]  ;;  %v256_v21 = vld [vmem:[#allocation2 + $0x30] sm:$0x1]  ;;  %vm6414_vm7 = vmand %vm773_vm4, %vm774_vm5 }
  0x11   : > { %1599 = vmatpush.bf16.msra.mxu1 %v5848_v3  ;;  %6233 = vmatpush.bf16.msra.mxu3 %v5848_v3  ;;  %v6194_v22 = vld [vmem:[%s6324_s9 + $0x8] sm:$0xff]   ;;  %v5846_v23 = vld [vmem:[%s7791_s2 + $0x120] sm:$0xff]  ;;  %v257_v27 = vsel %vm6327_vm2, 0, %v256_v21  ;;  %v268_v28 = vld [vmem:[#allocation2 + $0x90] sm:$0x1] }
  0x12   : > { %v419_v24 = vadd.f32 %v6052_v12, %v6343_v19  ;;  %v420_v25 = vadd.f32 %v6053_v13, %v6343_v19  ;;  %v427_v26 = vadd.f32 %v6068_v17, %v6343_v19  ;;  %v6358_v29 = vld [vmem:[%s6324_s9 + $0x28] sm:$0xff]   ;;  %v428_v30 = vadd.f32 %v6069_v18, %v6343_v19  ;;  %258 = vst [vmem:[#allocation2 + $0x30] sm:$0x1] %v257_v27  ;;  %v5837_v37 = vld [vmem:[%s7791_s2 + $0xd8] sm:$0xff]  ;;  %v5836_v47 = vld [vmem:[%s7791_s2 + $0xd0] sm:$0xff] }
  0x13   : > { %v6056_v31 = vunpack.c.l.bf16 %v6194_v22  ;;  %v6057_v32 = vunpack.c.h.bf16 %v6194_v22  ;;  %v269_v33 = vsel %vm6327_vm2, 0, %v268_v28  ;;  %v5845_v38 = vld [vmem:[%s7791_s2 + $0x118] sm:$0xff]  ;;  %v6072_v42 = vunpack.c.l.bf16 %v6358_v29  ;;  %v5844_v52 = vld [vmem:[%s7791_s2 + $0x110] sm:$0xff]  ;;  %v5835_v7 = vld [vmem:[%s7791_s2 + $0xc8] sm:$0xff] }
  0x14   : > { %1551 = vmatpush.bf16.msra.mxu0 %v5839_v6  ;;  %6226 = vmatpush.bf16.msra.mxu2 %v5839_v6  ;;  %v6363_v34 = vpack.c.bf16 %v419_v24, %v419_v24  ;;  %v6365_v35 = vpack.c.bf16 %v420_v25, %v420_v25  ;;  %v6367_v36 = vpack.c.bf16 %v427_v26, %v427_v26  ;;  %v6073_v58 = vunpack.c.h.bf16 %v6358_v29  ;;  %v6410_v59 = vld [vmem:[%s6324_s9 + $0x10] sm:$0xff]   ;;  %v5843_v12 = vld [vmem:[%s7791_s2 + $0x108] sm:$0xff] }
  0x15   : > { %1600 = vmatpush.bf16.msra.mxu1 %v5847_v10  ;;  %6234 = vmatpush.bf16.msra.mxu3 %v5847_v10  ;;  %270 = vst [vmem:[#allocation2 + $0x90] sm:$0x1] %v269_v33  ;;  %v6375_v39 = vpack.c.bf16 %v428_v30, %v428_v30  ;;  %v421_v40 = vadd.f32 %v6056_v31, %v6343_v19  ;;  %v6461_v24 = vld [vmem:[%s6324_s9 + $0x30] sm:$0xff]   ;;  %v5834_v30 = vld [vmem:[%s7791_s2 + $0xc0] sm:$0xff]  ;;  %v259_v33 = vld [vmem:[#allocation2 + $0x48] sm:$0x1] }
  0x16   : > { %v422_v41 = vadd.f32 %v6057_v32, %v6343_v19  ;;  %v486_v43 = vshrl.u32 %v6363_v34, 16  ;;  %v489_v44 = vshll.u32 %v6363_v34, 16  ;;  %v494_v45 = vshrl.u32 %v6365_v35, 16  ;;  %840 = vst [vmem:[#allocation2 + $0x1c] sm:$0xf] %v6363_v34  ;;  %v5787_v34 = vld [vmem:[%s7791_s2 + $0x8] sm:$0xff] }
  0x17   : > { %v497_v46 = vshll.u32 %v6365_v35, 16  ;;  %841 = vst [vmem:[#allocation2 + $0x28] sm:$0xf] %v6365_v35  ;;  %v550_v48 = vshrl.u32 %v6367_v36, 16  ;;  %v553_v49 = vshll.u32 %v6367_v36, 16  ;;  %v7803_v50 = vshrl.u32 %v6375_v39, 16 }
  0x18   : > { %1552 = vmatpush.bf16.msra.mxu0 %v5838_v20  ;;  %6227 = vmatpush.bf16.msra.mxu2 %v5838_v20  ;;  %v561_v51 = vshll.u32 %v6375_v39, 16  ;;  %v488_v54 = vrot.slane %v486_v43, 7  ;;  %v496_v55 = vrot.slane %v494_v45, 7  ;;  %v776_v56 = vld [vmem:[#allocation2 + $0x18] sm:$0xf]  ;;  %v6406_v57 = vpack.c.bf16 %v421_v40, %v421_v40  ;;  %v5795_v35 = vld [vmem:[%s7791_s2 + $0x48] sm:$0xff] }
  0x19   : > { %1601 = vmatpush.bf16.msra.mxu1 %v5846_v23  ;;  %6235 = vmatpush.bf16.msra.mxu3 %v5846_v23  ;;  %v552_v61 = vrot.slane %v550_v48, 7  ;;  %v560_v62 = vrot.slane %v7803_v50, 7  ;;  %848 = vst [vmem:[#allocation2 + $0x7c] sm:$0xf] %v6367_v36  ;;  %v6423_v63 = vpack.c.bf16 %v422_v41, %v422_v41  ;;  %v429_v0 = vadd.f32 %v6072_v42, %v6343_v19  ;;  %v792_v5 = vld [vmem:[#allocation2 + $0x78] sm:$0xf] }
  0x1a   : > { %v491_v1 = vor.u32 %v489_v44, %v488_v54  ;;  %v492_v2 = vrot.slane %v488_v54, 4  ;;  %v499_v3 = vor.u32 %v497_v46, %v496_v55  ;;  %849 = vst [vmem:[#allocation2 + $0x88] sm:$0xf] %v6375_v39  ;;  %v502_v6 = vshrl.u32 %v6406_v57, 16  ;;  %v780_v17 = vld [vmem:[#allocation2 + $0x30] sm:$0xf] }
  0x1b   : > { %v555_v8 = vor.u32 %v553_v49, %v552_v61  ;;  %v556_v9 = vrot.slane %v552_v61, 4  ;;  %v563_v10 = vor.u32 %v561_v51, %v560_v62  ;;  %v505_v11 = vshll.u32 %v6406_v57, 16  ;;  %842 = vst [vmem:[#allocation2 + $0x34] sm:$0xf] %v6406_v57  ;;  %v6490_v54 = vld [vmem:[#allocation2 + $0xa8] sm:$0x1] }
  0x1c   : > { %1553 = vmatpush.bf16.msra.mxu0 %v5837_v37  ;;  %6228 = vmatpush.bf16.msra.mxu2 %v5837_v37  ;;  %v500_v13 = vsel %vm6398_vm6, %v492_v2, %v499_v3  ;;  %v777_v14 = vsel %vm6414_vm7, %v491_v1, %v776_v56  ;;  %v504_v15 = vrot.slane %v502_v6, 7  ;;  %v510_v16 = vshrl.u32 %v6423_v63, 16  ;;  %843 = vst [vmem:[#allocation2 + $0x40] sm:$0xf] %v6423_v63  ;;  %v5793_v56 = vld [vmem:[%s7791_s2 + $0x38] sm:$0xff]  ;;  %v5939_v53 = vld [vmem:[%s7791_s2 + $0x48] sm:$0xff] }
  0x1d   : > { %1602 = vmatpush.bf16.msra.mxu1 %v5845_v38  ;;  %6236 = vmatpush.bf16.msra.mxu3 %v5845_v38  ;;  %778 = vst [vmem:[#allocation2 + $0x18] sm:$0xf] %v777_v14  ;;  %v564_v18 = vsel %vm6398_vm6, %v556_v9, %v563_v10  ;;  %v793_v20 = vsel %vm6414_vm7, %v555_v8, %v792_v5  ;;  %v6456_v21 = vld [vmem:[#allocation2 + $0x1c] sm:$0xf]  ;;  %v513_v22 = vshll.u32 %v6423_v63, 16  ;;  %v6060_v23 = vunpack.c.l.bf16 %v6410_v59  ;;  %v5842_v38 = vld [vmem:[%s7791_s2 + $0x100] sm:$0xff] }
  0x1e   : > { %779 = vst [vmem:[#allocation2 + $0x24] sm:$0xf] %v500_v13  ;;  %v6463_v25 = vld [vmem:[#allocation2 + $0x24] sm:$0xf0]  ;;  %v507_v26 = vor.u32 %v505_v11, %v504_v15  ;;  %v508_v27 = vrot.slane %v504_v15, 4  ;;  %v512_v28 = vrot.slane %v510_v16, 7  ;;  %v430_v29 = vadd.f32 %v6073_v58, %v6343_v19 }
  0x1f   : > { %794 = vst [vmem:[#allocation2 + $0x78] sm:$0xf] %v793_v20  ;;  %v4453_v31 = vor.u32 %v6456_v21, %v6463_v25  ;;  %v6475_v32 = vpack.c.bf16 %v429_v0, %v429_v0  ;;  %v6061_v37 = vunpack.c.h.bf16 %v6410_v59  ;;  %v5857_v58 = vld [vmem:[%s7791_s2 + $0x178] sm:$0xff]  ;;  %v6076_v0 = vunpack.c.l.bf16 %v6461_v24  ;;  %v796_v9 = vld [vmem:[#allocation2 + $0x90] sm:$0xf]  ;;  %v5791_v21 = vld [vmem:[%s7791_s2 + $0x28] sm:$0xff] }
  0x20   : > { %1554 = vmatpush.bf16.msra.mxu0 %v5836_v47  ;;  %6229 = vmatpush.bf16.msra.mxu2 %v5836_v47  ;;  %795 = vst [vmem:[#allocation2 + $0x84] sm:$0xf] %v564_v18  ;;  %v6481_v40 = vld [vmem:[#allocation2 + $0x7c] sm:$0xf]  ;;  %v515_v41 = vor.u32 %v513_v22, %v512_v28  ;;  %v781_v42 = vsel %vm6414_vm7, %v507_v26, %v780_v17  ;;  %v272_v13 = vsel %vm6327_vm2, 0, %v6490_v54  ;;  %v6077_v20 = vunpack.c.h.bf16 %v6461_v24  ;;  %v5792_v28 = vld [vmem:[%s7791_s2 + $0x30] sm:$0xff] }
  0x21   : > { %1603 = vmatpush.bf16.msra.mxu1 %v5844_v52  ;;  %6237 = vmatpush.bf16.msra.mxu3 %v5844_v52  ;;  %v6487_v47 = vpack.c.bf16 %v430_v29, %v430_v29  ;;  %v423_v52 = vadd.f32 %v6060_v23, %v6343_v19  ;;  %v6492_v55 = vld [vmem:[#allocation2 + $0x84] sm:$0xf0]  ;;  %782 = vst [vmem:[#allocation2 + $0x30] sm:$0xf] %v781_v42  ;;  %v7802_v59 = vshrl.u32 %v6475_v32, 16  ;;  %v7801_v61 = vshll.u32 %v6475_v32, 16 }
  0x22   : > { %v424_v62 = vadd.f32 %v6061_v37, %v6343_v19  ;;  %v5809_v1 = vld [vmem:[%s7791_s2 + $0xb8] sm:$0xff]  ;;  %v516_v2 = vsel %vm6398_vm6, %v508_v27, %v515_v41  ;;  %850 = vst [vmem:[#allocation2 + $0x94] sm:$0xf] %v6475_v32  ;;  %v4501_v15 = vor.u32 %v6481_v40, %v6492_v55  ;;  %v431_v23 = vadd.f32 %v6076_v0, %v6343_v19  ;;  %v5856_v29 = vld [vmem:[%s7791_s2 + $0x170] sm:$0xff] }
  0x23   : > { %v7799_v3 = vshrl.u32 %v6487_v47, 16  ;;  %v7800_v5 = vshll.u32 %v6487_v47, 16  ;;  %783 = vst [vmem:[#allocation2 + $0x3c] sm:$0xf] %v516_v2  ;;  %v568_v8 = vrot.slane %v7802_v59, 7  ;;  %v6516_v10 = vpack.c.bf16 %v423_v52, %v423_v52  ;;  %v5801_v17 = vld [vmem:[%s7791_s2 + $0x78] sm:$0xff] }
  0x24   : > { %1555 = vmatpush.bf16.msra.mxu0 %v5835_v7  ;;  %6230 = vmatpush.bf16.msra.mxu2 %v5835_v7  ;;  %v260_v7 = vsel %vm6327_vm2, 0, %v259_v33  ;;  %v4448_v14 = vld [vmem:[#allocation2 + $0x18] sm:$0xf]  ;;  %851 = vst [vmem:[#allocation2 + $0xa0] sm:$0xf] %v6487_v47  ;;  %v432_v2 = vadd.f32 %v6077_v20, %v6343_v19  ;;  %v6568_v20 = vpack.c.bf16 %v431_v23, %v431_v23  ;;  %v5807_v23 = vld [vmem:[%s7791_s2 + $0xa8] sm:$0xff] }
  0x25   : > { %1604 = vmatpush.bf16.msra.mxu1 %v5843_v12  ;;  %6238 = vmatpush.bf16.msra.mxu3 %v5843_v12  ;;  %v6518_v12 = vpack.c.bf16 %v424_v62, %v424_v62  ;;  %v576_v18 = vrot.slane %v7799_v3, 7  ;;  %v6196_v26 = vld [vmem:[%s6324_s9 + $0x18] sm:$0xff]   ;;  %v5811_v27 = vld [vmem:[#allocation2 + $0x20] sm:$0xf0]  ;;  %v571_v33 = vor.u32 %v7801_v61, %v568_v8  ;;  %v572_v37 = vrot.slane %v568_v8, 4 }
  0x26   : > { %261 = vst [vmem:[#allocation2 + $0x48] sm:$0x1] %v260_v7  ;;  %v518_v24 = vshrl.u32 %v6516_v10, 16  ;;  %v6064_v40 = vunpack.c.l.bf16 %v6196_v26  ;;  %v4496_v41 = vld [vmem:[#allocation2 + $0x78] sm:$0xf]  ;;  %v521_v52 = vshll.u32 %v6516_v10, 16 }
  0x27   : > { %v579_v42 = vor.u32 %v7800_v5, %v576_v18  ;;  %v526_v54 = vshrl.u32 %v6518_v12, 16  ;;  %844 = vst [vmem:[#allocation2 + $0x4c] sm:$0xf] %v6516_v10  ;;  %v5823_v55 = vld [vmem:[#allocation2 + $0x80] sm:$0xf0]  ;;  %v797_v62 = vsel %vm6414_vm7, %v571_v33, %v796_v9  ;;  %v529_v0 = vshll.u32 %v6518_v12, 16 }
  0x28   : > { %1556 = vmatpush.bf16.msra.mxu0 %v5834_v30  ;;  %6231 = vmatpush.bf16.msra.mxu2 %v5834_v30  ;;  %v4449_v30 = vor.u32 %v5811_v27, %v4448_v14  ;;  %845 = vst [vmem:[#allocation2 + $0x58] sm:$0xf] %v6518_v12  ;;  %v4497_v7 = vor.u32 %v5823_v55, %v4496_v41  ;;  %v6065_v9 = vunpack.c.h.bf16 %v6196_v26  ;;  %v6200_v14 = vld [vmem:[%s6324_s9 + $0x38] sm:$0xff]   ;;  %v5800_v26 = vld [vmem:[%s7791_s2 + $0x70] sm:$0xff]  ;;  %v7798_v33 = vshrl.u32 %v6568_v20, 16 }
  0x29   : > { %1605 = vmatpush.bf16.msra.mxu1 %v5842_v38  ;;  %6239 = vmatpush.bf16.msra.mxu3 %v5842_v38  ;;  %v520_v38 = vrot.slane %v518_v24, 7  ;;  %v580_v8 = vsel %vm6398_vm6, %v572_v37, %v579_v42  ;;  %798 = vst [vmem:[#allocation2 + $0x90] sm:$0xf] %v797_v62  ;;  %v6080_v27 = vunpack.c.l.bf16 %v6200_v14  ;;  %v7796_v37 = vshll.u32 %v6568_v20, 16  ;;  %v5985_v57 = vld [vmem:[%s7791_s2 + $0xf8] sm:$0xff] }
  0x2a   : > { %799 = vst [vmem:[#allocation2 + $0x9c] sm:$0xf] %v580_v8  ;;  %v584_v42 = vrot.slane %v7798_v33, 7  ;;  %vm302_vm9 = vsmask.f32 7950  ;;  %v899_v10 = vrot.slane %v526_v54, 4 }
  0x2b   : > { %1557 = vmatmul.bf16.vlgmr.msra.gmra.mxu0 %v4449_v30  ;;  %v524_v18 = vrot.slane %v520_v38, 4  ;;  %1577 = vmatmul.bf16.vlgmr.msra.gmra.mxu2 %v4497_v7  ;;  %273 = vst [vmem:[#allocation2 + $0xa8] sm:$0x1] %v272_v13  ;;  %v426_v13 = vadd.f32 %v6065_v9, %v6343_v19  ;;  %v5854_v7 = vld [vmem:[%s7791_s2 + $0x160] sm:$0xff]  ;;  %v6616_v9 = vld [vmem:[#allocation2 + $0x30] sm:$0xf]  ;;  %vm6699_vm10 = vmand %vm301_vm8, %vm302_vm9 }
  0x2c   : > { %1647 = vmatpush.bf16.msrb.mxu2 %v5857_v58  ;;  %v528_v58 = vrot.slane %v526_v54, 7  ;;  %1606 = vmatmul.bf16.vlgmr.msra.gmra.mxu1 %v4453_v31  ;;  %v6578_v31 = vpack.c.bf16 %v432_v2, %v432_v2  ;;  %852 = vst [vmem:[#allocation2 + $0xac] sm:$0xf] %v6568_v20  ;;  %v5790_v2 = vld [vmem:[%s7791_s2 + $0x20] sm:$0xff]  ;;  %vm872_vm11 = vsmask.f32 3328 }
  0x2d   : > { %1968 = vmatpush.bf16.msrb.mxu3 %v5793_v56  ;;  %2066 = vmatpush.bf16.msrb.mxu1 %v5809_v1  ;;  %v5808_v56 = vld [vmem:[%s7791_s2 + $0xb0] sm:$0xff]  ;;  %v523_v1 = vor.u32 %v521_v52, %v520_v38  ;;  %v6602_v62 = vpack.c.bf16 %v426_v13, %v426_v13  ;;  %v5799_v38 = vld [vmem:[%s7791_s2 + $0x68] sm:$0xff]  ;;  %v5814_v13 = vld [vmem:[#allocation2 + $0x38] sm:$0xf0]  ;;  %vm873_vm12 = vsmask.f32 7440 }
  0x2e   : > { %1626 = vmatmul.bf16.vlgmr.msra.gmra.mxu3 %v4501_v15  ;;  %2017 = vmatpush.bf16.msrb.mxu0 %v5801_v17  ;;  %v531_v25 = vor.u32 %v529_v0, %v528_v58  ;;  %v425_v15 = vadd.f32 %v6064_v40, %v6343_v19  ;;  %v5855_v17 = vld [vmem:[%s7791_s2 + $0x168] sm:$0xff]  ;;  %v7795_v40 = vshrl.u32 %v6578_v31, 16  ;;  %v7797_v30 = vshll.u32 %v6578_v31, 16  ;;  %853 = vst [vmem:[#allocation2 + $0xb8] sm:$0xf] %v6578_v31  ;;  %vm6750_vm13 = vmor %vm872_vm11, %vm873_vm12 }
  0x2f   : > { %v433_v58 = vadd.f32 %v6080_v27, %v6343_v19  ;;  %v5798_v27 = vld [vmem:[%s7791_s2 + $0x60] sm:$0xff]  ;;  %847 = vst [vmem:[#allocation2 + $0x70] sm:$0xf] %v6602_v62  ;;  %vm6758_vm14 = vmand %vm773_vm4, %vm872_vm11  ;;  %v4664_v36 = vld [vmem:[#allocation2 + $0x30] sm:$0xf] }
  0x30   : > { %1648 = vmatpush.bf16.msrb.mxu2 %v5856_v29  ;;  %v784_v29 = vld [vmem:[#allocation2 + $0x48] sm:$0xf]  ;;  %v6600_v55 = vpack.c.bf16 %v425_v15, %v425_v15  ;;  %v592_v8 = vrot.slane %v7795_v40, 7  ;;  %v5853_v40 = vld [vmem:[%s7791_s2 + $0x158] sm:$0xff]  ;;  %v4508_v3 = vld [vmem:[#allocation2 + $0x90] sm:$0xf] }
  0x31   : > { %1969 = vmatpush.bf16.msrb.mxu3 %v5792_v28  ;;  %2067 = vmatpush.bf16.msrb.mxu1 %v5808_v56  ;;  %v532_v28 = vsel %vm6398_vm6, %v524_v18, %v531_v25  ;;  %v785_v41 = vsel %vm6414_vm7, %v523_v1, %v784_v29  ;;  %v6081_v56 = vunpack.c.h.bf16 %v6200_v14  ;;  %v6618_v1 = vld [vmem:[#allocation2 + $0x34] sm:$0xf]  ;;  %v6620_v18 = vld [vmem:[#allocation2 + $0x3c] sm:$0xf0]  ;;  %v588_v25 = vrot.slane %v584_v42, 4 }
  0x32   : > { %787 = vst [vmem:[#allocation2 + $0x54] sm:$0xf] %v532_v28  ;;  %2018 = vmatpush.bf16.msrb.mxu0 %v5800_v26  ;;  %v587_v26 = vor.u32 %v7796_v37, %v584_v42  ;;  %v534_v15 = vshrl.u32 %v6600_v55, 16  ;;  %v6625_v28 = vld [vmem:[#allocation2 + $0x94] sm:$0xf]  ;;  %v542_v29 = vshrl.u32 %v6602_v62, 16  ;;  %v6648_v33 = vpack.c.bf16 %v433_v58, %v433_v58 }
  0x33   : > { %786 = vst [vmem:[#allocation2 + $0x48] sm:$0xf] %v785_v41  ;;  %v6627_v14 = vld [vmem:[#allocation2 + $0x9c] sm:$0xf0]  ;;  %v434_v41 = vadd.f32 %v6081_v56, %v6343_v19  ;;  %v800_v42 = vld [vmem:[#allocation2 + $0xa8] sm:$0xf] }
  0x34   : > { %1649 = vmatpush.bf16.msrb.mxu2 %v5855_v17  ;;  %v5806_v17 = vld [vmem:[%s7791_s2 + $0xa0] sm:$0xff]  ;;  %v801_v5 = vsel %vm6414_vm7, %v587_v26, %v800_v42  ;;  %v544_v59 = vrot.slane %v542_v29, 7  ;;  %846 = vst [vmem:[#allocation2 + $0x64] sm:$0xf] %v6600_v55  ;;  %v5826_v50 = vld [vmem:[#allocation2 + $0x98] sm:$0xf0]  ;;  %v4465_v26 = vor.u32 %v6618_v1, %v6620_v18 }
  0x35   : > { %1970 = vmatpush.bf16.msrb.mxu3 %v5791_v21  ;;  %2068 = vmatpush.bf16.msrb.mxu1 %v5807_v23  ;;  %v595_v21 = vor.u32 %v7797_v30, %v592_v8  ;;  %v5789_v23 = vld [vmem:[%s7791_s2 + $0x18] sm:$0xff]  ;;  %v262_v37 = vld [vmem:[#allocation2 + $0x60] sm:$0x1]  ;;  %v536_v8 = vrot.slane %v534_v15, 7  ;;  %v545_v30 = vshll.u32 %v6602_v62, 16  ;;  %v537_v1 = vshll.u32 %v6600_v55, 16 }
  0x36   : > { %2019 = vmatpush.bf16.msrb.mxu0 %v5799_v38  ;;  %v263_v61 = vsel %vm6327_vm2, 0, %v262_v37  ;;  %802 = vst [vmem:[#allocation2 + $0xa8] sm:$0xf] %v801_v5  ;;  %v6659_v38 = vpack.c.bf16 %v434_v41, %v434_v41  ;;  %v5805_v37 = vld [vmem:[%s7791_s2 + $0x98] sm:$0xff]  ;;  %v274_v5 = vld [vmem:[#allocation2 + $0xc0] sm:$0x1] }
  0x37   : > { %v596_v56 = vsel %vm6398_vm6, %v588_v25, %v595_v21  ;;  %v540_v58 = vrot.slane %v536_v8, 4  ;;  %v598_v25 = vshrl.u32 %v6648_v33, 16  ;;  %v4461_v21 = vor.u32 %v5814_v13, %v6616_v9  ;;  %v5797_v9 = vld [vmem:[%s7791_s2 + $0x58] sm:$0xff]  ;;  %264 = vst [vmem:[#allocation2 + $0x60] sm:$0x1] %v263_v61 }
  0x38   : > { %1650 = vmatpush.bf16.msrb.mxu2 %v5854_v7  ;;  %803 = vst [vmem:[#allocation2 + $0xb4] sm:$0xf] %v596_v56  ;;  %v4513_v7 = vor.u32 %v6625_v28, %v6627_v14  ;;  %v275_v18 = vsel %vm6327_vm2, 0, %v274_v5  ;;  %v5852_v28 = vld [vmem:[%s7791_s2 + $0x150] sm:$0xff]  ;;  %v601_v14 = vshll.u32 %v6648_v33, 16  ;;  %v606_v41 = vshrl.u32 %v6659_v38, 16 }
  0x39   : > { %1971 = vmatpush.bf16.msrb.mxu3 %v5790_v2  ;;  %2069 = vmatpush.bf16.msrb.mxu1 %v5806_v17  ;;  %v547_v2 = vor.u32 %v545_v30, %v544_v59  ;;  %v600_v13 = vrot.slane %v598_v25, 7  ;;  %v4509_v17 = vor.u32 %v5826_v50, %v4508_v3  ;;  %v5788_v59 = vld [vmem:[%s7791_s2 + $0x10] sm:$0xff]  ;;  %v609_v50 = vshll.u32 %v6659_v38, 16  ;;  %v304_v3 = vld [vmem:[#allocation2 + $0x2c] sm:$0x8] }
  0x3a   : > { %2020 = vmatpush.bf16.msrb.mxu0 %v5798_v27  ;;  %276 = vst [vmem:[#allocation2 + $0xc0] sm:$0x1] %v275_v18  ;;  %v608_v42 = vrot.slane %v606_v41, 7  ;;  %v881_v56 = vrot.slane %v494_v45, 4  ;;  %v5796_v45 = vld [vmem:[%s7791_s2 + $0x50] sm:$0xff]  ;;  %v5803_v18 = vld [vmem:[%s7791_s2 + $0x88] sm:$0xff] }
  0x3b   : > { %v548_v61 = vsel %vm6398_vm6, %v540_v58, %v547_v2  ;;  %1562 = vmatmul.bf16.gmra.mxu0 %v4461_v21  ;;  %v604_v27 = vrot.slane %v600_v13, 4  ;;  %854 = vst [vmem:[#allocation2 + $0xc4] sm:$0xf] %v6648_v33  ;;  %v875_v58 = vrot.slane %v486_v43, 4  ;;  %v876_v21 = vrot.slane %v489_v44, 5  ;;  %1582 = vmatmul.bf16.gmra.mxu2 %v4509_v17  ;;  %v5851_v43 = vld [vmem:[%s7791_s2 + $0x148] sm:$0xff] }
  0x3c   : > { %1651 = vmatpush.bf16.msrb.mxu2 %v5853_v40  ;;  %791 = vst [vmem:[#allocation2 + $0x6c] sm:$0xf] %v548_v61  ;;  %1611 = vmatmul.bf16.gmra.mxu1 %v4465_v26  ;;  %v539_v40 = vor.u32 %v537_v1, %v536_v8  ;;  %v611_v8 = vor.u32 %v609_v50, %v608_v42  ;;  %v5804_v26 = vld [vmem:[%s7791_s2 + $0x90] sm:$0xff]  ;;  %v305_v44 = vsel %vm6699_vm10, 0, %v304_v3  ;;  %v879_v2 = vrot.slane %v497_v46, 5  ;;  %v5786_v46 = vld [vmem:[%s7791_s2] sm:$0xff] }
  0x3d   : > { %1972 = vmatpush.bf16.msrb.mxu3 %v5789_v23  ;;  %2070 = vmatpush.bf16.msrb.mxu1 %v5805_v37  ;;  %855 = vst [vmem:[#allocation2 + $0xd0] sm:$0xf] %v6659_v38  ;;  %v877_v37 = vor.u32 %v876_v21, %v875_v58  ;;  %v5816_v3 = vld [vmem:[#allocation2 + $0x4c] sm:$0xf]  ;;  %v5802_v58 = vld [vmem:[%s7791_s2 + $0x80] sm:$0xff] }
  0x3e   : > { %1631 = vmatmul.bf16.gmra.mxu3 %v4513_v7  ;;  %2021 = vmatpush.bf16.msrb.mxu0 %v5797_v9  ;;  %v788_v5 = vld [vmem:[#allocation2 + $0x60] sm:$0xf]  ;;  %v603_v7 = vor.u32 %v601_v14, %v600_v13  ;;  %v612_v9 = vsel %vm6398_vm6, %v604_v27, %v611_v8  ;;  %306 = vst [vmem:[#allocation2 + $0x2c] sm:$0x8] %v305_v44  ;;  %v4474_v27 = vld [vmem:[#allocation2 + $0x54] sm:$0xf0] }
  0x3f   : > { %v789_v17 = vsel %vm6414_vm7, %v539_v40, %v788_v5  ;;  %807 = vst [vmem:[#allocation2 + $0xcc] sm:$0xf] %v612_v9  ;;  %v5850_v13 = vld [vmem:[%s7791_s2 + $0x140] sm:$0xff]  ;;  %v5828_v42 = vld [vmem:[#allocation2 + $0xac] sm:$0xf]  ;;  %v6261_v9 = vmov 0  }
  0x40   : > { %1652 = vmatpush.bf16.msrb.mxu2 %v5852_v28  ;;  %790 = vst [vmem:[#allocation2 + $0x60] sm:$0xf] %v789_v17  ;;  %v878_v28 = vrot.slane %v877_v37, 4  ;;  %v4472_v8 = vld [vmem:[#allocation2 + $0x48] sm:$0xf]  ;;  %v5794_v37 = vld [vmem:[%s7791_s2 + $0x40] sm:$0xff]  ;;  %v4477_v17 = vor.u32 %v5816_v3, %v4474_v27 }
  0x41   : > { %1973 = vmatpush.bf16.msrb.mxu3 %v5788_v59  ;;  %2071 = vmatpush.bf16.msrb.mxu1 %v5804_v26  ;;  %v882_v59 = vor.u32 %v881_v56, %v879_v2  ;;  %v804_v61 = vld [vmem:[#allocation2 + $0xc0] sm:$0xf]  ;;  %v4522_v56 = vld [vmem:[#allocation2 + $0xb4] sm:$0xf0]  ;;  %v5817_v26 = vld [vmem:[#allocation2 + $0x50] sm:$0xf0] }
  0x42   : > { %2022 = vmatpush.bf16.msrb.mxu0 %v5796_v45  ;;  %v805_v40 = vsel %vm6414_vm7, %v603_v7, %v804_v61  ;;  %v4520_v44 = vld [vmem:[#allocation2 + $0xa8] sm:$0xf]  ;;  %v5829_v5 = vld [vmem:[#allocation2 + $0xb0] sm:$0xf0]  ;;  %240 = vst [vmem:[#allocation2] sm:$0xff] %v6261_v9  ;;  %v885_v61 = vrot.slane %v505_v11, 5 }
  0x43   : > { %v883_v45 = vrot.slane %v882_v59, 4  ;;  %806 = vst [vmem:[#allocation2 + $0xc0] sm:$0xf] %v805_v40  ;;  %v4525_v59 = vor.u32 %v5828_v42, %v4522_v56  ;;  %v5897_v3 = vld [vmem:[%s7791_s2 + $0x1f8] sm:$0xff]  ;;  %v888_v56 = vrot.slane %v513_v22, 5  ;;  %v890_v40 = vrot.slane %v510_v16, 4 }
  0x44   : > { %1653 = vmatpush.bf16.msrb.mxu2 %v5851_v43  ;;  %242 = vst [vmem:[#allocation2 + $0xc] sm:$0xff] %v6261_v9  ;;  %v5889_v42 = vld [vmem:[%s7791_s2 + $0x1b8] sm:$0xff]  ;;  %v5899_v33 = vld [vmem:[%s7791_s2 + $0x208] sm:$0xff] }
  0x45   : > { %1974 = vmatpush.bf16.msrb.mxu3 %v5787_v34  ;;  %2072 = vmatpush.bf16.msrb.mxu1 %v5803_v18  ;;  %v880_v34 = vsel %vm6750_vm13, %v878_v28, %v879_v2  ;;  %v1053_v7 = vld [vmem:[#allocation2 + $0x2c] sm:$0xf]  ;;  %v4473_v2 = vor.u32 %v5817_v26, %v4472_v8  ;;  %241 = vst [vmem:[#allocation2 + $0x8] sm:$0xf] %v6261_v9  ;;  %v307_v28 = vld [vmem:[#allocation2 + $0x44] sm:$0x8] }
  0x46   : > { %2023 = vmatpush.bf16.msrb.mxu0 %v5795_v35  ;;  %1051 = vst [vmem:[#allocation2 + $0x20] sm:$0xf] %v880_v34  ;;  %v1054_v18 = vsel %vm6758_vm14, %v883_v45, %v1053_v7  ;;  %v4521_v35 = vor.u32 %v5829_v5, %v4520_v44  ;;  %v891_v45 = vor.u32 %v890_v40, %v888_v56  ;;  %v5819_v8 = vld [vmem:[#allocation2 + $0x64] sm:$0xf]  ;;  %v5820_v34 = vld [vmem:[#allocation2 + $0x68] sm:$0xf0] }
  0x47   : > { %1055 = vst [vmem:[#allocation2 + $0x2c] sm:$0xf] %v1054_v18  ;;  %v4484_v26 = vld [vmem:[#allocation2 + $0x60] sm:$0xf]  ;;  %v5831_v5 = vld [vmem:[#allocation2 + $0xc4] sm:$0xf] }
  0x48   : > { %1654 = vmatpush.bf16.msrb.mxu2 %v5850_v13  ;;  %243 = vst [vmem:[#allocation2 + $0x14] sm:$0xf] %v6261_v9  ;;  %v884_v13 = vrot.slane %v502_v6, 4  ;;  %v5905_v6 = vld [vmem:[%s7791_s2 + $0x238] sm:$0xff]  ;;  %v892_v44 = vrot.slane %v891_v45, 4  ;;  %v4485_v63 = vor.u32 %v5820_v34, %v4484_v26  ;;  %v5979_v38 = vld [vmem:[%s7791_s2 + $0xc8] sm:$0xff] }
  0x49   : > { %1975 = vmatpush.bf16.msrb.mxu3 %v5786_v46  ;;  %2073 = vmatpush.bf16.msrb.mxu1 %v5802_v58  ;;  %245 = vst [vmem:[#allocation2 + $0x198] sm:$0xff] %v6261_v9  ;;  %v308_v46 = vsel %vm6699_vm10, 0, %v307_v28  ;;  %v4534_v7 = vld [vmem:[#allocation2 + $0xcc] sm:$0xf0]  ;;  %v5832_v22 = vld [vmem:[#allocation2 + $0xc8] sm:$0xf0] }
  0x4a   : > { %2024 = vmatpush.bf16.msrb.mxu0 %v5794_v37  ;;  %246 = vst [vmem:[#allocation2 + $0x1a0] sm:$0xf] %v6261_v9  ;;  %v886_v27 = vor.u32 %v885_v61, %v884_v13  ;;  %v4486_v37 = vld [vmem:[#allocation2 + $0x6c] sm:$0xf0]  ;;  %v894_v13 = vrot.slane %v521_v52, 5  ;;  %v6027_v21 = vld [vmem:[%s7791_s2 + $0x188] sm:$0xff] }
  0x4b   : > { %1567 = vmatmul.bf16.gmra.mxu0 %v4473_v2  ;;  %1587 = vmatmul.bf16.gmra.mxu2 %v4521_v35  ;;  %247 = vst [vmem:[#allocation2 + $0x1a4] sm:$0xff] %v6261_v9  ;;  %v4489_v18 = vor.u32 %v5819_v8, %v4486_v37  ;;  %v5896_v61 = vld [vmem:[%s7791_s2 + $0x1f0] sm:$0xff]  ;;  %v4640_v40 = vld [vmem:[#allocation2] sm:$0xf]  ;;  %v5763_v12 = vld [vmem:[#allocation2 + $0x8] sm:$0xf0] }
  0x4c   : > { %1616 = vmatmul.bf16.gmra.mxu1 %v4477_v17  ;;  %248 = vst [vmem:[#allocation2 + $0x1ac] sm:$0xf] %v6261_v9  ;;  %v887_v11 = vrot.slane %v886_v27, 4  ;;  %2469 = vmatpush.bf16.msra.mxu2 %v5889_v42  ;;  %v4532_v9 = vld [vmem:[#allocation2 + $0xc0] sm:$0xf]  ;;  %v4537_v17 = vor.u32 %v5831_v5, %v4534_v7  ;;  %v5904_v27 = vld [vmem:[%s7791_s2 + $0x230] sm:$0xff]  ;;  %v4641_v5 = vor.u32 %v5763_v12, %v4640_v40 }
  0x4d   : > { %2518 = vmatpush.bf16.msra.mxu3 %v5897_v3  ;;  %309 = vst [vmem:[#allocation2 + $0x44] sm:$0x8] %v308_v46  ;;  %3154 = vmatpush.bf16.msra.mxu1 %v5985_v57  ;;  %v4533_v35 = vor.u32 %v5832_v22, %v4532_v9  ;;  %v893_v46 = vrot.slane %v518_v24, 4  ;;  %v5888_v3 = vld [vmem:[%s7791_s2 + $0x1b0] sm:$0xff]  ;;  %v897_v42 = vrot.slane %v529_v0, 5 }
  0x4e   : > { %1636 = vmatmul.bf16.gmra.mxu3 %v4525_v59  ;;  %2567 = vmatpush.bf16.msra.mxu0 %v5905_v6  ;;  %v889_v58 = vsel %vm6750_vm13, %v887_v11, %v888_v56  ;;  %v310_v59 = vld [vmem:[#allocation2 + $0x5c] sm:$0x8]  ;;  %v5984_v24 = vld [vmem:[%s7791_s2 + $0xf0] sm:$0xff]  ;;  %v5762_v54 = vld [vmem:[#allocation2 + $0x4] sm:$0xf] }
  0x4f   : > { %1056 = vst [vmem:[#allocation2 + $0x38] sm:$0xf] %v889_v58  ;;  %v311_v28 = vsel %vm6699_vm10, 0, %v310_v59  ;;  %v895_v52 = vor.u32 %v894_v13, %v893_v46  ;;  %v900_v6 = vor.u32 %v899_v10, %v897_v42  ;;  %v4642_v58 = vld [vmem:[#allocation2 + $0xc] sm:$0xf0]  ;;  %v903_v59 = vrot.slane %v537_v1, 5 }
  0x50   : > { %312 = vst [vmem:[#allocation2 + $0x5c] sm:$0x8] %v311_v28  ;;  %2470 = vmatpush.bf16.msra.mxu2 %v5888_v3  ;;  %v4648_v8 = vld [vmem:[#allocation2 + $0x8] sm:$0xf]  ;;  %v5764_v26 = vld [vmem:[#allocation2 + $0x10] sm:$0xf0]  ;;  %v4645_v37 = vor.u32 %v5762_v54, %v4642_v58 }
  0x51   : > { %2519 = vmatpush.bf16.msra.mxu3 %v5896_v61  ;;  %3155 = vmatpush.bf16.msra.mxu1 %v5984_v24  ;;  %v896_v57 = vrot.slane %v895_v52, 4  ;;  %v901_v11 = vrot.slane %v900_v6, 4  ;;  %v4456_v34 = vld [vmem:[#allocation2 + $0x20] sm:$0xf]  ;;  %v4649_v7 = vor.u32 %v5764_v26, %v4648_v8  ;;  %v313_v9 = vld [vmem:[#allocation2 + $0x74] sm:$0x8] }
  0x52   : > { %2568 = vmatpush.bf16.msra.mxu0 %v5904_v27  ;;  %v906_v28 = vrot.slane %v545_v30, 5  ;;  %v908_v46 = vrot.slane %v542_v29, 4  ;;  %v4652_v55 = vld [vmem:[#allocation2 + $0x18] sm:$0xf]  ;;  %v5766_v1 = vld [vmem:[#allocation2 + $0x20] sm:$0xf0] }
  0x53   : > { %v898_v56 = vsel %vm6750_vm13, %v896_v57, %v897_v42  ;;  %v5765_v10 = vld [vmem:[#allocation2 + $0x1c] sm:$0xf]  ;;  %v4654_v24 = vld [vmem:[#allocation2 + $0x24] sm:$0xf0]  ;;  %v4660_v62 = vld [vmem:[#allocation2 + $0x20] sm:$0xf] }
  0x54   : > { %v1057_v2 = vld [vmem:[#allocation2 + $0x44] sm:$0xf]  ;;  %1060 = vst [vmem:[#allocation2 + $0x50] sm:$0xf] %v898_v56  ;;  %v909_v61 = vor.u32 %v908_v46, %v906_v28  ;;  %v5767_v29 = vld [vmem:[#allocation2 + $0x28] sm:$0xf0]  ;;  %v4657_v57 = vor.u32 %v5765_v10, %v4654_v24 }
  0x55   : > { %v1058_v16 = vsel %vm6758_vm14, %v892_v44, %v1057_v2  ;;  %v5812_v44 = vld [vmem:[#allocation2 + $0x28] sm:$0xf0]  ;;  %v314_v2 = vsel %vm6699_vm10, 0, %v313_v9  ;;  %v4661_v56 = vor.u32 %v5767_v29, %v4660_v62  ;;  %v5894_v54 = vld [vmem:[%s7791_s2 + $0x1e0] sm:$0xff]  ;;  %v911_v8 = vrot.slane %v550_v48, 4 }
  0x56   : > { %1059 = vst [vmem:[#allocation2 + $0x44] sm:$0xf] %v1058_v16  ;;  %v4457_v22 = vor.u32 %v5812_v44, %v4456_v34  ;;  %v5887_v16 = vld [vmem:[%s7791_s2 + $0x1a8] sm:$0xff]  ;;  %v910_v3 = vrot.slane %v909_v61, 4  ;;  %v4468_v52 = vld [vmem:[#allocation2 + $0x38] sm:$0xf] }
  0x57   : > { %v1061_v0 = vld [vmem:[#allocation2 + $0x5c] sm:$0xf]  ;;  %315 = vst [vmem:[#allocation2 + $0x74] sm:$0x8] %v314_v2  ;;  %2471 = vmatpush.bf16.msra.mxu2 %v5887_v16  ;;  %v316_v40 = vld [vmem:[#allocation2 + $0x8c] sm:$0x8] }
  0x58   : > { %v1062_v45 = vsel %vm6758_vm14, %v901_v11, %v1061_v0  ;;  %v4653_v11 = vor.u32 %v5766_v1, %v4652_v55  ;;  %v317_v12 = vsel %vm6699_vm10, 0, %v316_v40  ;;  %v5886_v58 = vld [vmem:[%s7791_s2 + $0x1a0] sm:$0xff]  ;;  %v912_v26 = vrot.slane %v553_v49, 5  ;;  %v5769_v49 = vld [vmem:[#allocation2 + $0x38] sm:$0xf0] }
  0x59   : > { %1063 = vst [vmem:[#allocation2 + $0x5c] sm:$0xf] %v1062_v45  ;;  %v5902_v45 = vld [vmem:[%s7791_s2 + $0x220] sm:$0xff]  ;;  %v915_v44 = vrot.slane %v561_v51, 5  ;;  %v5768_v16 = vld [vmem:[#allocation2 + $0x34] sm:$0xf]  ;;  %v4665_v46 = vor.u32 %v5769_v49, %v4664_v36 }
  0x5a   : > { %318 = vst [vmem:[#allocation2 + $0x8c] sm:$0x8] %v317_v12  ;;  %v5982_v34 = vld [vmem:[%s7791_s2 + $0xe0] sm:$0xff]  ;;  %v4672_v51 = vld [vmem:[#allocation2 + $0x38] sm:$0xf]  ;;  %v7845_v10 = vshll.u32 %v6475_v32, 16 }
  0x5b   : > { %1572 = vmatmul.bf16.gmra.mxu0 %v4485_v63  ;;  %1592 = vmatmul.bf16.gmra.mxu2 %v4533_v35  ;;  %v5895_v63 = vld [vmem:[%s7791_s2 + $0x1e8] sm:$0xff]  ;;  %v319_v61 = vld [vmem:[#allocation2 + $0xa4] sm:$0x8]  ;;  %v5893_v55 = vld [vmem:[%s7791_s2 + $0x1d8] sm:$0xff]  ;;  %v7847_v29 = vshrl.u32 %v6487_v47, 16 }
  0x5c   : > { %1621 = vmatmul.bf16.gmra.mxu1 %v4489_v18  ;;  %v5903_v18 = vld [vmem:[%s7791_s2 + $0x228] sm:$0xff]  ;;  %2520 = vmatpush.bf16.msra.mxu3 %v5895_v63  ;;  %v5885_v1 = vld [vmem:[%s7791_s2 + $0x198] sm:$0xff]  ;;  %v921_v24 = vrot.slane %v7845_v10, 5  ;;  %v5772_v12 = vld [vmem:[#allocation2 + $0x50] sm:$0xf0] }
  0x5d   : > { %v5983_v35 = vld [vmem:[%s7791_s2 + $0xe8] sm:$0xff]  ;;  %2569 = vmatpush.bf16.msra.mxu0 %v5903_v18  ;;  %v5815_v6 = vld [vmem:[#allocation2 + $0x40] sm:$0xf0]  ;;  %2472 = vmatpush.bf16.msra.mxu2 %v5886_v58  ;;  %v4666_v18 = vld [vmem:[#allocation2 + $0x3c] sm:$0xf0] }
  0x5e   : > { %1641 = vmatmul.bf16.gmra.mxu3 %v4537_v17  ;;  %v902_v17 = vrot.slane %v534_v15, 4  ;;  %3156 = vmatpush.bf16.msra.mxu1 %v5983_v35  ;;  %v1065_v42 = vld [vmem:[#allocation2 + $0x74] sm:$0xf]  ;;  %v4469_v0 = vor.u32 %v5815_v6, %v4468_v52  ;;  %v926_v52 = vrot.slane %v7847_v29, 4  ;;  %v5771_v58 = vld [vmem:[#allocation2 + $0x4c] sm:$0xf] }
  0x5f   : > { %v1066_v30 = vsel %vm6758_vm14, %v910_v3, %v1065_v42  ;;  %v320_v3 = vsel %vm6699_vm10, 0, %v319_v61  ;;  %v5892_v49 = vld [vmem:[%s7791_s2 + $0x1d0] sm:$0xff] }
  0x60   : > { %v904_v13 = vor.u32 %v903_v59, %v902_v17  ;;  %1067 = vst [vmem:[#allocation2 + $0x74] sm:$0xf] %v1066_v30  ;;  %2521 = vmatpush.bf16.msra.mxu3 %v5894_v54  ;;  %v5770_v17 = vld [vmem:[#allocation2 + $0x40] sm:$0xf0]  ;;  %v4480_v59 = vld [vmem:[#allocation2 + $0x50] sm:$0xf] }
  0x61   : > { %2570 = vmatpush.bf16.msra.mxu0 %v5902_v45  ;;  %v1069_v63 = vld [vmem:[#allocation2 + $0x8c] sm:$0xf]  ;;  %v5818_v35 = vld [vmem:[#allocation2 + $0x58] sm:$0xf0]  ;;  %321 = vst [vmem:[#allocation2 + $0xa4] sm:$0x8] %v320_v3  ;;  %2473 = vmatpush.bf16.msra.mxu2 %v5885_v1 }
  0x62   : > { %v905_v15 = vrot.slane %v904_v13, 4  ;;  %3157 = vmatpush.bf16.msra.mxu1 %v5982_v34  ;;  %v4673_v13 = vor.u32 %v5770_v17, %v4672_v51  ;;  %v7846_v30 = vshll.u32 %v6487_v47, 16  ;;  %v4678_v45 = vld [vmem:[#allocation2 + $0x54] sm:$0xf0]  ;;  %v5773_v34 = vld [vmem:[#allocation2 + $0x58] sm:$0xf0] }
  0x63   : > { %v7850_v51 = vshll.u32 %v6578_v31, 16  ;;  %v5900_v61 = vld [vmem:[%s7791_s2 + $0x210] sm:$0xff]  ;;  %v4688_v3 = vld [vmem:[#allocation2 + $0x60] sm:$0xf] }
  0x64   : > { %v907_v27 = vsel %vm6750_vm13, %v905_v15, %v906_v28  ;;  %v4669_v28 = vor.u32 %v5768_v16, %v4666_v18  ;;  %v4481_v15 = vor.u32 %v5818_v35, %v4480_v59  ;;  %v924_v62 = vrot.slane %v7846_v30, 5  ;;  %2522 = vmatpush.bf16.msra.mxu3 %v5893_v55  ;;  %v5775_v55 = vld [vmem:[#allocation2 + $0x68] sm:$0xf0] }
  0x65   : > { %1064 = vst [vmem:[#allocation2 + $0x68] sm:$0xf] %v907_v27  ;;  %v7844_v27 = vshrl.u32 %v6475_v32, 16  ;;  %v5981_v32 = vld [vmem:[%s7791_s2 + $0xd8] sm:$0xff]  ;;  %v7849_v18 = vshll.u32 %v6568_v20, 16  ;;  %v933_v17 = vrot.slane %v7850_v51, 5 }
  0x66   : > { %3158 = vmatpush.bf16.msra.mxu1 %v5981_v32  ;;  %v7851_v59 = vshrl.u32 %v6578_v31, 16  ;;  %v6201_v51 = vld [vmem:[%s6324_s9 + $0x40] sm:$0xff]  }
  0x67   : > { %v920_v42 = vrot.slane %v7844_v27, 4  ;;  %v5774_v27 = vld [vmem:[#allocation2 + $0x64] sm:$0xf]  ;;  %v5776_v30 = vld [vmem:[#allocation2 + $0x70] sm:$0xf0] }
  0x68   : > { %v1073_v54 = vld [vmem:[#allocation2 + $0xa4] sm:$0xf]  ;;  %v935_v35 = vrot.slane %v7851_v59, 4  ;;  %2523 = vmatpush.bf16.msra.mxu3 %v5892_v49 }
  0x69   : > { %v922_v6 = vor.u32 %v921_v24, %v920_v42  ;;  %v4690_v42 = vld [vmem:[#allocation2 + $0x6c] sm:$0xf0] }
  0x6b   : > { %2025 = vmatmul.bf16.vlgmr.msrb.gmra.mxu0 %v4645_v37  ;;  %1655 = vmatmul.bf16.vlgmr.msrb.gmra.mxu2 %v4457_v22  ;;  %v7843_v37 = vshrl.u32 %v6375_v39, 16 }
  0x6c   : > { %2074 = vmatmul.bf16.vlgmr.msrb.gmra.mxu1 %v4649_v7  ;;  %v913_v7 = vor.u32 %v912_v26, %v911_v8  ;;  %v4684_v26 = vld [vmem:[#allocation2 + $0x50] sm:$0xf]  ;;  %v4696_v24 = vld [vmem:[#allocation2 + $0x68] sm:$0xf] }
  0x6e   : > { %1976 = vmatmul.bf16.vlgmr.msrb.gmra.mxu3 %v4641_v5  ;;  %v917_v5 = vrot.slane %v7843_v37, 4  ;;  %v914_v48 = vrot.slane %v913_v7, 4  ;;  %v5821_v37 = vld [vmem:[#allocation2 + $0x70] sm:$0xf0] }
  0x70   : > { %v918_v9 = vor.u32 %v917_v5, %v915_v44  ;;  %v916_v2 = vsel %vm6750_vm13, %v914_v48, %v915_v44  ;;  %v4492_v44 = vld [vmem:[#allocation2 + $0x68] sm:$0xf]  ;;  %v4681_v5 = vor.u32 %v5771_v58, %v4678_v45  ;;  %v322_v48 = vld [vmem:[#allocation2 + $0xbc] sm:$0x8]  ;;  %v938_v58 = vrot.slane %v598_v25, 4 }
  0x71   : > { %1068 = vst [vmem:[#allocation2 + $0x80] sm:$0xf] %v916_v2  ;;  %v323_v36 = vsel %vm6699_vm10, 0, %v322_v48  ;;  %v5884_v2 = vld [vmem:[%s7791_s2 + $0x190] sm:$0xff]  ;;  %v939_v45 = vrot.slane %v601_v14, 5 }
  0x72   : > { %v919_v22 = vrot.slane %v918_v9, 4  ;;  %v4685_v9 = vor.u32 %v5773_v34, %v4684_v26  ;;  %324 = vst [vmem:[#allocation2 + $0xbc] sm:$0x8] %v323_v36  ;;  %2474 = vmatpush.bf16.msra.mxu2 %v5884_v2  ;;  %v944_v26 = vrot.slane %v606_v41, 4  ;;  %v4700_v41 = vld [vmem:[#allocation2 + $0x78] sm:$0xf] }
  0x73   : > { %v5777_v36 = vld [vmem:[#allocation2 + $0x7c] sm:$0xf] }
  0x74   : > { %v1070_v39 = vsel %vm6758_vm14, %v919_v22, %v1069_v63  ;;  %v4493_v22 = vor.u32 %v5821_v37, %v4492_v44  ;;  %v7848_v63 = vshrl.u32 %v6568_v20, 16  ;;  %v5980_v20 = vld [vmem:[%s7791_s2 + $0xd0] sm:$0xff]  ;;  %v940_v44 = vor.u32 %v939_v45, %v938_v58 }
  0x75   : > { %1071 = vst [vmem:[#allocation2 + $0x8c] sm:$0xf] %v1070_v39  ;;  %v930_v39 = vrot.slane %v7849_v18, 5  ;;  %3159 = vmatpush.bf16.msra.mxu1 %v5980_v20 }
  0x76   : > { %v929_v16 = vrot.slane %v7848_v63, 4  ;;  %v941_v25 = vrot.slane %v940_v44, 4  ;;  %v4702_v63 = vld [vmem:[#allocation2 + $0x84] sm:$0xf0] }
  0x79   : > { %v1077_v1 = vld [vmem:[#allocation2 + $0xbc] sm:$0xf]  ;;  %3160 = vmatpush.bf16.msra.mxu1 %v5979_v38 }
  0x7b   : > { %2030 = vmatmul.bf16.gmra.mxu0 %v4657_v57  ;;  %1660 = vmatmul.bf16.gmra.mxu2 %v4469_v0  ;;  %v927_v57 = vor.u32 %v926_v52, %v924_v62  ;;  %v4676_v0 = vld [vmem:[#allocation2 + $0x48] sm:$0xf]  ;;  %v4693_v52 = vor.u32 %v5774_v27, %v4690_v42 }
  0x7c   : > { %2079 = vmatmul.bf16.gmra.mxu1 %v4661_v56  ;;  %v5901_v56 = vld [vmem:[%s7791_s2 + $0x218] sm:$0xff]  ;;  %v4677_v7 = vor.u32 %v5772_v12, %v4676_v0  ;;  %v5824_v29 = vld [vmem:[#allocation2 + $0x88] sm:$0xf0] }
  0x7d   : > { %v928_v40 = vrot.slane %v927_v57, 4  ;;  %2571 = vmatpush.bf16.msra.mxu0 %v5901_v56  ;;  %v4689_v57 = vor.u32 %v5775_v55, %v4688_v3  ;;  %v325_v56 = vld [vmem:[#allocation2 + $0xd4] sm:$0x8]  ;;  %v277_v55 = vld [vmem:[#allocation2 + $0xd8] sm:$0x1] }
  0x7e   : > { %1981 = vmatmul.bf16.gmra.mxu3 %v4653_v11  ;;  %v923_v11 = vrot.slane %v922_v6, 4  ;;  %v326_v0 = vsel %vm6699_vm10, 0, %v325_v56 }
  0x7f   : > { %v1074_v8 = vsel %vm6758_vm14, %v928_v40, %v1073_v54  ;;  %327 = vst [vmem:[#allocation2 + $0xd4] sm:$0x8] %v326_v0  ;;  %v5883_v54 = vld [vmem:[%s7791_s2 + $0x188] sm:$0xff] }
  0x80   : > { %v925_v47 = vsel %vm6750_vm13, %v923_v11, %v924_v62  ;;  %1075 = vst [vmem:[#allocation2 + $0xa4] sm:$0xf] %v1074_v8  ;;  %v4504_v62 = vld [vmem:[#allocation2 + $0x80] sm:$0xf]  ;;  %v4697_v11 = vor.u32 %v5776_v30, %v4696_v24  ;;  %v942_v8 = vrot.slane %v609_v50, 5  ;;  %2475 = vmatpush.bf16.msra.mxu2 %v5883_v54  ;;  %v278_v24 = vsel %vm6327_vm2, 0, %v277_v55 }
  0x81   : > { %1072 = vst [vmem:[#allocation2 + $0x98] sm:$0xf] %v925_v47  ;;  %2572 = vmatpush.bf16.msra.mxu0 %v5900_v61  ;;  %v4505_v40 = vor.u32 %v5824_v29, %v4504_v62  ;;  %v5891_v47 = vld [vmem:[%s7791_s2 + $0x1c8] sm:$0xff]  ;;  %v5778_v50 = vld [vmem:[#allocation2 + $0x80] sm:$0xf0] }
  0x82   : > { %2524 = vmatpush.bf16.msra.mxu3 %v5891_v47  ;;  %v943_v49 = vsel %vm6750_vm13, %v941_v25, %v942_v8  ;;  %279 = vst [vmem:[#allocation2 + $0xd8] sm:$0x1] %v278_v24  ;;  %v5781_v25 = vld [vmem:[#allocation2 + $0x98] sm:$0xf0] }
  0x83   : > { %1080 = vst [vmem:[#allocation2 + $0xc8] sm:$0xf] %v943_v49 }
  0x85   : > { %2573 = vmatpush.bf16.msra.mxu0 %v5899_v33  ;;  %v5780_v33 = vld [vmem:[#allocation2 + $0x94] sm:$0xf] }
  0x86   : > { %v1081_v2 = vld [vmem:[#allocation2 + $0xd4] sm:$0xf] }
  0x87   : > { %v5827_v59 = vld [vmem:[#allocation2 + $0xa0] sm:$0xf0] }
  0x88   : > { %v5782_v49 = vld [vmem:[#allocation2 + $0xa0] sm:$0xf0] }
  0x8b   : > { %2035 = vmatmul.bf16.gmra.mxu0 %v4669_v28  ;;  %1665 = vmatmul.bf16.gmra.mxu2 %v4481_v15  ;;  %v931_v28 = vor.u32 %v930_v39, %v929_v16  ;;  %v4708_v16 = vld [vmem:[#allocation2 + $0x80] sm:$0xf]  ;;  %v5779_v39 = vld [vmem:[#allocation2 + $0x88] sm:$0xf0] }
  0x8c   : > { %2084 = vmatmul.bf16.gmra.mxu1 %v4673_v13  ;;  %v4709_v3 = vor.u32 %v5779_v39, %v4708_v16 }
  0x8d   : > { %v932_v13 = vrot.slane %v931_v28, 4  ;;  %v6085_v28 = vunpack.c.h.bf16 %v6201_v51 }
  0x8e   : > { %1986 = vmatmul.bf16.gmra.mxu3 %v4665_v46  ;;  %v936_v46 = vor.u32 %v935_v35, %v933_v17  ;;  %v6084_v35 = vunpack.c.l.bf16 %v6201_v51 }
  0x8f   : > { %v934_v31 = vsel %vm6750_vm13, %v932_v13, %v933_v17  ;;  %v4516_v17 = vld [vmem:[#allocation2 + $0x98] sm:$0xf]  ;;  %v4705_v13 = vor.u32 %v5777_v36, %v4702_v63 }
  0x90   : > { %v937_v15 = vrot.slane %v936_v46, 4  ;;  %1076 = vst [vmem:[#allocation2 + $0xb0] sm:$0xf] %v934_v31  ;;  %v435_v31 = vadd.f32 %v6084_v35, %v6343_v19 }
  0x92   : > { %v1078_v10 = vsel %vm6758_vm14, %v937_v15, %v1077_v1  ;;  %v4701_v15 = vor.u32 %v5778_v50, %v4700_v41  ;;  %v436_v1 = vadd.f32 %v6085_v28, %v6343_v19  ;;  %v6964_v62 = vpack.c.bf16 %v435_v31, %v435_v31  ;;  %v4714_v41 = vld [vmem:[#allocation2 + $0x9c] sm:$0xf0]  ;;  %v4720_v50 = vld [vmem:[#allocation2 + $0x98] sm:$0xf] }
  0x93   : > { %1079 = vst [vmem:[#allocation2 + $0xbc] sm:$0xf] %v1078_v10  ;;  %v4517_v10 = vor.u32 %v5827_v59, %v4516_v17  ;;  %v4717_v17 = vor.u32 %v5780_v33, %v4714_v41  ;;  %v4724_v41 = vld [vmem:[#allocation2 + $0xa8] sm:$0xf] }
  0x94   : > { %v6966_v29 = vpack.c.bf16 %v436_v1, %v436_v1  ;;  %856 = vst [vmem:[#allocation2 + $0xdc] sm:$0xf] %v6964_v62  ;;  %v7830_v56 = vshll.u32 %v6964_v62, 16 }
  0x96   : > { %857 = vst [vmem:[#allocation2 + $0xe8] sm:$0xf] %v6966_v29  ;;  %v7853_v4 = vshll.u32 %v6966_v29, 16 }
  0x97   : > { %v4528_v63 = vld [vmem:[#allocation2 + $0xb0] sm:$0xf] }
  0x9a   : > { %v5830_v16 = vld [vmem:[#allocation2 + $0xb8] sm:$0xf0] }
  0x9b   : > { %2040 = vmatmul.bf16.gmra.mxu0 %v4681_v5  ;;  %1670 = vmatmul.bf16.gmra.mxu2 %v4493_v22  ;;  %v4529_v55 = vor.u32 %v5830_v16, %v4528_v63  ;;  %v4732_v63 = vld [vmem:[#allocation2 + $0xb0] sm:$0xf]  ;;  %v5785_v16 = vld [vmem:[#allocation2 + $0xb8] sm:$0xf0] }
  0x9c   : > { %2089 = vmatmul.bf16.gmra.mxu1 %v4685_v9 }
  0x9e   : > { %1991 = vmatmul.bf16.gmra.mxu3 %v4677_v7  ;;  %v945_v7 = vor.u32 %v944_v26, %v942_v8 }
  0xa0   : > { %v946_v14 = vrot.slane %v945_v7, 4  ;;  %v5978_v7 = vld [vmem:[%s7791_s2 + $0xc0] sm:$0xff] }
  0xa1   : > { %3161 = vmatpush.bf16.msra.mxu1 %v5978_v7 }
  0xa2   : > { %v1082_v18 = vsel %vm6758_vm14, %v946_v14, %v1081_v2  ;;  %v808_v14 = vld [vmem:[#allocation2 + $0xd8] sm:$0xf]  ;;  %v6202_v2 = vld [vmem:[%s6324_s9 + $0x48] sm:$0xff]  }
  0xa3   : > { %1083 = vst [vmem:[#allocation2 + $0xd4] sm:$0xf] %v1082_v18  ;;  %v6088_v18 = vunpack.c.l.bf16 %v6202_v2  ;;  %v6089_v39 = vunpack.c.h.bf16 %v6202_v2  ;;  %v4726_v2 = vld [vmem:[#allocation2 + $0xb4] sm:$0xf0] }
  0xa8   : > { %v1558_v6 = vpop.f32.mrf.mxu0 }
  0xa9   : > { %v1607_v32 = vpop.f32.mrf.mxu1 }
  0xaa   : > { %v6925_v12 = vadd.f32 %v1607_v32, %v1558_v6  ;;  %v5882_v6 = vld [vmem:[%s7791_s2 + $0x180] sm:$0xff]  ;;  %v7825_v32 = vshll.u32 %v6966_v29, 16 }
  0xab   : > { %2045 = vmatmul.bf16.gmra.mxu0 %v4693_v52  ;;  %1675 = vmatmul.bf16.gmra.mxu2 %v4505_v40  ;;  %v5890_v52 = vld [vmem:[%s7791_s2 + $0x1c0] sm:$0xff] }
  0xac   : > { %2094 = vmatmul.bf16.gmra.mxu1 %v4697_v11  ;;  %v7824_v11 = vshrl.u32 %v6966_v29, 16  ;;  %2525 = vmatpush.bf16.msra.mxu3 %v5890_v52 }
  0xad   : > { %2476 = vmatpush.bf16.msra.mxu2 %v5882_v6  ;;  %v6001_v6 = vld [vmem:[%s7791_s2 + $0x178] sm:$0xff] }
  0xae   : > { %1996 = vmatmul.bf16.gmra.mxu3 %v4689_v57  ;;  %v1578_v37 = vpop.f32.mrf.mxu2  ;;  %v614_v57 = vshrl.u32 %v6964_v62, 16  ;;  %v624_v47 = vrot.slane %v7824_v11, 7 }
  0xb0   : > { %v1560_v5 = vpop.f32.mrf.mxu0  ;;  %v616_v0 = vrot.slane %v614_v57, 7  ;;  %v627_v44 = vor.u32 %v7825_v32, %v624_v47  ;;  %3252 = vmatpush.bf16.msrb.mxu3 %v6001_v6 }
  0xb1   : > { %v1627_v34 = vpop.f32.mrf.mxu3  ;;  %v1609_v48 = vpop.f32.mrf.mxu1 }
  0xb2   : > { %v6941_v9 = vadd.f32 %v1627_v34, %v1578_v37  ;;  %v6943_v22 = vadd.f32 %v1609_v48, %v1560_v5  ;;  %v619_v26 = vor.u32 %v7830_v56, %v616_v0  ;;  %v620_v34 = vrot.slane %v616_v0, 4  ;;  %v5898_v5 = vld [vmem:[%s7791_s2 + $0x200] sm:$0xff]  ;;  %v4712_v48 = vld [vmem:[#allocation2 + $0x90] sm:$0xf] }
  0xb3   : > { %2574 = vmatpush.bf16.msra.mxu0 %v5898_v5  ;;  %v4713_v28 = vor.u32 %v5781_v25, %v4712_v48 }
  0xb4   : > { %v628_v38 = vsel %vm6398_vm6, %v620_v34, %v627_v44  ;;  %v809_v36 = vsel %vm6414_vm7, %v619_v26, %v808_v14 }
  0xb5   : > { %811 = vst [vmem:[#allocation2 + $0xe4] sm:$0xf] %v628_v38 }
  0xb6   : > { %v1580_v61 = vpop.f32.mrf.mxu2  ;;  %810 = vst [vmem:[#allocation2 + $0xd8] sm:$0xf] %v809_v36 }
  0xb8   : > { %v1563_v20 = vpop.f32.mrf.mxu0 }
  0xb9   : > { %v1629_v46 = vpop.f32.mrf.mxu3  ;;  %v1612_v42 = vpop.f32.mrf.mxu1 }
  0xba   : > { %v6958_v27 = vadd.f32 %v1629_v46, %v1580_v61  ;;  %v6962_v30 = vadd.f32 %v1612_v42, %v1563_v20  ;;  %v4721_v46 = vor.u32 %v5782_v49, %v4720_v50  ;;  %v437_v61 = vadd.f32 %v6088_v18, %v6343_v19  ;;  %v5784_v50 = vld [vmem:[#allocation2 + $0xb0] sm:$0xf0]  ;;  %v5783_v49 = vld [vmem:[#allocation2 + $0xac] sm:$0xf] }
  0xbb   : > { %2050 = vmatmul.bf16.gmra.mxu0 %v4705_v13  ;;  %1680 = vmatmul.bf16.gmra.mxu2 %v4517_v10  ;;  %v280_v13 = vld [vmem:[#allocation2 + $0xf0] sm:$0x1]  ;;  %v438_v20 = vadd.f32 %v6089_v39, %v6343_v19  ;;  %v4540_v39 = vld [vmem:[#allocation2 + $0xc8] sm:$0xf] }
  0xbc   : > { %2099 = vmatmul.bf16.gmra.mxu1 %v4709_v3  ;;  %v281_v31 = vsel %vm6327_vm2, 0, %v280_v13  ;;  %v7011_v42 = vpack.c.bf16 %v437_v61, %v437_v61  ;;  %v6203_v18 = vld [vmem:[%s6324_s9 + $0x50] sm:$0xff]   ;;  %v5945_v13 = vld [vmem:[%s7791_s2 + $0x78] sm:$0xff] }
  0xbd   : > { %v7013_v10 = vpack.c.bf16 %v438_v20, %v438_v20  ;;  %282 = vst [vmem:[#allocation2 + $0xf0] sm:$0x1] %v281_v31  ;;  %v283_v31 = vld [vmem:[#allocation2 + $0x108] sm:$0x1]  ;;  %3622 = vmatpush.bf16.msrb.mxu1 %v5945_v13  ;;  %v4888_v13 = vld [vmem:[#allocation2 + $0x38] sm:$0xf] }
  0xbe   : > { %2001 = vmatmul.bf16.gmra.mxu3 %v4701_v15  ;;  %v1583_v54 = vpop.f32.mrf.mxu2  ;;  %v7819_v24 = vshrl.u32 %v7011_v42, 16  ;;  %858 = vst [vmem:[#allocation2 + $0xf4] sm:$0xf] %v7011_v42  ;;  %v7818_v47 = vshll.u32 %v7011_v42, 16 }
  0xbf   : > { %v7812_v52 = vshrl.u32 %v7013_v10, 16  ;;  %859 = vst [vmem:[#allocation2 + $0x100] sm:$0xf] %v7013_v10 }
  0xc0   : > { %v1565_v58 = vpop.f32.mrf.mxu0  ;;  %v632_v0 = vrot.slane %v7819_v24, 7 }
  0xc1   : > { %v1632_v40 = vpop.f32.mrf.mxu3  ;;  %v1614_v8 = vpop.f32.mrf.mxu1 }
  0xc2   : > { %v6984_v45 = vadd.f32 %v1632_v40, %v1583_v54  ;;  %v6990_v37 = vadd.f32 %v1614_v8, %v1565_v58  ;;  %v5993_v40 = vld [vmem:[%s7791_s2 + $0x138] sm:$0xff]  ;;  %v640_v54 = vrot.slane %v7812_v52, 7  ;;  %v7813_v58 = vshll.u32 %v7013_v10, 16 }
  0xc3   : > { %3203 = vmatpush.bf16.msrb.mxu2 %v5993_v40  ;;  %v635_v44 = vor.u32 %v7818_v47, %v632_v0  ;;  %v636_v5 = vrot.slane %v632_v0, 4 }
  0xc4   : > { %v643_v7 = vor.u32 %v7813_v58, %v640_v54  ;;  %v812_v14 = vld [vmem:[#allocation2 + $0xf0] sm:$0xf] }
  0xc5   : > { %v813_v36 = vsel %vm6414_vm7, %v635_v44, %v812_v14 }
  0xc6   : > { %v1585_v59 = vpop.f32.mrf.mxu2  ;;  %v644_v38 = vsel %vm6398_vm6, %v636_v5, %v643_v7  ;;  %814 = vst [vmem:[#allocation2 + $0xf0] sm:$0xf] %v813_v36  ;;  %v5992_v36 = vld [vmem:[%s7791_s2 + $0x130] sm:$0xff] }
  0xc7   : > { %815 = vst [vmem:[#allocation2 + $0xfc] sm:$0xf] %v644_v38  ;;  %3204 = vmatpush.bf16.msrb.mxu2 %v5992_v36 }
  0xc8   : > { %v1568_v35 = vpop.f32.mrf.mxu0 }
  0xc9   : > { %v1634_v51 = vpop.f32.mrf.mxu3  ;;  %v1617_v3 = vpop.f32.mrf.mxu1 }
  0xca   : > { %v7005_v15 = vadd.f32 %v1634_v51, %v1585_v59  ;;  %v7009_v1 = vadd.f32 %v1617_v3, %v1568_v35  ;;  %v5833_v51 = vld [vmem:[#allocation2 + $0xd0] sm:$0xf0]  ;;  %v6093_v59 = vunpack.c.h.bf16 %v6203_v18  ;;  %v4725_v3 = vor.u32 %v5784_v50, %v4724_v41 }
  0xcb   : > { %2055 = vmatmul.bf16.gmra.mxu0 %v4717_v17  ;;  %1685 = vmatmul.bf16.gmra.mxu2 %v4529_v55  ;;  %v6092_v17 = vunpack.c.l.bf16 %v6203_v18  ;;  %v4733_v55 = vor.u32 %v5785_v16, %v4732_v63  ;;  %v6000_v50 = vld [vmem:[%s7791_s2 + $0x170] sm:$0xff] }
  0xcc   : > { %2104 = vmatmul.bf16.gmra.mxu1 %v4721_v46  ;;  %v5937_v46 = vld [vmem:[%s7791_s2 + $0x38] sm:$0xff]  ;;  %v440_v40 = vadd.f32 %v6093_v59, %v6343_v19  ;;  %3253 = vmatpush.bf16.msrb.mxu3 %v6000_v50 }
  0xcd   : > { %v439_v6 = vadd.f32 %v6092_v17, %v6343_v19  ;;  %3573 = vmatpush.bf16.msrb.mxu0 %v5937_v46  ;;  %v4882_v46 = vld [vmem:[#allocation2 + $0x3c] sm:$0xf0] }
  0xce   : > { %2006 = vmatmul.bf16.gmra.mxu3 %v4713_v28  ;;  %v1588_v26 = vpop.f32.mrf.mxu2  ;;  %v4729_v28 = vor.u32 %v5783_v49, %v4726_v2  ;;  %v7060_v5 = vpack.c.bf16 %v440_v40, %v440_v40  ;;  %v6204_v40 = vld [vmem:[%s6324_s9 + $0x58] sm:$0xff]  }
  0xcf   : > { %v7058_v44 = vpack.c.bf16 %v439_v6, %v439_v6  ;;  %v5120_v6 = vld [vmem:[#allocation2 + $0xd8] sm:$0xf] }
  0xd0   : > { %v1570_v34 = vpop.f32.mrf.mxu0  ;;  %v7808_v14 = vshll.u32 %v7060_v5, 16  ;;  %861 = vst [vmem:[#allocation2 + $0x118] sm:$0xf] %v7060_v5 }
  0xd1   : > { %v1637_v8 = vpop.f32.mrf.mxu3  ;;  %v1619_v25 = vpop.f32.mrf.mxu1  ;;  %v7811_v7 = vshrl.u32 %v7058_v44, 16  ;;  %860 = vst [vmem:[#allocation2 + $0x10c] sm:$0xf] %v7058_v44  ;;  %v7810_v38 = vshll.u32 %v7058_v44, 16 }
  0xd2   : > { %v7035_v48 = vadd.f32 %v1637_v8, %v1588_v26  ;;  %v7037_v33 = vadd.f32 %v1619_v25, %v1570_v34  ;;  %v4541_v8 = vor.u32 %v5833_v51, %v4540_v39  ;;  %v284_v26 = vsel %vm6327_vm2, 0, %v283_v31 }
  0xd3   : > { %285 = vst [vmem:[#allocation2 + $0x108] sm:$0x1] %v284_v26  ;;  %v7804_v25 = vshrl.u32 %v7060_v5, 16  ;;  %v648_v49 = vrot.slane %v7811_v7, 7  ;;  %v6096_v26 = vunpack.c.l.bf16 %v6204_v40 }
  0xd5   : > { %v656_v2 = vrot.slane %v7804_v25, 7  ;;  %v651_v51 = vor.u32 %v7810_v38, %v648_v49  ;;  %v652_v17 = vrot.slane %v648_v49, 4  ;;  %v5936_v49 = vld [vmem:[%s7791_s2 + $0x30] sm:$0xff] }
  0xd6   : > { %v1590_v61 = vpop.f32.mrf.mxu2  ;;  %3574 = vmatpush.bf16.msrb.mxu0 %v5936_v49 }
  0xd7   : > { %v659_v59 = vor.u32 %v7808_v14, %v656_v2  ;;  %v5944_v2 = vld [vmem:[%s7791_s2 + $0x70] sm:$0xff]  ;;  %v4892_v14 = vld [vmem:[#allocation2 + $0x48] sm:$0xf] }
  0xd8   : > { %v1573_v20 = vpop.f32.mrf.mxu0  ;;  %3623 = vmatpush.bf16.msrb.mxu1 %v5944_v2 }
  0xd9   : > { %v1639_v35 = vpop.f32.mrf.mxu3  ;;  %v1622_v54 = vpop.f32.mrf.mxu1 }
  0xda   : > { %v7052_v0 = vadd.f32 %v1639_v35, %v1590_v61  ;;  %v7056_v34 = vadd.f32 %v1622_v54, %v1573_v20  ;;  %v660_v61 = vsel %vm6398_vm6, %v652_v17, %v659_v59  ;;  %v816_v20 = vld [vmem:[#allocation2 + $0x108] sm:$0xf]  ;;  %v4880_v54 = vld [vmem:[#allocation2 + $0x30] sm:$0xf]  ;;  %v286_v17 = vld [vmem:[#allocation2 + $0x120] sm:$0x1]  ;;  %v441_v59 = vadd.f32 %v6096_v26, %v6343_v19 }
  0xdb   : > { %2060 = vmatmul.bf16.gmra.mxu0 %v4729_v28  ;;  %1690 = vmatmul.bf16.gmra.mxu2 %v4541_v8  ;;  %v5858_v28 = vld [vmem:[#allocation2 + $0x34] sm:$0xf]  ;;  %v817_v31 = vsel %vm6414_vm7, %v651_v51, %v816_v20  ;;  %819 = vst [vmem:[#allocation2 + $0x114] sm:$0xf] %v660_v61  ;;  %v5859_v8 = vld [vmem:[#allocation2 + $0x38] sm:$0xf0] }
  0xdc   : > { %2109 = vmatmul.bf16.gmra.mxu1 %v4733_v55  ;;  %v5955_v55 = vld [vmem:[#allocation2 + $0xe0] sm:$0xf0]  ;;  %818 = vst [vmem:[#allocation2 + $0x108] sm:$0xf] %v817_v31  ;;  %v287_v31 = vsel %vm6327_vm2, 0, %v286_v17  ;;  %v5991_v26 = vld [vmem:[%s7791_s2 + $0x128] sm:$0xff] }
  0xdd   : > { %v5121_v51 = vor.u32 %v5955_v55, %v5120_v6  ;;  %288 = vst [vmem:[#allocation2 + $0x120] sm:$0x1] %v287_v31  ;;  %3205 = vmatpush.bf16.msrb.mxu2 %v5991_v26  ;;  %v4900_v31 = vld [vmem:[#allocation2 + $0x50] sm:$0xf] }
  0xde   : > { %2011 = vmatmul.bf16.gmra.mxu3 %v4725_v3  ;;  %v1593_v63 = vpop.f32.mrf.mxu2  ;;  %v5860_v3 = vld [vmem:[#allocation2 + $0x40] sm:$0xf0] }
  0xdf   : > { %v4889_v36 = vor.u32 %v5860_v3, %v4888_v13  ;;  %v4881_v3 = vor.u32 %v5859_v8, %v4880_v54  ;;  %v5999_v8 = vld [vmem:[%s7791_s2 + $0x168] sm:$0xff] }
  0xe0   : > { %v1575_v16 = vpop.f32.mrf.mxu0  ;;  %3254 = vmatpush.bf16.msrb.mxu3 %v5999_v8 }
  0xe1   : > { %v1642_v41 = vpop.f32.mrf.mxu3  ;;  %v1624_v39 = vpop.f32.mrf.mxu1 }
  0xe2   : > { %v7078_v18 = vadd.f32 %v1642_v41, %v1593_v63  ;;  %v7084_v35 = vadd.f32 %v1624_v39, %v1575_v16  ;;  %v6097_v41 = vunpack.c.h.bf16 %v6204_v40  ;;  %v4885_v39 = vor.u32 %v5858_v28, %v4882_v46 }
  0xe3   : > { %v7103_v40 = vpack.c.bf16 %v441_v59, %v441_v59 }
  0xe4   : > { %v442_v61 = vadd.f32 %v6097_v41, %v6343_v19 }
  0xe5   : > { %v7806_v28 = vshrl.u32 %v7103_v40, 16  ;;  %862 = vst [vmem:[#allocation2 + $0x124] sm:$0xf] %v7103_v40  ;;  %v7807_v55 = vshll.u32 %v7103_v40, 16 }
  0xe6   : > { %v1595_v63 = vpop.f32.mrf.mxu2  ;;  %v7105_v25 = vpack.c.bf16 %v442_v61, %v442_v61  ;;  %v5861_v61 = vld [vmem:[#allocation2 + $0x4c] sm:$0xf] }
  0xe7   : > { %v664_v41 = vrot.slane %v7806_v28, 7  ;;  %v820_v28 = vld [vmem:[#allocation2 + $0x120] sm:$0xf] }
  0xe8   : > { %v2026_v16 = vpop.f32.mrf.mxu0  ;;  %v7805_v46 = vshrl.u32 %v7105_v25, 16  ;;  %v7809_v6 = vshll.u32 %v7105_v25, 16  ;;  %863 = vst [vmem:[#allocation2 + $0x130] sm:$0xf] %v7105_v25 }
  0xe9   : > { %v1644_v50 = vpop.f32.mrf.mxu3  ;;  %v2075_v13 = vpop.f32.mrf.mxu1 }
  0xea   : > { %v7099_v20 = vadd.f32 %v1644_v50, %v1595_v63  ;;  %v672_v50 = vrot.slane %v7805_v46, 7 }
  0xeb   : > { %2575 = vmatmul.bf16.vlgmr.msra.gmra.mxu0 %v4889_v36  ;;  %2477 = vmatmul.bf16.vlgmr.msra.gmra.mxu2 %v4881_v3  ;;  %v4894_v3 = vld [vmem:[#allocation2 + $0x54] sm:$0xf0] }
  0xec   : > { %3162 = vmatmul.bf16.vlgmr.msra.gmra.mxu1 %v5121_v51  ;;  %v668_v51 = vrot.slane %v664_v41, 4  ;;  %v675_v17 = vor.u32 %v7809_v6, %v672_v50  ;;  %v5862_v50 = vld [vmem:[#allocation2 + $0x50] sm:$0xf0] }
  0xee   : > { %2526 = vmatmul.bf16.vlgmr.msra.gmra.mxu3 %v4885_v39  ;;  %v1656_v36 = vpop.f32.mrf.mxu2  ;;  %v667_v39 = vor.u32 %v7807_v55, %v664_v41  ;;  %v676_v46 = vsel %vm6398_vm6, %v668_v51, %v675_v17  ;;  %v5958_v55 = vld [vmem:[#allocation2 + $0xf8] sm:$0xf0]  ;;  %v6205_v41 = vld [vmem:[%s6324_s9 + $0x60] sm:$0xff]   ;;  %v5935_v51 = vld [vmem:[%s7791_s2 + $0x28] sm:$0xff] }
  0xef   : > { %v1657_v2 = vadd.f32 %v1656_v36, %v6925_v12  ;;  %v5863_v12 = vld [vmem:[#allocation2 + $0x58] sm:$0xf0]  ;;  %v5132_v36 = vld [vmem:[#allocation2 + $0xf0] sm:$0xf]  ;;  %823 = vst [vmem:[#allocation2 + $0x12c] sm:$0xf] %v676_v46  ;;  %3575 = vmatpush.bf16.msrb.mxu0 %v5935_v51 }
  0xf0   : > { %v2028_v49 = vpop.f32.mrf.mxu0  ;;  %v821_v8 = vsel %vm6414_vm7, %v667_v39, %v820_v28  ;;  %v4901_v7 = vor.u32 %v5863_v12, %v4900_v31  ;;  %v5943_v28 = vld [vmem:[%s7791_s2 + $0x68] sm:$0xff]  ;;  %v4897_v39 = vor.u32 %v5861_v61, %v4894_v3  ;;  %v5133_v17 = vor.u32 %v5958_v55, %v5132_v36 }
  0xf1   : > { %v1977_v54 = vpop.f32.mrf.mxu3  ;;  %v2077_v63 = vpop.f32.mrf.mxu1  ;;  %822 = vst [vmem:[#allocation2 + $0x120] sm:$0xf] %v821_v8  ;;  %v4893_v12 = vor.u32 %v5862_v50, %v4892_v14  ;;  %3624 = vmatpush.bf16.msrb.mxu1 %v5943_v28 }
  0xf2   : > { %v1978_v59 = vadd.f32 %v1977_v54, %v1657_v2  ;;  %v6100_v54 = vunpack.c.l.bf16 %v6205_v41  ;;  %v6101_v2 = vunpack.c.h.bf16 %v6205_v41 }
  0xf4   : > { %v2027_v26 = vadd.f32 %v2026_v16, %v1978_v59  ;;  %v289_v59 = vld [vmem:[#allocation2 + $0x138] sm:$0x1]  ;;  %v443_v8 = vadd.f32 %v6100_v54, %v6343_v19 }
  0xf5   : > { %v290_v41 = vsel %vm6327_vm2, 0, %v289_v59 }
  0xf6   : > { %v7133_v6 = vadd.f32 %v2075_v13, %v2027_v26  ;;  %v1658_v16 = vpop.f32.mrf.mxu2  ;;  %v444_v13 = vadd.f32 %v6101_v2, %v6343_v19  ;;  %v7146_v52 = vpack.c.bf16 %v443_v8, %v443_v8  ;;  %291 = vst [vmem:[#allocation2 + $0x138] sm:$0x1] %v290_v41 }
  0xf7   : > { %v1659_v26 = vadd.f32 %v1658_v16, %v6943_v22 }
  0xf8   : > { %v2031_v46 = vpop.f32.mrf.mxu0  ;;  %v7148_v58 = vpack.c.bf16 %v444_v13, %v444_v13  ;;  %v7817_v22 = vshrl.u32 %v7146_v52, 16  ;;  %864 = vst [vmem:[#allocation2 + $0x13c] sm:$0xf] %v7146_v52  ;;  %v7816_v3 = vshll.u32 %v7146_v52, 16  ;;  %v5864_v13 = vld [vmem:[#allocation2 + $0x64] sm:$0xf] }
  0xf9   : > { %v1979_v38 = vpop.f32.mrf.mxu3  ;;  %v2080_v31 = vpop.f32.mrf.mxu1 }
  0xfa   : > { %v1980_v61 = vadd.f32 %v1979_v38, %v1659_v26  ;;  %v7814_v14 = vshrl.u32 %v7148_v58, 16  ;;  %v7815_v36 = vshll.u32 %v7148_v58, 16  ;;  %865 = vst [vmem:[#allocation2 + $0x148] sm:$0xf] %v7148_v58  ;;  %v5998_v38 = vld [vmem:[%s7791_s2 + $0x160] sm:$0xff]  ;;  %v680_v54 = vrot.slane %v7817_v22, 7 }
  0xfb   : > { %2580 = vmatmul.bf16.gmra.mxu0 %v4901_v7  ;;  %2482 = vmatmul.bf16.gmra.mxu2 %v4893_v12  ;;  %v4906_v26 = vld [vmem:[#allocation2 + $0x6c] sm:$0xf0]  ;;  %v4912_v12 = vld [vmem:[#allocation2 + $0x68] sm:$0xf] }
  0xfc   : > { %3167 = vmatmul.bf16.gmra.mxu1 %v5133_v17  ;;  %v2029_v55 = vadd.f32 %v2028_v49, %v1980_v61  ;;  %v5990_v49 = vld [vmem:[%s7791_s2 + $0x120] sm:$0xff]  ;;  %v688_v2 = vrot.slane %v7814_v14, 7  ;;  %3255 = vmatpush.bf16.msrb.mxu3 %v5998_v38  ;;  %v684_v17 = vrot.slane %v680_v54, 4 }
  0xfd   : > { %3206 = vmatpush.bf16.msrb.mxu2 %v5990_v49  ;;  %v824_v61 = vld [vmem:[#allocation2 + $0x138] sm:$0xf]  ;;  %v4904_v14 = vld [vmem:[#allocation2 + $0x60] sm:$0xf] }
  0xfe   : > { %2531 = vmatmul.bf16.gmra.mxu3 %v4897_v39  ;;  %v7156_v50 = vadd.f32 %v2077_v63, %v2029_v55  ;;  %v1661_v51 = vpop.f32.mrf.mxu2  ;;  %v683_v39 = vor.u32 %v7816_v3, %v680_v54  ;;  %v691_v59 = vor.u32 %v7815_v36, %v688_v2  ;;  %v5144_v55 = vld [vmem:[#allocation2 + $0x108] sm:$0xf]  ;;  %v5865_v2 = vld [vmem:[#allocation2 + $0x68] sm:$0xf0] }
  0xff   : > { %v1662_v63 = vadd.f32 %v1661_v51, %v6962_v30  ;;  %v5866_v30 = vld [vmem:[#allocation2 + $0x70] sm:$0xf0]  ;;  %v6206_v54 = vld [vmem:[%s6324_s9 + $0x68] sm:$0xff]  }
 0x100   : > { %v2033_v28 = vpop.f32.mrf.mxu0  ;;  %v692_v41 = vsel %vm6398_vm6, %v684_v17, %v691_v59  ;;  %v825_v38 = vsel %vm6414_vm7, %v683_v39, %v824_v61  ;;  %v5961_v51 = vld [vmem:[#allocation2 + $0x110] sm:$0xf0]  ;;  %v4913_v22 = vor.u32 %v5866_v30, %v4912_v12  ;;  %v5934_v17 = vld [vmem:[%s7791_s2 + $0x20] sm:$0xff]  ;;  %v292_v61 = vld [vmem:[#allocation2 + $0x150] sm:$0x1]  ;;  %v4905_v30 = vor.u32 %v5865_v2, %v4904_v14 }
 0x101   : > { %v1982_v7 = vpop.f32.mrf.mxu3  ;;  %v2082_v16 = vpop.f32.mrf.mxu1  ;;  %827 = vst [vmem:[#allocation2 + $0x144] sm:$0xf] %v692_v41  ;;  %v5942_v39 = vld [vmem:[%s7791_s2 + $0x60] sm:$0xff]  ;;  %v5145_v41 = vor.u32 %v5961_v51, %v5144_v55  ;;  %3576 = vmatpush.bf16.msrb.mxu0 %v5934_v17 }
 0x102   : > { %v1983_v8 = vadd.f32 %v1982_v7, %v1662_v63  ;;  %826 = vst [vmem:[#allocation2 + $0x138] sm:$0xf] %v825_v38  ;;  %v6104_v7 = vunpack.c.l.bf16 %v6206_v54  ;;  %v6105_v63 = vunpack.c.h.bf16 %v6206_v54  ;;  %3625 = vmatpush.bf16.msrb.mxu1 %v5942_v39  ;;  %v293_v54 = vsel %vm6327_vm2, 0, %v292_v61 }
 0x103   : > { %294 = vst [vmem:[#allocation2 + $0x150] sm:$0x1] %v293_v54 }
 0x104   : > { %v2032_v49 = vadd.f32 %v2031_v46, %v1983_v8  ;;  %v4909_v8 = vor.u32 %v5864_v13, %v4906_v26  ;;  %v445_v38 = vadd.f32 %v6104_v7, %v6343_v19 }
 0x106   : > { %v7178_v36 = vadd.f32 %v2080_v31, %v2032_v49  ;;  %v1663_v46 = vpop.f32.mrf.mxu2  ;;  %v446_v31 = vadd.f32 %v6105_v63, %v6343_v19  ;;  %v7191_v47 = vpack.c.bf16 %v445_v38, %v445_v38 }
 0x107   : > { %v1664_v49 = vadd.f32 %v1663_v46, %v6990_v37 }
 0x108   : > { %v2036_v59 = vpop.f32.mrf.mxu0  ;;  %v7193_v24 = vpack.c.bf16 %v446_v31, %v446_v31  ;;  %v7823_v37 = vshrl.u32 %v7191_v47, 16  ;;  %866 = vst [vmem:[#allocation2 + $0x154] sm:$0xf] %v7191_v47  ;;  %v7822_v55 = vshll.u32 %v7191_v47, 16  ;;  %v5867_v31 = vld [vmem:[#allocation2 + $0x7c] sm:$0xf] }
 0x109   : > { %v1984_v3 = vpop.f32.mrf.mxu3  ;;  %v2085_v12 = vpop.f32.mrf.mxu1 }
 0x10a   : > { %v1985_v13 = vadd.f32 %v1984_v3, %v1664_v49  ;;  %v7820_v14 = vshrl.u32 %v7193_v24, 16  ;;  %v7821_v51 = vshll.u32 %v7193_v24, 16  ;;  %867 = vst [vmem:[#allocation2 + $0x160] sm:$0xf] %v7193_v24  ;;  %v5997_v3 = vld [vmem:[%s7791_s2 + $0x158] sm:$0xff]  ;;  %v696_v7 = vrot.slane %v7823_v37, 7 }
 0x10b   : > { %2585 = vmatmul.bf16.gmra.mxu0 %v4913_v22  ;;  %2487 = vmatmul.bf16.gmra.mxu2 %v4905_v30  ;;  %v4918_v49 = vld [vmem:[#allocation2 + $0x84] sm:$0xf0]  ;;  %v4924_v30 = vld [vmem:[#allocation2 + $0x80] sm:$0xf] }
 0x10c   : > { %3172 = vmatmul.bf16.gmra.mxu1 %v5145_v41  ;;  %v2034_v26 = vadd.f32 %v2033_v28, %v1985_v13  ;;  %v5989_v28 = vld [vmem:[%s7791_s2 + $0x118] sm:$0xff]  ;;  %v704_v63 = vrot.slane %v7820_v14, 7  ;;  %3256 = vmatpush.bf16.msrb.mxu3 %v5997_v3  ;;  %v700_v41 = vrot.slane %v696_v7, 4  ;;  %v828_v13 = vld [vmem:[#allocation2 + $0x150] sm:$0xf] }
 0x10d   : > { %3207 = vmatpush.bf16.msrb.mxu2 %v5989_v28  ;;  %v4916_v14 = vld [vmem:[#allocation2 + $0x78] sm:$0xf] }
 0x10e   : > { %2536 = vmatmul.bf16.gmra.mxu3 %v4909_v8  ;;  %v7201_v2 = vadd.f32 %v2082_v16, %v2034_v26  ;;  %v1666_v17 = vpop.f32.mrf.mxu2  ;;  %v699_v8 = vor.u32 %v7822_v55, %v696_v7  ;;  %v707_v61 = vor.u32 %v7821_v51, %v704_v63  ;;  %v5156_v26 = vld [vmem:[#allocation2 + $0x120] sm:$0xf]  ;;  %v6207_v7 = vld [vmem:[%s6324_s9 + $0x70] sm:$0xff]   ;;  %v5868_v63 = vld [vmem:[#allocation2 + $0x80] sm:$0xf0] }
 0x10f   : > { %v1667_v16 = vadd.f32 %v1666_v17, %v7009_v1  ;;  %v5869_v1 = vld [vmem:[#allocation2 + $0x88] sm:$0xf0] }
 0x110   : > { %v2038_v39 = vpop.f32.mrf.mxu0  ;;  %v708_v54 = vsel %vm6398_vm6, %v700_v41, %v707_v61  ;;  %v829_v3 = vsel %vm6414_vm7, %v699_v8, %v828_v13  ;;  %v5964_v17 = vld [vmem:[#allocation2 + $0x128] sm:$0xf0]  ;;  %v4925_v37 = vor.u32 %v5869_v1, %v4924_v30  ;;  %v5933_v41 = vld [vmem:[%s7791_s2 + $0x18] sm:$0xff]  ;;  %v295_v13 = vld [vmem:[#allocation2 + $0x168] sm:$0x1]  ;;  %v4917_v1 = vor.u32 %v5868_v63, %v4916_v14 }
 0x111   : > { %v1987_v22 = vpop.f32.mrf.mxu3  ;;  %v2087_v46 = vpop.f32.mrf.mxu1  ;;  %831 = vst [vmem:[#allocation2 + $0x15c] sm:$0xf] %v708_v54  ;;  %v5941_v8 = vld [vmem:[%s7791_s2 + $0x58] sm:$0xff]  ;;  %v5157_v54 = vor.u32 %v5964_v17, %v5156_v26  ;;  %3577 = vmatpush.bf16.msrb.mxu0 %v5933_v41 }
 0x112   : > { %v1988_v38 = vadd.f32 %v1987_v22, %v1667_v16  ;;  %830 = vst [vmem:[#allocation2 + $0x150] sm:$0xf] %v829_v3  ;;  %v6108_v22 = vunpack.c.l.bf16 %v6207_v7  ;;  %v6109_v16 = vunpack.c.h.bf16 %v6207_v7  ;;  %3626 = vmatpush.bf16.msrb.mxu1 %v5941_v8  ;;  %v296_v7 = vsel %vm6327_vm2, 0, %v295_v13 }
 0x113   : > { %297 = vst [vmem:[#allocation2 + $0x168] sm:$0x1] %v296_v7 }
 0x114   : > { %v2037_v28 = vadd.f32 %v2036_v59, %v1988_v38  ;;  %v4921_v38 = vor.u32 %v5867_v31, %v4918_v49  ;;  %v447_v3 = vadd.f32 %v6108_v22, %v6343_v19 }
 0x116   : > { %v7223_v51 = vadd.f32 %v2085_v12, %v2037_v28  ;;  %v1668_v59 = vpop.f32.mrf.mxu2  ;;  %v448_v12 = vadd.f32 %v6109_v16, %v6343_v19  ;;  %v7236_v11 = vpack.c.bf16 %v447_v3, %v447_v3 }
 0x117   : > { %v1669_v28 = vadd.f32 %v1668_v59, %v7037_v33 }
 0x118   : > { %v2041_v61 = vpop.f32.mrf.mxu0  ;;  %v7238_v32 = vpack.c.bf16 %v448_v12, %v448_v12  ;;  %v7829_v33 = vshrl.u32 %v7236_v11, 16  ;;  %868 = vst [vmem:[#allocation2 + $0x16c] sm:$0xf] %v7236_v11  ;;  %v7828_v26 = vshll.u32 %v7236_v11, 16  ;;  %v5870_v12 = vld [vmem:[#allocation2 + $0x94] sm:$0xf] }
 0x119   : > { %v1989_v55 = vpop.f32.mrf.mxu3  ;;  %v2090_v30 = vpop.f32.mrf.mxu1 }
 0x11a   : > { %v1990_v31 = vadd.f32 %v1989_v55, %v1669_v28  ;;  %v7826_v14 = vshrl.u32 %v7238_v32, 16  ;;  %v7827_v17 = vshll.u32 %v7238_v32, 16  ;;  %869 = vst [vmem:[#allocation2 + $0x178] sm:$0xf] %v7238_v32  ;;  %v5996_v55 = vld [vmem:[%s7791_s2 + $0x150] sm:$0xff]  ;;  %v712_v22 = vrot.slane %v7829_v33, 7 }
 0x11b   : > { %2590 = vmatmul.bf16.gmra.mxu0 %v4925_v37  ;;  %2492 = vmatmul.bf16.gmra.mxu2 %v4917_v1  ;;  %v4930_v28 = vld [vmem:[#allocation2 + $0x9c] sm:$0xf0]  ;;  %v4936_v1 = vld [vmem:[#allocation2 + $0x98] sm:$0xf] }
 0x11c   : > { %3177 = vmatmul.bf16.gmra.mxu1 %v5157_v54  ;;  %v2039_v49 = vadd.f32 %v2038_v39, %v1990_v31  ;;  %v5988_v39 = vld [vmem:[%s7791_s2 + $0x110] sm:$0xff]  ;;  %v720_v16 = vrot.slane %v7826_v14, 7  ;;  %3257 = vmatpush.bf16.msrb.mxu3 %v5996_v55  ;;  %v716_v54 = vrot.slane %v712_v22, 4  ;;  %v832_v31 = vld [vmem:[#allocation2 + $0x168] sm:$0xf] }
 0x11d   : > { %3208 = vmatpush.bf16.msrb.mxu2 %v5988_v39  ;;  %v4928_v14 = vld [vmem:[#allocation2 + $0x90] sm:$0xf] }
 0x11e   : > { %2541 = vmatmul.bf16.gmra.mxu3 %v4921_v38  ;;  %v7246_v63 = vadd.f32 %v2087_v46, %v2039_v49  ;;  %v1671_v41 = vpop.f32.mrf.mxu2  ;;  %v715_v38 = vor.u32 %v7828_v26, %v712_v22  ;;  %v723_v13 = vor.u32 %v7827_v17, %v720_v16  ;;  %v5168_v49 = vld [vmem:[#allocation2 + $0x138] sm:$0xf]  ;;  %v5871_v16 = vld [vmem:[#allocation2 + $0x98] sm:$0xf0] }
 0x11f   : > { %v1672_v46 = vadd.f32 %v1671_v41, %v7056_v34  ;;  %v5872_v34 = vld [vmem:[#allocation2 + $0xa0] sm:$0xf0]  ;;  %v6208_v22 = vld [vmem:[%s6324_s9 + $0x78] sm:$0xff]  }
 0x120   : > { %v2043_v8 = vpop.f32.mrf.mxu0  ;;  %v724_v7 = vsel %vm6398_vm6, %v716_v54, %v723_v13  ;;  %v833_v55 = vsel %vm6414_vm7, %v715_v38, %v832_v31  ;;  %v5967_v41 = vld [vmem:[#allocation2 + $0x140] sm:$0xf0]  ;;  %v4937_v33 = vor.u32 %v5872_v34, %v4936_v1  ;;  %v5932_v54 = vld [vmem:[%s7791_s2 + $0x10] sm:$0xff]  ;;  %v328_v31 = vld [vmem:[#allocation2 + $0xec] sm:$0x8] }
 0x121   : > { %v1992_v37 = vpop.f32.mrf.mxu3  ;;  %v2092_v59 = vpop.f32.mrf.mxu1  ;;  %835 = vst [vmem:[#allocation2 + $0x174] sm:$0xf] %v724_v7  ;;  %v5940_v38 = vld [vmem:[%s7791_s2 + $0x50] sm:$0xff]  ;;  %v5169_v7 = vor.u32 %v5967_v41, %v5168_v49  ;;  %3578 = vmatpush.bf16.msrb.mxu0 %v5932_v54  ;;  %v329_v56 = vsel %vm6699_vm10, 0, %v328_v31 }
 0x122   : > { %v1993_v3 = vadd.f32 %v1992_v37, %v1672_v46  ;;  %834 = vst [vmem:[#allocation2 + $0x168] sm:$0xf] %v833_v55  ;;  %v6112_v37 = vunpack.c.l.bf16 %v6208_v22  ;;  %v6113_v46 = vunpack.c.h.bf16 %v6208_v22  ;;  %v298_v55 = vld [vmem:[#allocation2 + $0x180] sm:$0x1]  ;;  %v4929_v22 = vor.u32 %v5871_v16, %v4928_v14  ;;  %3627 = vmatpush.bf16.msrb.mxu1 %v5940_v38 }
 0x123   : > { %330 = vst [vmem:[#allocation2 + $0xec] sm:$0x8] %v329_v56  ;;  %v7852_v14 = vshll.u32 %v6964_v62, 16  ;;  %v5995_v62 = vld [vmem:[%s7791_s2 + $0x148] sm:$0xff] }
 0x124   : > { %v2042_v39 = vadd.f32 %v2041_v61, %v1993_v3  ;;  %v4933_v3 = vor.u32 %v5870_v12, %v4930_v28  ;;  %v299_v12 = vsel %vm6327_vm2, 0, %v298_v55  ;;  %3258 = vmatpush.bf16.msrb.mxu3 %v5995_v62 }
 0x125   : > { %v948_v16 = vrot.slane %v7852_v14, 5  ;;  %300 = vst [vmem:[#allocation2 + $0x180] sm:$0x1] %v299_v12  ;;  %v4942_v14 = vld [vmem:[#allocation2 + $0xb4] sm:$0xf0] }
 0x126   : > { %v7268_v17 = vadd.f32 %v2090_v30, %v2042_v39  ;;  %v1673_v61 = vpop.f32.mrf.mxu2  ;;  %v449_v30 = vadd.f32 %v6112_v37, %v6343_v19  ;;  %v450_v39 = vadd.f32 %v6113_v46, %v6343_v19  ;;  %v951_v37 = vrot.slane %v7853_v4, 5  ;;  %3628 = vmatpush.bf16.msrb.mxu1 %v5939_v53 }
 0x127   : > { %v1674_v1 = vadd.f32 %v1673_v61, %v7084_v35  ;;  %v947_v35 = vrot.slane %v614_v57, 4  ;;  %v5987_v57 = vld [vmem:[%s7791_s2 + $0x108] sm:$0xff] }
 0x128   : > { %v7276_v13 = vpop.f32.mrf.mxu0  ;;  %v7287_v28 = vpack.c.bf16 %v449_v30, %v449_v30  ;;  %v7289_v41 = vpack.c.bf16 %v450_v39, %v450_v39  ;;  %3209 = vmatpush.bf16.msrb.mxu2 %v5987_v57 }
 0x129   : > { %v1994_v26 = vpop.f32.mrf.mxu3  ;;  %v7281_v34 = vpop.f32.mrf.mxu1  ;;  %v949_v38 = vor.u32 %v948_v16, %v947_v35  ;;  %v5873_v35 = vld [vmem:[#allocation2 + $0xac] sm:$0xf]  ;;  %v4948_v16 = vld [vmem:[#allocation2 + $0xb0] sm:$0xf] }
 0x12a   : > { %v1995_v49 = vadd.f32 %v1994_v26, %v1674_v1  ;;  %v7854_v26 = vshrl.u32 %v6966_v29, 16  ;;  %v726_v46 = vshrl.u32 %v7287_v28, 16  ;;  %v729_v54 = vshll.u32 %v7287_v28, 16  ;;  %870 = vst [vmem:[#allocation2 + $0x184] sm:$0xf] %v7287_v28 }
 0x12b   : > { %2595 = vmatmul.bf16.gmra.mxu0 %v4937_v33  ;;  %2497 = vmatmul.bf16.gmra.mxu2 %v4929_v22  ;;  %v734_v29 = vshrl.u32 %v7289_v41, 16  ;;  %v737_v61 = vshll.u32 %v7289_v41, 16  ;;  %871 = vst [vmem:[#allocation2 + $0x190] sm:$0xf] %v7289_v41  ;;  %v950_v39 = vrot.slane %v949_v38, 4 }
 0x12c   : > { %3182 = vmatmul.bf16.gmra.mxu1 %v5169_v7  ;;  %v2044_v19 = vadd.f32 %v2043_v8, %v1995_v49  ;;  %v953_v33 = vrot.slane %v7854_v26, 4  ;;  %v728_v31 = vrot.slane %v726_v46, 7  ;;  %v836_v57 = vld [vmem:[#allocation2 + $0x180] sm:$0xf]  ;;  %v1010_v23 = vrot.slane %v726_v46, 4 }
 0x12d   : > { %v736_v1 = vrot.slane %v734_v29, 7  ;;  %v952_v4 = vsel %vm6750_vm13, %v950_v39, %v951_v37 }
 0x12e   : > { %2546 = vmatmul.bf16.gmra.mxu3 %v4933_v3  ;;  %v7302_v56 = vadd.f32 %v2092_v59, %v2044_v19  ;;  %v1676_v3 = vpop.f32.mrf.mxu2  ;;  %v954_v59 = vor.u32 %v953_v33, %v951_v37  ;;  %v731_v12 = vor.u32 %v729_v54, %v728_v31  ;;  %v732_v49 = vrot.slane %v728_v31, 4  ;;  %v5875_v33 = vld [vmem:[#allocation2 + $0xb8] sm:$0xf0]  ;;  %1084 = vst [vmem:[#allocation2 + $0xe0] sm:$0xf] %v952_v4 }
 0x12f   : > { %v1677_v55 = vadd.f32 %v1676_v3, %v6941_v9  ;;  %v1085_v9 = vld [vmem:[#allocation2 + $0xec] sm:$0xf]  ;;  %v739_v26 = vor.u32 %v737_v61, %v736_v1  ;;  %v5180_v3 = vld [vmem:[#allocation2 + $0x150] sm:$0xf]  ;;  %v4940_v31 = vld [vmem:[#allocation2 + $0xa8] sm:$0xf] }
 0x130   : > { %v2048_v7 = vpop.f32.mrf.mxu0  ;;  %v955_v22 = vrot.slane %v954_v59, 4  ;;  %v837_v37 = vsel %vm6414_vm7, %v731_v12, %v836_v57  ;;  %v4945_v12 = vor.u32 %v5873_v35, %v4942_v14  ;;  %v5994_v35 = vld [vmem:[%s7791_s2 + $0x140] sm:$0xff] }
 0x131   : > { %v1997_v8 = vpop.f32.mrf.mxu3  ;;  %v2097_v30 = vpop.f32.mrf.mxu1  ;;  %v740_v59 = vsel %vm6398_vm6, %v732_v49, %v739_v26  ;;  %838 = vst [vmem:[#allocation2 + $0x180] sm:$0xf] %v837_v37  ;;  %3259 = vmatpush.bf16.msrb.mxu3 %v5994_v35 }
 0x132   : > { %v1998_v19 = vadd.f32 %v1997_v8, %v1677_v55  ;;  %v1086_v62 = vsel %vm6758_vm14, %v955_v22, %v1085_v9  ;;  %v5970_v8 = vld [vmem:[#allocation2 + $0x158] sm:$0xf0]  ;;  %v5874_v55 = vld [vmem:[#allocation2 + $0xb0] sm:$0xf0]  ;;  %v4949_v22 = vor.u32 %v5875_v33, %v4948_v16  ;;  %839 = vst [vmem:[#allocation2 + $0x18c] sm:$0xf] %v740_v59 }
 0x133   : > { %1087 = vst [vmem:[#allocation2 + $0xec] sm:$0xf] %v1086_v62  ;;  %v5878_v59 = vld [vmem:[#allocation2 + $0xd0] sm:$0xf0] }
 0x134   : > { %v2047_v38 = vadd.f32 %v7276_v13, %v1998_v19  ;;  %v5931_v13 = vld [vmem:[%s7791_s2 + $0x8] sm:$0xff]  ;;  %v5181_v19 = vor.u32 %v5970_v8, %v5180_v3  ;;  %v5876_v8 = vld [vmem:[#allocation2 + $0xc4] sm:$0xf] }
 0x135   : > { %3579 = vmatpush.bf16.msrb.mxu0 %v5931_v13  ;;  %v5877_v13 = vld [vmem:[#allocation2 + $0xc8] sm:$0xf0] }
 0x136   : > { %v7332_v39 = vadd.f32 %v7281_v34, %v2047_v38  ;;  %v1678_v49 = vpop.f32.mrf.mxu2  ;;  %v4941_v34 = vor.u32 %v5874_v55, %v4940_v31  ;;  %v4954_v31 = vld [vmem:[#allocation2 + $0xcc] sm:$0xf0]  ;;  %v5192_v55 = vld [vmem:[#allocation2 + $0x168] sm:$0xf] }
 0x137   : > { %v1679_v4 = vadd.f32 %v1678_v49, %v6958_v27  ;;  %v5986_v27 = vld [vmem:[%s7791_s2 + $0x100] sm:$0xff] }
 0x138   : > { %v2051_v60 = vpop.f32.mrf.mxu0  ;;  %3210 = vmatpush.bf16.msrb.mxu2 %v5986_v27 }
 0x139   : > { %v1999_v1 = vpop.f32.mrf.mxu3  ;;  %v2100_v9 = vpop.f32.mrf.mxu1 }
 0x13a   : > { %v2000_v16 = vadd.f32 %v1999_v1, %v1679_v4  ;;  %v5973_v1 = vld [vmem:[#allocation2 + $0x170] sm:$0xf0] }
 0x13b   : > { %2600 = vmatmul.bf16.gmra.mxu0 %v4949_v22  ;;  %2502 = vmatmul.bf16.gmra.mxu2 %v4941_v34  ;;  %v4952_v22 = vld [vmem:[#allocation2 + $0xc0] sm:$0xf] }
 0x13c   : > { %3187 = vmatmul.bf16.gmra.mxu1 %v5181_v19  ;;  %v2049_v26 = vadd.f32 %v2048_v7, %v2000_v16  ;;  %v5938_v19 = vld [vmem:[%s7791_s2 + $0x40] sm:$0xff]  ;;  %v5193_v16 = vor.u32 %v5973_v1, %v5192_v55 }
 0x13d   : > { %3629 = vmatpush.bf16.msrb.mxu1 %v5938_v19 }
 0x13e   : > { %2551 = vmatmul.bf16.gmra.mxu3 %v4945_v12  ;;  %v7341_v33 = vadd.f32 %v2097_v30, %v2049_v26  ;;  %v1681_v14 = vpop.f32.mrf.mxu2  ;;  %v4960_v30 = vld [vmem:[#allocation2 + $0xc8] sm:$0xf]  ;;  %v331_v26 = vld [vmem:[#allocation2 + $0x104] sm:$0x8] }
 0x13f   : > { %v1682_v38 = vadd.f32 %v1681_v14, %v6984_v45  ;;  %v4961_v12 = vor.u32 %v5878_v59, %v4960_v30  ;;  %v5930_v45 = vld [vmem:[%s7791_s2] sm:$0xff]  ;;  %v332_v27 = vsel %vm6699_vm10, 0, %v331_v26  ;;  %v7856_v30 = vshll.u32 %v7011_v42, 16  ;;  %v4966_v26 = vld [vmem:[#allocation2 + $0xe4] sm:$0xf0] }
 0x140   : > { %v2053_v57 = vpop.f32.mrf.mxu0  ;;  %3580 = vmatpush.bf16.msrb.mxu0 %v5930_v45  ;;  %333 = vst [vmem:[#allocation2 + $0x104] sm:$0x8] %v332_v27  ;;  %v7857_v59 = vshll.u32 %v7013_v10, 16  ;;  %v4972_v27 = vld [vmem:[#allocation2 + $0xe0] sm:$0xf] }
 0x141   : > { %v2002_v62 = vpop.f32.mrf.mxu3  ;;  %v2102_v3 = vpop.f32.mrf.mxu1 }
 0x142   : > { %v2003_v7 = vadd.f32 %v2002_v62, %v1682_v38 }
 0x144   : > { %v2052_v37 = vadd.f32 %v2051_v60, %v2003_v7  ;;  %v4957_v60 = vor.u32 %v5876_v8, %v4954_v31  ;;  %v7855_v7 = vshrl.u32 %v7011_v42, 16  ;;  %v7858_v31 = vshrl.u32 %v7013_v10, 16 }
 0x146   : > { %v7350_v53 = vadd.f32 %v2100_v9, %v2052_v37  ;;  %v1683_v4 = vpop.f32.mrf.mxu2  ;;  %v4953_v9 = vor.u32 %v5877_v13, %v4952_v22  ;;  %v956_v8 = vrot.slane %v7855_v7, 4  ;;  %v960_v37 = vrot.slane %v7857_v59, 5  ;;  %v5953_v13 = vld [vmem:[%s7791_s2 + $0xb8] sm:$0xff] }
 0x147   : > { %v1684_v62 = vadd.f32 %v1683_v4, %v7005_v15  ;;  %v957_v15 = vrot.slane %v7856_v30, 5  ;;  %v962_v55 = vrot.slane %v7858_v31, 4  ;;  %3671 = vmatpush.bf16.msra.mxu2 %v5953_v13  ;;  %v4964_v30 = vld [vmem:[#allocation2 + $0xd8] sm:$0xf] }
 0x148   : > { %v2056_v34 = vpop.f32.mrf.mxu0 }
 0x149   : > { %v2004_v49 = vpop.f32.mrf.mxu3  ;;  %v2105_v35 = vpop.f32.mrf.mxu1  ;;  %v963_v45 = vor.u32 %v962_v55, %v960_v37 }
 0x14a   : > { %v2005_v14 = vadd.f32 %v2004_v49, %v1684_v62  ;;  %v958_v49 = vor.u32 %v957_v15, %v956_v8  ;;  %v5976_v8 = vld [vmem:[#allocation2 + $0x188] sm:$0xf0]  ;;  %v5880_v15 = vld [vmem:[#allocation2 + $0xe0] sm:$0xf0] }
 0x14b   : > { %2605 = vmatmul.bf16.gmra.mxu0 %v4961_v12  ;;  %2507 = vmatmul.bf16.gmra.mxu2 %v4953_v9  ;;  %v1089_v9 = vld [vmem:[#allocation2 + $0x104] sm:$0xf] }
 0x14c   : > { %3192 = vmatmul.bf16.gmra.mxu1 %v5193_v16  ;;  %v2054_v38 = vadd.f32 %v2053_v57, %v2005_v14  ;;  %v6033_v57 = vld [vmem:[%s7791_s2 + $0x1b8] sm:$0xff]  ;;  %v959_v10 = vrot.slane %v958_v49, 4  ;;  %v5881_v14 = vld [vmem:[#allocation2 + $0xe8] sm:$0xf0] }
 0x14d   : > { %4073 = vmatpush.bf16.msra.mxu3 %v6033_v57  ;;  %v5879_v16 = vld [vmem:[#allocation2 + $0xdc] sm:$0xf]  ;;  %v4973_v55 = vor.u32 %v5881_v14, %v4972_v27  ;;  %v7862_v14 = vshrl.u32 %v7060_v5, 16 }
 0x14e   : > { %2556 = vmatmul.bf16.gmra.mxu3 %v4957_v60  ;;  %v7369_v1 = vadd.f32 %v2102_v3, %v2054_v38  ;;  %v1686_v42 = vpop.f32.mrf.mxu2  ;;  %v964_v3 = vrot.slane %v963_v45, 4  ;;  %v961_v62 = vsel %vm6750_vm13, %v959_v10, %v960_v37  ;;  %v4969_v37 = vor.u32 %v5879_v16, %v4966_v26  ;;  %v334_v49 = vld [vmem:[#allocation2 + $0x11c] sm:$0x8] }
 0x14f   : > { %v1687_v19 = vadd.f32 %v1686_v42, %v7035_v48  ;;  %1088 = vst [vmem:[#allocation2 + $0xf8] sm:$0xf] %v961_v62  ;;  %v5204_v48 = vld [vmem:[#allocation2 + $0x180] sm:$0xf]  ;;  %v7860_v26 = vshll.u32 %v7058_v44, 16 }
 0x150   : > { %v2058_v12 = vpop.f32.mrf.mxu0  ;;  %v1090_v38 = vsel %vm6758_vm14, %v964_v3, %v1089_v9  ;;  %v5205_v13 = vor.u32 %v5976_v8, %v5204_v48  ;;  %v6049_v3 = vld [vmem:[%s7791_s2 + $0x238] sm:$0xff]  ;;  %v7861_v9 = vshll.u32 %v7060_v5, 16 }
 0x151   : > { %v2007_v22 = vpop.f32.mrf.mxu3  ;;  %v2107_v4 = vpop.f32.mrf.mxu1  ;;  %1091 = vst [vmem:[#allocation2 + $0x104] sm:$0xf] %v1090_v38  ;;  %4171 = vmatpush.bf16.msra.mxu1 %v6049_v3  ;;  %v966_v62 = vrot.slane %v7860_v26, 5  ;;  %v971_v38 = vrot.slane %v7862_v14, 4  ;;  %v5314_v3 = vld [vmem:[#allocation2 + $0xcc] sm:$0xf0] }
 0x152   : > { %v2008_v60 = vadd.f32 %v2007_v22, %v1687_v19  ;;  %v4965_v19 = vor.u32 %v5880_v15, %v4964_v30  ;;  %v969_v27 = vrot.slane %v7861_v9, 5  ;;  %v5952_v9 = vld [vmem:[%s7791_s2 + $0xb0] sm:$0xff] }
 0x153   : > { %3672 = vmatpush.bf16.msra.mxu2 %v5952_v9 }
 0x154   : > { %v2057_v7 = vadd.f32 %v2056_v34, %v2008_v60  ;;  %v335_v34 = vsel %vm6699_vm10, 0, %v334_v49  ;;  %v972_v15 = vor.u32 %v971_v38, %v969_v27  ;;  %v5128_v49 = vld [vmem:[#allocation2 + $0xe0] sm:$0xf] }
 0x155   : > { %336 = vst [vmem:[#allocation2 + $0x11c] sm:$0x8] %v335_v34  ;;  %v5907_v34 = vld [vmem:[#allocation2 + $0xc8] sm:$0xf0] }
 0x156   : > { %v7382_v59 = vadd.f32 %v2105_v35, %v2057_v7  ;;  %v1688_v22 = vpop.f32.mrf.mxu2  ;;  %v6041_v35 = vld [vmem:[%s7791_s2 + $0x1f8] sm:$0xff] }
 0x157   : > { %v1689_v42 = vadd.f32 %v1688_v22, %v7052_v0  ;;  %4122 = vmatpush.bf16.msra.mxu0 %v6041_v35  ;;  %v7859_v0 = vshrl.u32 %v7058_v44, 16  ;;  %v5906_v35 = vld [vmem:[#allocation2 + $0xc4] sm:$0xf] }
 0x158   : > { %v2061_v57 = vpop.f32.mrf.mxu0  ;;  %v5317_v38 = vor.u32 %v5906_v35, %v5314_v3 }
 0x159   : > { %v2009_v31 = vpop.f32.mrf.mxu3  ;;  %v2110_v45 = vpop.f32.mrf.mxu1  ;;  %v965_v16 = vrot.slane %v7859_v0, 4 }
 0x15a   : > { %v2010_v10 = vadd.f32 %v2009_v31, %v1689_v42  ;;  %v5956_v42 = vld [vmem:[#allocation2 + $0xe8] sm:$0xf0] }
 0x15b   : > { %2610 = vmatmul.bf16.gmra.mxu0 %v4973_v55  ;;  %2512 = vmatmul.bf16.gmra.mxu2 %v4965_v19  ;;  %v967_v30 = vor.u32 %v966_v62, %v965_v16  ;;  %v5312_v19 = vld [vmem:[#allocation2 + $0xc0] sm:$0xf]  ;;  %v6032_v62 = vld [vmem:[%s7791_s2 + $0x1b0] sm:$0xff]  ;;  %v5129_v14 = vor.u32 %v5956_v42, %v5128_v49  ;;  %v7864_v49 = vshll.u32 %v7103_v40, 16 }
 0x15c   : > { %3197 = vmatmul.bf16.gmra.mxu1 %v5205_v13  ;;  %v2059_v60 = vadd.f32 %v2058_v12, %v2010_v10  ;;  %v1093_v44 = vld [vmem:[#allocation2 + $0x11c] sm:$0xf]  ;;  %v5313_v26 = vor.u32 %v5907_v34, %v5312_v19  ;;  %4074 = vmatpush.bf16.msra.mxu3 %v6032_v62  ;;  %v7865_v19 = vshll.u32 %v7105_v25, 16 }
 0x15d   : > { %v968_v22 = vrot.slane %v967_v30, 4  ;;  %v975_v42 = vrot.slane %v7864_v49, 5  ;;  %v5951_v49 = vld [vmem:[%s7791_s2 + $0xa8] sm:$0xff] }
 0x15e   : > { %2561 = vmatmul.bf16.gmra.mxu3 %v4969_v37  ;;  %v7401_v7 = vadd.f32 %v2107_v4, %v2059_v60  ;;  %v1691_v8 = vpop.f32.mrf.mxu2  ;;  %v973_v37 = vrot.slane %v972_v15, 4  ;;  %v5122_v60 = vld [vmem:[#allocation2 + $0xe4] sm:$0xf0]  ;;  %v978_v34 = vrot.slane %v7865_v19, 5  ;;  %3673 = vmatpush.bf16.msra.mxu2 %v5951_v49 }
 0x15f   : > { %v1692_v31 = vadd.f32 %v1691_v8, %v7078_v18  ;;  %v970_v5 = vsel %vm6750_vm13, %v968_v22, %v969_v27  ;;  %v5954_v18 = vld [vmem:[#allocation2 + $0xdc] sm:$0xf]  ;;  %v6040_v22 = vld [vmem:[%s7791_s2 + $0x1f0] sm:$0xff] }
 0x160   : > { %v2063_v12 = vpop.f32.mrf.mxu0  ;;  %v1094_v4 = vsel %vm6758_vm14, %v973_v37, %v1093_v44  ;;  %1092 = vst [vmem:[#allocation2 + $0x110] sm:$0xf] %v970_v5  ;;  %v6048_v37 = vld [vmem:[%s7791_s2 + $0x230] sm:$0xff]  ;;  %4123 = vmatpush.bf16.msra.mxu0 %v6040_v22  ;;  %v7863_v44 = vshrl.u32 %v7103_v40, 16  ;;  %v7866_v5 = vshrl.u32 %v7105_v25, 16 }
 0x161   : > { %v2012_v48 = vpop.f32.mrf.mxu3  ;;  %v2112_v55 = vpop.f32.mrf.mxu1  ;;  %1095 = vst [vmem:[#allocation2 + $0x11c] sm:$0xf] %v1094_v4  ;;  %4172 = vmatpush.bf16.msra.mxu1 %v6048_v37  ;;  %v5134_v22 = vld [vmem:[#allocation2 + $0xfc] sm:$0xf0] }
 0x162   : > { %v2013_v13 = vadd.f32 %v2012_v48, %v1692_v31  ;;  %v337_v48 = vld [vmem:[#allocation2 + $0x134] sm:$0x8]  ;;  %v980_v4 = vrot.slane %v7866_v5, 4 }
 0x163   : > { %v338_v15 = vsel %vm6699_vm10, 0, %v337_v48  ;;  %v5959_v48 = vld [vmem:[#allocation2 + $0x100] sm:$0xf0] }
 0x164   : > { %v2062_v10 = vadd.f32 %v2061_v57, %v2013_v13  ;;  %339 = vst [vmem:[#allocation2 + $0x134] sm:$0x8] %v338_v15  ;;  %v974_v13 = vrot.slane %v7863_v44, 4  ;;  %v5326_v15 = vld [vmem:[#allocation2 + $0xe4] sm:$0xf0] }
 0x166   : > { %v7408_v0 = vadd.f32 %v2110_v45, %v2062_v10  ;;  %v1693_v27 = vpop.f32.mrf.mxu2  ;;  %v5125_v45 = vor.u32 %v5954_v18, %v5122_v60  ;;  %v976_v3 = vor.u32 %v975_v42, %v974_v13  ;;  %v981_v60 = vor.u32 %v980_v4, %v978_v34  ;;  %v6031_v13 = vld [vmem:[%s7791_s2 + $0x1a8] sm:$0xff] }
 0x167   : > { %v1694_v8 = vadd.f32 %v1693_v27, %v7099_v20  ;;  %4075 = vmatpush.bf16.msra.mxu3 %v6031_v13 }
 0x168   : > { %v2576_v57 = vpop.f32.mrf.mxu0  ;;  %v977_v62 = vrot.slane %v976_v3, 4  ;;  %v982_v40 = vrot.slane %v981_v60, 4 }
 0x169   : > { %v2014_v16 = vpop.f32.mrf.mxu3  ;;  %v7417_v30 = vpop.f32.mrf.mxu1 }
 0x16a   : > { %v2015_v31 = vadd.f32 %v2014_v16, %v1694_v8  ;;  %v979_v25 = vsel %vm6750_vm13, %v977_v62, %v978_v34 }
 0x16b   : > { %3581 = vmatmul.bf16.vlgmr.msrb.gmra.mxu0 %v5313_v26  ;;  %3211 = vmatmul.bf16.vlgmr.msrb.gmra.mxu2 %v5125_v45  ;;  %v1097_v9 = vld [vmem:[#allocation2 + $0x134] sm:$0xf]  ;;  %1096 = vst [vmem:[#allocation2 + $0x128] sm:$0xf] %v979_v25  ;;  %v5909_v45 = vld [vmem:[#allocation2 + $0xdc] sm:$0xf] }
 0x16c   : > { %3630 = vmatmul.bf16.vlgmr.msrb.gmra.mxu1 %v5317_v38  ;;  %v2064_v20 = vadd.f32 %v2063_v12, %v2015_v31  ;;  %v5324_v38 = vld [vmem:[#allocation2 + $0xd8] sm:$0xf]  ;;  %v1098_v8 = vsel %vm6758_vm14, %v982_v40, %v1097_v9  ;;  %v5957_v31 = vld [vmem:[#allocation2 + $0xf4] sm:$0xf]  ;;  %v5329_v5 = vor.u32 %v5909_v45, %v5326_v15  ;;  %v6039_v40 = vld [vmem:[%s7791_s2 + $0x1e8] sm:$0xff] }
 0x16d   : > { %1099 = vst [vmem:[#allocation2 + $0x134] sm:$0xf] %v1098_v8  ;;  %v5137_v3 = vor.u32 %v5957_v31, %v5134_v22  ;;  %v6047_v9 = vld [vmem:[%s7791_s2 + $0x228] sm:$0xff]  ;;  %4124 = vmatpush.bf16.msra.mxu0 %v6039_v40 }
 0x16e   : > { %3260 = vmatmul.bf16.vlgmr.msrb.gmra.mxu3 %v5129_v14  ;;  %v7435_v10 = vadd.f32 %v2112_v55, %v2064_v20  ;;  %v2478_v12 = vpop.f32.mrf.mxu2  ;;  %v5140_v14 = vld [vmem:[#allocation2 + $0xf8] sm:$0xf]  ;;  %v5910_v55 = vld [vmem:[#allocation2 + $0xe0] sm:$0xf0]  ;;  %4173 = vmatpush.bf16.msra.mxu1 %v6047_v9 }
 0x16f   : > { %v5325_v44 = vor.u32 %v5910_v55, %v5324_v38  ;;  %v5141_v34 = vor.u32 %v5959_v48, %v5140_v14  ;;  %v7867_v14 = vshrl.u32 %v7146_v52, 16  ;;  %v7868_v38 = vshll.u32 %v7146_v52, 16 }
 0x170   : > { %v2578_v18 = vpop.f32.mrf.mxu0  ;;  %v7869_v48 = vshll.u32 %v7148_v58, 16 }
 0x171   : > { %v2527_v35 = vpop.f32.mrf.mxu3  ;;  %v7437_v26 = vpop.f32.mrf.mxu1  ;;  %v984_v25 = vrot.slane %v7868_v38, 5  ;;  %v5146_v38 = vld [vmem:[#allocation2 + $0x114] sm:$0xf0] }
 0x172   : > { %v2528_v16 = vadd.f32 %v2527_v35, %v2478_v12  ;;  %v987_v55 = vrot.slane %v7869_v48, 5 }
 0x174   : > { %v2577_v27 = vadd.f32 %v2576_v57, %v2528_v16  ;;  %v7447_v57 = vld [vmem:[%s7792_s3] ss:$0 sm:$0xff] }
 0x175   : > { %v7463_v16 = vld [vmem:[%s7793_s4] ss:$0 sm:$0xff] }
 0x176   : > { %v2616_v37 = vadd.f32 %v2577_v27, %v7133_v6  ;;  %v2480_v42 = vpop.f32.mrf.mxu2  ;;  %v340_v6 = vld [vmem:[#allocation2 + $0x14c] sm:$0x8] }
 0x177   : > { %v341_v12 = vsel %vm6699_vm10, 0, %v340_v6 }
 0x178   : > { %v2581_v19 = vpop.f32.mrf.mxu0  ;;  %v2636_v60 = vmul.f32 %v7447_v57, %v2616_v37  ;;  %342 = vst [vmem:[#allocation2 + $0x14c] sm:$0x8] %v341_v12 }
 0x179   : > { %v2529_v20 = vpop.f32.mrf.mxu3  ;;  %v7455_v35 = vpop.f32.mrf.mxu1 }
 0x17a   : > { %v2530_v4 = vadd.f32 %v2529_v20, %v2480_v42  ;;  %v2656_v8 = vadd.f32 %v7463_v16, %v2636_v60  ;;  %v5336_v42 = vld [vmem:[#allocation2 + $0xf0] sm:$0xf]  ;;  %v5912_v60 = vld [vmem:[#allocation2 + $0xf4] sm:$0xf] }
 0x17b   : > { %3586 = vmatmul.bf16.gmra.mxu0 %v5325_v44  ;;  %3216 = vmatmul.bf16.gmra.mxu2 %v5137_v3  ;;  %v5913_v3 = vld [vmem:[#allocation2 + $0xf8] sm:$0xf0] }
 0x17c   : > { %v2579_v62 = vadd.f32 %v2578_v18, %v2530_v4  ;;  %3635 = vmatmul.bf16.gmra.mxu1 %v5329_v5  ;;  %v983_v18 = vrot.slane %v7867_v14, 4  ;;  %v2672_v5 = vmax.f32 %v2656_v8, 0.0  ;;  %v5338_v14 = vld [vmem:[#allocation2 + $0xfc] sm:$0xf0]  ;;  %v5337_v8 = vor.u32 %v5913_v3, %v5336_v42 }
 0x17d   : > { %v7871_v3 = vshrl.u32 %v7191_v47, 16 }
 0x17e   : > { %3265 = vmatmul.bf16.gmra.mxu3 %v5141_v34  ;;  %v2617_v27 = vadd.f32 %v2579_v62, %v7156_v50  ;;  %v7870_v50 = vshrl.u32 %v7148_v58, 16  ;;  %v2483_v22 = vpop.f32.mrf.mxu2  ;;  %v985_v20 = vor.u32 %v984_v25, %v983_v18  ;;  %v5152_v58 = vld [vmem:[#allocation2 + $0x110] sm:$0xf]  ;;  %v5960_v18 = vld [vmem:[#allocation2 + $0x10c] sm:$0xf] }
 0x17f   : > { %v1101_v40 = vld [vmem:[#allocation2 + $0x14c] sm:$0xf] }
 0x180   : > { %v2637_v45 = vmul.f32 %v7447_v57, %v2617_v27  ;;  %v989_v31 = vrot.slane %v7870_v50, 4  ;;  %v2583_v37 = vpop.f32.mrf.mxu0  ;;  %v986_v34 = vrot.slane %v985_v20, 4  ;;  %v5962_v27 = vld [vmem:[#allocation2 + $0x118] sm:$0xf0]  ;;  %v343_v20 = vld [vmem:[#allocation2 + $0x164] sm:$0x8] }
 0x181   : > { %v2532_v15 = vpop.f32.mrf.mxu3  ;;  %v7483_v52 = vpop.f32.mrf.mxu1 }
 0x182   : > { %v2657_v44 = vadd.f32 %v7463_v16, %v2637_v45  ;;  %v2533_v13 = vadd.f32 %v2532_v15, %v2483_v22  ;;  %v990_v49 = vor.u32 %v989_v31, %v987_v55  ;;  %v988_v62 = vsel %vm6750_vm13, %v986_v34, %v987_v55  ;;  %v6030_v55 = vld [vmem:[%s7791_s2 + $0x1a0] sm:$0xff] }
 0x183   : > { %1100 = vst [vmem:[#allocation2 + $0x140] sm:$0xf] %v988_v62  ;;  %v5950_v45 = vld [vmem:[%s7791_s2 + $0xa0] sm:$0xff]  ;;  %v5153_v31 = vor.u32 %v5962_v27, %v5152_v58  ;;  %v5341_v22 = vor.u32 %v5912_v60, %v5338_v14  ;;  %4076 = vmatpush.bf16.msra.mxu3 %v6030_v55  ;;  %v7873_v60 = vshll.u32 %v7193_v24, 16 }
 0x184   : > { %v2673_v6 = vmax.f32 %v2657_v44, 0.0  ;;  %v2582_v4 = vadd.f32 %v2581_v19, %v2533_v13  ;;  %v991_v12 = vrot.slane %v990_v49, 4  ;;  %v5149_v49 = vor.u32 %v5960_v18, %v5146_v38  ;;  %3674 = vmatpush.bf16.msra.mxu2 %v5950_v45 }
 0x185   : > { %v996_v62 = vrot.slane %v7873_v60, 5  ;;  %v6029_v60 = vld [vmem:[%s7791_s2 + $0x198] sm:$0xff] }
 0x186   : > { %v6117_v9 = vpack.c.bf16 %v2673_v6, %v2672_v5  ;;  %v1102_v19 = vsel %vm6758_vm14, %v991_v12, %v1101_v40  ;;  %v2618_v25 = vadd.f32 %v2582_v4, %v7178_v36  ;;  %v2485_v15 = vpop.f32.mrf.mxu2  ;;  %v344_v36 = vsel %vm6699_vm10, 0, %v343_v20  ;;  %v6038_v5 = vld [vmem:[%s7791_s2 + $0x1e0] sm:$0xff]  ;;  %v5348_v20 = vld [vmem:[#allocation2 + $0x108] sm:$0xf] }
 0x187   : > { %1103 = vst [vmem:[#allocation2 + $0x14c] sm:$0xf] %v1102_v19  ;;  %v6046_v6 = vld [vmem:[%s7791_s2 + $0x220] sm:$0xff]  ;;  %4125 = vmatpush.bf16.msra.mxu0 %v6038_v5  ;;  %v992_v12 = vrot.slane %v7871_v3, 4  ;;  %v7874_v40 = vshrl.u32 %v7193_v24, 16  ;;  %4077 = vmatpush.bf16.msra.mxu3 %v6029_v60 }
 0x188   : > { %6118 = vst [vmem:[%s7490_s24] sm:$0xff] %v6117_v9   ;;  %v2586_v50 = vpop.f32.mrf.mxu0  ;;  %v2638_v42 = vmul.f32 %v7447_v57, %v2618_v25  ;;  %4174 = vmatpush.bf16.msra.mxu1 %v6046_v6  ;;  %v5915_v5 = vld [vmem:[#allocation2 + $0x10c] sm:$0xf]  ;;  %v5350_v6 = vld [vmem:[#allocation2 + $0x114] sm:$0xf0]  ;;  %v5963_v3 = vld [vmem:[#allocation2 + $0x124] sm:$0xf] }
 0x189   : > { %v2534_v48 = vpop.f32.mrf.mxu3  ;;  %v7504_v13 = vpop.f32.mrf.mxu1  ;;  %345 = vst [vmem:[#allocation2 + $0x164] sm:$0x8] %v344_v36  ;;  %v998_v9 = vrot.slane %v7874_v40, 4 }
 0x18a   : > { %v2535_v44 = vadd.f32 %v2534_v48, %v2485_v15  ;;  %v2658_v27 = vadd.f32 %v7463_v16, %v2638_v42 }
 0x18b   : > { %3591 = vmatmul.bf16.gmra.mxu0 %v5337_v8  ;;  %3221 = vmatmul.bf16.gmra.mxu2 %v5149_v49  ;;  %v999_v25 = vor.u32 %v998_v9, %v996_v62  ;;  %v5916_v49 = vld [vmem:[#allocation2 + $0x110] sm:$0xf0] }
 0x18c   : > { %v2584_v34 = vadd.f32 %v2583_v37, %v2535_v44  ;;  %3640 = vmatmul.bf16.gmra.mxu1 %v5341_v22  ;;  %v7872_v37 = vshll.u32 %v7191_v47, 16  ;;  %v2674_v15 = vmax.f32 %v2658_v27, 0.0  ;;  %v5164_v22 = vld [vmem:[#allocation2 + $0x128] sm:$0xf] }
 0x18d   : > { %v1000_v45 = vrot.slane %v999_v25, 4 }
 0x18e   : > { %3270 = vmatmul.bf16.gmra.mxu3 %v5153_v31  ;;  %v2619_v4 = vadd.f32 %v2584_v34, %v7201_v2  ;;  %v993_v58 = vrot.slane %v7872_v37, 5  ;;  %v2488_v18 = vpop.f32.mrf.mxu2  ;;  %v5965_v34 = vld [vmem:[#allocation2 + $0x130] sm:$0xf0] }
 0x18f   : > { %v5165_v27 = vor.u32 %v5965_v34, %v5164_v22 }
 0x190   : > { %v2639_v2 = vmul.f32 %v7447_v57, %v2619_v4  ;;  %v994_v19 = vor.u32 %v993_v58, %v992_v12  ;;  %v2588_v38 = vpop.f32.mrf.mxu0  ;;  %v1105_v36 = vld [vmem:[#allocation2 + $0x164] sm:$0xf]  ;;  %v5158_v12 = vld [vmem:[#allocation2 + $0x12c] sm:$0xf0]  ;;  %v5349_v58 = vor.u32 %v5916_v49, %v5348_v20  ;;  %v7877_v20 = vshll.u32 %v7238_v32, 16 }
 0x191   : > { %v2537_v14 = vpop.f32.mrf.mxu3  ;;  %v7527_v8 = vpop.f32.mrf.mxu1  ;;  %v1106_v4 = vsel %vm6758_vm14, %v1000_v45, %v1105_v36  ;;  %v5161_v25 = vor.u32 %v5963_v3, %v5158_v12  ;;  %v6045_v45 = vld [vmem:[%s7791_s2 + $0x218] sm:$0xff] }
 0x192   : > { %v2659_v48 = vadd.f32 %v7463_v16, %v2639_v2  ;;  %v2538_v47 = vadd.f32 %v2537_v14, %v2488_v18  ;;  %v995_v55 = vrot.slane %v994_v19, 4  ;;  %1107 = vst [vmem:[#allocation2 + $0x164] sm:$0xf] %v1106_v4  ;;  %v5353_v2 = vor.u32 %v5915_v5, %v5350_v6  ;;  %v346_v14 = vld [vmem:[#allocation2 + $0x17c] sm:$0x8]  ;;  %4175 = vmatpush.bf16.msra.mxu1 %v6045_v45 }
 0x193   : > { %v5966_v45 = vld [vmem:[#allocation2 + $0x13c] sm:$0xf] }
 0x194   : > { %v2675_v31 = vmax.f32 %v2659_v48, 0.0  ;;  %v2587_v24 = vadd.f32 %v2586_v50, %v2538_v47  ;;  %v997_v44 = vsel %vm6750_vm13, %v995_v55, %v996_v62  ;;  %v5949_v62 = vld [vmem:[%s7791_s2 + $0x98] sm:$0xff] }
 0x195   : > { %1104 = vst [vmem:[#allocation2 + $0x158] sm:$0xf] %v997_v44  ;;  %3675 = vmatpush.bf16.msra.mxu2 %v5949_v62  ;;  %v6037_v55 = vld [vmem:[%s7791_s2 + $0x1d8] sm:$0xff]  ;;  %v1005_v44 = vrot.slane %v7877_v20, 5 }
 0x196   : > { %v6122_v42 = vpack.c.bf16 %v2675_v31, %v2674_v15  ;;  %v2620_v50 = vadd.f32 %v2587_v24, %v7223_v51  ;;  %v2490_v40 = vpop.f32.mrf.mxu2  ;;  %v347_v51 = vsel %vm6699_vm10, 0, %v346_v14  ;;  %4126 = vmatpush.bf16.msra.mxu0 %v6037_v55  ;;  %v7875_v31 = vshrl.u32 %v7236_v11, 16  ;;  %v5176_v14 = vld [vmem:[#allocation2 + $0x140] sm:$0xf] }
 0x197   : > { %348 = vst [vmem:[#allocation2 + $0x17c] sm:$0x8] %v347_v51  ;;  %v7876_v24 = vshll.u32 %v7236_v11, 16 }
 0x198   : > { %6209 = vst [vmem:[%s7490_s24 + $0x8] sm:$0xff] %v6122_v42   ;;  %v2591_v9 = vpop.f32.mrf.mxu0  ;;  %v2640_v48 = vmul.f32 %v7447_v57, %v2620_v50 }
 0x199   : > { %v2539_v37 = vpop.f32.mrf.mxu3  ;;  %v7541_v18 = vpop.f32.mrf.mxu1  ;;  %v1002_v22 = vrot.slane %v7876_v24, 5  ;;  %v6028_v24 = vld [vmem:[%s7791_s2 + $0x190] sm:$0xff] }
 0x19a   : > { %v2540_v19 = vadd.f32 %v2539_v37, %v2490_v40  ;;  %v2660_v49 = vadd.f32 %v7463_v16, %v2640_v48  ;;  %v5360_v37 = vld [vmem:[#allocation2 + $0x120] sm:$0xf]  ;;  %v5968_v48 = vld [vmem:[#allocation2 + $0x148] sm:$0xf0]  ;;  %4078 = vmatpush.bf16.msra.mxu3 %v6028_v24 }
 0x19b   : > { %3596 = vmatmul.bf16.gmra.mxu0 %v5349_v58  ;;  %3226 = vmatmul.bf16.gmra.mxu2 %v5161_v25 }
 0x19c   : > { %v2589_v47 = vadd.f32 %v2588_v38, %v2540_v19  ;;  %3645 = vmatmul.bf16.gmra.mxu1 %v5353_v2  ;;  %v1001_v38 = vrot.slane %v7875_v31, 4  ;;  %v2676_v60 = vmax.f32 %v2660_v49, 0.0  ;;  %v5177_v49 = vor.u32 %v5968_v48, %v5176_v14  ;;  %v5372_v48 = vld [vmem:[#allocation2 + $0x138] sm:$0xf] }
 0x19e   : > { %3275 = vmatmul.bf16.gmra.mxu3 %v5165_v27  ;;  %v2621_v15 = vadd.f32 %v2589_v47, %v7246_v63  ;;  %v7878_v63 = vshrl.u32 %v7238_v32, 16  ;;  %v2493_v5 = vpop.f32.mrf.mxu2  ;;  %v1003_v4 = vor.u32 %v1002_v22, %v1001_v38  ;;  %v5919_v27 = vld [vmem:[#allocation2 + $0x128] sm:$0xf0]  ;;  %v5918_v32 = vld [vmem:[#allocation2 + $0x124] sm:$0xf]  ;;  %v5948_v22 = vld [vmem:[%s7791_s2 + $0x90] sm:$0xff] }
 0x19f   : > { %v1109_v25 = vld [vmem:[#allocation2 + $0x17c] sm:$0xf]  ;;  %v5362_v47 = vld [vmem:[#allocation2 + $0x12c] sm:$0xf0]  ;;  %v5361_v38 = vor.u32 %v5919_v27, %v5360_v37  ;;  %3676 = vmatpush.bf16.msra.mxu2 %v5948_v22  ;;  %v5969_v22 = vld [vmem:[#allocation2 + $0x154] sm:$0xf]  ;;  %4079 = vmatpush.bf16.msra.mxu3 %v6027_v21 }
 0x1a0   : > { %v2641_v36 = vmul.f32 %v7447_v57, %v2621_v15  ;;  %v1007_v34 = vrot.slane %v7878_v63, 4  ;;  %v2593_v6 = vpop.f32.mrf.mxu0  ;;  %v1004_v58 = vrot.slane %v1003_v4, 4  ;;  %v5170_v15 = vld [vmem:[#allocation2 + $0x144] sm:$0xf0] }
 0x1a1   : > { %v2542_v42 = vpop.f32.mrf.mxu3  ;;  %v7564_v50 = vpop.f32.mrf.mxu1 }
 0x1a2   : > { %v2661_v3 = vadd.f32 %v7463_v16, %v2641_v36  ;;  %v2543_v12 = vadd.f32 %v2542_v42, %v2493_v5  ;;  %v1008_v11 = vor.u32 %v1007_v34, %v1005_v44  ;;  %v1006_v19 = vsel %vm6750_vm13, %v1004_v58, %v1005_v44  ;;  %v349_v42 = vld [vmem:[#allocation2 + $0x194] sm:$0x8] }
 0x1a3   : > { %1108 = vst [vmem:[#allocation2 + $0x170] sm:$0xf] %v1006_v19  ;;  %v5365_v36 = vor.u32 %v5918_v32, %v5362_v47  ;;  %v5173_v5 = vor.u32 %v5966_v45, %v5170_v15  ;;  %v1014_v58 = vrot.slane %v737_v61, 5 }
 0x1a4   : > { %v2677_v62 = vmax.f32 %v2661_v3, 0.0  ;;  %v2592_v40 = vadd.f32 %v2591_v9, %v2543_v12  ;;  %v1009_v2 = vrot.slane %v1008_v11, 4  ;;  %v6036_v12 = vld [vmem:[%s7791_s2 + $0x1d0] sm:$0xff] }
 0x1a5   : > { %v6044_v11 = vld [vmem:[%s7791_s2 + $0x210] sm:$0xff]  ;;  %4127 = vmatpush.bf16.msra.mxu0 %v6036_v12 }
 0x1a6   : > { %v6127_v51 = vpack.c.bf16 %v2677_v62, %v2676_v60  ;;  %v1110_v55 = vsel %vm6758_vm14, %v1009_v2, %v1109_v25  ;;  %v2622_v9 = vadd.f32 %v2592_v40, %v7268_v17  ;;  %v2495_v20 = vpop.f32.mrf.mxu2  ;;  %v350_v17 = vsel %vm6699_vm10, 0, %v349_v42  ;;  %4176 = vmatpush.bf16.msra.mxu1 %v6044_v11  ;;  %v5947_v42 = vld [vmem:[%s7791_s2 + $0x88] sm:$0xff] }
 0x1a7   : > { %1111 = vst [vmem:[#allocation2 + $0x17c] sm:$0xf] %v1110_v55  ;;  %v1016_v60 = vrot.slane %v734_v29, 4  ;;  %v5188_v29 = vld [vmem:[#allocation2 + $0x158] sm:$0xf]  ;;  %3677 = vmatpush.bf16.msra.mxu2 %v5947_v42 }
 0x1a8   : > { %6210 = vst [vmem:[%s7490_s24 + $0x10] sm:$0xff] %v6127_v51   ;;  %v2596_v44 = vpop.f32.mrf.mxu0  ;;  %v2642_v4 = vmul.f32 %v7447_v57, %v2622_v9  ;;  %v5922_v55 = vld [vmem:[#allocation2 + $0x140] sm:$0xf0] }
 0x1a9   : > { %v2544_v31 = vpop.f32.mrf.mxu3  ;;  %v7578_v34 = vpop.f32.mrf.mxu1  ;;  %351 = vst [vmem:[#allocation2 + $0x194] sm:$0x8] %v350_v17  ;;  %v1017_v32 = vor.u32 %v1016_v60, %v1014_v58  ;;  %v5971_v9 = vld [vmem:[#allocation2 + $0x160] sm:$0xf0] }
 0x1aa   : > { %v2545_v63 = vadd.f32 %v2544_v31, %v2495_v20  ;;  %v2662_v62 = vadd.f32 %v7463_v16, %v2642_v4  ;;  %v5921_v31 = vld [vmem:[#allocation2 + $0x13c] sm:$0xf]  ;;  %v5182_v20 = vld [vmem:[#allocation2 + $0x15c] sm:$0xf0]  ;;  %v5189_v43 = vor.u32 %v5971_v9, %v5188_v29 }
 0x1ab   : > { %3601 = vmatmul.bf16.gmra.mxu0 %v5361_v38  ;;  %3231 = vmatmul.bf16.gmra.mxu2 %v5173_v5  ;;  %v1018_v25 = vrot.slane %v1017_v32, 4  ;;  %v5374_v38 = vld [vmem:[#allocation2 + $0x144] sm:$0xf0]  ;;  %v5185_v12 = vor.u32 %v5969_v22, %v5182_v20  ;;  %v5386_v29 = vld [vmem:[#allocation2 + $0x15c] sm:$0xf0] }
 0x1ac   : > { %v2594_v3 = vadd.f32 %v2593_v6, %v2545_v63  ;;  %3650 = vmatmul.bf16.gmra.mxu1 %v5365_v36  ;;  %v1011_v6 = vrot.slane %v729_v54, 5  ;;  %v2678_v61 = vmax.f32 %v2662_v62, 0.0  ;;  %v5373_v36 = vor.u32 %v5922_v55, %v5372_v48  ;;  %v5972_v48 = vld [vmem:[#allocation2 + $0x16c] sm:$0xf]  ;;  %v6026_v9 = vld [vmem:[%s7791_s2 + $0x180] sm:$0xff] }
 0x1ad   : > { %v5377_v17 = vor.u32 %v5921_v31, %v5374_v38  ;;  %v5946_v31 = vld [vmem:[%s7791_s2 + $0x80] sm:$0xff]  ;;  %4080 = vmatpush.bf16.msra.mxu3 %v6026_v9 }
 0x1ae   : > { %3280 = vmatmul.bf16.gmra.mxu3 %v5177_v49  ;;  %v2623_v37 = vadd.f32 %v2594_v3, %v7302_v56  ;;  %v1012_v27 = vor.u32 %v1011_v6, %v1010_v23  ;;  %v2498_v2 = vpop.f32.mrf.mxu2  ;;  %v6043_v23 = vld [vmem:[%s7791_s2 + $0x208] sm:$0xff]  ;;  %3678 = vmatpush.bf16.msra.mxu2 %v5946_v31 }
 0x1af   : > { %4177 = vmatpush.bf16.msra.mxu1 %v6043_v23 }
 0x1b0   : > { %v2643_v56 = vmul.f32 %v7447_v57, %v2623_v37  ;;  %v2598_v14 = vpop.f32.mrf.mxu0  ;;  %v1013_v19 = vrot.slane %v1012_v27, 4  ;;  %v1113_v45 = vld [vmem:[#allocation2 + $0x194] sm:$0xf]  ;;  %v6035_v37 = vld [vmem:[%s7791_s2 + $0x1c8] sm:$0xff] }
 0x1b1   : > { %v2547_v40 = vpop.f32.mrf.mxu3  ;;  %v7601_v54 = vpop.f32.mrf.mxu1  ;;  %v1114_v24 = vsel %vm6758_vm14, %v1018_v25, %v1113_v45  ;;  %4128 = vmatpush.bf16.msra.mxu0 %v6035_v37  ;;  %v5925_v25 = vld [vmem:[#allocation2 + $0x158] sm:$0xf0] }
 0x1b2   : > { %v2663_v46 = vadd.f32 %v7463_v16, %v2643_v56  ;;  %v2548_v28 = vadd.f32 %v2547_v40, %v2498_v2  ;;  %v1015_v47 = vsel %vm6750_vm13, %v1013_v19, %v1014_v58  ;;  %1115 = vst [vmem:[#allocation2 + $0x194] sm:$0xf] %v1114_v24  ;;  %v5384_v19 = vld [vmem:[#allocation2 + $0x150] sm:$0xf] }
 0x1b3   : > { %1112 = vst [vmem:[#allocation2 + $0x188] sm:$0xf] %v1015_v47  ;;  %v5194_v47 = vld [vmem:[#allocation2 + $0x174] sm:$0xf0] }
 0x1b4   : > { %v2679_v51 = vmax.f32 %v2663_v46, 0.0  ;;  %v2597_v41 = vadd.f32 %v2596_v44, %v2548_v28  ;;  %v5197_v21 = vor.u32 %v5972_v48, %v5194_v47 }
 0x1b6   : > { %v6132_v15 = vpack.c.bf16 %v2679_v51, %v2678_v61  ;;  %v2624_v44 = vadd.f32 %v2597_v41, %v7332_v39  ;;  %v2500_v63 = vpop.f32.mrf.mxu2  ;;  %v5974_v51 = vld [vmem:[#allocation2 + $0x178] sm:$0xf0]  ;;  %v5924_v41 = vld [vmem:[#allocation2 + $0x154] sm:$0xf] }
 0x1b7   : > { %v5389_v20 = vor.u32 %v5924_v41, %v5386_v29 }
 0x1b8   : > { %6211 = vst [vmem:[%s7490_s24 + $0x18] sm:$0xff] %v6132_v15   ;;  %v2601_v5 = vpop.f32.mrf.mxu0  ;;  %v2644_v39 = vmul.f32 %v7447_v57, %v2624_v44  ;;  %v5385_v15 = vor.u32 %v5925_v25, %v5384_v19  ;;  %v6034_v44 = vld [vmem:[%s7791_s2 + $0x1c0] sm:$0xff] }
 0x1b9   : > { %v2549_v49 = vpop.f32.mrf.mxu3  ;;  %v7615_v3 = vpop.f32.mrf.mxu1  ;;  %4129 = vmatpush.bf16.msra.mxu0 %v6034_v44 }
 0x1ba   : > { %v2550_v4 = vadd.f32 %v2549_v49, %v2500_v63  ;;  %v2664_v58 = vadd.f32 %v7463_v16, %v2644_v39 }
 0x1bb   : > { %3606 = vmatmul.bf16.gmra.mxu0 %v5373_v36  ;;  %3236 = vmatmul.bf16.gmra.mxu2 %v5185_v12 }
 0x1bc   : > { %v2599_v11 = vadd.f32 %v2598_v14, %v2550_v4  ;;  %3655 = vmatmul.bf16.gmra.mxu1 %v5377_v17  ;;  %v2680_v32 = vmax.f32 %v2664_v58, 0.0 }
 0x1be   : > { %3285 = vmatmul.bf16.gmra.mxu3 %v5189_v43  ;;  %v2625_v6 = vadd.f32 %v2599_v11, %v7341_v33  ;;  %v2503_v56 = vpop.f32.mrf.mxu2  ;;  %v5200_v33 = vld [vmem:[#allocation2 + $0x170] sm:$0xf] }
 0x1bf   : > { %v5201_v22 = vor.u32 %v5974_v51, %v5200_v33 }
 0x1c0   : > { %v2645_v60 = vmul.f32 %v7447_v57, %v2625_v6  ;;  %v2603_v40 = vpop.f32.mrf.mxu0 }
 0x1c1   : > { %v2552_v62 = vpop.f32.mrf.mxu3  ;;  %v7628_v14 = vpop.f32.mrf.mxu1 }
 0x1c2   : > { %v2665_v27 = vadd.f32 %v7463_v16, %v2645_v60  ;;  %v2553_v2 = vadd.f32 %v2552_v62, %v2503_v56  ;;  %v5212_v62 = vld [vmem:[#allocation2 + $0x188] sm:$0xf] }
 0x1c3   : > { %v5396_v56 = vld [vmem:[#allocation2 + $0x168] sm:$0xf] }
 0x1c4   : > { %v2681_v46 = vmax.f32 %v2665_v27, 0.0  ;;  %v2602_v28 = vadd.f32 %v2601_v5, %v2553_v2  ;;  %v5977_v27 = vld [vmem:[#allocation2 + $0x190] sm:$0xf0]  ;;  %v5927_v2 = vld [vmem:[#allocation2 + $0x16c] sm:$0xf] }
 0x1c5   : > { %v5213_v41 = vor.u32 %v5977_v27, %v5212_v62 }
 0x1c6   : > { %v6137_v61 = vpack.c.bf16 %v2681_v46, %v2680_v32  ;;  %v2626_v55 = vadd.f32 %v2602_v28, %v7350_v53  ;;  %v2505_v38 = vpop.f32.mrf.mxu2  ;;  %v6042_v53 = vld [vmem:[%s7791_s2 + $0x200] sm:$0xff]  ;;  %v5398_v32 = vld [vmem:[#allocation2 + $0x174] sm:$0xf0]  ;;  %v5206_v28 = vld [vmem:[#allocation2 + $0x18c] sm:$0xf0] }
 0x1c7   : > { %4178 = vmatpush.bf16.msra.mxu1 %v6042_v53  ;;  %v5975_v46 = vld [vmem:[#allocation2 + $0x184] sm:$0xf]  ;;  %v5401_v29 = vor.u32 %v5927_v2, %v5398_v32 }
 0x1c8   : > { %6212 = vst [vmem:[%s7490_s24 + $0x20] sm:$0xff] %v6137_v61   ;;  %v2606_v24 = vpop.f32.mrf.mxu0  ;;  %v2646_v42 = vmul.f32 %v7447_v57, %v2626_v55  ;;  %v5209_v55 = vor.u32 %v5975_v46, %v5206_v28 }
 0x1c9   : > { %v2554_v45 = vpop.f32.mrf.mxu3  ;;  %v7644_v36 = vpop.f32.mrf.mxu1 }
 0x1ca   : > { %v2555_v49 = vadd.f32 %v2554_v45, %v2505_v38  ;;  %v2666_v43 = vadd.f32 %v7463_v16, %v2646_v42 }
 0x1cb   : > { %3611 = vmatmul.bf16.gmra.mxu0 %v5385_v15  ;;  %3241 = vmatmul.bf16.gmra.mxu2 %v5197_v21 }
 0x1cc   : > { %v2604_v63 = vadd.f32 %v2603_v40, %v2555_v49  ;;  %3660 = vmatmul.bf16.gmra.mxu1 %v5389_v20  ;;  %v2682_v6 = vmax.f32 %v2666_v43, 0.0 }
 0x1ce   : > { %3290 = vmatmul.bf16.gmra.mxu3 %v5201_v22  ;;  %v2627_v5 = vadd.f32 %v2604_v63, %v7369_v1  ;;  %v2508_v12 = vpop.f32.mrf.mxu2  ;;  %v5928_v1 = vld [vmem:[#allocation2 + $0x170] sm:$0xf0]  ;;  %v5552_v63 = vld [vmem:[#allocation2 + $0xf0] sm:$0xf] }
 0x1cf   : > { %v5397_v25 = vor.u32 %v5928_v1, %v5396_v56 }
 0x1d0   : > { %v2647_v17 = vmul.f32 %v7447_v57, %v2627_v5  ;;  %v2608_v39 = vpop.f32.mrf.mxu0  ;;  %v6002_v5 = vld [vmem:[#allocation2 + $0xf4] sm:$0xf] }
 0x1d1   : > { %v2557_v4 = vpop.f32.mrf.mxu3  ;;  %v7651_v23 = vpop.f32.mrf.mxu1 }
 0x1d2   : > { %v2667_v11 = vadd.f32 %v7463_v16, %v2647_v17  ;;  %v2558_v37 = vadd.f32 %v2557_v4, %v2508_v12  ;;  %v6003_v17 = vld [vmem:[#allocation2 + $0xf8] sm:$0xf0]  ;;  %v5560_v4 = vld [vmem:[#allocation2 + $0xf8] sm:$0xf]  ;;  %v6004_v12 = vld [vmem:[#allocation2 + $0x100] sm:$0xf0] }
 0x1d3   : > { %v5553_v56 = vor.u32 %v6003_v17, %v5552_v63  ;;  %v5561_v1 = vor.u32 %v6004_v12, %v5560_v4 }
 0x1d4   : > { %v2683_v58 = vmax.f32 %v2667_v11, 0.0  ;;  %v2607_v60 = vadd.f32 %v2606_v24, %v2558_v37  ;;  %v5908_v11 = vld [vmem:[#allocation2 + $0xd0] sm:$0xf0] }
 0x1d6   : > { %v6142_v40 = vpack.c.bf16 %v2683_v58, %v2682_v6  ;;  %v2628_v33 = vadd.f32 %v2607_v60, %v7382_v59  ;;  %v2510_v61 = vpop.f32.mrf.mxu2 }
 0x1d8   : > { %6213 = vst [vmem:[%s7490_s24 + $0x28] sm:$0xff] %v6142_v40   ;;  %v2611_v51 = vpop.f32.mrf.mxu0  ;;  %v2648_v45 = vmul.f32 %v7447_v57, %v2628_v33 }
 0x1d9   : > { %v2559_v19 = vpop.f32.mrf.mxu3  ;;  %v7655_v47 = vpop.f32.mrf.mxu1 }
 0x1da   : > { %v2560_v48 = vadd.f32 %v2559_v19, %v2510_v61  ;;  %v2668_v59 = vadd.f32 %v7463_v16, %v2648_v45 }
 0x1db   : > { %3616 = vmatmul.bf16.gmra.mxu0 %v5397_v25  ;;  %3246 = vmatmul.bf16.gmra.mxu2 %v5209_v55 }
 0x1dc   : > { %v2609_v15 = vadd.f32 %v2608_v39, %v2560_v48  ;;  %3665 = vmatmul.bf16.gmra.mxu1 %v5401_v29  ;;  %v2684_v49 = vmax.f32 %v2668_v59, 0.0  ;;  %v5320_v39 = vld [vmem:[#allocation2 + $0xc8] sm:$0xf] }
 0x1dd   : > { %v5321_v2 = vor.u32 %v5908_v11, %v5320_v39 }
 0x1de   : > { %3295 = vmatmul.bf16.gmra.mxu3 %v5213_v41  ;;  %v2629_v9 = vadd.f32 %v2609_v15, %v7401_v7  ;;  %v2513_v24 = vpop.f32.mrf.mxu2  ;;  %v5554_v7 = vld [vmem:[#allocation2 + $0xfc] sm:$0xf0]  ;;  %v5564_v15 = vld [vmem:[#allocation2 + $0x108] sm:$0xf] }
 0x1df   : > { %v5557_v58 = vor.u32 %v6002_v5, %v5554_v7 }
 0x1e0   : > { %v2649_v31 = vmul.f32 %v7447_v57, %v2629_v9  ;;  %v2613_v22 = vpop.f32.mrf.mxu0  ;;  %v6005_v9 = vld [vmem:[#allocation2 + $0x10c] sm:$0xf] }
 0x1e1   : > { %v2562_v38 = vpop.f32.mrf.mxu3  ;;  %v7662_v53 = vpop.f32.mrf.mxu1 }
 0x1e2   : > { %v2669_v20 = vadd.f32 %v7463_v16, %v2649_v31  ;;  %v2563_v44 = vadd.f32 %v2562_v38, %v2513_v24  ;;  %v6006_v38 = vld [vmem:[#allocation2 + $0x110] sm:$0xf0]  ;;  %v5572_v24 = vld [vmem:[#allocation2 + $0x110] sm:$0xf] }
 0x1e4   : > { %v2685_v21 = vmax.f32 %v2669_v20, 0.0  ;;  %v2612_v42 = vadd.f32 %v2611_v51, %v2563_v44  ;;  %v5911_v20 = vld [vmem:[#allocation2 + $0xe8] sm:$0xf0] }
 0x1e6   : > { %v6147_v43 = vpack.c.bf16 %v2685_v21, %v2684_v49  ;;  %v2630_v37 = vadd.f32 %v2612_v42, %v7408_v0  ;;  %v2515_v60 = vpop.f32.mrf.mxu2  ;;  %v5565_v42 = vor.u32 %v6006_v38, %v5564_v15 }
 0x1e8   : > { %6214 = vst [vmem:[%s7490_s24 + $0x30] sm:$0xff] %v6147_v43   ;;  %v3582_v62 = vpop.f32.mrf.mxu0  ;;  %v2650_v32 = vmul.f32 %v7447_v57, %v2630_v37 }
 0x1e9   : > { %v2564_v6 = vpop.f32.mrf.mxu3  ;;  %v3631_v27 = vpop.f32.mrf.mxu1 }
 0x1ea   : > { %v2565_v40 = vadd.f32 %v2564_v6, %v2515_v60  ;;  %v2670_v0 = vadd.f32 %v7463_v16, %v2650_v32  ;;  %v5344_v32 = vld [vmem:[#allocation2 + $0xf8] sm:$0xf] }
 0x1eb   : > { %4130 = vmatmul.bf16.vlgmr.msra.gmra.mxu0 %v5557_v58  ;;  %3679 = vmatmul.bf16.vlgmr.msra.gmra.mxu2 %v5321_v2  ;;  %v6010_v2 = vld [vmem:[#allocation2 + $0x130] sm:$0xf0] }
 0x1ec   : > { %v2614_v46 = vadd.f32 %v2613_v22, %v2565_v40  ;;  %4179 = vmatmul.bf16.vlgmr.msra.gmra.mxu1 %v5561_v1  ;;  %v2686_v48 = vmax.f32 %v2670_v0, 0.0  ;;  %v5332_v22 = vld [vmem:[#allocation2 + $0xe0] sm:$0xf]  ;;  %v6009_v40 = vld [vmem:[#allocation2 + $0x128] sm:$0xf0] }
 0x1ed   : > { %v5333_v43 = vor.u32 %v5911_v20, %v5332_v22  ;;  %v6012_v20 = vld [vmem:[#allocation2 + $0x140] sm:$0xf0] }
 0x1ee   : > { %4081 = vmatmul.bf16.vlgmr.msra.gmra.mxu3 %v5553_v56  ;;  %v2631_v28 = vadd.f32 %v2614_v46, %v7435_v10  ;;  %v3212_v25 = vpop.f32.mrf.mxu2  ;;  %v5566_v10 = vld [vmem:[#allocation2 + $0x114] sm:$0xf0]  ;;  %v6008_v56 = vld [vmem:[#allocation2 + $0x124] sm:$0xf] }
 0x1ef   : > { %v3213_v41 = vadd.f32 %v3212_v25, %v7417_v30  ;;  %v5914_v46 = vld [vmem:[#allocation2 + $0x100] sm:$0xf0] }
 0x1f0   : > { %v2651_v33 = vmul.f32 %v7447_v57, %v2631_v28  ;;  %v3584_v61 = vpop.f32.mrf.mxu0  ;;  %v6007_v57 = vld [vmem:[#allocation2 + $0x118] sm:$0xf0] }
 0x1f1   : > { %v3261_v19 = vpop.f32.mrf.mxu3  ;;  %v3633_v29 = vpop.f32.mrf.mxu1  ;;  %v5573_v63 = vor.u32 %v6007_v57, %v5572_v24  ;;  %v5588_v24 = vld [vmem:[#allocation2 + $0x138] sm:$0xf]  ;;  %v6011_v57 = vld [vmem:[#allocation2 + $0x13c] sm:$0xf] }
 0x1f2   : > { %v2671_v51 = vadd.f32 %v7463_v16, %v2651_v33  ;;  %v3262_v45 = vadd.f32 %v3261_v19, %v3213_v41  ;;  %v5569_v16 = vor.u32 %v6005_v9, %v5566_v10 }
 0x1f4   : > { %v2687_v55 = vmax.f32 %v2671_v51, 0.0  ;;  %v3583_v31 = vadd.f32 %v3582_v62, %v3262_v45  ;;  %v5576_v62 = vld [vmem:[#allocation2 + $0x120] sm:$0xf] }
 0x1f6   : > { %v6152_v59 = vpack.c.bf16 %v2687_v55, %v2686_v48  ;;  %v7673_v49 = vadd.f32 %v3631_v27, %v3583_v31  ;;  %v3214_v30 = vpop.f32.mrf.mxu2  ;;  %v5584_v27 = vld [vmem:[#allocation2 + $0x128] sm:$0xf] }
 0x1f7   : > { %v3215_v5 = vadd.f32 %v3214_v30, %v7437_v26  ;;  %v5578_v26 = vld [vmem:[#allocation2 + $0x12c] sm:$0xf0]  ;;  %v5585_v51 = vor.u32 %v6010_v2, %v5584_v27  ;;  %v6014_v2 = vld [vmem:[#allocation2 + $0x154] sm:$0xf] }
 0x1f8   : > { %6215 = vst [vmem:[%s7490_s24 + $0x38] sm:$0xff] %v6152_v59   ;;  %v3587_v21 = vpop.f32.mrf.mxu0  ;;  %v5581_v0 = vor.u32 %v6008_v56, %v5578_v26  ;;  %v5356_v30 = vld [vmem:[#allocation2 + $0x110] sm:$0xf] }
 0x1f9   : > { %v3263_v44 = vpop.f32.mrf.mxu3  ;;  %v3636_v7 = vpop.f32.mrf.mxu1  ;;  %v5600_v27 = vld [vmem:[#allocation2 + $0x150] sm:$0xf] }
 0x1fa   : > { %v3264_v17 = vadd.f32 %v3263_v44, %v3215_v5  ;;  %v5596_v44 = vld [vmem:[#allocation2 + $0x140] sm:$0xf] }
 0x1fb   : > { %4135 = vmatmul.bf16.gmra.mxu0 %v5569_v16  ;;  %3684 = vmatmul.bf16.gmra.mxu2 %v5333_v43  ;;  %v6013_v16 = vld [vmem:[#allocation2 + $0x148] sm:$0xf0] }
 0x1fc   : > { %4184 = vmatmul.bf16.gmra.mxu1 %v5573_v63  ;;  %v3585_v4 = vadd.f32 %v3584_v61, %v3264_v17  ;;  %v5577_v61 = vor.u32 %v6009_v40, %v5576_v62  ;;  %v5589_v17 = vor.u32 %v6012_v20, %v5588_v24 }
 0x1fe   : > { %4086 = vmatmul.bf16.gmra.mxu3 %v5565_v42  ;;  %v7676_v39 = vadd.f32 %v3633_v29, %v3585_v4  ;;  %v3217_v11 = vpop.f32.mrf.mxu2  ;;  %v5345_v29 = vor.u32 %v5914_v46, %v5344_v32  ;;  %v5597_v4 = vor.u32 %v6013_v16, %v5596_v44  ;;  %v6015_v46 = vld [vmem:[#allocation2 + $0x158] sm:$0xf0]  ;;  %v5612_v44 = vld [vmem:[#allocation2 + $0x168] sm:$0xf]  ;;  %v6017_v16 = vld [vmem:[#allocation2 + $0x16c] sm:$0xf] }
 0x1ff   : > { %v3218_v6 = vadd.f32 %v3217_v11, %v7455_v35 }
 0x200   : > { %v3589_v37 = vpop.f32.mrf.mxu0 }
 0x201   : > { %v3266_v12 = vpop.f32.mrf.mxu3  ;;  %v3638_v58 = vpop.f32.mrf.mxu1 }
 0x202   : > { %v3267_v60 = vadd.f32 %v3266_v12, %v3218_v6 }
 0x204   : > { %v3588_v1 = vadd.f32 %v3587_v21, %v3267_v60  ;;  %v5917_v21 = vld [vmem:[#allocation2 + $0x118] sm:$0xf0] }
 0x205   : > { %v5357_v11 = vor.u32 %v5917_v21, %v5356_v30  ;;  %v6018_v21 = vld [vmem:[#allocation2 + $0x170] sm:$0xf0] }
 0x206   : > { %v7679_v33 = vadd.f32 %v3636_v7, %v3588_v1  ;;  %v3219_v19 = vpop.f32.mrf.mxu2 }
 0x207   : > { %v3220_v35 = vadd.f32 %v3219_v19, %v7483_v52  ;;  %v5590_v52 = vld [vmem:[#allocation2 + $0x144] sm:$0xf0] }
 0x208   : > { %v3592_v25 = vpop.f32.mrf.mxu0  ;;  %v5593_v63 = vor.u32 %v6011_v57, %v5590_v52  ;;  %v5368_v19 = vld [vmem:[#allocation2 + $0x128] sm:$0xf] }
 0x209   : > { %v3268_v28 = vpop.f32.mrf.mxu3  ;;  %v3641_v41 = vpop.f32.mrf.mxu1 }
 0x20a   : > { %v3269_v48 = vadd.f32 %v3268_v28, %v3220_v35  ;;  %v5608_v28 = vld [vmem:[#allocation2 + $0x158] sm:$0xf] }
 0x20b   : > { %4140 = vmatmul.bf16.gmra.mxu0 %v5581_v0  ;;  %3689 = vmatmul.bf16.gmra.mxu2 %v5345_v29  ;;  %v6016_v0 = vld [vmem:[#allocation2 + $0x160] sm:$0xf0] }
 0x20c   : > { %4189 = vmatmul.bf16.gmra.mxu1 %v5585_v51  ;;  %v3590_v55 = vadd.f32 %v3589_v37, %v3269_v48  ;;  %v5601_v48 = vor.u32 %v6015_v46, %v5600_v27 }
 0x20e   : > { %4091 = vmatmul.bf16.gmra.mxu3 %v5577_v61  ;;  %v7682_v15 = vadd.f32 %v3638_v58, %v3590_v55  ;;  %v3222_v9 = vpop.f32.mrf.mxu2  ;;  %v5609_v55 = vor.u32 %v6016_v0, %v5608_v28  ;;  %v5624_v28 = vld [vmem:[#allocation2 + $0x180] sm:$0xf]  ;;  %v6020_v0 = vld [vmem:[#allocation2 + $0x184] sm:$0xf] }
 0x20f   : > { %v3223_v59 = vadd.f32 %v3222_v9, %v7504_v13 }
 0x210   : > { %v3594_v10 = vpop.f32.mrf.mxu0 }
 0x211   : > { %v3271_v45 = vpop.f32.mrf.mxu3  ;;  %v3643_v31 = vpop.f32.mrf.mxu1 }
 0x212   : > { %v3272_v38 = vadd.f32 %v3271_v45, %v3223_v59 }
 0x214   : > { %v3593_v22 = vadd.f32 %v3592_v25, %v3272_v38  ;;  %v5920_v25 = vld [vmem:[#allocation2 + $0x130] sm:$0xf0] }
 0x215   : > { %v5369_v9 = vor.u32 %v5920_v25, %v5368_v19  ;;  %v6021_v25 = vld [vmem:[#allocation2 + $0x188] sm:$0xf0] }
 0x216   : > { %v7685_v5 = vadd.f32 %v3641_v41, %v3593_v22  ;;  %v3224_v7 = vpop.f32.mrf.mxu2 }
 0x217   : > { %v3225_v13 = vadd.f32 %v3224_v7, %v7527_v8  ;;  %v5602_v8 = vld [vmem:[#allocation2 + $0x15c] sm:$0xf0] }
 0x218   : > { %v3597_v43 = vpop.f32.mrf.mxu0  ;;  %v5605_v51 = vor.u32 %v6014_v2, %v5602_v8  ;;  %v5380_v7 = vld [vmem:[#allocation2 + $0x140] sm:$0xf] }
 0x219   : > { %v3273_v42 = vpop.f32.mrf.mxu3  ;;  %v3646_v12 = vpop.f32.mrf.mxu1 }
 0x21a   : > { %v3274_v37 = vadd.f32 %v3273_v42, %v3225_v13  ;;  %v5620_v42 = vld [vmem:[#allocation2 + $0x170] sm:$0xf] }
 0x21b   : > { %4145 = vmatmul.bf16.gmra.mxu0 %v5593_v63  ;;  %3694 = vmatmul.bf16.gmra.mxu2 %v5357_v11  ;;  %v6019_v63 = vld [vmem:[#allocation2 + $0x178] sm:$0xf0] }
 0x21c   : > { %4194 = vmatmul.bf16.gmra.mxu1 %v5597_v4  ;;  %v3595_v6 = vadd.f32 %v3594_v10, %v3274_v37  ;;  %v5613_v37 = vor.u32 %v6018_v21, %v5612_v44 }
 0x21e   : > { %4096 = vmatmul.bf16.gmra.mxu3 %v5589_v17  ;;  %v7688_v60 = vadd.f32 %v3643_v31, %v3595_v6  ;;  %v3227_v62 = vpop.f32.mrf.mxu2  ;;  %v5621_v6 = vor.u32 %v6019_v63, %v5620_v42  ;;  %v5636_v42 = vld [vmem:[#allocation2 + $0x198] sm:$0xf]  ;;  %v6023_v63 = vld [vmem:[#allocation2 + $0x19c] sm:$0xf] }
 0x21f   : > { %v3228_v26 = vadd.f32 %v3227_v62, %v7541_v18 }
 0x220   : > { %v3599_v56 = vpop.f32.mrf.mxu0 }
 0x221   : > { %v3276_v58 = vpop.f32.mrf.mxu3  ;;  %v3648_v1 = vpop.f32.mrf.mxu1 }
 0x222   : > { %v3277_v40 = vadd.f32 %v3276_v58, %v3228_v26 }
 0x224   : > { %v3598_v32 = vadd.f32 %v3597_v43, %v3277_v40  ;;  %v5923_v43 = vld [vmem:[#allocation2 + $0x148] sm:$0xf0] }
 0x225   : > { %v5381_v62 = vor.u32 %v5923_v43, %v5380_v7  ;;  %v6024_v43 = vld [vmem:[#allocation2 + $0x1a0] sm:$0xf0] }
 0x226   : > { %v7691_v35 = vadd.f32 %v3646_v12, %v3598_v32  ;;  %v3229_v41 = vpop.f32.mrf.mxu2 }
 0x227   : > { %v3230_v18 = vadd.f32 %v3229_v41, %v7564_v50  ;;  %v5614_v50 = vld [vmem:[#allocation2 + $0x174] sm:$0xf0] }
 0x228   : > { %v3602_v29 = vpop.f32.mrf.mxu0  ;;  %v5617_v4 = vor.u32 %v6017_v16, %v5614_v50  ;;  %v5392_v41 = vld [vmem:[#allocation2 + $0x158] sm:$0xf] }
 0x229   : > { %v3278_v61 = vpop.f32.mrf.mxu3  ;;  %v3651_v45 = vpop.f32.mrf.mxu1 }
 0x22a   : > { %v3279_v10 = vadd.f32 %v3278_v61, %v3230_v18  ;;  %v5632_v61 = vld [vmem:[#allocation2 + $0x188] sm:$0xf] }
 0x22b   : > { %4150 = vmatmul.bf16.gmra.mxu0 %v5605_v51  ;;  %3699 = vmatmul.bf16.gmra.mxu2 %v5369_v9  ;;  %v6022_v51 = vld [vmem:[#allocation2 + $0x190] sm:$0xf0] }
 0x22c   : > { %4199 = vmatmul.bf16.gmra.mxu1 %v5609_v55  ;;  %v3600_v59 = vadd.f32 %v3599_v56, %v3279_v10  ;;  %v5625_v10 = vor.u32 %v6021_v25, %v5624_v28 }
 0x22e   : > { %4101 = vmatmul.bf16.gmra.mxu3 %v5601_v48  ;;  %v7694_v38 = vadd.f32 %v3648_v1, %v3600_v59  ;;  %v3232_v24 = vpop.f32.mrf.mxu2  ;;  %v5633_v59 = vor.u32 %v6022_v51, %v5632_v61 }
 0x22f   : > { %v3233_v52 = vadd.f32 %v3232_v24, %v7578_v34 }
 0x230   : > { %v3604_v57 = vpop.f32.mrf.mxu0 }
 0x231   : > { %v3281_v31 = vpop.f32.mrf.mxu3  ;;  %v3653_v22 = vpop.f32.mrf.mxu1 }
 0x232   : > { %v3282_v20 = vadd.f32 %v3281_v31, %v3233_v52 }
 0x234   : > { %v3603_v30 = vadd.f32 %v3602_v29, %v3282_v20  ;;  %v5926_v29 = vld [vmem:[#allocation2 + $0x160] sm:$0xf0] }
 0x235   : > { %v5393_v24 = vor.u32 %v5926_v29, %v5392_v41 }
 0x236   : > { %v7697_v13 = vadd.f32 %v3651_v45, %v3603_v30  ;;  %v3234_v12 = vpop.f32.mrf.mxu2 }
 0x237   : > { %v3235_v34 = vadd.f32 %v3234_v12, %v7601_v54  ;;  %v5626_v54 = vld [vmem:[#allocation2 + $0x18c] sm:$0xf0] }
 0x238   : > { %v3607_v11 = vpop.f32.mrf.mxu0  ;;  %v5629_v55 = vor.u32 %v6020_v0, %v5626_v54  ;;  %v5404_v12 = vld [vmem:[#allocation2 + $0x170] sm:$0xf] }
 0x239   : > { %v3283_v17 = vpop.f32.mrf.mxu3  ;;  %v3656_v58 = vpop.f32.mrf.mxu1 }
 0x23a   : > { %v3284_v56 = vadd.f32 %v3283_v17, %v3235_v34  ;;  %v5644_v17 = vld [vmem:[#allocation2 + $0x1a0] sm:$0xf] }
 0x23b   : > { %4155 = vmatmul.bf16.gmra.mxu0 %v5617_v4  ;;  %3704 = vmatmul.bf16.gmra.mxu2 %v5381_v62  ;;  %v6025_v4 = vld [vmem:[#allocation2 + $0x1a8] sm:$0xf0] }
 0x23c   : > { %4204 = vmatmul.bf16.gmra.mxu1 %v5621_v6  ;;  %v3605_v26 = vadd.f32 %v3604_v57, %v3284_v56  ;;  %v5637_v56 = vor.u32 %v6024_v43, %v5636_v42 }
 0x23e   : > { %4106 = vmatmul.bf16.gmra.mxu3 %v5613_v37  ;;  %v7700_v40 = vadd.f32 %v3653_v22, %v3605_v26  ;;  %v3237_v27 = vpop.f32.mrf.mxu2  ;;  %v5645_v26 = vor.u32 %v6025_v4, %v5644_v17 }
 0x23f   : > { %v3238_v8 = vadd.f32 %v3237_v27, %v7615_v3 }
 0x240   : > { %v3609_v2 = vpop.f32.mrf.mxu0 }
 0x241   : > { %v3286_v1 = vpop.f32.mrf.mxu3  ;;  %v3658_v32 = vpop.f32.mrf.mxu1 }
 0x242   : > { %v3287_v46 = vadd.f32 %v3286_v1, %v3238_v8 }
 0x244   : > { %v3608_v19 = vadd.f32 %v3607_v11, %v3287_v46  ;;  %v5929_v11 = vld [vmem:[#allocation2 + $0x178] sm:$0xf0] }
 0x245   : > { %v5405_v27 = vor.u32 %v5929_v11, %v5404_v12 }
 0x246   : > { %v7703_v18 = vadd.f32 %v3656_v58, %v3608_v19  ;;  %v3239_v45 = vpop.f32.mrf.mxu2 }
 0x247   : > { %v3240_v3 = vadd.f32 %v3239_v45, %v7628_v14  ;;  %v5638_v14 = vld [vmem:[#allocation2 + $0x1a4] sm:$0xf0] }
 0x248   : > { %v3612_v9 = vpop.f32.mrf.mxu0  ;;  %v5641_v6 = vor.u32 %v6023_v63, %v5638_v14  ;;  %v7730_v63 = vld [vmem:[%s7793_s4] ss:$0 sm:$0xff] }
 0x249   : > { %v3288_v48 = vpop.f32.mrf.mxu3  ;;  %v3661_v31 = vpop.f32.mrf.mxu1 }
 0x24a   : > { %v3289_v57 = vadd.f32 %v3288_v48, %v3240_v3 }
 0x24b   : > { %4160 = vmatmul.bf16.gmra.mxu0 %v5629_v55  ;;  %3709 = vmatmul.bf16.gmra.mxu2 %v5393_v24 }
 0x24c   : > { %4209 = vmatmul.bf16.gmra.mxu1 %v5633_v59  ;;  %v3610_v52 = vadd.f32 %v3609_v2, %v3289_v57 }
 0x24e   : > { %4111 = vmatmul.bf16.gmra.mxu3 %v5625_v10  ;;  %v7706_v20 = vadd.f32 %v3658_v32, %v3610_v52  ;;  %v3242_v44 = vpop.f32.mrf.mxu2 }
 0x24f   : > { %v3243_v50 = vadd.f32 %v3242_v44, %v7644_v36  ;;  %v7724_v44 = vld [vmem:[%s7792_s3] ss:$0 sm:$0xff] }
 0x250   : > { %v3614_v16 = vpop.f32.mrf.mxu0 }
 0x251   : > { %v3291_v22 = vpop.f32.mrf.mxu3  ;;  %v3663_v30 = vpop.f32.mrf.mxu1 }
 0x252   : > { %v3292_v21 = vadd.f32 %v3291_v22, %v3243_v50 }
 0x254   : > { %v3613_v7 = vadd.f32 %v3612_v9, %v3292_v21 }
 0x256   : > { %v7709_v34 = vadd.f32 %v3661_v31, %v3613_v7  ;;  %v3244_v58 = vpop.f32.mrf.mxu2 }
 0x257   : > { %v3245_v36 = vadd.f32 %v3244_v58, %v7651_v23 }
 0x258   : > { %v3617_v62 = vpop.f32.mrf.mxu0 }
 0x259   : > { %v3293_v37 = vpop.f32.mrf.mxu3  ;;  %v3666_v1 = vpop.f32.mrf.mxu1 }
 0x25a   : > { %v3294_v2 = vadd.f32 %v3293_v37, %v3245_v36 }
 0x25b   : > { %4165 = vmatmul.bf16.gmra.mxu0 %v5641_v6  ;;  %3714 = vmatmul.bf16.gmra.mxu2 %v5405_v27 }
 0x25c   : > { %4214 = vmatmul.bf16.gmra.mxu1 %v5645_v26  ;;  %v3615_v8 = vadd.f32 %v3614_v16, %v3294_v2 }
 0x25e   : > { %4116 = vmatmul.bf16.gmra.mxu3 %v5637_v56  ;;  %v7712_v46 = vadd.f32 %v3663_v30, %v3615_v8  ;;  %v3247_v28 = vpop.f32.mrf.mxu2 }
 0x25f   : > { %v3248_v54 = vadd.f32 %v3247_v28, %v7655_v47 }
 0x260   : > { %v3619_v0 = vpop.f32.mrf.mxu0 }
 0x261   : > { %v3296_v32 = vpop.f32.mrf.mxu3  ;;  %v3668_v19 = vpop.f32.mrf.mxu1 }
 0x262   : > { %v3297_v25 = vadd.f32 %v3296_v32, %v3248_v54 }
 0x264   : > { %v3618_v61 = vadd.f32 %v3617_v62, %v3297_v25 }
 0x266   : > { %v7715_v23 = vadd.f32 %v3666_v1, %v3618_v61  ;;  %v3249_v41 = vpop.f32.mrf.mxu2 }
 0x267   : > { %v3250_v48 = vadd.f32 %v3249_v41, %v7662_v53 }
 0x268   : > { %v4131_v29 = vpop.f32.mrf.mxu0 }
 0x269   : > { %v3298_v51 = vpop.f32.mrf.mxu3  ;;  %v4180_v55 = vpop.f32.mrf.mxu1 }
 0x26a   : > { %v3299_v45 = vadd.f32 %v3298_v51, %v3250_v48 }
 0x26c   : > { %v3620_v9 = vadd.f32 %v3619_v0, %v3299_v45 }
 0x26e   : > { %v7718_v59 = vadd.f32 %v3668_v19, %v3620_v9  ;;  %v3680_v3 = vpop.f32.mrf.mxu2 }
 0x26f   : > { %v3681_v52 = vadd.f32 %v3680_v3, %v7673_v49 }
 0x270   : > { %v4133_v24 = vpop.f32.mrf.mxu0 }
 0x271   : > { %v4082_v10 = vpop.f32.mrf.mxu3  ;;  %v4182_v47 = vpop.f32.mrf.mxu1 }
 0x272   : > { %v4132_v31 = vadd.f32 %v4131_v29, %v4082_v10 }
 0x274   : > { %v4181_v57 = vadd.f32 %v4180_v55, %v4132_v31 }
 0x276   : > { %v4220_v22 = vadd.f32 %v4181_v57, %v3681_v52  ;;  %v3682_v16 = vpop.f32.mrf.mxu2 }
 0x277   : > { %v3683_v49 = vadd.f32 %v3682_v16, %v7676_v39 }
 0x278   : > { %v4136_v30 = vpop.f32.mrf.mxu0  ;;  %v4240_v42 = vmul.f32 %v7724_v44, %v4220_v22 }
 0x279   : > { %v4084_v53 = vpop.f32.mrf.mxu3  ;;  %v4185_v21 = vpop.f32.mrf.mxu1 }
 0x27a   : > { %v4134_v50 = vadd.f32 %v4133_v24, %v4084_v53  ;;  %v4260_v43 = vadd.f32 %v7730_v63, %v4240_v42 }
 0x27c   : > { %v4183_v14 = vadd.f32 %v4182_v47, %v4134_v50  ;;  %v4276_v62 = vmax.f32 %v4260_v43, 0.0 }
 0x27e   : > { %v4221_v7 = vadd.f32 %v4183_v14, %v3683_v49  ;;  %v3685_v11 = vpop.f32.mrf.mxu2 }
 0x27f   : > { %v3686_v39 = vadd.f32 %v3685_v11, %v7679_v33 }
 0x280   : > { %v4241_v17 = vmul.f32 %v7724_v44, %v4221_v7  ;;  %v4138_v6 = vpop.f32.mrf.mxu0 }
 0x281   : > { %v4087_v4 = vpop.f32.mrf.mxu3  ;;  %v4187_v58 = vpop.f32.mrf.mxu1 }
 0x282   : > { %v4261_v12 = vadd.f32 %v7730_v63, %v4241_v17  ;;  %v4137_v37 = vadd.f32 %v4136_v30, %v4087_v4 }
 0x284   : > { %v4277_v56 = vmax.f32 %v4261_v12, 0.0  ;;  %v4186_v26 = vadd.f32 %v4185_v21, %v4137_v37 }
 0x286   : > { %v6157_v36 = vpack.c.bf16 %v4277_v56, %v4276_v62  ;;  %v4222_v1 = vadd.f32 %v4186_v26, %v3686_v39  ;;  %v3687_v2 = vpop.f32.mrf.mxu2 }
 0x287   : > { %v3688_v54 = vadd.f32 %v3687_v2, %v7682_v15 }
 0x288   : > { %6216 = vst [vmem:[%s7490_s24 + $0x40] sm:$0xff] %v6157_v36   ;;  %v4141_v32 = vpop.f32.mrf.mxu0  ;;  %v4242_v0 = vmul.f32 %v7724_v44, %v4222_v1 }
 0x289   : > { %v4089_v27 = vpop.f32.mrf.mxu3  ;;  %v4190_v28 = vpop.f32.mrf.mxu1 }
 0x28a   : > { %v4139_v8 = vadd.f32 %v4138_v6, %v4089_v27  ;;  %v4262_v61 = vadd.f32 %v7730_v63, %v4242_v0 }
 0x28c   : > { %v4188_v19 = vadd.f32 %v4187_v58, %v4139_v8  ;;  %v4278_v9 = vmax.f32 %v4262_v61, 0.0 }
 0x28e   : > { %v4223_v25 = vadd.f32 %v4188_v19, %v3688_v54  ;;  %v3690_v29 = vpop.f32.mrf.mxu2 }
 0x28f   : > { %v3691_v15 = vadd.f32 %v3690_v29, %v7685_v5 }
 0x290   : > { %v4243_v51 = vmul.f32 %v7724_v44, %v4223_v25  ;;  %v4143_v55 = vpop.f32.mrf.mxu0 }
 0x291   : > { %v4092_v41 = vpop.f32.mrf.mxu3  ;;  %v4192_v45 = vpop.f32.mrf.mxu1 }
 0x292   : > { %v4263_v33 = vadd.f32 %v7730_v63, %v4243_v51  ;;  %v4142_v48 = vadd.f32 %v4141_v32, %v4092_v41 }
 0x294   : > { %v4279_v10 = vmax.f32 %v4263_v33, 0.0  ;;  %v4191_v3 = vadd.f32 %v4190_v28, %v4142_v48 }
 0x296   : > { %v6162_v31 = vpack.c.bf16 %v4279_v10, %v4278_v9  ;;  %v4224_v24 = vadd.f32 %v4191_v3, %v3691_v15  ;;  %v3692_v57 = vpop.f32.mrf.mxu2 }
 0x297   : > { %v3693_v50 = vadd.f32 %v3692_v57, %v7688_v60 }
 0x298   : > { %6217 = vst [vmem:[%s7490_s24 + $0x48] sm:$0xff] %v6162_v31   ;;  %v4146_v22 = vpop.f32.mrf.mxu0  ;;  %v4244_v16 = vmul.f32 %v7724_v44, %v4224_v24 }
 0x299   : > { %v4094_v47 = vpop.f32.mrf.mxu3  ;;  %v4195_v53 = vpop.f32.mrf.mxu1 }
 0x29a   : > { %v4144_v52 = vadd.f32 %v4143_v55, %v4094_v47  ;;  %v4264_v42 = vadd.f32 %v7730_v63, %v4244_v16 }
 0x29c   : > { %v4193_v30 = vadd.f32 %v4192_v45, %v4144_v52  ;;  %v4280_v12 = vmax.f32 %v4264_v42, 0.0 }
 0x29e   : > { %v4225_v21 = vadd.f32 %v4193_v30, %v3693_v50  ;;  %v3695_v7 = vpop.f32.mrf.mxu2 }
 0x29f   : > { %v3696_v60 = vadd.f32 %v3695_v7, %v7691_v35 }
 0x2a0   : > { %v4245_v49 = vmul.f32 %v7724_v44, %v4225_v21  ;;  %v4148_v17 = vpop.f32.mrf.mxu0 }
 0x2a1   : > { %v4097_v14 = vpop.f32.mrf.mxu3  ;;  %v4197_v4 = vpop.f32.mrf.mxu1 }
 0x2a2   : > { %v4265_v5 = vadd.f32 %v7730_v63, %v4245_v49  ;;  %v4147_v43 = vadd.f32 %v4146_v22, %v4097_v14 }
 0x2a4   : > { %v4281_v11 = vmax.f32 %v4265_v5, 0.0  ;;  %v4196_v37 = vadd.f32 %v4195_v53, %v4147_v43 }
 0x2a6   : > { %v6167_v6 = vpack.c.bf16 %v4281_v11, %v4280_v12  ;;  %v4226_v58 = vadd.f32 %v4196_v37, %v3696_v60  ;;  %v3697_v56 = vpop.f32.mrf.mxu2 }
 0x2a7   : > { %v3698_v27 = vadd.f32 %v3697_v56, %v7694_v38 }
 0x2a8   : > { %6218 = vst [vmem:[%s7490_s24 + $0x50] sm:$0xff] %v6167_v6   ;;  %v4151_v36 = vpop.f32.mrf.mxu0  ;;  %v4246_v1 = vmul.f32 %v7724_v44, %v4226_v58 }
 0x2a9   : > { %v4099_v62 = vpop.f32.mrf.mxu3  ;;  %v4200_v39 = vpop.f32.mrf.mxu1 }
 0x2aa   : > { %v4149_v26 = vadd.f32 %v4148_v17, %v4099_v62  ;;  %v4266_v32 = vadd.f32 %v7730_v63, %v4246_v1 }
 0x2ac   : > { %v4198_v2 = vadd.f32 %v4197_v4, %v4149_v26  ;;  %v4282_v51 = vmax.f32 %v4266_v32, 0.0 }
 0x2ae   : > { %v4227_v8 = vadd.f32 %v4198_v2, %v3698_v27  ;;  %v3700_v54 = vpop.f32.mrf.mxu2 }
 0x2af   : > { %v3701_v38 = vadd.f32 %v3700_v54, %v7697_v13 }
 0x2b0   : > { %v4247_v28 = vmul.f32 %v7724_v44, %v4227_v8  ;;  %v4153_v25 = vpop.f32.mrf.mxu0 }
 0x2b1   : > { %v4102_v0 = vpop.f32.mrf.mxu3  ;;  %v4202_v61 = vpop.f32.mrf.mxu1 }
 0x2b2   : > { %v4267_v35 = vadd.f32 %v7730_v63, %v4247_v28  ;;  %v4152_v19 = vadd.f32 %v4151_v36, %v4102_v0 }
 0x2b4   : > { %v4283_v41 = vmax.f32 %v4267_v35, 0.0  ;;  %v4201_v33 = vadd.f32 %v4200_v39, %v4152_v19 }
 0x2b6   : > { %v6172_v29 = vpack.c.bf16 %v4283_v41, %v4282_v51  ;;  %v4228_v48 = vadd.f32 %v4201_v33, %v3701_v38  ;;  %v3702_v45 = vpop.f32.mrf.mxu2 }
 0x2b7   : > { %v3703_v15 = vadd.f32 %v3702_v45, %v7700_v40 }
 0x2b8   : > { %6219 = vst [vmem:[%s7490_s24 + $0x58] sm:$0xff] %v6172_v29   ;;  %v4156_v10 = vpop.f32.mrf.mxu0  ;;  %v4248_v31 = vmul.f32 %v7724_v44, %v4228_v48 }
 0x2b9   : > { %v4104_v55 = vpop.f32.mrf.mxu3  ;;  %v4205_v3 = vpop.f32.mrf.mxu1 }
 0x2ba   : > { %v4154_v9 = vadd.f32 %v4153_v25, %v4104_v55  ;;  %v4268_v57 = vadd.f32 %v7730_v63, %v4248_v31 }
 0x2bc   : > { %v4203_v24 = vadd.f32 %v4202_v61, %v4154_v9  ;;  %v4284_v21 = vmax.f32 %v4268_v57, 0.0 }
 0x2be   : > { %v4229_v47 = vadd.f32 %v4203_v24, %v3703_v15  ;;  %v3705_v53 = vpop.f32.mrf.mxu2 }
 0x2bf   : > { %v3706_v40 = vadd.f32 %v3705_v53, %v7703_v18 }
 0x2c0   : > { %v4249_v52 = vmul.f32 %v7724_v44, %v4229_v47  ;;  %v4158_v50 = vpop.f32.mrf.mxu0 }
 0x2c1   : > { %v4107_v22 = vpop.f32.mrf.mxu3  ;;  %v4207_v30 = vpop.f32.mrf.mxu1 }
 0x2c2   : > { %v4269_v13 = vadd.f32 %v7730_v63, %v4249_v52  ;;  %v4157_v16 = vadd.f32 %v4156_v10, %v4107_v22 }
 0x2c4   : > { %v4285_v42 = vmax.f32 %v4269_v13, 0.0  ;;  %v4206_v49 = vadd.f32 %v4205_v3, %v4157_v16 }
 0x2c6   : > { %v6177_v14 = vpack.c.bf16 %v4285_v42, %v4284_v21  ;;  %v4230_v5 = vadd.f32 %v4206_v49, %v3706_v40  ;;  %v3707_v43 = vpop.f32.mrf.mxu2 }
 0x2c7   : > { %v3708_v11 = vadd.f32 %v3707_v43, %v7706_v20 }
 0x2c8   : > { %6220 = vst [vmem:[%s7490_s24 + $0x60] sm:$0xff] %v6177_v14   ;;  %v4161_v4 = vpop.f32.mrf.mxu0  ;;  %v4250_v12 = vmul.f32 %v7724_v44, %v4230_v5 }
 0x2c9   : > { %v4109_v7 = vpop.f32.mrf.mxu3  ;;  %v4210_v6 = vpop.f32.mrf.mxu1 }
 0x2ca   : > { %v4159_v17 = vadd.f32 %v4158_v50, %v4109_v7  ;;  %v4270_v58 = vadd.f32 %v7730_v63, %v4250_v12 }
 0x2cc   : > { %v4208_v37 = vadd.f32 %v4207_v30, %v4159_v17  ;;  %v4286_v39 = vmax.f32 %v4270_v58, 0.0 }
 0x2ce   : > { %v4231_v60 = vadd.f32 %v4208_v37, %v3708_v11  ;;  %v3710_v26 = vpop.f32.mrf.mxu2 }
 0x2cf   : > { %v3711_v20 = vadd.f32 %v3710_v26, %v7709_v34 }
 0x2d0   : > { %v4251_v62 = vmul.f32 %v7724_v44, %v4231_v60  ;;  %v4163_v2 = vpop.f32.mrf.mxu0 }
 0x2d1   : > { %v4112_v56 = vpop.f32.mrf.mxu3  ;;  %v4212_v32 = vpop.f32.mrf.mxu1 }
 0x2d2   : > { %v4271_v18 = vadd.f32 %v7730_v63, %v4251_v62  ;;  %v4162_v36 = vadd.f32 %v4161_v4, %v4112_v56 }
 0x2d4   : > { %v4287_v1 = vmax.f32 %v4271_v18, 0.0  ;;  %v4211_v27 = vadd.f32 %v4210_v6, %v4162_v36 }
 0x2d6   : > { %v6182_v8 = vpack.c.bf16 %v4287_v1, %v4286_v39  ;;  %v4232_v28 = vadd.f32 %v4211_v27, %v3711_v20  ;;  %v3712_v35 = vpop.f32.mrf.mxu2 }
 0x2d7   : > { %v3713_v25 = vadd.f32 %v3712_v35, %v7712_v46 }
 0x2d8   : > { %6221 = vst [vmem:[%s7490_s24 + $0x68] sm:$0xff] %v6182_v8   ;;  %v4252_v19 = vmul.f32 %v7724_v44, %v4232_v28  ;;  %v4166_v41 = vpop.f32.mrf.mxu0 }
 0x2d9   : > { %v4114_v0 = vpop.f32.mrf.mxu3  ;;  %v4215_v38 = vpop.f32.mrf.mxu1 }
 0x2da   : > { %v4164_v54 = vadd.f32 %v4163_v2, %v4114_v0  ;;  %v4272_v33 = vadd.f32 %v7730_v63, %v4252_v19 }
 0x2dc   : > { %v4213_v61 = vadd.f32 %v4212_v32, %v4164_v54  ;;  %v4288_v9 = vmax.f32 %v4272_v33, 0.0 }
 0x2de   : > { %v4233_v51 = vadd.f32 %v4213_v61, %v3713_v25  ;;  %v3715_v55 = vpop.f32.mrf.mxu2 }
 0x2df   : > { %v3716_v46 = vadd.f32 %v3715_v55, %v7715_v23 }
 0x2e0   : > { %v4253_v29 = vmul.f32 %v7724_v44, %v4233_v51  ;;  %v4168_v24 = vpop.f32.mrf.mxu0 }
 0x2e1   : > { %v4117_v34 = vpop.f32.mrf.mxu3  ;;  %v4217_v22 = vpop.f32.mrf.mxu1 }
 0x2e2   : > { %v4273_v48 = vadd.f32 %v7730_v63, %v4253_v29  ;;  %v4167_v45 = vadd.f32 %v4166_v41, %v4117_v34 }
 0x2e4   : > { %v4289_v10 = vmax.f32 %v4273_v48, 0.0  ;;  %v4216_v3 = vadd.f32 %v4215_v38, %v4167_v45 }
 0x2e6   : > { %v6187_v31 = vpack.c.bf16 %v4289_v10, %v4288_v9  ;;  %v4234_v15 = vadd.f32 %v4216_v3, %v3716_v46  ;;  %v3717_v57 = vpop.f32.mrf.mxu2 }
 0x2e7   : > { %v3718_v53 = vadd.f32 %v3717_v57, %v7718_v59 }
 0x2e8   : > { %6222 = vst [vmem:[%s7490_s24 + $0x70] sm:$0xff] %v6187_v31   ;;  %v4254_v13 = vmul.f32 %v7724_v44, %v4234_v15 }
 0x2e9   : > { %v4119_v47 = vpop.f32.mrf.mxu3 }
 0x2ea   : > { %v4169_v52 = vadd.f32 %v4168_v24, %v4119_v47  ;;  %v4274_v30 = vadd.f32 %v7730_v63, %v4254_v13 }
 0x2ec   : > { %v4218_v16 = vadd.f32 %v4217_v22, %v4169_v52  ;;  %v4290_v42 = vmax.f32 %v4274_v30, 0.0 }
 0x2ee   : > { %v4235_v50 = vadd.f32 %v4218_v16, %v3718_v53 }
 0x2f0   : > { %v4255_v21 = vmul.f32 %v7724_v44, %v4235_v50 }
 0x2f2   : > { %v4275_v23 = vadd.f32 %v7730_v63, %v4255_v21 }
 0x2f4   : > { %v4291_v49 = vmax.f32 %v4275_v23, 0.0 }
 0x2f6   : > { %v6192_v14 = vpack.c.bf16 %v4291_v49, %v4290_v42 }
 0x2f8   : > { %6223 = vst [vmem:[%s7490_s24 + $0x78] sm:$0xff] %v6192_v14  }
 0x2f9 PF: > { %s15_s18 = sadd.s32 1, %s6259_s18  }
 0x2fa   : > { %p12_p4 = scmp.ge.s32.totalorder %s15_s18, 4  }
 0x2fc   :  { %14 = sbr.rel (!%p12_p4) target bundleno = 1 (0x1), region = 82 }

</bundles_post_ra>
